<compile_context>
chip_gen: v7x
topology: tpu7x:2x2x1
jax: 0.10.0
libtpu: 0.0.40
codegen_flags: <defaults>
</compile_context>

<pallas_src>
import math

import jax
import jax.numpy as jnp
from jax.experimental import pallas as pl
from jax.experimental.pallas import tpu as pltpu

_EPS = 1e-5
_VMEM_LIMIT = 32 * 1024 * 1024  # explicit scoped-VMEM budget (safe on v5e/v6e/v7x)


def _pick_tn(nc):
    """Largest lane-dense (multiple of 128) column tile dividing nc, preferring >=2 grid steps."""
    for t in (256, 128):
        if nc % t == 0 and nc > t:
            return t
    for t in (256, 128):
        if nc % t == 0:
            return t
    return nc  # small tail (e.g. 16*channels for the last layer)


# ----------------------------- Pallas kernels ------------------------------

def _matmul_kernel(a_ref, b_ref, o_ref):
    # a: (M, K) f32 -> bf16, b: (K, tn) bf16, accumulate f32 on the MXU.
    o_ref[...] = jnp.dot(a_ref[...].astype(jnp.bfloat16), b_ref[...],
                         preferred_element_type=jnp.float32)


def pallas_matmul(a, b):
    """(M, K) f32 @ (K, Nc) bf16 -> (M, Nc) f32, tiled over lane-dense Nc."""
    M, K = a.shape
    _, Nc = b.shape
    tn = _pick_tn(Nc)
    return pl.pallas_call(
        _matmul_kernel,
        out_shape=jax.ShapeDtypeStruct((M, Nc), jnp.float32),
        grid=(Nc // tn,),
        in_specs=[pl.BlockSpec((M, K), lambda j: (0, 0)),
                  pl.BlockSpec((K, tn), lambda j: (0, j))],
        out_specs=pl.BlockSpec((M, tn), lambda j: (0, j)),
        compiler_params=pltpu.CompilerParams(
            dimension_semantics=("parallel",),
            vmem_limit_bytes=_VMEM_LIMIT),
    )(a, b)


def _bn_relu_matmul_kernel(x_ref, g_ref, b_ref, w_ref, o_ref):
    # Fused: BatchNorm (batch stats over the full M block) + ReLU + MXU matmul.
    x = x_ref[...]                                            # (M, Cin) f32
    mean = jnp.mean(x, axis=0, keepdims=True)
    var = jnp.mean(jnp.square(x - mean), axis=0, keepdims=True)
    xn = (x - mean) * jax.lax.rsqrt(var + _EPS) * g_ref[...] + b_ref[...]
    xn = jnp.maximum(xn, 0.0).astype(jnp.bfloat16)            # ReLU -> bf16 for MXU
    o_ref[...] = jnp.dot(xn, w_ref[...], preferred_element_type=jnp.float32)


def pallas_bn_relu_matmul(x, gamma, beta, w):
    """BN(x)+ReLU then @ w.  x:(M,Cin) f32, w:(Cin, 16*Cout) bf16 -> (M, 16*Cout) f32."""
    M, Cin = x.shape
    _, Nc = w.shape
    tn = _pick_tn(Nc)
    return pl.pallas_call(
        _bn_relu_matmul_kernel,
        out_shape=jax.ShapeDtypeStruct((M, Nc), jnp.float32),
        grid=(Nc // tn,),
        in_specs=[pl.BlockSpec((M, Cin), lambda j: (0, 0)),
                  pl.BlockSpec((1, Cin), lambda j: (0, 0)),
                  pl.BlockSpec((1, Cin), lambda j: (0, 0)),
                  pl.BlockSpec((Cin, tn), lambda j: (0, j))],
        out_specs=pl.BlockSpec((M, tn), lambda j: (0, j)),
        compiler_params=pltpu.CompilerParams(
            dimension_semantics=("parallel",),
            vmem_limit_bytes=_VMEM_LIMIT),
    )(x, gamma, beta, w)


def _tanh_kernel(x_ref, o_ref):
    o_ref[...] = jnp.tanh(x_ref[...])


def pallas_tanh(x_flat):
    """Element-wise tanh; input regrouped to a lane-dense (rows, 128) slab when possible."""
    M, C = x_flat.shape
    total = M * C
    x2 = x_flat.reshape(total // 128, 128) if total % 128 == 0 else x_flat
    R, L = x2.shape
    tm = R
    for t in (512, 256, 128, 64, 32, 16, 8):
        if R % t == 0:
            tm = t
            break
    out = pl.pallas_call(
        _tanh_kernel,
        out_shape=jax.ShapeDtypeStruct((R, L), jnp.float32),
        grid=(R // tm,),
        in_specs=[pl.BlockSpec((tm, L), lambda i: (i, 0))],
        out_specs=pl.BlockSpec((tm, L), lambda i: (i, 0)),
        compiler_params=pltpu.CompilerParams(
            dimension_semantics=("parallel",),
            vmem_limit_bytes=_VMEM_LIMIT),
    )(x2)
    return out.reshape(M, C)


# --------------- col2im / overlap-add for k=4, stride=2, pad=1 ---------------

def overlap_add_s2k4p1(y_flat, n, h, w, cout):
    """Scatter the sub-pixel matmul result back onto the upsampled grid.

    y_flat: (N*H*W, 16*Cout), columns ordered (kh, kw, cout).
    Returns (N, 2H, 2W, Cout).  Pure layout plumbing (reshape/slice/add)."""
    y6 = y_flat.reshape(n, h, w, 4, 4, cout)
    out = jnp.zeros((n, 2 * h, 2 * w, cout), y_flat.dtype)
    for dh in (0, 2):
        for dw in (0, 2):
            # 2x2 tap group -> depth-to-space -> shifted add (oh = 2*ih - 1 + kh)
            g = y6[:, :, :, dh:dh + 2, dw:dw + 2, :]
            g = jnp.transpose(g, (0, 1, 3, 2, 4, 5)).reshape(n, 2 * h, 2 * w, cout)
            rs, re = (1, 2 * h) if dh == 0 else (0, 2 * h - 1)
            cs, ce = (1, 2 * w) if dw == 0 else (0, 2 * w - 1)
            orow = 0 if dh == 0 else 1
            ocol = 0 if dw == 0 else 1
            out = out.at[:, orow:orow + (re - rs), ocol:ocol + (ce - cs), :].add(
                g[:, rs:re, cs:ce, :])
    return out


# ------------------------------ Generator ----------------------------------

def init_generator_params(key, image_size=16, z_dim=16, conv_dim=16, channels=1):
    repeat_num = int(math.log2(image_size)) - 3
    mult = 2 ** repeat_num
    curr = conv_dim * mult
    layer_io = [(z_dim, curr)]
    for _ in range(3):
        layer_io.append((curr, curr // 2))
        curr //= 2
    layer_io.append((curr, channels))                      # `last` layer

    keys = jax.random.split(key, len(layer_io))
    # PyTorch ConvTranspose2d weight layout: (Cin, Cout, kH, kW)
    torch_ws = [jax.random.normal(k, (cin, cout, 4, 4), jnp.float32) * 0.05
                for k, (cin, cout) in zip(keys, layer_io)]
    # Hoisted sub-pixel matmul weights: (Cin, kH*kW*Cout), pre-cast to bf16.
    mm_ws = [jnp.transpose(wt, (0, 2, 3, 1)).reshape(wt.shape[0], -1).astype(jnp.bfloat16)
             for wt in torch_ws]
    # BatchNorm2d default init: gamma=1, beta=0 (first 4 layers only)
    gammas = [jnp.ones((1, cout), jnp.float32) for (_, cout) in layer_io[:4]]
    betas = [jnp.zeros((1, cout), jnp.float32) for (_, cout) in layer_io[:4]]
    params = {"w_mm": mm_ws, "gamma": gammas, "beta": betas}
    return params, torch_ws


@jax.jit
def generator_forward(z_nchw, params):
    w_mm, gammas, betas = params["w_mm"], params["gamma"], params["beta"]
    n = z_nchw.shape[0]

    # ---- l1: ConvTranspose2d(z_dim, C1, 4, 1, 0) on a 1x1 input == plain matmul.
    z = z_nchw.reshape(n, -1).astype(jnp.float32)            # (N, z_dim)
    y = pallas_matmul(z, w_mm[0])                            # (N, 16*C1), cols = (kh, kw, c)
    c_out = w_mm[0].shape[1] // 16
    h = w = 4
    x_pre = y.reshape(n * h * w, c_out)                      # pre-BN activations, NHWC-flat

    # ---- l2..l4 + last: BN+ReLU of the previous layer is fused into the
    #      sub-pixel matmul of the next ConvTranspose2d(4, stride=2, pad=1).
    for li in range(1, 5):
        c_out = w_mm[li].shape[1] // 16
        y = pallas_bn_relu_matmul(x_pre, gammas[li - 1], betas[li - 1], w_mm[li])
        x_nhwc = overlap_add_s2k4p1(y, n, h, w, c_out)       # (N, 2H, 2W, Cout)
        h, w = 2 * h, 2 * w
        x_pre = x_nhwc.reshape(n * h * w, c_out)

    # ---- final Tanh (lane-dense store inside the kernel), then NHWC -> NCHW.
    x_out = pallas_tanh(x_pre).reshape(n, h, w, c_out)
    return jnp.transpose(x_out, (0, 3, 1, 2))


# ------------------------- pure-JAX reference (XLA) -------------------------

def _ref_conv_transpose(x_nhwc, w_t, stride, pad, k=4):
    w = jnp.transpose(jnp.flip(w_t, (2, 3)), (2, 3, 0, 1))   # (k, k, Cin, Cout)
    p = k - 1 - pad
    return jax.lax.conv_general_dilated(
        x_nhwc, w, window_strides=(1, 1), padding=[(p, p), (p, p)],
        lhs_dilation=(stride, stride),
        dimension_numbers=("NHWC", "HWIO", "NHWC"))


def ref_forward(z_nchw, torch_ws, params):
    x = jnp.transpose(z_nchw, (0, 2, 3, 1)).astype(jnp.float32)
    strides, pads = (1, 2, 2, 2, 2), (0, 1, 1, 1, 1)
    for i in range(5):
        x = _ref_conv_transpose(x, torch_ws[i], strides[i], pads[i])
        if i < 4:
            g = params["gamma"][i].reshape(1, 1, 1, -1)
            b = params["beta"][i].reshape(1, 1, 1, -1)
            mean = jnp.mean(x, axis=(0, 1, 2), keepdims=True)
            var = jnp.mean(jnp.square(x - mean), axis=(0, 1, 2), keepdims=True)
            x = jnp.maximum((x - mean) * jax.lax.rsqrt(var + _EPS) * g + b, 0.0)
        else:
            x = jnp.tanh(x)
    return jnp.transpose(x, (0, 3, 1, 2))


# --------------------------------- main -------------------------------------

if __name__ == "__main__":
    key = jax.random.PRNGKey(0)
    k_params, k_z = jax.random.split(key)

    # small config: image_size=16 -> mult=2; channel widths 32->16->8->4->1
    IMAGE_SIZE, Z_DIM, CONV_DIM, CHANNELS, BATCH = 16, 16, 16, 1, 2
    params, torch_ws = init_generator_params(
        k_params, image_size=IMAGE_SIZE, z_dim=Z_DIM,
        conv_dim=CONV_DIM, channels=CHANNELS)

    z = jax.random.normal(k_z, (BATCH, Z_DIM, 1, 1), jnp.float32)

    out = jax.block_until_ready(generator_forward(z, params))

    assert out.shape == (BATCH, CHANNELS, 64, 64), out.shape
    assert bool(jnp.all(jnp.isfinite(out)))
    assert bool(jnp.all(jnp.abs(out) <= 1.0 + 1e-6))          # tanh range

    # cross-check against an independent pure-JAX implementation of the module
    ref = jax.block_until_ready(ref_forward(z, torch_ws, params))
    err = float(jnp.max(jnp.abs(out - ref)))
    assert err < 1e-1, f"max abs err vs reference: {err}"

    print("KERNEL_OK")
</pallas_src>

<mosaic_0001>
module attributes {stable_mosaic.version = 11 : i64} {
  func.func @_matmul_kernel(%arg0: i32, %arg1: memref<2x16xf32, #tpu.memory_space<vmem>>, %arg2: memref<16x256xbf16, #tpu.memory_space<vmem>>, %arg3: memref<2x256xf32, #tpu.memory_space<vmem>>) attributes {dimension_semantics = [#tpu.dimension_semantics<parallel>], iteration_bounds = array<i64: 2>, scalar_prefetch = 0 : i64, scratch_operands = 0 : i64, tpu.core_type = #tpu.core_type<tc>, window_params = [{pipeline_mode = #tpu.pipeline_mode<synchronous>, transform_indices = @transform_0, window_bounds = array<i64: 2, 16>}, {transform_indices = @transform_1, window_bounds = array<i64: 16, 256>}, {transform_indices = @transform_2, window_bounds = array<i64: 2, 256>}]} {
    %c0 = arith.constant 0 : index
    %c0_0 = arith.constant 0 : index
    %0 = vector.load %arg1[%c0, %c0_0] : memref<2x16xf32, #tpu.memory_space<vmem>>, vector<2x16xf32>
    %1 = arith.truncf %0 : vector<2x16xf32> to vector<2x16xbf16>
    %c0_1 = arith.constant 0 : index
    %c0_2 = arith.constant 0 : index
    %2 = vector.load %arg2[%c0_1, %c0_2] : memref<16x256xbf16, #tpu.memory_space<vmem>>, vector<16x256xbf16>
    %cst = arith.constant dense<0.000000e+00> : vector<2x256xf32>
    %3 = tpu.matmul %1, %2, %cst {dimension_numbers = #tpu.dot_dimension_numbers<[1], [0], [0], [1], [0, 0, 1, 1], [], []>} : vector<2x16xbf16>, vector<16x256xbf16>, vector<2x256xf32> -> vector<2x256xf32>
    %c0_3 = arith.constant 0 : index
    %c0_4 = arith.constant 0 : index
    %4 = vector.load %arg3[%c0_3, %c0_4] : memref<2x256xf32, #tpu.memory_space<vmem>>, vector<2x256xf32>
    tpu.vector_store %arg3[%c0_3, %c0_4], %3 {strides = array<i32>} : memref<2x256xf32, #tpu.memory_space<vmem>>, vector<2x256xf32>,
    return
  }
  func.func @transform_0(%arg0: i32) -> (i32, i32) {
    %c0_i32 = arith.constant 0 : i32
    %c0_i32_0 = arith.constant 0 : i32
    %c0_i32_1 = arith.constant 0 : i32
    return %c0_i32, %c0_i32_0 : i32, i32
  }
  func.func @transform_1(%arg0: i32) -> (i32, i32) {
    %c0_i32 = arith.constant 0 : i32
    %c0_i32_0 = arith.constant 0 : i32
    return %c0_i32, %arg0 : i32, i32
  }
  func.func @transform_2(%arg0: i32) -> (i32, i32) {
    %c0_i32 = arith.constant 0 : i32
    %c0_i32_0 = arith.constant 0 : i32
    return %c0_i32, %arg0 : i32, i32
  }
}

module attributes {stable_mosaic.version = 11 : i64} {
  func.func @_bn_relu_matmul_kernel(%arg0: i32, %arg1: memref<32x32xf32, #tpu.memory_space<vmem>>, %arg2: memref<1x32xf32, #tpu.memory_space<vmem>>, %arg3: memref<1x32xf32, #tpu.memory_space<vmem>>, %arg4: memref<32x128xbf16, #tpu.memory_space<vmem>>, %arg5: memref<32x128xf32, #tpu.memory_space<vmem>>) attributes {dimension_semantics = [#tpu.dimension_semantics<parallel>], iteration_bounds = array<i64: 2>, scalar_prefetch = 0 : i64, scratch_operands = 0 : i64, tpu.core_type = #tpu.core_type<tc>, window_params = [{pipeline_mode = #tpu.pipeline_mode<synchronous>, transform_indices = @transform_0, window_bounds = array<i64: 32, 32>}, {pipeline_mode = #tpu.pipeline_mode<synchronous>, transform_indices = @transform_1, window_bounds = array<i64: 1, 32>}, {pipeline_mode = #tpu.pipeline_mode<synchronous>, transform_indices = @transform_2, window_bounds = array<i64: 1, 32>}, {transform_indices = @transform_3, window_bounds = array<i64: 32, 128>}, {transform_indices = @transform_4, window_bounds = array<i64: 32, 128>}]} {
    %c0 = arith.constant 0 : index
    %c0_0 = arith.constant 0 : index
    %0 = vector.load %arg1[%c0, %c0_0] : memref<32x32xf32, #tpu.memory_space<vmem>>, vector<32x32xf32>
    %cst = arith.constant dense<0.000000e+00> : vector<32xf32>
    %1 = vector.multi_reduction <add>, %0, %cst [0] : vector<32x32xf32> to vector<32xf32>
    %2 = vector.shape_cast %1 : vector<32xf32> to vector<1x32xf32>
    %cst_1 = arith.constant 3.200000e+01 : f32
    %3 = vector.broadcast %cst_1 : f32 to vector<1x32xf32>
    %4 = arith.divf %2, %3 : vector<1x32xf32>
    %5 = vector.broadcast %4 : vector<1x32xf32> to vector<32x32xf32>
    %6 = arith.subf %0, %5 : vector<32x32xf32>
    %7 = arith.mulf %6, %6 : vector<32x32xf32>
    %cst_2 = arith.constant dense<0.000000e+00> : vector<32xf32>
    %8 = vector.multi_reduction <add>, %7, %cst_2 [0] : vector<32x32xf32> to vector<32xf32>
    %9 = vector.shape_cast %8 : vector<32xf32> to vector<1x32xf32>
    %cst_3 = arith.constant 3.200000e+01 : f32
    %10 = vector.broadcast %cst_3 : f32 to vector<1x32xf32>
    %11 = arith.divf %9, %10 : vector<1x32xf32>
    %12 = vector.broadcast %4 : vector<1x32xf32> to vector<32x32xf32>
    %13 = arith.subf %0, %12 : vector<32x32xf32>
    %cst_4 = arith.constant 9.99999974E-6 : f32
    %14 = vector.broadcast %cst_4 : f32 to vector<1x32xf32>
    %15 = arith.addf %11, %14 : vector<1x32xf32>
    %16 = math.rsqrt %15 : vector<1x32xf32>
    %17 = vector.broadcast %16 : vector<1x32xf32> to vector<32x32xf32>
    %18 = arith.mulf %13, %17 : vector<32x32xf32>
    %c0_5 = arith.constant 0 : index
    %c0_6 = arith.constant 0 : index
    %19 = vector.load %arg2[%c0_5, %c0_6] : memref<1x32xf32, #tpu.memory_space<vmem>>, vector<1x32xf32>
    %20 = vector.broadcast %19 : vector<1x32xf32> to vector<32x32xf32>
    %21 = arith.mulf %18, %20 : vector<32x32xf32>
    %c0_7 = arith.constant 0 : index
    %c0_8 = arith.constant 0 : index
    %22 = vector.load %arg3[%c0_7, %c0_8] : memref<1x32xf32, #tpu.memory_space<vmem>>, vector<1x32xf32>
    %23 = vector.broadcast %22 : vector<1x32xf32> to vector<32x32xf32>
    %24 = arith.addf %21, %23 : vector<32x32xf32>
    %cst_9 = arith.constant 0.000000e+00 : f32
    %25 = vector.broadcast %cst_9 : f32 to vector<32x32xf32>
    %26 = arith.maximumf %24, %25 : vector<32x32xf32>
    %27 = arith.truncf %26 : vector<32x32xf32> to vector<32x32xbf16>
    %c0_10 = arith.constant 0 : index
    %c0_11 = arith.constant 0 : index
    %28 = vector.load %arg4[%c0_10, %c0_11] : memref<32x128xbf16, #tpu.memory_space<vmem>>, vector<32x128xbf16>
    %cst_12 = arith.constant dense<0.000000e+00> : vector<32x128xf32>
    %29 = tpu.matmul %27, %28, %cst_12 {dimension_numbers = #tpu.dot_dimension_numbers<[1], [0], [0], [1], [0, 0, 1, 1], [], []>} : vector<32x32xbf16>, vector<32x128xbf16>, vector<32x128xf32> -> vector<32x128xf32>
    %c0_13 = arith.constant 0 : index
    %c0_14 = arith.constant 0 : index
    %30 = vector.load %arg5[%c0_13, %c0_14] : memref<32x128xf32, #tpu.memory_space<vmem>>, vector<32x128xf32>
    tpu.vector_store %arg5[%c0_13, %c0_14], %29 {strides = array<i32>} : memref<32x128xf32, #tpu.memory_space<vmem>>, vector<32x128xf32>,
    return
  }
  func.func @transform_0(%arg0: i32) -> (i32, i32) {
    %c0_i32 = arith.constant 0 : i32
    %c0_i32_0 = arith.constant 0 : i32
    %c0_i32_1 = arith.constant 0 : i32
    return %c0_i32, %c0_i32_0 : i32, i32
  }
  func.func @transform_1(%arg0: i32) -> (i32, i32) {
    %c0_i32 = arith.constant 0 : i32
    %c0_i32_0 = arith.constant 0 : i32
    %c0_i32_1 = arith.constant 0 : i32
    return %c0_i32, %c0_i32_0 : i32, i32
  }
  func.func @transform_2(%arg0: i32) -> (i32, i32) {
    %c0_i32 = arith.constant 0 : i32
    %c0_i32_0 = arith.constant 0 : i32
    %c0_i32_1 = arith.constant 0 : i32
    return %c0_i32, %c0_i32_0 : i32, i32
  }
  func.func @transform_3(%arg0: i32) -> (i32, i32) {
    %c0_i32 = arith.constant 0 : i32
    %c0_i32_0 = arith.constant 0 : i32
    return %c0_i32, %arg0 : i32, i32
  }
  func.func @transform_4(%arg0: i32) -> (i32, i32) {
    %c0_i32 = arith.constant 0 : i32
    %c0_i32_0 = arith.constant 0 : i32
    return %c0_i32, %arg0 : i32, i32
  }
}

module attributes {stable_mosaic.version = 11 : i64} {
  func.func @_bn_relu_matmul_kernel(%arg0: i32, %arg1: memref<128x16xf32, #tpu.memory_space<vmem>>, %arg2: memref<1x16xf32, #tpu.memory_space<vmem>>, %arg3: memref<1x16xf32, #tpu.memory_space<vmem>>, %arg4: memref<16x128xbf16, #tpu.memory_space<vmem>>, %arg5: memref<128x128xf32, #tpu.memory_space<vmem>>) attributes {dimension_semantics = [#tpu.dimension_semantics<parallel>], iteration_bounds = array<i64: 1>, scalar_prefetch = 0 : i64, scratch_operands = 0 : i64, tpu.core_type = #tpu.core_type<tc>, window_params = [{pipeline_mode = #tpu.pipeline_mode<synchronous>, transform_indices = @transform_0, window_bounds = array<i64: 128, 16>}, {pipeline_mode = #tpu.pipeline_mode<synchronous>, transform_indices = @transform_1, window_bounds = array<i64: 1, 16>}, {pipeline_mode = #tpu.pipeline_mode<synchronous>, transform_indices = @transform_2, window_bounds = array<i64: 1, 16>}, {transform_indices = @transform_3, window_bounds = array<i64: 16, 128>}, {transform_indices = @transform_4, window_bounds = array<i64: 128, 128>}]} {
    %c0 = arith.constant 0 : index
    %c0_0 = arith.constant 0 : index
    %0 = vector.load %arg1[%c0, %c0_0] : memref<128x16xf32, #tpu.memory_space<vmem>>, vector<128x16xf32>
    %cst = arith.constant dense<0.000000e+00> : vector<16xf32>
    %1 = vector.multi_reduction <add>, %0, %cst [0] : vector<128x16xf32> to vector<16xf32>
    %2 = vector.shape_cast %1 : vector<16xf32> to vector<1x16xf32>
    %cst_1 = arith.constant 1.280000e+02 : f32
    %3 = vector.broadcast %cst_1 : f32 to vector<1x16xf32>
    %4 = arith.divf %2, %3 : vector<1x16xf32>
    %5 = vector.broadcast %4 : vector<1x16xf32> to vector<128x16xf32>
    %6 = arith.subf %0, %5 : vector<128x16xf32>
    %7 = arith.mulf %6, %6 : vector<128x16xf32>
    %cst_2 = arith.constant dense<0.000000e+00> : vector<16xf32>
    %8 = vector.multi_reduction <add>, %7, %cst_2 [0] : vector<128x16xf32> to vector<16xf32>
    %9 = vector.shape_cast %8 : vector<16xf32> to vector<1x16xf32>
    %cst_3 = arith.constant 1.280000e+02 : f32
    %10 = vector.broadcast %cst_3 : f32 to vector<1x16xf32>
    %11 = arith.divf %9, %10 : vector<1x16xf32>
    %12 = vector.broadcast %4 : vector<1x16xf32> to vector<128x16xf32>
    %13 = arith.subf %0, %12 : vector<128x16xf32>
    %cst_4 = arith.constant 9.99999974E-6 : f32
    %14 = vector.broadcast %cst_4 : f32 to vector<1x16xf32>
    %15 = arith.addf %11, %14 : vector<1x16xf32>
    %16 = math.rsqrt %15 : vector<1x16xf32>
    %17 = vector.broadcast %16 : vector<1x16xf32> to vector<128x16xf32>
    %18 = arith.mulf %13, %17 : vector<128x16xf32>
    %c0_5 = arith.constant 0 : index
    %c0_6 = arith.constant 0 : index
    %19 = vector.load %arg2[%c0_5, %c0_6] : memref<1x16xf32, #tpu.memory_space<vmem>>, vector<1x16xf32>
    %20 = vector.broadcast %19 : vector<1x16xf32> to vector<128x16xf32>
    %21 = arith.mulf %18, %20 : vector<128x16xf32>
    %c0_7 = arith.constant 0 : index
    %c0_8 = arith.constant 0 : index
    %22 = vector.load %arg3[%c0_7, %c0_8] : memref<1x16xf32, #tpu.memory_space<vmem>>, vector<1x16xf32>
    %23 = vector.broadcast %22 : vector<1x16xf32> to vector<128x16xf32>
    %24 = arith.addf %21, %23 : vector<128x16xf32>
    %cst_9 = arith.constant 0.000000e+00 : f32
    %25 = vector.broadcast %cst_9 : f32 to vector<128x16xf32>
    %26 = arith.maximumf %24, %25 : vector<128x16xf32>
    %27 = arith.truncf %26 : vector<128x16xf32> to vector<128x16xbf16>
    %c0_10 = arith.constant 0 : index
    %c0_11 = arith.constant 0 : index
    %28 = vector.load %arg4[%c0_10, %c0_11] : memref<16x128xbf16, #tpu.memory_space<vmem>>, vector<16x128xbf16>
    %cst_12 = arith.constant dense<0.000000e+00> : vector<128x128xf32>
    %29 = tpu.matmul %27, %28, %cst_12 {dimension_numbers = #tpu.dot_dimension_numbers<[1], [0], [0], [1], [0, 0, 1, 1], [], []>} : vector<128x16xbf16>, vector<16x128xbf16>, vector<128x128xf32> -> vector<128x128xf32>
    %c0_13 = arith.constant 0 : index
    %c0_14 = arith.constant 0 : index
    %30 = vector.load %arg5[%c0_13, %c0_14] : memref<128x128xf32, #tpu.memory_space<vmem>>, vector<128x128xf32>
    tpu.vector_store %arg5[%c0_13, %c0_14], %29 {strides = array<i32>} : memref<128x128xf32, #tpu.memory_space<vmem>>, vector<128x128xf32>,
    return
  }
  func.func @transform_0(%arg0: i32) -> (i32, i32) {
    %c0_i32 = arith.constant 0 : i32
    %c0_i32_0 = arith.constant 0 : i32
    %c0_i32_1 = arith.constant 0 : i32
    return %c0_i32, %c0_i32_0 : i32, i32
  }
  func.func @transform_1(%arg0: i32) -> (i32, i32) {
    %c0_i32 = arith.constant 0 : i32
    %c0_i32_0 = arith.constant 0 : i32
    %c0_i32_1 = arith.constant 0 : i32
    return %c0_i32, %c0_i32_0 : i32, i32
  }
  func.func @transform_2(%arg0: i32) -> (i32, i32) {
    %c0_i32 = arith.constant 0 : i32
    %c0_i32_0 = arith.constant 0 : i32
    %c0_i32_1 = arith.constant 0 : i32
    return %c0_i32, %c0_i32_0 : i32, i32
  }
  func.func @transform_3(%arg0: i32) -> (i32, i32) {
    %c0_i32 = arith.constant 0 : i32
    %c0_i32_0 = arith.constant 0 : i32
    return %c0_i32, %arg0 : i32, i32
  }
  func.func @transform_4(%arg0: i32) -> (i32, i32) {
    %c0_i32 = arith.constant 0 : i32
    %c0_i32_0 = arith.constant 0 : i32
    return %c0_i32, %arg0 : i32, i32
  }
}

module attributes {stable_mosaic.version = 11 : i64} {
  func.func @_bn_relu_matmul_kernel(%arg0: i32, %arg1: memref<512x8xf32, #tpu.memory_space<vmem>>, %arg2: memref<1x8xf32, #tpu.memory_space<vmem>>, %arg3: memref<1x8xf32, #tpu.memory_space<vmem>>, %arg4: memref<8x64xbf16, #tpu.memory_space<vmem>>, %arg5: memref<512x64xf32, #tpu.memory_space<vmem>>) attributes {dimension_semantics = [#tpu.dimension_semantics<parallel>], iteration_bounds = array<i64: 1>, scalar_prefetch = 0 : i64, scratch_operands = 0 : i64, tpu.core_type = #tpu.core_type<tc>, window_params = [{pipeline_mode = #tpu.pipeline_mode<synchronous>, transform_indices = @transform_0, window_bounds = array<i64: 512, 8>}, {pipeline_mode = #tpu.pipeline_mode<synchronous>, transform_indices = @transform_1, window_bounds = array<i64: 1, 8>}, {pipeline_mode = #tpu.pipeline_mode<synchronous>, transform_indices = @transform_2, window_bounds = array<i64: 1, 8>}, {transform_indices = @transform_3, window_bounds = array<i64: 8, 64>}, {transform_indices = @transform_4, window_bounds = array<i64: 512, 64>}]} {
    %c0 = arith.constant 0 : index
    %c0_0 = arith.constant 0 : index
    %0 = vector.load %arg1[%c0, %c0_0] : memref<512x8xf32, #tpu.memory_space<vmem>>, vector<512x8xf32>
    %cst = arith.constant dense<0.000000e+00> : vector<8xf32>
    %1 = vector.multi_reduction <add>, %0, %cst [0] : vector<512x8xf32> to vector<8xf32>
    %2 = vector.shape_cast %1 : vector<8xf32> to vector<1x8xf32>
    %cst_1 = arith.constant 5.120000e+02 : f32
    %3 = vector.broadcast %cst_1 : f32 to vector<1x8xf32>
    %4 = arith.divf %2, %3 : vector<1x8xf32>
    %5 = vector.broadcast %4 : vector<1x8xf32> to vector<512x8xf32>
    %6 = arith.subf %0, %5 : vector<512x8xf32>
    %7 = arith.mulf %6, %6 : vector<512x8xf32>
    %cst_2 = arith.constant dense<0.000000e+00> : vector<8xf32>
    %8 = vector.multi_reduction <add>, %7, %cst_2 [0] : vector<512x8xf32> to vector<8xf32>
    %9 = vector.shape_cast %8 : vector<8xf32> to vector<1x8xf32>
    %cst_3 = arith.constant 5.120000e+02 : f32
    %10 = vector.broadcast %cst_3 : f32 to vector<1x8xf32>
    %11 = arith.divf %9, %10 : vector<1x8xf32>
    %12 = vector.broadcast %4 : vector<1x8xf32> to vector<512x8xf32>
    %13 = arith.subf %0, %12 : vector<512x8xf32>
    %cst_4 = arith.constant 9.99999974E-6 : f32
    %14 = vector.broadcast %cst_4 : f32 to vector<1x8xf32>
    %15 = arith.addf %11, %14 : vector<1x8xf32>
    %16 = math.rsqrt %15 : vector<1x8xf32>
    %17 = vector.broadcast %16 : vector<1x8xf32> to vector<512x8xf32>
    %18 = arith.mulf %13, %17 : vector<512x8xf32>
    %c0_5 = arith.constant 0 : index
    %c0_6 = arith.constant 0 : index
    %19 = vector.load %arg2[%c0_5, %c0_6] : memref<1x8xf32, #tpu.memory_space<vmem>>, vector<1x8xf32>
    %20 = vector.broadcast %19 : vector<1x8xf32> to vector<512x8xf32>
    %21 = arith.mulf %18, %20 : vector<512x8xf32>
    %c0_7 = arith.constant 0 : index
    %c0_8 = arith.constant 0 : index
    %22 = vector.load %arg3[%c0_7, %c0_8] : memref<1x8xf32, #tpu.memory_space<vmem>>, vector<1x8xf32>
    %23 = vector.broadcast %22 : vector<1x8xf32> to vector<512x8xf32>
    %24 = arith.addf %21, %23 : vector<512x8xf32>
    %cst_9 = arith.constant 0.000000e+00 : f32
    %25 = vector.broadcast %cst_9 : f32 to vector<512x8xf32>
    %26 = arith.maximumf %24, %25 : vector<512x8xf32>
    %27 = arith.truncf %26 : vector<512x8xf32> to vector<512x8xbf16>
    %c0_10 = arith.constant 0 : index
    %c0_11 = arith.constant 0 : index
    %28 = vector.load %arg4[%c0_10, %c0_11] : memref<8x64xbf16, #tpu.memory_space<vmem>>, vector<8x64xbf16>
    %cst_12 = arith.constant dense<0.000000e+00> : vector<512x64xf32>
    %29 = tpu.matmul %27, %28, %cst_12 {dimension_numbers = #tpu.dot_dimension_numbers<[1], [0], [0], [1], [0, 0, 1, 1], [], []>} : vector<512x8xbf16>, vector<8x64xbf16>, vector<512x64xf32> -> vector<512x64xf32>
    %c0_13 = arith.constant 0 : index
    %c0_14 = arith.constant 0 : index
    %30 = vector.load %arg5[%c0_13, %c0_14] : memref<512x64xf32, #tpu.memory_space<vmem>>, vector<512x64xf32>
    tpu.vector_store %arg5[%c0_13, %c0_14], %29 {strides = array<i32>} : memref<512x64xf32, #tpu.memory_space<vmem>>, vector<512x64xf32>,
    return
  }
  func.func @transform_0(%arg0: i32) -> (i32, i32) {
    %c0_i32 = arith.constant 0 : i32
    %c0_i32_0 = arith.constant 0 : i32
    %c0_i32_1 = arith.constant 0 : i32
    return %c0_i32, %c0_i32_0 : i32, i32
  }
  func.func @transform_1(%arg0: i32) -> (i32, i32) {
    %c0_i32 = arith.constant 0 : i32
    %c0_i32_0 = arith.constant 0 : i32
    %c0_i32_1 = arith.constant 0 : i32
    return %c0_i32, %c0_i32_0 : i32, i32
  }
  func.func @transform_2(%arg0: i32) -> (i32, i32) {
    %c0_i32 = arith.constant 0 : i32
    %c0_i32_0 = arith.constant 0 : i32
    %c0_i32_1 = arith.constant 0 : i32
    return %c0_i32, %c0_i32_0 : i32, i32
  }
  func.func @transform_3(%arg0: i32) -> (i32, i32) {
    %c0_i32 = arith.constant 0 : i32
    %c0_i32_0 = arith.constant 0 : i32
    return %c0_i32, %arg0 : i32, i32
  }
  func.func @transform_4(%arg0: i32) -> (i32, i32) {
    %c0_i32 = arith.constant 0 : i32
    %c0_i32_0 = arith.constant 0 : i32
    return %c0_i32, %arg0 : i32, i32
  }
}

module attributes {stable_mosaic.version = 11 : i64} {
  func.func @_bn_relu_matmul_kernel(%arg0: i32, %arg1: memref<2048x4xf32, #tpu.memory_space<vmem>>, %arg2: memref<1x4xf32, #tpu.memory_space<vmem>>, %arg3: memref<1x4xf32, #tpu.memory_space<vmem>>, %arg4: memref<4x16xbf16, #tpu.memory_space<vmem>>, %arg5: memref<2048x16xf32, #tpu.memory_space<vmem>>) attributes {dimension_semantics = [#tpu.dimension_semantics<parallel>], iteration_bounds = array<i64: 1>, scalar_prefetch = 0 : i64, scratch_operands = 0 : i64, tpu.core_type = #tpu.core_type<tc>, window_params = [{pipeline_mode = #tpu.pipeline_mode<synchronous>, transform_indices = @transform_0, window_bounds = array<i64: 2048, 4>}, {pipeline_mode = #tpu.pipeline_mode<synchronous>, transform_indices = @transform_1, window_bounds = array<i64: 1, 4>}, {pipeline_mode = #tpu.pipeline_mode<synchronous>, transform_indices = @transform_2, window_bounds = array<i64: 1, 4>}, {transform_indices = @transform_3, window_bounds = array<i64: 4, 16>}, {transform_indices = @transform_4, window_bounds = array<i64: 2048, 16>}]} {
    %c0 = arith.constant 0 : index
    %c0_0 = arith.constant 0 : index
    %0 = vector.load %arg1[%c0, %c0_0] : memref<2048x4xf32, #tpu.memory_space<vmem>>, vector<2048x4xf32>
    %cst = arith.constant dense<0.000000e+00> : vector<4xf32>
    %1 = vector.multi_reduction <add>, %0, %cst [0] : vector<2048x4xf32> to vector<4xf32>
    %2 = vector.shape_cast %1 : vector<4xf32> to vector<1x4xf32>
    %cst_1 = arith.constant 2.048000e+03 : f32
    %3 = vector.broadcast %cst_1 : f32 to vector<1x4xf32>
    %4 = arith.divf %2, %3 : vector<1x4xf32>
    %5 = vector.broadcast %4 : vector<1x4xf32> to vector<2048x4xf32>
    %6 = arith.subf %0, %5 : vector<2048x4xf32>
    %7 = arith.mulf %6, %6 : vector<2048x4xf32>
    %cst_2 = arith.constant dense<0.000000e+00> : vector<4xf32>
    %8 = vector.multi_reduction <add>, %7, %cst_2 [0] : vector<2048x4xf32> to vector<4xf32>
    %9 = vector.shape_cast %8 : vector<4xf32> to vector<1x4xf32>
    %cst_3 = arith.constant 2.048000e+03 : f32
    %10 = vector.broadcast %cst_3 : f32 to vector<1x4xf32>
    %11 = arith.divf %9, %10 : vector<1x4xf32>
    %12 = vector.broadcast %4 : vector<1x4xf32> to vector<2048x4xf32>
    %13 = arith.subf %0, %12 : vector<2048x4xf32>
    %cst_4 = arith.constant 9.99999974E-6 : f32
    %14 = vector.broadcast %cst_4 : f32 to vector<1x4xf32>
    %15 = arith.addf %11, %14 : vector<1x4xf32>
    %16 = math.rsqrt %15 : vector<1x4xf32>
    %17 = vector.broadcast %16 : vector<1x4xf32> to vector<2048x4xf32>
    %18 = arith.mulf %13, %17 : vector<2048x4xf32>
    %c0_5 = arith.constant 0 : index
    %c0_6 = arith.constant 0 : index
    %19 = vector.load %arg2[%c0_5, %c0_6] : memref<1x4xf32, #tpu.memory_space<vmem>>, vector<1x4xf32>
    %20 = vector.broadcast %19 : vector<1x4xf32> to vector<2048x4xf32>
    %21 = arith.mulf %18, %20 : vector<2048x4xf32>
    %c0_7 = arith.constant 0 : index
    %c0_8 = arith.constant 0 : index
    %22 = vector.load %arg3[%c0_7, %c0_8] : memref<1x4xf32, #tpu.memory_space<vmem>>, vector<1x4xf32>
    %23 = vector.broadcast %22 : vector<1x4xf32> to vector<2048x4xf32>
    %24 = arith.addf %21, %23 : vector<2048x4xf32>
    %cst_9 = arith.constant 0.000000e+00 : f32
    %25 = vector.broadcast %cst_9 : f32 to vector<2048x4xf32>
    %26 = arith.maximumf %24, %25 : vector<2048x4xf32>
    %27 = arith.truncf %26 : vector<2048x4xf32> to vector<2048x4xbf16>
    %c0_10 = arith.constant 0 : index
    %c0_11 = arith.constant 0 : index
    %28 = vector.load %arg4[%c0_10, %c0_11] : memref<4x16xbf16, #tpu.memory_space<vmem>>, vector<4x16xbf16>
    %cst_12 = arith.constant dense<0.000000e+00> : vector<2048x16xf32>
    %29 = tpu.matmul %27, %28, %cst_12 {dimension_numbers = #tpu.dot_dimension_numbers<[1], [0], [0], [1], [0, 0, 1, 1], [], []>} : vector<2048x4xbf16>, vector<4x16xbf16>, vector<2048x16xf32> -> vector<2048x16xf32>
    %c0_13 = arith.constant 0 : index
    %c0_14 = arith.constant 0 : index
    %30 = vector.load %arg5[%c0_13, %c0_14] : memref<2048x16xf32, #tpu.memory_space<vmem>>, vector<2048x16xf32>
    tpu.vector_store %arg5[%c0_13, %c0_14], %29 {strides = array<i32>} : memref<2048x16xf32, #tpu.memory_space<vmem>>, vector<2048x16xf32>,
    return
  }
  func.func @transform_0(%arg0: i32) -> (i32, i32) {
    %c0_i32 = arith.constant 0 : i32
    %c0_i32_0 = arith.constant 0 : i32
    %c0_i32_1 = arith.constant 0 : i32
    return %c0_i32, %c0_i32_0 : i32, i32
  }
  func.func @transform_1(%arg0: i32) -> (i32, i32) {
    %c0_i32 = arith.constant 0 : i32
    %c0_i32_0 = arith.constant 0 : i32
    %c0_i32_1 = arith.constant 0 : i32
    return %c0_i32, %c0_i32_0 : i32, i32
  }
  func.func @transform_2(%arg0: i32) -> (i32, i32) {
    %c0_i32 = arith.constant 0 : i32
    %c0_i32_0 = arith.constant 0 : i32
    %c0_i32_1 = arith.constant 0 : i32
    return %c0_i32, %c0_i32_0 : i32, i32
  }
  func.func @transform_3(%arg0: i32) -> (i32, i32) {
    %c0_i32 = arith.constant 0 : i32
    %c0_i32_0 = arith.constant 0 : i32
    return %c0_i32, %arg0 : i32, i32
  }
  func.func @transform_4(%arg0: i32) -> (i32, i32) {
    %c0_i32 = arith.constant 0 : i32
    %c0_i32_0 = arith.constant 0 : i32
    return %c0_i32, %arg0 : i32, i32
  }
}

module attributes {stable_mosaic.version = 11 : i64} {
  func.func @_tanh_kernel(%arg0: i32, %arg1: memref<64x128xf32, #tpu.memory_space<vmem>>, %arg2: memref<64x128xf32, #tpu.memory_space<vmem>>) attributes {dimension_semantics = [#tpu.dimension_semantics<parallel>], iteration_bounds = array<i64: 1>, scalar_prefetch = 0 : i64, scratch_operands = 0 : i64, tpu.core_type = #tpu.core_type<tc>, window_params = [{transform_indices = @transform_0, window_bounds = array<i64: 64, 128>}, {transform_indices = @transform_1, window_bounds = array<i64: 64, 128>}]} {
    %c0 = arith.constant 0 : index
    %c0_0 = arith.constant 0 : index
    %0 = vector.load %arg1[%c0, %c0_0] : memref<64x128xf32, #tpu.memory_space<vmem>>, vector<64x128xf32>
    %1 = math.tanh %0 : vector<64x128xf32>
    %c0_1 = arith.constant 0 : index
    %c0_2 = arith.constant 0 : index
    %2 = vector.load %arg2[%c0_1, %c0_2] : memref<64x128xf32, #tpu.memory_space<vmem>>, vector<64x128xf32>
    tpu.vector_store %arg2[%c0_1, %c0_2], %1 {strides = array<i32>} : memref<64x128xf32, #tpu.memory_space<vmem>>, vector<64x128xf32>,
    return
  }
  func.func @transform_0(%arg0: i32) -> (i32, i32) {
    %c0_i32 = arith.constant 0 : i32
    %c0_i32_0 = arith.constant 0 : i32
    return %arg0, %c0_i32 : i32, i32
  }
  func.func @transform_1(%arg0: i32) -> (i32, i32) {
    %c0_i32 = arith.constant 0 : i32
    %c0_i32_0 = arith.constant 0 : i32
    return %arg0, %c0_i32 : i32, i32
  }
}

</mosaic_0001>

<bundles_post_ra>
// kernel: generator_forward.7
= control target key start
LH: loop header
LB: loop body
LE: loop exit
PB: predicated region body
PF: predicated region fallthrough
CT: control target
= control target key end

     0   :  { %9 = vsyncpa [#allocation3], 0  ;;  %s1004_s0 = inlined_call_operand.vmem [shape: f32[32,32], index: 0, kind: input, shape index: {}]   ;;  %s1005_s1 = inlined_call_operand.hbm [shape: f32[1,32], index: 1, kind: input, shape index: {}]   ;;  %s1006_s2 = inlined_call_operand.hbm [shape: f32[1,32], index: 2, kind: input, shape index: {}]   ;;  %s1007_s3 = inlined_call_operand.hbm [shape: bf16[32,256], index: 3, kind: input, shape index: {}]   ;;  %s1008_s4 = inlined_call_operand.vmem [shape: f32[32,256], index: 4, kind: output, shape index: {}]  }
   0x1   :  { %10 = vsyncpa [#allocation5], 0  ;;  %s782_s15 = smov 0   ;;  %s784_s16 = smov 0  }
   0x2   :  { %s786_s17 = smov 0   ;;  %s788_s18 = smov 0  }
   0x3 LB: > { %s801_s19 = sadd.s32 4294967295, %s749_s18   ;;  %s804_s20 = sadd.s32 1, %s749_s18   ;;  %s749_s18 = sphi %s788_s18, %s1030_s18   ;;  %s745_s17 = sphi %s786_s17, %s1029_s17   ;;  %s741_s16 = sphi %s784_s16, %s1028_s16   ;;  %s737_s15 = sphi %s782_s15, %s1027_s15  }
   0x4   : > { %s83_s21 = ssub.s32 %s749_s18, %s804_s20  ;;  %s86_s22 = sadd.s32 1, %s745_s17 }
   0x5   : > { %p84_p0 = scmp.eq.s32.totalorder %s83_s21, 0  ;;  %p93_p1 = scmp.ne.s32.totalorder %s745_s17, %s741_s16 }
   0x6   : > { %p94_p2 = scmp.eq.s32.totalorder %s749_s18, 0  ;;  %p99_p3 = scmp.ne.s32.totalorder %s741_s16, %s737_s15 }
   0x7   : > { %s814_s23 = scalar_select %p84_p0, %s745_s17, %s86_s22  }
   0x8   : > { %p816_p4 = por %p94_p2, %p93_p1  ;;  %p1009_p5 = scmp.eq.s32.totalorder %s801_s19, 0 }
   0x9   : > { %p123_p6 = scmp.eq.s32.totalorder %s801_s19, 1  ;;  %p521_p7 = scmp.ge.s32.totalorder %s749_s18, 1 }
   0xa   : > { %p825_p8 = por %p1009_p5, %p99_p3  ;;  %p136_p9 = scmp.lt.s32.totalorder %s749_s18, 3 }
   0xb   : > { %p830_p10 = por %p123_p6, %p93_p1  ;;  %s751_s28 = smov [#allocation2]  }
   0xc   : > { %s1014_s25 = scalar_select %p825_p8, 1, 0 }
   0xd   : > { %s1015_s26 = scalar_select %p830_p10, 1, 0 }
   0xe   : > { %p834_p11 = pnand %p521_p7, %p136_p9  ;;  %s152_s29 = sshll.u32 %s751_s28, 4  ;;  %s153_s29 = int_to_ptr.vmem [resolvable:$true] %s152_s29 }
   0xf   : > { %p577_p13 = scmp.lt.s32.totalorder %s749_s18, 2  ;;  %s752_s5 = smov [#allocation4]  }
  0x10   : > { %s1016_s27 = scalar_select %p834_p11, 1, 0 }
  0x11   : > { %p564_p12 = pneg %p834_p11  ;;  %s163_s6 = sshll.u32 %s752_s5, 4  ;;  %s853_s6 = int_to_ptr.vmem [resolvable:$true] %s163_s6 }
  0x12   : > { %p849_p1 = pnand %p577_p13, %p816_p4  ;;  %s174_s8 = sand.u32 1, %s749_s18  }
  0x13   : > { %p843_p0 = pnand %p564_p12, %p1009_p5  ;;  %s621_s11 = scalar_lea.hbm %s1005_s1, 16 }
  0x14   : > { %s1018_s7 = scalar_select %p849_p1, 1, 0 }
  0x15   : > { %p622_p2 = scmp.ne.s32.totalorder %s1005_s1, %s621_s11  ;;  %p623_p3 = pneg %p843_p0 }
  0x16   : > { %p628_p7 = scmp.lt.u32.totalorder %s621_s11, %s1005_s1 }
  0x17   : > { %p624_p6 = pnand %p623_p3, %p622_p2 }
  0x19   : > { %p625_p4 = pneg %p624_p6 }
  0x1b   : > { %p630_p9 = pnand %p628_p7, %p625_p4 }
  0x1d   : > { %633 = shalt.err (!%p630_p9)
}
  0x1e   : > { %s634_s21 = scalar_lea.vmem %s153_s29, 16  ;;  %s641_s22 = scalar_lea.vmem %s153_s29, 32 }
  0x1f   : > { %p635_p12 = scmp.ne.s32.totalorder %s153_s29, %s634_s21  ;;  %p642_p10 = scmp.lt.s32.totalorder %s153_s29, %s153_s29 }
  0x20   : > { %p643_p8 = scmp.lt.s32.totalorder %s641_s22, %s634_s21 }
  0x21   : > { %p637_p13 = pnand %p635_p12, %p623_p3 }
  0x22   : > { %p644_p11 = por %p643_p8, %p642_p10 }
  0x23   : > { %p638_p5 = pneg %p637_p13 }
  0x25   : > { %p645_p1 = pnand %p644_p11, %p638_p5 }
  0x27   : > { %648 = shalt.err (!%p645_p1)
}
  0x28   : > { %567 = dma.hbm_to_vmem [thread:$0]  (!%p843_p0), %s1005_s1, 16, %s153_s29, [#allocation3]  }
  0x29   : > { %s649_s10 = scalar_lea.hbm %s1006_s2, 16 }
  0x2a   : > { %p650_p2 = scmp.ne.s32.totalorder %s1006_s2, %s649_s10  ;;  %p656_p10 = scmp.lt.u32.totalorder %s649_s10, %s1006_s2 }
  0x2c   : > { %p652_p8 = pnand %p650_p2, %p623_p3 }
  0x2e   : > { %p653_p5 = pneg %p652_p8 }
  0x30   : > { %p658_p11 = pnand %p656_p10, %p653_p5 }
  0x32   : > { %661 = shalt.err (!%p658_p11)
}
  0x33   : > { %s662_s29 = scalar_lea.vmem %s853_s6, 16  ;;  %s669_s15 = scalar_lea.vmem %s853_s6, 32 }
  0x34   : > { %p663_p1 = scmp.ne.s32.totalorder %s853_s6, %s662_s29  ;;  %p670_p7 = scmp.lt.s32.totalorder %s853_s6, %s853_s6 }
  0x35   : > { %p671_p9 = scmp.lt.s32.totalorder %s669_s15, %s662_s29 }
  0x36   : > { %p665_p6 = pnand %p663_p1, %p623_p3 }
  0x37   : > { %p672_p12 = por %p671_p9, %p670_p7 }
  0x38   : > { %p666_p4 = pneg %p665_p6 }
  0x3a   : > { %p673_p13 = pnand %p672_p12, %p666_p4 }
  0x3c   : > { %676 = shalt.err (!%p673_p13)
}
  0x3d   : > { %570 = dma.hbm_to_vmem [thread:$0]  (!%p843_p0), %s1006_s2, 16, %s853_s6, [#allocation5]  }
  0x3e   : > { %s176_s24 = sand.u32 1, %s745_s17   ;;  %s526_s28 = sshll.u32 %s749_s18, 6 }
  0x3f   : > { %s525_s5 = sshll.u32 %s176_s24, 4  ;;  %s909_s11 = scalar_lea.hbm %s1007_s3, %s526_s28 }
  0x40   : > { %s178_s30 = scalar_lea.vmem [#allocation6], %s525_s5  ;;  %s915_s13 = scalar_lea.sflag [#allocation3], %s174_s8 }
  0x41   : > { %s184_s12 = sshll.u32 %s178_s30, 4  ;;  %s677_s6 = scalar_lea.hbm %s909_s11, 256  ;;  %s911_s12 = int_to_ptr.vmem [resolvable:$true] %s184_s12 }
  0x42   : > { %p678_p0 = scmp.ne.s32.totalorder %s909_s11, %s677_s6  ;;  %p1019_p3 = scmp.ne.s32.totalorder %s1018_s7, 0 }
  0x43   : > { %s682_s15 = scalar_lea.hbm %s1007_s3, 512  ;;  %p683_p10 = scmp.lt.u32.totalorder %s909_s11, %s1007_s3 }
  0x44   : > { %p679_p2 = pneg %p1019_p3  ;;  %p684_p11 = scmp.lt.u32.totalorder %s682_s15, %s677_s6 }
  0x45   : > { %p686_p6 = scmp.lt.u32.totalorder %s677_s6, %s909_s11 }
  0x46   : > { %p680_p8 = pnand %p679_p2, %p678_p0  ;;  %p685_p1 = por %p684_p11, %p683_p10 }
  0x48   : > { %p681_p5 = pneg %p680_p8  ;;  %p687_p4 = por %p686_p6, %p685_p1 }
  0x4a   : > { %p688_p7 = pnand %p687_p4, %p681_p5 }
  0x4c   : > { %691 = shalt.err (!%p688_p7)
}
  0x4d   : > { %s692_s18 = scalar_lea.vmem %s911_s12, 256  ;;  %s753_s8 = smov [#allocation6]  }
  0x4e   : > { %p693_p9 = scmp.ne.s32.totalorder %s911_s12, %s692_s18  ;;  %s697_s24 = sshll.u32 %s753_s8, 4  ;;  %s698_s24 = int_to_ptr.vmem [resolvable:$false] %s697_s24 }
  0x4f   : > { %s699_s28 = scalar_lea.vmem %s698_s24, 512  ;;  %p700_p0 = scmp.lt.s32.totalorder %s911_s12, %s698_s24 }
  0x50   : > { %p695_p12 = pnand %p693_p9, %p679_p2  ;;  %p701_p8 = scmp.lt.s32.totalorder %s699_s28, %s692_s18 }
  0x52   : > { %p696_p13 = pneg %p695_p12  ;;  %p702_p10 = por %p701_p8, %p700_p0 }
  0x54   : > { %p703_p11 = pnand %p702_p10, %p696_p13 }
  0x56   : > { %706 = shalt.err (!%p703_p11)
}
  0x57   : > { %s754_s5 = smov 128   ;;  %s755_s9 = smov 64  }
  0x58   : > { %s756_s10 = smov 4   ;;  %p1020_p2 = scmp.ne.s32.totalorder %s1016_s27, 0 }
  0x59   : > { %574 = dma.hbm_to_vmem [thread:$0]  (!%p1019_p3), %s909_s11, 256, %s911_s12, %s915_s13, %s754_s5, %s755_s9, %s756_s10  }
  0x5a   : > { %196 = sbr.rel (%p1020_p2) target bundleno = 403 (0x193), region = 36  ;;  %p1021_p5 = scmp.eq.s32.totalorder (!%p1020_p2), %s801_s19, 0 }
  0x61   : > { %724 = dma.done.wait (%p1021_p5), [#allocation3], 16   ;;  %p1022_p1 = pmov %p1021_p5 }
  0x63   : > { %726 = vsyncadd (%p1022_p1), [#allocation3], 4294967280  ;;  %p1023_p6 = pmov %p1022_p1 }
  0x64   : > { %p1024_p4 = pmov %p1022_p1 }
  0x65   : > { %728 = dma.done.wait (%p1023_p6), [#allocation5], 16  }
  0x66   : > { %730 = vsyncadd (%p1024_p4), [#allocation5], 4294967280  ;;  %s206_s7 = sand.u32 1, %s801_s19   ;;  %s208_s11 = sand.u32 1, %s741_s16  }
  0x67   : > { %s530_s27 = sshll.u32 %s208_s11, 4  ;;  %s207_s30 = scalar_lea.sflag [#allocation3], %s206_s7 }
  0x68   : > { %s210_s12 = scalar_lea.vmem [#allocation6], %s530_s27  ;;  %p1025_p3 = scmp.ne.s32.totalorder %s1014_s25, 0 }
  0x6a   : > { %732 = dma.done.wait (%p1025_p3), %s207_s30, 256  }
  0x6b   : > { %734 = vsyncadd (%p1025_p3), %s207_s30, 4294967040  ;;  %v617_v0 = vld [vmem:[%s210_s12] sm:$0xff]   ;;  %vm239_vm0 = vcmask 261120   ;;  %v618_v1 = vld [vmem:[%s210_s12 + $0x8] sm:$0xff]   ;;  %s531_s18 = sshll.u32 %s208_s11, 5  ;;  %p1026_p7 = scmp.ne.s32.totalorder %s1015_s26, 0 }
  0x6c   : > { %546 = vmatprep.subr.bf16.mxu0 %v617_v0  ;;  %v235_v2 = vld [vmem:[%s1004_s0] sm:$0xff]  ;;  %v236_v3 = vld [vmem:[%s1004_s0 + $0x8] sm:$0xff]  ;;  %v237_v4 = vld [vmem:[%s1004_s0 + $0x10] sm:$0xff]  ;;  %s233_s8 = scalar_lea.vmem [#allocation7], %s531_s18  ;;  %s539_s24 = sshll.u32 (%p1026_p7), %s801_s19, 3 }
  0x6d   : > { %547 = vmatpush3.bf16.msra.mxu0 %v617_v0  ;;  %v238_v5 = vld [vmem:[%s1004_s0 + $0x18] sm:$0xff]  ;;  %v240_v6 = vsel %vm239_vm0, %v235_v2, 0.0  ;;  %v241_v7 = vsel %vm239_vm0, %v236_v3, 0.0  ;;  %v243_v8 = vsel %vm239_vm0, %v237_v4, 0.0  ;;  %v532_v44 = vld [vmem:[#allocation2] ss:$0 sm:$0xff]  ;;  %s394_s9 = scalar_lea.vmem (%p1026_p7), %s1008_s4, %s539_s24 }
  0x6e   : > { %548 = vmatprep.subr.bf16.mxu0 %v618_v1  ;;  %v242_v9 = vadd.f32 %v241_v7, %v240_v6  ;;  %v245_v10 = vsel %vm239_vm0, %v238_v5, 0.0  ;;  %v533_v49 = vld [vmem:[#allocation4] ss:$0 sm:$0xff] }
  0x70   : > { %v244_v11 = vadd.f32 %v243_v8, %v242_v9 }
  0x71   : > { %549 = vmatpush3.bf16.msra.mxu0 %v618_v1 }
  0x72   : > { %v246_v12 = vadd.f32 %v245_v10, %v244_v11 }
  0x74   : > { %v247_v13 = vrot.slane %v246_v12, 4 }
  0x76   : > { %v248_v14 = vadd.f32 %v247_v13, %v246_v12 }
  0x78   : > { %v249_v15 = vrot.slane %v248_v14, 2 }
  0x7a   : > { %v250_v16 = vadd.f32 %v249_v15, %v248_v14 }
  0x7c   : > { %v251_v17 = vrot.slane %v250_v16, 1 }
  0x7e   : > { %v252_v18 = vadd.f32 %v251_v17, %v250_v16 }
  0x80   : > { %v254_v19 = vmul.f32 0.03125, %v252_v18 }
  0x82   : > { %v255_v20 = vsub.f32 %v235_v2, %v254_v19  ;;  %v256_v21 = vsub.f32 %v236_v3, %v254_v19  ;;  %v257_v22 = vsub.f32 %v237_v4, %v254_v19  ;;  %v258_v23 = vsub.f32 %v238_v5, %v254_v19 }
  0x84   : > { %v259_v24 = vmul.f32 %v255_v20, %v255_v20  ;;  %v260_v25 = vmul.f32 %v256_v21, %v256_v21  ;;  %v261_v26 = vmul.f32 %v257_v22, %v257_v22  ;;  %v262_v27 = vmul.f32 %v258_v23, %v258_v23 }
  0x86   : > { %v263_v28 = vsel %vm239_vm0, %v259_v24, 0.0  ;;  %v264_v29 = vsel %vm239_vm0, %v260_v25, 0.0  ;;  %v266_v30 = vsel %vm239_vm0, %v261_v26, 0.0  ;;  %v268_v32 = vsel %vm239_vm0, %v262_v27, 0.0 }
  0x87   : > { %v265_v31 = vadd.f32 %v264_v29, %v263_v28 }
  0x89   : > { %v267_v33 = vadd.f32 %v266_v30, %v265_v31 }
  0x8b   : > { %v269_v34 = vadd.f32 %v268_v32, %v267_v33 }
  0x8d   : > { %v270_v35 = vrot.slane %v269_v34, 4 }
  0x8f   : > { %v271_v36 = vadd.f32 %v270_v35, %v269_v34 }
  0x91   : > { %v272_v37 = vrot.slane %v271_v36, 2 }
  0x93   : > { %v273_v38 = vadd.f32 %v272_v37, %v271_v36 }
  0x95   : > { %v274_v39 = vrot.slane %v273_v38, 1 }
  0x97   : > { %v275_v40 = vadd.f32 %v274_v39, %v273_v38 }
  0x99   : > { %v276_v41 = vmul.f32 0.03125, %v275_v40 }
  0x9b   : > { %v277_v42 = vadd.f32 1e-05, %v276_v41 }
  0x9d   : > { %619 = vrsqrt.f32 %v277_v42 }
  0xa7   : > { %v620_v43 = vpop.eup %619 }
  0xa8   : > { %v279_v45 = vmul.f32 %v620_v43, %v255_v20  ;;  %v280_v46 = vmul.f32 %v620_v43, %v256_v21  ;;  %v281_v47 = vmul.f32 %v620_v43, %v257_v22  ;;  %v282_v48 = vmul.f32 %v620_v43, %v258_v23 }
  0xaa   : > { %v290_v50 = vmul.f32 %v532_v44, %v279_v45  ;;  %v291_v51 = vmul.f32 %v532_v44, %v280_v46  ;;  %v292_v52 = vmul.f32 %v532_v44, %v281_v47  ;;  %v293_v53 = vmul.f32 %v532_v44, %v282_v48 }
  0xac   : > { %v301_v54 = vadd.f32 %v533_v49, %v290_v50  ;;  %v302_v55 = vadd.f32 %v533_v49, %v291_v51  ;;  %v303_v56 = vadd.f32 %v533_v49, %v292_v52  ;;  %v304_v57 = vadd.f32 %v533_v49, %v293_v53 }
  0xae   : > { %v305_v58 = vmax.f32 %v301_v54, 0.0  ;;  %v306_v59 = vmax.f32 %v302_v55, 0.0  ;;  %v307_v60 = vmax.f32 %v303_v56, 0.0  ;;  %v308_v61 = vmax.f32 %v304_v57, 0.0 }
  0xb0   : > { %v309_v62 = vpack.c.bf16 %v306_v59, %v305_v58  ;;  %v310_v63 = vpack.c.bf16 %v308_v61, %v307_v60 }
  0xb2   : > { %550 = vmatprep.mubr.msk.bf16.mxu0 %vm239_vm0, %v309_v62 }
  0xb3   : > { %551 = vmatmul.mubr.msk.bf16.vlgmr.msra.gmra.mrb[0].mxu0 %vm239_vm0, %v310_v63 }
 0x184   : > { %392 = sbr.rel (!%p1026_p7) target bundleno = 403 (0x193), region = 52 }
 0x186   : > { %v552_v0 = vpop.f32.mrb[0].mxu0 }
 0x187   : > { %384 = vst [vmem:[%s233_s8 + $0x10] sm:$0xff] %v552_v0  ;;  %v367_v1 = vpop.f32.mrb[1].mxu0 }
 0x188   : > { %382 = vst [vmem:[%s233_s8] sm:$0xff] %v367_v1  ;;  %v553_v2 = vpop.f32.mrb[2].mxu0 }
 0x189   : > { %385 = vst [vmem:[%s233_s8 + $0x18] sm:$0xff] %v553_v2  ;;  %v370_v3 = vpop.f32.mrb[3].mxu0 }
 0x18a   : > { %383 = vst [vmem:[%s233_s8 + $0x8] sm:$0xff] %v370_v3 }
 0x18e   : > { %v432_v6 = vld [vmem:[%s233_s8 + $0x10] sm:$0xff] }
 0x18f   : > { %v428_v4 = vld [vmem:[%s233_s8] sm:$0xff]  ;;  %433 = vst [vmem:[%s394_s9 + $0x20] sm:$0xff] %v432_v6 }
 0x190   : > { %v434_v7 = vld [vmem:[%s233_s8 + $0x18] sm:$0xff]  ;;  %429 = vst [vmem:[%s394_s9] sm:$0xff] %v428_v4 }
 0x191   : > { %v430_v5 = vld [vmem:[%s233_s8 + $0x8] sm:$0xff]  ;;  %435 = vst [vmem:[%s394_s9 + $0x30] sm:$0xff] %v434_v7 }
 0x192   : > { %431 = vst [vmem:[%s394_s9 + $0x10] sm:$0xff] %v430_v5 }
 0x193 PF: > { %p13_p9 = scmp.ge.s32.totalorder %s804_s20, 4   ;;  %s1027_s15 = smov %s741_s16 }
 0x194   : > { %s1028_s16 = smov %s745_s17  ;;  %s1029_s17 = smov %s814_s23 }
 0x195   : > { %s1030_s18 = smov %s804_s20  ;;  %15 = sbr.rel (!%p13_p9) target bundleno = 3 (0x3), region = 121 }
 0x19c   :  { %451 = vsyncpa [#allocation3], 1 }
 0x19d   :  { %453 = vsyncpa [#allocation3 + $0x1], 1 }
 0x19e   :  { %454 = vsyncpa [#allocation5], 1 }

// kernel: generator_forward.6
= control target key start
LH: loop header
LB: loop body
LE: loop exit
PB: predicated region body
PF: predicated region fallthrough
CT: control target
= control target key end

     0   :  { %7 = vsyncpa [#allocation3], 0  ;;  %s677_s0 = inlined_call_operand.hbm [shape: f32[2,16], index: 0, kind: input, shape index: {}]   ;;  %s678_s1 = inlined_call_operand.hbm [shape: bf16[16,512], index: 1, kind: input, shape index: {}]   ;;  %s679_s2 = inlined_call_operand.vmem [shape: f32[2,512], index: 2, kind: output, shape index: {}]  }
   0x1   :  { %8 = vsyncpa [#allocation5], 0 }
   0x2   :  { %10 = vsyncpa [#allocation5 + $0x1], 0  ;;  %s526_s9 = smov 0   ;;  %s528_s10 = smov 0  }
   0x3   :  { %s530_s11 = smov 0   ;;  %s532_s12 = smov 0  }
   0x4 LB: > { %s330_s13 = sadd.s32 4294967295, %s503_s12   ;;  %s546_s14 = sadd.s32 1, %s503_s12   ;;  %s503_s12 = sphi %s532_s12, %s698_s12   ;;  %s499_s11 = sphi %s530_s11, %s697_s11   ;;  %s495_s10 = sphi %s528_s10, %s696_s10   ;;  %s491_s9 = sphi %s526_s9, %s695_s9  }
   0x5   : > { %s41_s15 = ssub.s32 %s503_s12, %s546_s14  ;;  %s44_s16 = sadd.s32 1, %s499_s11 }
   0x6   : > { %p42_p0 = scmp.eq.s32.totalorder %s41_s15, 0  ;;  %p51_p1 = scmp.ne.s32.totalorder %s499_s11, %s495_s10 }
   0x7   : > { %p52_p2 = scmp.eq.s32.totalorder %s503_s12, 0  ;;  %p57_p3 = scmp.ne.s32.totalorder %s495_s10, %s491_s9 }
   0x8   : > { %s556_s17 = scalar_select %p42_p0, %s499_s11, %s44_s16  }
   0x9   : > { %p558_p4 = por %p52_p2, %p51_p1  ;;  %p564_p5 = scmp.eq.s32.totalorder %s330_s13, 0 }
   0xa   : > { %p332_p6 = scmp.ge.s32.totalorder %s503_s12, 1  ;;  %p94_p7 = scmp.lt.s32.totalorder %s503_s12, 3 }
   0xb   : > { %s686_s19 = scalar_select %p564_p5, 1, 0 }
   0xc   : > { %p572_p8 = por %p564_p5, %p57_p3  ;;  %p576_p9 = pnand %p332_p6, %p94_p7 }
   0xd   : > { %s505_s22 = smov [#allocation2]   ;;  %p365_p11 = scmp.lt.s32.totalorder %s503_s12, 2 }
   0xe   : > { %s687_s20 = scalar_select %p572_p8, 1, 0 }
   0xf   : > { %s688_s21 = scalar_select %p576_p9, 1, 0 }
  0x10   : > { %s107_s23 = sshll.u32 %s505_s22, 4  ;;  %p356_p10 = pneg %p576_p9  ;;  %s108_s23 = int_to_ptr.vmem [resolvable:$true] %s107_s23 }
  0x11   : > { %s118_s24 = sand.u32 1, %s499_s11   ;;  %p592_p13 = pnand %p365_p11, %p558_p4 }
  0x12   : > { %p586_p12 = pnand %p356_p10, %p564_p5  ;;  %s335_s27 = sshll.u32 %s118_s24, 4 }
  0x13   : > { %s690_s26 = scalar_select %p592_p13, 1, 0 }
  0x14   : > { %s407_s30 = scalar_lea.hbm %s677_s0, 32  ;;  %p409_p1 = pneg %p586_p12 }
  0x15   : > { %p408_p0 = scmp.ne.s32.totalorder %s677_s0, %s407_s30  ;;  %p414_p4 = scmp.lt.u32.totalorder %s407_s30, %s677_s0 }
  0x17   : > { %p410_p2 = pnand %p409_p1, %p408_p0 }
  0x19   : > { %p411_p3 = pneg %p410_p2 }
  0x1b   : > { %p416_p6 = pnand %p414_p4, %p411_p3 }
  0x1d   : > { %419 = shalt.err (!%p416_p6)
}
  0x1e   : > { %s420_s7 = scalar_lea.vmem %s108_s23, 32  ;;  %p428_p8 = scmp.lt.s32.totalorder %s108_s23, %s108_s23 }
  0x1f   : > { %p421_p7 = scmp.ne.s32.totalorder %s108_s23, %s420_s7  ;;  %p429_p5 = scmp.lt.s32.totalorder %s420_s7, %s420_s7 }
  0x21   : > { %p423_p10 = pnand %p421_p7, %p409_p1  ;;  %p430_p9 = por %p429_p5, %p428_p8 }
  0x23   : > { %p424_p11 = pneg %p423_p10 }
  0x25   : > { %p431_p13 = pnand %p430_p9, %p424_p11 }
  0x27   : > { %434 = shalt.err (!%p431_p13)
}
  0x28   : > { %359 = dma.hbm_to_vmem [thread:$0]  (!%p586_p12), %s677_s0, 32, %s108_s23, [#allocation3]  }
  0x29   : > { %s349_s15 = sshll.u32 %s503_s12, 7  ;;  %s122_s28 = scalar_lea.vmem [#allocation4], %s335_s27 }
  0x2a   : > { %s616_s22 = scalar_lea.hbm %s678_s1, %s349_s15  ;;  %s129_s29 = sshll.u32 %s122_s28, 4  ;;  %s618_s29 = int_to_ptr.vmem [resolvable:$true] %s129_s29 }
  0x2b   : > { %s620_s25 = scalar_lea.sflag [#allocation5], %s118_s24  ;;  %s435_s30 = scalar_lea.hbm %s616_s22, 256 }
  0x2c   : > { %p436_p5 = scmp.ne.s32.totalorder %s616_s22, %s435_s30  ;;  %p691_p8 = scmp.ne.s32.totalorder %s690_s26, 0 }
  0x2d   : > { %s440_s4 = scalar_lea.hbm %s678_s1, 512  ;;  %p441_p0 = scmp.lt.u32.totalorder %s616_s22, %s678_s1 }
  0x2e   : > { %p437_p9 = pneg %p691_p8  ;;  %p442_p1 = scmp.lt.u32.totalorder %s440_s4, %s435_s30 }
  0x2f   : > { %p444_p3 = scmp.lt.u32.totalorder %s435_s30, %s616_s22 }
  0x30   : > { %p438_p12 = pnand %p437_p9, %p436_p5  ;;  %p443_p2 = por %p442_p1, %p441_p0 }
  0x32   : > { %p439_p13 = pneg %p438_p12  ;;  %p445_p4 = por %p444_p3, %p443_p2 }
  0x34   : > { %p446_p6 = pnand %p445_p4, %p439_p13 }
  0x36   : > { %449 = shalt.err (!%p446_p6)
}
  0x37   : > { %s450_s24 = scalar_lea.vmem %s618_s29, 256  ;;  %s506_s27 = smov [#allocation4]  }
  0x38   : > { %p451_p7 = scmp.ne.s32.totalorder %s618_s29, %s450_s24  ;;  %s455_s7 = sshll.u32 %s506_s27, 4  ;;  %s456_s7 = int_to_ptr.vmem [resolvable:$false] %s455_s7 }
  0x39   : > { %s457_s8 = scalar_lea.vmem %s456_s7, 512  ;;  %p458_p5 = scmp.lt.s32.totalorder %s618_s29, %s456_s7 }
  0x3a   : > { %p453_p10 = pnand %p451_p7, %p437_p9  ;;  %p459_p12 = scmp.lt.s32.totalorder %s457_s8, %s450_s24 }
  0x3c   : > { %p454_p11 = pneg %p453_p10  ;;  %p460_p0 = por %p459_p12, %p458_p5 }
  0x3e   : > { %p461_p1 = pnand %p460_p0, %p454_p11 }
  0x40   : > { %464 = shalt.err (!%p461_p1)
}
  0x41   : > { %s507_s9 = smov 256   ;;  %s508_s15 = smov 128  }
  0x42   : > { %s509_s16 = smov 8   ;;  %p692_p9 = scmp.ne.s32.totalorder %s688_s21, 0 }
  0x43   : > { %363 = dma.hbm_to_vmem [thread:$0]  (!%p691_p8), %s616_s22, 256, %s618_s29, %s620_s25, %s507_s9, %s508_s15, %s509_s16  }
  0x44   : > { %141 = sbr.rel (%p692_p9) target bundleno = 301 (0x12d), region = 28  ;;  %p693_p13 = scmp.ne.s32.totalorder (!%p692_p9), %s686_s19, 0 }
  0x4b   : > { %482 = dma.done.wait (%p693_p13), [#allocation3], 32  }
  0x4c   : > { %484 = vsyncadd (%p693_p13), [#allocation3], 4294967264  ;;  %s147_s18 = sand.u32 1, %s495_s10   ;;  %p694_p2 = scmp.ne.s32.totalorder %s687_s20, 0 }
  0x4d   : > { %s340_s28 = sshll.u32 %s147_s18, 4  ;;  %s148_s30 = scalar_lea.sflag [#allocation5], %s147_s18 }
  0x4e   : > { %s151_s23 = scalar_lea.vmem [#allocation4], %s340_s28 }
  0x4f   : > { %486 = dma.done.wait (%p694_p2), %s148_s30, 256  }
  0x50   : > { %488 = vsyncadd (%p694_p2), %s148_s30, 4294967040  ;;  %v510_v0 = vmov 0   ;;  %v404_v1 = vld [vmem:[%s151_s23 + $0x4] ss:$8 sps:$4 sm:$0xff]   ;;  %v406_v2 = vld [vmem:[%s151_s23] ss:$8 sps:$4 sm:$0xff]  }
  0x51   : > { %230 = vmatprep.mubr.bf16.mxu0 %v510_v0  ;;  %v180_v3 = vld [vmem:[#allocation2] sm:$0x3]  ;;  %198 = vmatprep.subr.bf16.mxu0 %v404_v1  ;;  %vm194_vm0 = vcmask 130048   ;;  %s341_s19 = sshll.u32 %s330_s13, 1 }
  0x52   : > { %v181_v4 = vpack.c.bf16 %v180_v3, %v180_v3  ;;  %199 = vmatpush1.bf16.msra.mxu0 %v406_v2  ;;  %p174_p8 = scmp.lt.s32.totalorder %s341_s19, 3 }
  0x54   : > { %s700_s19 = smov (!%p174_p8, %s341_s19), 3 }
  0x55   : > { %345 = vmatmul.mubr.msk.bf16.vlgmr.msra.gmra.mrb[0].mxu0 %vm194_vm0, %v181_v4  ;;  %s342_s21 = sshll.u32 %s700_s19, 1 }
  0x56   : > { %s177_s22 = scalar_lea.vmem %s679_s2, %s342_s21 }
 0x128   : > { %v232_v5 = vpop.f32.mrb[0].mxu0 }
 0x129   : > { %v234_v6 = vpop.f32.mrb[1].mxu0 }
 0x12a   : > { %v241_v7 = vcombine.low %v232_v5, %v234_v6  ;;  %v236_v8 = vpop.f32.mrb[2].mxu0 }
 0x12b   : > { %v237_v9 = vpop.f32.mrb[3].mxu0 }
 0x12c   : > { %346 = vst.sshfl [vmem:[%s177_s22] sm:$0x33 pattern:$0x76325410] %v241_v7 }
 0x12d PF: > { %p13_p3 = scmp.ge.s32.totalorder %s546_s14, 4   ;;  %s695_s9 = smov %s495_s10 }
 0x12e   : > { %s696_s10 = smov %s499_s11  ;;  %s697_s11 = smov %s556_s17 }
 0x12f   : > { %s698_s12 = smov %s546_s14  ;;  %15 = sbr.rel (!%p13_p3) target bundleno = 4 (0x4), region = 73 }
 0x136   :  { %273 = vsyncpa [#allocation3], 1 }
 0x137   :  { %275 = vsyncpa [#allocation3 + $0x1], 1 }
 0x138   :  { %276 = vsyncpa [#allocation5], 1 }
 0x139   :  { %278 = vsyncpa [#allocation5 + $0x1], 1 }

// kernel: generator_forward.8
= control target key start
LH: loop header
LB: loop body
LE: loop exit
PB: predicated region body
PF: predicated region fallthrough
CT: control target
= control target key end

     0   :  { %vm34_vm0 = vcmask 130048   ;;  %s690_s3 = inlined_call_operand.vmem [shape: bf16[16,128], index: 3, kind: input, shape index: {}]   ;;  %s691_s0 = inlined_call_operand.vmem [shape: f32[128,16], index: 0, kind: input, shape index: {}]   ;;  %s692_s1 = inlined_call_operand.vmem [shape: f32[1,16], index: 1, kind: input, shape index: {}]   ;;  %s693_s2 = inlined_call_operand.vmem [shape: f32[1,16], index: 2, kind: input, shape index: {}]   ;;  %s694_s4 = inlined_call_operand.vmem [shape: f32[128,128], index: 4, kind: output, shape index: {}]  }
   0x1   :  { %v421_v0 = vld [vmem:[%s690_s3] sm:$0xff]   ;;  %v19_v2 = vld [vmem:[%s691_s0 + $0x8] sm:$0xff]  ;;  %v20_v3 = vld [vmem:[%s691_s0 + $0x10] sm:$0xff] }
   0x2   :  { %v18_v1 = vld [vmem:[%s691_s0] sm:$0xff]  ;;  %401 = vmatprep.subr.bf16.mxu0 %v421_v0  ;;  %419 = vmatprep.subr.bf16.mxu1 %v421_v0  ;;  %v21_v4 = vld [vmem:[%s691_s0 + $0x18] sm:$0xff]  ;;  %v36_v6 = vsel %vm34_vm0, %v19_v2, 0.0  ;;  %v38_v7 = vsel %vm34_vm0, %v20_v3, 0.0  ;;  %v23_v11 = vld [vmem:[%s691_s0 + $0x28] sm:$0xff] }
   0x3   :  { %v35_v5 = vsel %vm34_vm0, %v18_v1, 0.0  ;;  %402 = vmatpush3.bf16.msra.mxu0 %v421_v0  ;;  %420 = vmatpush3.bf16.msra.mxu1 %v421_v0  ;;  %v22_v8 = vld [vmem:[%s691_s0 + $0x20] sm:$0xff]  ;;  %v40_v10 = vsel %vm34_vm0, %v21_v4, 0.0  ;;  %v24_v14 = vld [vmem:[%s691_s0 + $0x30] sm:$0xff]  ;;  %v44_v16 = vsel %vm34_vm0, %v23_v11, 0.0  ;;  %v25_v17 = vld [vmem:[%s691_s0 + $0x38] sm:$0xff] }
   0x4   :  { %v37_v9 = vadd.f32 %v36_v6, %v35_v5  ;;  %v42_v13 = vsel %vm34_vm0, %v22_v8, 0.0  ;;  %v46_v19 = vsel %vm34_vm0, %v24_v14, 0.0  ;;  %v26_v20 = vld [vmem:[%s691_s0 + $0x40] sm:$0xff]  ;;  %v48_v22 = vsel %vm34_vm0, %v25_v17, 0.0  ;;  %v27_v23 = vld [vmem:[%s691_s0 + $0x48] sm:$0xff]  ;;  %v28_v26 = vld [vmem:[%s691_s0 + $0x50] sm:$0xff] }
   0x5   :  { %v50_v25 = vsel %vm34_vm0, %v26_v20, 0.0  ;;  %v52_v28 = vsel %vm34_vm0, %v27_v23, 0.0  ;;  %v29_v29 = vld [vmem:[%s691_s0 + $0x58] sm:$0xff]  ;;  %v54_v31 = vsel %vm34_vm0, %v28_v26, 0.0  ;;  %v30_v32 = vld [vmem:[%s691_s0 + $0x60] sm:$0xff]  ;;  %v31_v35 = vld [vmem:[%s691_s0 + $0x68] sm:$0xff] }
   0x6   :  { %v39_v12 = vadd.f32 %v38_v7, %v37_v9  ;;  %v56_v34 = vsel %vm34_vm0, %v29_v29, 0.0  ;;  %v58_v37 = vsel %vm34_vm0, %v30_v32, 0.0  ;;  %v32_v38 = vld [vmem:[%s691_s0 + $0x70] sm:$0xff]  ;;  %v60_v40 = vsel %vm34_vm0, %v31_v35, 0.0  ;;  %v33_v41 = vld [vmem:[%s691_s0 + $0x78] sm:$0xff] }
   0x7   :  { %v62_v43 = vsel %vm34_vm0, %v32_v38, 0.0  ;;  %v64_v45 = vsel %vm34_vm0, %v33_v41, 0.0 }
   0x8   :  { %v41_v15 = vadd.f32 %v40_v10, %v39_v12 }
   0xa   :  { %v43_v18 = vadd.f32 %v42_v13, %v41_v15 }
   0xc   :  { %v45_v21 = vadd.f32 %v44_v16, %v43_v18 }
   0xe   :  { %v47_v24 = vadd.f32 %v46_v19, %v45_v21 }
  0x10   :  { %v49_v27 = vadd.f32 %v48_v22, %v47_v24 }
  0x12   :  { %v51_v30 = vadd.f32 %v50_v25, %v49_v27 }
  0x14   :  { %v53_v33 = vadd.f32 %v52_v28, %v51_v30 }
  0x16   :  { %v55_v36 = vadd.f32 %v54_v31, %v53_v33 }
  0x18   :  { %v57_v39 = vadd.f32 %v56_v34, %v55_v36 }
  0x1a   :  { %v59_v42 = vadd.f32 %v58_v37, %v57_v39 }
  0x1c   :  { %v61_v44 = vadd.f32 %v60_v40, %v59_v42 }
  0x1e   :  { %v63_v46 = vadd.f32 %v62_v43, %v61_v44 }
  0x20   :  { %v65_v47 = vadd.f32 %v64_v45, %v63_v46 }
  0x22   :  { %v66_v48 = vrot.slane %v65_v47, 4 }
  0x24   :  { %v67_v49 = vadd.f32 %v66_v48, %v65_v47 }
  0x26   :  { %v68_v50 = vrot.slane %v67_v49, 2 }
  0x28   :  { %v69_v51 = vadd.f32 %v68_v50, %v67_v49 }
  0x2a   :  { %v70_v52 = vrot.slane %v69_v51, 1 }
  0x2c   :  { %v71_v53 = vadd.f32 %v70_v52, %v69_v51 }
  0x2e   :  { %v73_v54 = vmul.f32 0.0078125, %v71_v53 }
  0x30   :  { %v516_v55 = vsub.f32 %v18_v1, %v73_v54  ;;  %v518_v56 = vsub.f32 %v19_v2, %v73_v54  ;;  %v520_v57 = vsub.f32 %v20_v3, %v73_v54  ;;  %v522_v58 = vsub.f32 %v21_v4, %v73_v54 }
  0x31   :  { %v524_v59 = vsub.f32 %v22_v8, %v73_v54  ;;  %v532_v63 = vsub.f32 %v23_v11, %v73_v54  ;;  %v536_v1 = vsub.f32 %v24_v14, %v73_v54  ;;  %v543_v7 = vsub.f32 %v25_v17, %v73_v54 }
  0x32   :  { %v90_v60 = vmul.f32 %v516_v55, %v516_v55  ;;  %v91_v61 = vmul.f32 %v518_v56, %v518_v56  ;;  %v92_v62 = vmul.f32 %v520_v57, %v520_v57  ;;  %v93_v0 = vmul.f32 %v522_v58, %v522_v58 }
  0x33   :  { %v94_v2 = vmul.f32 %v524_v59, %v524_v59  ;;  %v95_v8 = vmul.f32 %v532_v63, %v532_v63  ;;  %v82_v11 = vsub.f32 %v26_v20, %v73_v54  ;;  %v96_v12 = vmul.f32 %v536_v1, %v536_v1 }
  0x34   :  { %v106_v3 = vsel %vm34_vm0, %v90_v60, 0.0  ;;  %v107_v4 = vsel %vm34_vm0, %v91_v61, 0.0  ;;  %v109_v5 = vsel %vm34_vm0, %v92_v62, 0.0  ;;  %v111_v9 = vsel %vm34_vm0, %v93_v0, 0.0 }
  0x35   :  { %v108_v6 = vadd.f32 %v107_v4, %v106_v3  ;;  %v113_v13 = vsel %vm34_vm0, %v94_v2, 0.0  ;;  %v83_v15 = vsub.f32 %v27_v23, %v73_v54  ;;  %v97_v16 = vmul.f32 %v543_v7, %v543_v7 }
  0x36   :  { %v115_v17 = vsel %vm34_vm0, %v95_v8, 0.0  ;;  %v84_v19 = vsub.f32 %v28_v26, %v73_v54  ;;  %v98_v21 = vmul.f32 %v82_v11, %v82_v11  ;;  %v117_v22 = vsel %vm34_vm0, %v96_v12, 0.0 }
  0x37   :  { %v110_v10 = vadd.f32 %v109_v5, %v108_v6  ;;  %v85_v25 = vsub.f32 %v29_v29, %v73_v54  ;;  %v99_v20 = vmul.f32 %v83_v15, %v83_v15  ;;  %v119_v27 = vsel %vm34_vm0, %v97_v16, 0.0  ;;  %v583_v6 = vld [vmem:[%s692_s1] ss:$0 sm:$0xff] }
  0x38   :  { %v556_v30 = vsub.f32 %v30_v32, %v73_v54  ;;  %v100_v31 = vmul.f32 %v84_v19, %v84_v19  ;;  %v121_v23 = vsel %vm34_vm0, %v98_v21, 0.0  ;;  %v559_v34 = vsub.f32 %v31_v35, %v73_v54 }
  0x39   :  { %v112_v14 = vadd.f32 %v111_v9, %v110_v10  ;;  %v101_v36 = vmul.f32 %v85_v25, %v85_v25  ;;  %v123_v26 = vsel %vm34_vm0, %v99_v20, 0.0  ;;  %v562_v39 = vsub.f32 %v32_v38, %v73_v54 }
  0x3a   :  { %v102_v29 = vmul.f32 %v556_v30, %v556_v30  ;;  %v125_v40 = vsel %vm34_vm0, %v100_v31, 0.0  ;;  %v567_v32 = vsub.f32 %v33_v41, %v73_v54  ;;  %v103_v43 = vmul.f32 %v559_v34, %v559_v34 }
  0x3b   :  { %v114_v18 = vadd.f32 %v113_v13, %v112_v14  ;;  %v127_v35 = vsel %vm34_vm0, %v101_v36, 0.0  ;;  %v104_v45 = vmul.f32 %v562_v39, %v562_v39  ;;  %v590_v13 = vld [vmem:[%s693_s2] ss:$0 sm:$0xff] }
  0x3c   :  { %v129_v38 = vsel %vm34_vm0, %v102_v29, 0.0  ;;  %v105_v47 = vmul.f32 %v567_v32, %v567_v32  ;;  %v131_v48 = vsel %vm34_vm0, %v103_v43, 0.0 }
  0x3d   :  { %v116_v24 = vadd.f32 %v115_v17, %v114_v18  ;;  %v133_v41 = vsel %vm34_vm0, %v104_v45, 0.0 }
  0x3e   :  { %v135_v51 = vsel %vm34_vm0, %v105_v47, 0.0 }
  0x3f   :  { %v118_v28 = vadd.f32 %v117_v22, %v116_v24 }
  0x41   :  { %v120_v33 = vadd.f32 %v119_v27, %v118_v28 }
  0x43   :  { %v122_v37 = vadd.f32 %v121_v23, %v120_v33 }
  0x45   :  { %v124_v42 = vadd.f32 %v123_v26, %v122_v37 }
  0x47   :  { %v126_v44 = vadd.f32 %v125_v40, %v124_v42 }
  0x49   :  { %v128_v46 = vadd.f32 %v127_v35, %v126_v44 }
  0x4b   :  { %v130_v49 = vadd.f32 %v129_v38, %v128_v46 }
  0x4d   :  { %v132_v50 = vadd.f32 %v131_v48, %v130_v49 }
  0x4f   :  { %v134_v52 = vadd.f32 %v133_v41, %v132_v50 }
  0x51   :  { %v136_v53 = vadd.f32 %v135_v51, %v134_v52 }
  0x53   :  { %v137_v54 = vrot.slane %v136_v53, 4 }
  0x55   :  { %v138_v60 = vadd.f32 %v137_v54, %v136_v53 }
  0x57   :  { %v139_v61 = vrot.slane %v138_v60, 2 }
  0x59   :  { %v140_v62 = vadd.f32 %v139_v61, %v138_v60 }
  0x5b   :  { %v141_v0 = vrot.slane %v140_v62, 1 }
  0x5d   :  { %v142_v2 = vadd.f32 %v141_v0, %v140_v62 }
  0x5f   :  { %v143_v3 = vmul.f32 0.0078125, %v142_v2 }
  0x61   :  { %v144_v4 = vadd.f32 1e-05, %v143_v3 }
  0x63   :  { %422 = vrsqrt.f32 %v144_v4 }
  0x6d   :  { %v423_v5 = vpop.eup %422 }
  0x6e   :  { %v146_v8 = vmul.f32 %v423_v5, %v516_v55  ;;  %v147_v9 = vmul.f32 %v423_v5, %v518_v56  ;;  %v154_v10 = vmul.f32 %v423_v5, %v82_v11  ;;  %v155_v12 = vmul.f32 %v423_v5, %v83_v15 }
  0x6f   :  { %v148_v14 = vmul.f32 %v423_v5, %v520_v57  ;;  %v149_v16 = vmul.f32 %v423_v5, %v522_v58  ;;  %v156_v17 = vmul.f32 %v423_v5, %v84_v19  ;;  %v157_v18 = vmul.f32 %v423_v5, %v85_v25 }
  0x70   :  { %v169_v21 = vmul.f32 %v583_v6, %v146_v8  ;;  %v170_v22 = vmul.f32 %v583_v6, %v147_v9  ;;  %v177_v55 = vmul.f32 %v583_v6, %v154_v10  ;;  %v178_v56 = vmul.f32 %v583_v6, %v155_v12 }
  0x71   :  { %v171_v11 = vmul.f32 %v583_v6, %v148_v14  ;;  %v172_v15 = vmul.f32 %v583_v6, %v149_v16  ;;  %v179_v24 = vmul.f32 %v583_v6, %v156_v17  ;;  %v180_v57 = vmul.f32 %v583_v6, %v157_v18 }
  0x72   :  { %v192_v58 = vadd.f32 %v590_v13, %v169_v21  ;;  %v193_v19 = vadd.f32 %v590_v13, %v170_v22  ;;  %v200_v25 = vadd.f32 %v590_v13, %v177_v55  ;;  %v201_v20 = vadd.f32 %v590_v13, %v178_v56 }
  0x73   :  { %v194_v27 = vadd.f32 %v590_v13, %v171_v11  ;;  %v195_v28 = vadd.f32 %v590_v13, %v172_v15  ;;  %v202_v31 = vadd.f32 %v590_v13, %v179_v24  ;;  %v203_v23 = vadd.f32 %v590_v13, %v180_v57 }
  0x74   :  { %v208_v33 = vmax.f32 %v192_v58, 0.0  ;;  %v209_v36 = vmax.f32 %v193_v19, 0.0  ;;  %v216_v26 = vmax.f32 %v200_v25, 0.0  ;;  %v217_v37 = vmax.f32 %v201_v20, 0.0 }
  0x75   :  { %v210_v29 = vmax.f32 %v194_v27, 0.0  ;;  %v211_v40 = vmax.f32 %v195_v28, 0.0  ;;  %v218_v42 = vmax.f32 %v202_v31, 0.0  ;;  %v219_v43 = vmax.f32 %v203_v23, 0.0 }
  0x76   :  { %v224_v35 = vpack.c.bf16 %v209_v36, %v208_v33  ;;  %v228_v44 = vpack.c.bf16 %v217_v37, %v216_v26  ;;  %v150_v45 = vmul.f32 %v423_v5, %v524_v59  ;;  %v151_v38 = vmul.f32 %v423_v5, %v532_v63 }
  0x77   :  { %v225_v46 = vpack.c.bf16 %v211_v40, %v210_v29  ;;  %v229_v47 = vpack.c.bf16 %v219_v43, %v218_v42  ;;  %v158_v48 = vmul.f32 %v423_v5, %v556_v30  ;;  %v159_v49 = vmul.f32 %v423_v5, %v559_v34 }
  0x78   :  { %403 = vmatprep.mubr.msk.bf16.mxu0 %vm34_vm0, %v224_v35  ;;  %411 = vmatprep.mubr.msk.bf16.mxu1 %vm34_vm0, %v228_v44  ;;  %v173_v41 = vmul.f32 %v583_v6, %v150_v45  ;;  %v174_v50 = vmul.f32 %v583_v6, %v151_v38  ;;  %v152_v51 = vmul.f32 %v423_v5, %v536_v1 }
  0x79   :  { %404 = vmatmul.mubr.msk.bf16.vlgmr.msra.gmra.mrb[0].mxu0 %vm34_vm0, %v225_v46  ;;  %412 = vmatmul.mubr.msk.bf16.vlgmr.msra.gmra.mrb[0].mxu1 %vm34_vm0, %v229_v47  ;;  %v181_v59 = vmul.f32 %v583_v6, %v158_v48  ;;  %v182_v63 = vmul.f32 %v583_v6, %v159_v49  ;;  %v153_v30 = vmul.f32 %v423_v5, %v543_v7 }
  0x7a   :  { %v196_v34 = vadd.f32 %v590_v13, %v173_v41  ;;  %v197_v52 = vadd.f32 %v590_v13, %v174_v50  ;;  %v175_v53 = vmul.f32 %v583_v6, %v152_v51  ;;  %v160_v54 = vmul.f32 %v423_v5, %v562_v39 }
  0x7b   :  { %v204_v1 = vadd.f32 %v590_v13, %v181_v59  ;;  %v205_v60 = vadd.f32 %v590_v13, %v182_v63  ;;  %v176_v61 = vmul.f32 %v583_v6, %v153_v30  ;;  %v161_v62 = vmul.f32 %v423_v5, %v567_v32 }
  0x7c   :  { %v212_v0 = vmax.f32 %v196_v34, 0.0  ;;  %v213_v2 = vmax.f32 %v197_v52, 0.0  ;;  %v198_v7 = vadd.f32 %v590_v13, %v175_v53  ;;  %v183_v3 = vmul.f32 %v583_v6, %v160_v54 }
  0x7d   :  { %v220_v4 = vmax.f32 %v204_v1, 0.0  ;;  %v221_v8 = vmax.f32 %v205_v60, 0.0  ;;  %v199_v9 = vadd.f32 %v590_v13, %v176_v61  ;;  %v184_v39 = vmul.f32 %v583_v6, %v161_v62 }
  0x7e   :  { %v226_v10 = vpack.c.bf16 %v213_v2, %v212_v0  ;;  %v214_v12 = vmax.f32 %v198_v7, 0.0  ;;  %v206_v14 = vadd.f32 %v590_v13, %v183_v3 }
  0x7f   :  { %v230_v16 = vpack.c.bf16 %v221_v8, %v220_v4  ;;  %v215_v17 = vmax.f32 %v199_v9, 0.0  ;;  %v207_v32 = vadd.f32 %v590_v13, %v184_v39 }
  0x80   :  { %407 = vmatprep.mubr.msk.bf16.mxu0 %vm34_vm0, %v226_v10  ;;  %v222_v5 = vmax.f32 %v206_v14, 0.0 }
  0x81   :  { %415 = vmatprep.mubr.msk.bf16.mxu1 %vm34_vm0, %v230_v16  ;;  %v227_v18 = vpack.c.bf16 %v215_v17, %v214_v12  ;;  %v223_v21 = vmax.f32 %v207_v32, 0.0 }
  0x83   :  { %408 = vmatmul.mubr.msk.bf16.gmra.mrb[4].mxu0 %vm34_vm0, %v227_v18  ;;  %v231_v22 = vpack.c.bf16 %v223_v21, %v222_v5 }
  0x85   :  { %416 = vmatmul.mubr.msk.bf16.gmra.mrb[4].mxu1 %vm34_vm0, %v231_v22 }
 0x14c   :  { %v405_v6 = vpop.f32.mrb[0].mxu0  ;;  %v413_v55 = vpop.f32.mrb[0].mxu1 }
 0x14d   :  { %363 = vst [vmem:[%s694_s4 + $0x10] sm:$0xff] %v405_v6  ;;  %371 = vst [vmem:[%s694_s4 + $0x50] sm:$0xff] %v413_v55  ;;  %v298_v13 = vpop.f32.mrb[1].mxu0  ;;  %v330_v56 = vpop.f32.mrb[1].mxu1 }
 0x14e   :  { %361 = vst [vmem:[%s694_s4] sm:$0xff] %v298_v13  ;;  %369 = vst [vmem:[%s694_s4 + $0x40] sm:$0xff] %v330_v56  ;;  %v406_v11 = vpop.f32.mrb[2].mxu0  ;;  %v414_v15 = vpop.f32.mrb[2].mxu1 }
 0x14f   :  { %364 = vst [vmem:[%s694_s4 + $0x18] sm:$0xff] %v406_v11  ;;  %372 = vst [vmem:[%s694_s4 + $0x58] sm:$0xff] %v414_v15  ;;  %v301_v24 = vpop.f32.mrb[3].mxu0  ;;  %v333_v57 = vpop.f32.mrb[3].mxu1 }
 0x150   :  { %362 = vst [vmem:[%s694_s4 + $0x8] sm:$0xff] %v301_v24  ;;  %370 = vst [vmem:[%s694_s4 + $0x48] sm:$0xff] %v333_v57 }
 0x156   :  { %v409_v58 = vpop.f32.mrb[4].mxu0 }
 0x157   :  { %367 = vst [vmem:[%s694_s4 + $0x30] sm:$0xff] %v409_v58  ;;  %v314_v19 = vpop.f32.mrb[5].mxu0 }
 0x158   :  { %v417_v25 = vpop.f32.mrb[4].mxu1  ;;  %365 = vst [vmem:[%s694_s4 + $0x20] sm:$0xff] %v314_v19  ;;  %v410_v20 = vpop.f32.mrb[6].mxu0 }
 0x159   :  { %375 = vst [vmem:[%s694_s4 + $0x70] sm:$0xff] %v417_v25  ;;  %v346_v27 = vpop.f32.mrb[5].mxu1  ;;  %368 = vst [vmem:[%s694_s4 + $0x38] sm:$0xff] %v410_v20  ;;  %v317_v28 = vpop.f32.mrb[7].mxu0 }
 0x15a   :  { %373 = vst [vmem:[%s694_s4 + $0x60] sm:$0xff] %v346_v27  ;;  %v418_v31 = vpop.f32.mrb[6].mxu1  ;;  %366 = vst [vmem:[%s694_s4 + $0x28] sm:$0xff] %v317_v28 }
 0x15b   :  { %376 = vst [vmem:[%s694_s4 + $0x78] sm:$0xff] %v418_v31  ;;  %v349_v23 = vpop.f32.mrb[7].mxu1 }
 0x15c   :  { %374 = vst [vmem:[%s694_s4 + $0x68] sm:$0xff] %v349_v23 }

// kernel: generator_forward.9
= control target key start
LH: loop header
LB: loop body
LE: loop exit
PB: predicated region body
PF: predicated region fallthrough
CT: control target
= control target key end

     0   :  { %vm881_vm0 = vcmask 1043456   ;;  %vm82_vm1 = vcmask 64512   ;;  %vm1174_vm2 = vcmask 523264   ;;  %s2864_s3 = inlined_call_operand.vmem [shape: bf16[8,64], index: 3, kind: input, shape index: {}]   ;;  %s2865_s0 = inlined_call_operand.vmem [shape: f32[512,8], index: 0, kind: input, shape index: {}]   ;;  %s2866_s1 = inlined_call_operand.vmem [shape: f32[1,8], index: 1, kind: input, shape index: {}]   ;;  %s2867_s2 = inlined_call_operand.vmem [shape: f32[1,8], index: 2, kind: input, shape index: {}]   ;;  %s2868_s4 = inlined_call_operand.vmem [shape: f32[512,64], index: 4, kind: output, shape index: {}]  }
   0x1   :  { %v784_v0 = vld [vmem:[%s2864_s3] sm:$0xf]  ;;  %v1418_v2 = vld [vmem:[%s2865_s0 + $0x8] sm:$0xff]  ;;  %v1423_v4 = vld [vmem:[%s2865_s0 + $0x10] sm:$0xff] }
   0x2   :  { %v1413_v1 = vld [vmem:[%s2865_s0] sm:$0xff]  ;;  %1378 = vmatprep.subr.msk.bf16.mxu0 %vm881_vm0, %v784_v0  ;;  %1379 = vmatprep.subr.msk.bf16.mxu1 %vm881_vm0, %v784_v0  ;;  %v883_v3 = vsel %vm881_vm0, %v784_v0, 0  ;;  %v1428_v5 = vld [vmem:[%s2865_s0 + $0x18] sm:$0xff]  ;;  %v84_v7 = vsel %vm82_vm1, %v1418_v2, 0.0  ;;  %v86_v10 = vsel %vm82_vm1, %v1423_v4, 0.0  ;;  %v1446_v12 = vld [vmem:[%s2865_s0 + $0x28] sm:$0xff] }
   0x3   :  { %v83_v6 = vsel %vm82_vm1, %v1413_v1, 0.0  ;;  %1311 = vmatpush3.bf16.msra.mxu0 %v883_v3  ;;  %1377 = vmatpush3.bf16.msra.mxu1 %v883_v3  ;;  %v1437_v8 = vld [vmem:[%s2865_s0 + $0x20] sm:$0xff]  ;;  %v88_v11 = vsel %vm82_vm1, %v1428_v5, 0.0  ;;  %v1453_v15 = vld [vmem:[%s2865_s0 + $0x30] sm:$0xff]  ;;  %v92_v17 = vsel %vm82_vm1, %v1446_v12, 0.0  ;;  %v1460_v18 = vld [vmem:[%s2865_s0 + $0x38] sm:$0xff] }
   0x4   :  { %v85_v9 = vadd.f32 %v84_v7, %v83_v6  ;;  %v90_v14 = vsel %vm82_vm1, %v1437_v8, 0.0  ;;  %v94_v20 = vsel %vm82_vm1, %v1453_v15, 0.0  ;;  %v1467_v21 = vld [vmem:[%s2865_s0 + $0x40] sm:$0xff]  ;;  %v96_v23 = vsel %vm82_vm1, %v1460_v18, 0.0  ;;  %v1474_v24 = vld [vmem:[%s2865_s0 + $0x48] sm:$0xff]  ;;  %v1481_v27 = vld [vmem:[%s2865_s0 + $0x50] sm:$0xff] }
   0x5   :  { %v98_v26 = vsel %vm82_vm1, %v1467_v21, 0.0  ;;  %v100_v29 = vsel %vm82_vm1, %v1474_v24, 0.0  ;;  %v1488_v30 = vld [vmem:[%s2865_s0 + $0x58] sm:$0xff]  ;;  %v102_v32 = vsel %vm82_vm1, %v1481_v27, 0.0  ;;  %v1495_v33 = vld [vmem:[%s2865_s0 + $0x60] sm:$0xff]  ;;  %v1502_v36 = vld [vmem:[%s2865_s0 + $0x68] sm:$0xff] }
   0x6   :  { %v87_v13 = vadd.f32 %v86_v10, %v85_v9  ;;  %v104_v35 = vsel %vm82_vm1, %v1488_v30, 0.0  ;;  %v106_v38 = vsel %vm82_vm1, %v1495_v33, 0.0  ;;  %v1509_v39 = vld [vmem:[%s2865_s0 + $0x70] sm:$0xff]  ;;  %v108_v41 = vsel %vm82_vm1, %v1502_v36, 0.0  ;;  %v1516_v42 = vld [vmem:[%s2865_s0 + $0x78] sm:$0xff]  ;;  %v1523_v45 = vld [vmem:[%s2865_s0 + $0x80] sm:$0xff] }
   0x7   :  { %v110_v44 = vsel %vm82_vm1, %v1509_v39, 0.0  ;;  %v112_v47 = vsel %vm82_vm1, %v1516_v42, 0.0  ;;  %v1530_v48 = vld [vmem:[%s2865_s0 + $0x88] sm:$0xff]  ;;  %v114_v50 = vsel %vm82_vm1, %v1523_v45, 0.0  ;;  %v1537_v51 = vld [vmem:[%s2865_s0 + $0x90] sm:$0xff]  ;;  %v1544_v54 = vld [vmem:[%s2865_s0 + $0x98] sm:$0xff] }
   0x8   :  { %v89_v16 = vadd.f32 %v88_v11, %v87_v13  ;;  %v116_v53 = vsel %vm82_vm1, %v1530_v48, 0.0  ;;  %v118_v56 = vsel %vm82_vm1, %v1537_v51, 0.0  ;;  %v1551_v57 = vld [vmem:[%s2865_s0 + $0xa0] sm:$0xff]  ;;  %v120_v59 = vsel %vm82_vm1, %v1544_v54, 0.0  ;;  %v1558_v60 = vld [vmem:[%s2865_s0 + $0xa8] sm:$0xff]  ;;  %v1565_v63 = vld [vmem:[%s2865_s0 + $0xb0] sm:$0xff] }
   0x9   :  { %v122_v62 = vsel %vm82_vm1, %v1551_v57, 0.0  ;;  %v124_v3 = vsel %vm82_vm1, %v1558_v60, 0.0  ;;  %v1572_v6 = vld [vmem:[%s2865_s0 + $0xb8] sm:$0xff]  ;;  %v126_v9 = vsel %vm82_vm1, %v1565_v63, 0.0  ;;  %v1579_v10 = vld [vmem:[%s2865_s0 + $0xc0] sm:$0xff] }
   0xa   :  { %v91_v19 = vadd.f32 %v90_v14, %v89_v16  ;;  %v128_v13 = vsel %vm82_vm1, %v1572_v6, 0.0  ;;  %v1586_v14 = vld [vmem:[%s2865_s0 + $0xc8] sm:$0xff] }
   0xc   :  { %v93_v22 = vadd.f32 %v92_v17, %v91_v19  ;;  %v130_v17 = vsel %vm82_vm1, %v1579_v10, 0.0  ;;  %v1593_v19 = vld [vmem:[%s2865_s0 + $0xd0] sm:$0xff] }
   0xe   :  { %v95_v25 = vadd.f32 %v94_v20, %v93_v22  ;;  %v132_v22 = vsel %vm82_vm1, %v1586_v14, 0.0 }
  0x10   :  { %v97_v28 = vadd.f32 %v96_v23, %v95_v25  ;;  %v1600_v23 = vld [vmem:[%s2865_s0 + $0xd8] sm:$0xff] }
  0x12   :  { %v99_v31 = vadd.f32 %v98_v26, %v97_v28  ;;  %v134_v26 = vsel %vm82_vm1, %v1593_v19, 0.0  ;;  %v1607_v28 = vld [vmem:[%s2865_s0 + $0xe0] sm:$0xff] }
  0x14   :  { %v101_v34 = vadd.f32 %v100_v29, %v99_v31  ;;  %v136_v31 = vsel %vm82_vm1, %v1600_v23, 0.0 }
  0x16   :  { %v103_v37 = vadd.f32 %v102_v32, %v101_v34  ;;  %v1614_v32 = vld [vmem:[%s2865_s0 + $0xe8] sm:$0xff] }
  0x18   :  { %v105_v40 = vadd.f32 %v104_v35, %v103_v37  ;;  %v138_v35 = vsel %vm82_vm1, %v1607_v28, 0.0  ;;  %v1621_v37 = vld [vmem:[%s2865_s0 + $0xf0] sm:$0xff] }
  0x1a   :  { %v107_v43 = vadd.f32 %v106_v38, %v105_v40  ;;  %v140_v40 = vsel %vm82_vm1, %v1614_v32, 0.0 }
  0x1c   :  { %v109_v46 = vadd.f32 %v108_v41, %v107_v43  ;;  %v1628_v41 = vld [vmem:[%s2865_s0 + $0xf8] sm:$0xff] }
  0x1e   :  { %v111_v49 = vadd.f32 %v110_v44, %v109_v46  ;;  %v142_v44 = vsel %vm82_vm1, %v1621_v37, 0.0  ;;  %v1635_v46 = vld [vmem:[%s2865_s0 + $0x100] sm:$0xff] }
  0x20   :  { %v113_v52 = vadd.f32 %v112_v47, %v111_v49  ;;  %v144_v49 = vsel %vm82_vm1, %v1628_v41, 0.0 }
  0x22   :  { %v115_v55 = vadd.f32 %v114_v50, %v113_v52  ;;  %v1642_v50 = vld [vmem:[%s2865_s0 + $0x108] sm:$0xff] }
  0x24   :  { %v117_v58 = vadd.f32 %v116_v53, %v115_v55  ;;  %v146_v53 = vsel %vm82_vm1, %v1635_v46, 0.0  ;;  %v1649_v55 = vld [vmem:[%s2865_s0 + $0x110] sm:$0xff] }
  0x26   :  { %v119_v61 = vadd.f32 %v118_v56, %v117_v58  ;;  %v148_v58 = vsel %vm82_vm1, %v1642_v50, 0.0 }
  0x28   :  { %v121_v0 = vadd.f32 %v120_v59, %v119_v61  ;;  %v1656_v59 = vld [vmem:[%s2865_s0 + $0x118] sm:$0xff] }
  0x2a   :  { %v123_v7 = vadd.f32 %v122_v62, %v121_v0  ;;  %v150_v62 = vsel %vm82_vm1, %v1649_v55, 0.0  ;;  %v1663_v0 = vld [vmem:[%s2865_s0 + $0x120] sm:$0xff] }
  0x2c   :  { %v125_v11 = vadd.f32 %v124_v3, %v123_v7  ;;  %v152_v7 = vsel %vm82_vm1, %v1656_v59, 0.0 }
  0x2e   :  { %v127_v16 = vadd.f32 %v126_v9, %v125_v11  ;;  %v1670_v9 = vld [vmem:[%s2865_s0 + $0x128] sm:$0xff] }
  0x30   :  { %v129_v20 = vadd.f32 %v128_v13, %v127_v16  ;;  %v154_v13 = vsel %vm82_vm1, %v1663_v0, 0.0  ;;  %v1677_v16 = vld [vmem:[%s2865_s0 + $0x130] sm:$0xff] }
  0x32   :  { %v131_v25 = vadd.f32 %v130_v17, %v129_v20  ;;  %v156_v20 = vsel %vm82_vm1, %v1670_v9, 0.0 }
  0x34   :  { %v133_v29 = vadd.f32 %v132_v22, %v131_v25  ;;  %v1684_v22 = vld [vmem:[%s2865_s0 + $0x138] sm:$0xff] }
  0x36   :  { %v135_v34 = vadd.f32 %v134_v26, %v133_v29  ;;  %v158_v26 = vsel %vm82_vm1, %v1677_v16, 0.0  ;;  %v1691_v29 = vld [vmem:[%s2865_s0 + $0x140] sm:$0xff] }
  0x38   :  { %v137_v38 = vadd.f32 %v136_v31, %v135_v34  ;;  %v160_v34 = vsel %vm82_vm1, %v1684_v22, 0.0 }
  0x3a   :  { %v139_v43 = vadd.f32 %v138_v35, %v137_v38  ;;  %v1698_v35 = vld [vmem:[%s2865_s0 + $0x148] sm:$0xff] }
  0x3c   :  { %v141_v47 = vadd.f32 %v140_v40, %v139_v43  ;;  %v162_v40 = vsel %vm82_vm1, %v1691_v29, 0.0  ;;  %v1705_v43 = vld [vmem:[%s2865_s0 + $0x150] sm:$0xff] }
  0x3e   :  { %v143_v52 = vadd.f32 %v142_v44, %v141_v47  ;;  %v164_v47 = vsel %vm82_vm1, %v1698_v35, 0.0 }
  0x40   :  { %v145_v56 = vadd.f32 %v144_v49, %v143_v52  ;;  %v1712_v49 = vld [vmem:[%s2865_s0 + $0x158] sm:$0xff] }
  0x42   :  { %v147_v61 = vadd.f32 %v146_v53, %v145_v56  ;;  %v166_v53 = vsel %vm82_vm1, %v1705_v43, 0.0  ;;  %v1719_v56 = vld [vmem:[%s2865_s0 + $0x160] sm:$0xff] }
  0x44   :  { %v149_v3 = vadd.f32 %v148_v58, %v147_v61  ;;  %v168_v61 = vsel %vm82_vm1, %v1712_v49, 0.0 }
  0x46   :  { %v151_v11 = vadd.f32 %v150_v62, %v149_v3  ;;  %v1726_v62 = vld [vmem:[%s2865_s0 + $0x168] sm:$0xff] }
  0x48   :  { %v153_v17 = vadd.f32 %v152_v7, %v151_v11  ;;  %v170_v7 = vsel %vm82_vm1, %v1719_v56, 0.0  ;;  %v1733_v11 = vld [vmem:[%s2865_s0 + $0x170] sm:$0xff] }
  0x4a   :  { %v155_v25 = vadd.f32 %v154_v13, %v153_v17  ;;  %v172_v17 = vsel %vm82_vm1, %v1726_v62, 0.0 }
  0x4c   :  { %v157_v31 = vadd.f32 %v156_v20, %v155_v25  ;;  %v1740_v20 = vld [vmem:[%s2865_s0 + $0x178] sm:$0xff] }
  0x4e   :  { %v159_v38 = vadd.f32 %v158_v26, %v157_v31  ;;  %v174_v26 = vsel %vm82_vm1, %v1733_v11, 0.0  ;;  %v1747_v31 = vld [vmem:[%s2865_s0 + $0x180] sm:$0xff] }
  0x50   :  { %v161_v44 = vadd.f32 %v160_v34, %v159_v38  ;;  %v176_v38 = vsel %vm82_vm1, %v1740_v20, 0.0 }
  0x52   :  { %v163_v52 = vadd.f32 %v162_v40, %v161_v44  ;;  %v1754_v40 = vld [vmem:[%s2865_s0 + $0x188] sm:$0xff] }
  0x53   :  { %2904 = vst [vmem:[#allocation2_spill] sm:$0xff] %v1754_v40 }
  0x54   :  { %v165_v58 = vadd.f32 %v164_v47, %v163_v52  ;;  %v178_v47 = vsel %vm82_vm1, %v1747_v31, 0.0  ;;  %v1761_v52 = vld [vmem:[%s2865_s0 + $0x190] sm:$0xff] }
  0x55   :  { %2905 = vst [vmem:[#allocation3_spill] sm:$0xff] %v1761_v52 }
  0x56   :  { %v167_v3 = vadd.f32 %v166_v53, %v165_v58  ;;  %v180_v58 = vsel %vm82_vm1, %v1754_v40, 0.0 }
  0x58   :  { %v169_v13 = vadd.f32 %v168_v61, %v167_v3  ;;  %v1768_v61 = vld [vmem:[%s2865_s0 + $0x198] sm:$0xff] }
  0x59   :  { %2906 = vst [vmem:[#allocation4_spill] sm:$0xff] %v1768_v61 }
  0x5a   :  { %v171_v25 = vadd.f32 %v170_v7, %v169_v13  ;;  %v182_v7 = vsel %vm82_vm1, %v1761_v52, 0.0  ;;  %v1775_v13 = vld [vmem:[%s2865_s0 + $0x1a0] sm:$0xff] }
  0x5b   :  { %2907 = vst [vmem:[#allocation5_spill] sm:$0xff] %v1775_v13 }
  0x5c   :  { %v173_v34 = vadd.f32 %v172_v17, %v171_v25  ;;  %v184_v25 = vsel %vm82_vm1, %v1768_v61, 0.0 }
  0x5e   :  { %v175_v44 = vadd.f32 %v174_v26, %v173_v34  ;;  %v1782_v26 = vld [vmem:[%s2865_s0 + $0x1a8] sm:$0xff] }
  0x5f   :  { %2908 = vst [vmem:[#allocation6_spill] sm:$0xff] %v1782_v26 }
  0x60   :  { %v177_v53 = vadd.f32 %v176_v38, %v175_v44  ;;  %v186_v38 = vsel %vm82_vm1, %v1775_v13, 0.0  ;;  %v1789_v44 = vld [vmem:[%s2865_s0 + $0x1b0] sm:$0xff] }
  0x61   :  { %2909 = vst [vmem:[#allocation7_spill] sm:$0xff] %v1789_v44 }
  0x62   :  { %v179_v3 = vadd.f32 %v178_v47, %v177_v53  ;;  %v188_v53 = vsel %vm82_vm1, %v1782_v26, 0.0 }
  0x64   :  { %v181_v17 = vadd.f32 %v180_v58, %v179_v3  ;;  %v1796_v58 = vld [vmem:[%s2865_s0 + $0x1b8] sm:$0xff] }
  0x65   :  { %2910 = vst [vmem:[#allocation8_spill] sm:$0xff] %v1796_v58 }
  0x66   :  { %v183_v34 = vadd.f32 %v182_v7, %v181_v17  ;;  %v190_v7 = vsel %vm82_vm1, %v1789_v44, 0.0  ;;  %v1803_v17 = vld [vmem:[%s2865_s0 + $0x1c0] sm:$0xff] }
  0x67   :  { %2911 = vst [vmem:[#allocation9_spill] sm:$0xff] %v1803_v17 }
  0x68   :  { %v185_v47 = vadd.f32 %v184_v25, %v183_v34  ;;  %v192_v25 = vsel %vm82_vm1, %v1796_v58, 0.0  ;;  %v1810_v34 = vld [vmem:[%s2865_s0 + $0x1c8] sm:$0xff] }
  0x69   :  { %2912 = vst [vmem:[#allocation10_spill] sm:$0xff] %v1810_v34 }
  0x6a   :  { %v187_v3 = vadd.f32 %v186_v38, %v185_v47  ;;  %v194_v38 = vsel %vm82_vm1, %v1803_v17, 0.0  ;;  %v1817_v47 = vld [vmem:[%s2865_s0 + $0x1d0] sm:$0xff] }
  0x6b   :  { %2913 = vst [vmem:[#allocation11_spill] sm:$0xff] %v1817_v47 }
  0x6c   :  { %v189_v13 = vadd.f32 %v188_v53, %v187_v3  ;;  %v196_v53 = vsel %vm82_vm1, %v1810_v34, 0.0  ;;  %v1824_v3 = vld [vmem:[%s2865_s0 + $0x1d8] sm:$0xff] }
  0x6d   :  { %2914 = vst [vmem:[#allocation12_spill] sm:$0xff] %v1824_v3  ;;  %v200_v17 = vsel %vm82_vm1, %v1824_v3, 0.0 }
  0x6e   :  { %v191_v26 = vadd.f32 %v190_v7, %v189_v13  ;;  %v198_v13 = vsel %vm82_vm1, %v1817_v47, 0.0 }
  0x70   :  { %v193_v44 = vadd.f32 %v192_v25, %v191_v26  ;;  %v1833_v26 = vld [vmem:[%s2865_s0 + $0x1e0] sm:$0xff] }
  0x71   :  { %2915 = vst [vmem:[#allocation13_spill] sm:$0xff] %v1833_v26  ;;  %v202_v61 = vsel %vm82_vm1, %v1833_v26, 0.0 }
  0x72   :  { %v195_v58 = vadd.f32 %v194_v38, %v193_v44  ;;  %v1840_v44 = vld [vmem:[%s2865_s0 + $0x1e8] sm:$0xff] }
  0x73   :  { %2916 = vst [vmem:[#allocation14_spill] sm:$0xff] %v1840_v44 }
  0x74   :  { %v197_v7 = vadd.f32 %v196_v53, %v195_v58  ;;  %v204_v58 = vsel %vm82_vm1, %v1840_v44, 0.0  ;;  %v1847_v53 = vld [vmem:[%s2865_s0 + $0x1f0] sm:$0xff] }
  0x75   :  { %2917 = vst [vmem:[#allocation15_spill] sm:$0xff] %v1847_v53 }
  0x76   :  { %v199_v25 = vadd.f32 %v198_v13, %v197_v7  ;;  %v1854_v13 = vld [vmem:[%s2865_s0 + $0x1f8] sm:$0xff] }
  0x78   :  { %v201_v34 = vadd.f32 %v200_v17, %v199_v25  ;;  %v206_v17 = vsel %vm82_vm1, %v1847_v53, 0.0 }
  0x7a   :  { %v203_v38 = vadd.f32 %v202_v61, %v201_v34  ;;  %v208_v61 = vsel %vm82_vm1, %v1854_v13, 0.0 }
  0x7c   :  { %v205_v3 = vadd.f32 %v204_v58, %v203_v38 }
  0x7e   :  { %v207_v7 = vadd.f32 %v206_v17, %v205_v3 }
  0x80   :  { %v209_v34 = vadd.f32 %v208_v61, %v207_v7 }
  0x82   :  { %v210_v25 = vrot.slane %v209_v34, 4 }
  0x84   :  { %v211_v44 = vadd.f32 %v210_v25, %v209_v34 }
  0x86   :  { %v212_v26 = vrot.slane %v211_v44, 2 }
  0x88   :  { %v213_v47 = vadd.f32 %v212_v26, %v211_v44 }
  0x8a   :  { %v214_v52 = vrot.slane %v213_v47, 1 }
  0x8c   :  { %v215_v40 = vadd.f32 %v214_v52, %v213_v47 }
  0x8e   :  { %v1858_v38 = vmul.f32 0.001953125, %v215_v40 }
  0x90   :  { %v1862_v58 = vsub.f32 %v1413_v1, %v1858_v38  ;;  %v1866_v53 = vsub.f32 %v1418_v2, %v1858_v38  ;;  %v1870_v3 = vsub.f32 %v1423_v4, %v1858_v38  ;;  %v1874_v17 = vsub.f32 %v1428_v5, %v1858_v38 }
  0x91   :  { %v1878_v40 = vsub.f32 %v1437_v8, %v1858_v38  ;;  %v1888_v4 = vsub.f32 %v1446_v12, %v1858_v38  ;;  %v1894_v8 = vsub.f32 %v1453_v15, %v1858_v38  ;;  %v1903_v12 = vsub.f32 %v1460_v18, %v1858_v38 }
  0x92   :  { %v282_v1 = vmul.f32 %v1862_v58, %v1862_v58  ;;  %v283_v52 = vmul.f32 %v1866_v53, %v1866_v53  ;;  %v284_v2 = vmul.f32 %v1870_v3, %v1870_v3  ;;  %v285_v5 = vmul.f32 %v1874_v17, %v1874_v17 }
  0x93   :  { %2918 = vst [vmem:[#allocation16_spill] sm:$0xff] %v1878_v40  ;;  %v286_v47 = vmul.f32 %v1878_v40, %v1878_v40  ;;  %v287_v34 = vmul.f32 %v1888_v4, %v1888_v4  ;;  %v1910_v40 = vsub.f32 %v1467_v21, %v1858_v38  ;;  %v1917_v18 = vsub.f32 %v1474_v24, %v1858_v38 }
  0x94   :  { %v346_v26 = vsel %vm82_vm1, %v282_v1, 0.0  ;;  %v347_v44 = vsel %vm82_vm1, %v283_v52, 0.0  ;;  %v349_v7 = vsel %vm82_vm1, %v284_v2, 0.0  ;;  %v351_v15 = vsel %vm82_vm1, %v285_v5, 0.0 }
  0x95   :  { %v348_v61 = vadd.f32 %v347_v44, %v346_v26  ;;  %v288_v1 = vmul.f32 %v1894_v8, %v1894_v8  ;;  %v353_v52 = vsel %vm82_vm1, %v286_v47, 0.0  ;;  %v289_v26 = vmul.f32 %v1903_v12, %v1903_v12 }
  0x96   :  { %v355_v5 = vsel %vm82_vm1, %v287_v34, 0.0  ;;  %v1924_v21 = vsub.f32 %v1481_v27, %v1858_v38  ;;  %v1931_v24 = vsub.f32 %v1488_v30, %v1858_v38  ;;  %v1938_v27 = vsub.f32 %v1495_v33, %v1858_v38 }
  0x97   :  { %v350_v25 = vadd.f32 %v349_v7, %v348_v61  ;;  %v290_v7 = vmul.f32 %v1910_v40, %v1910_v40  ;;  %v357_v47 = vsel %vm82_vm1, %v288_v1, 0.0  ;;  %v359_v34 = vsel %vm82_vm1, %v289_v26, 0.0 }
  0x98   :  { %v1945_v30 = vsub.f32 %v1502_v36, %v1858_v38  ;;  %v1952_v33 = vsub.f32 %v1509_v39, %v1858_v38  ;;  %v1959_v36 = vsub.f32 %v1516_v42, %v1858_v38  ;;  %v1966_v39 = vsub.f32 %v1523_v45, %v1858_v38 }
  0x99   :  { %v352_v2 = vadd.f32 %v351_v15, %v350_v25  ;;  %v291_v15 = vmul.f32 %v1917_v18, %v1917_v18  ;;  %v361_v1 = vsel %vm82_vm1, %v290_v7, 0.0  ;;  %v1973_v42 = vsub.f32 %v1530_v48, %v1858_v38 }
  0x9a   :  { %v1980_v45 = vsub.f32 %v1537_v51, %v1858_v38  ;;  %v1987_v48 = vsub.f32 %v1544_v54, %v1858_v38  ;;  %v1994_v51 = vsub.f32 %v1551_v57, %v1858_v38  ;;  %v2001_v54 = vsub.f32 %v1558_v60, %v1858_v38 }
  0x9b   :  { %v354_v44 = vadd.f32 %v353_v52, %v352_v2  ;;  %v292_v52 = vmul.f32 %v1924_v21, %v1924_v21  ;;  %v363_v26 = vsel %vm82_vm1, %v291_v15, 0.0  ;;  %v2008_v57 = vsub.f32 %v1565_v63, %v1858_v38 }
  0x9c   :  { %v2015_v60 = vsub.f32 %v1572_v6, %v1858_v38  ;;  %v2022_v63 = vsub.f32 %v1579_v10, %v1858_v38  ;;  %v2029_v6 = vsub.f32 %v1586_v14, %v1858_v38  ;;  %v2036_v10 = vsub.f32 %v1593_v19, %v1858_v38 }
  0x9d   :  { %v356_v61 = vadd.f32 %v355_v5, %v354_v44  ;;  %v293_v5 = vmul.f32 %v1931_v24, %v1931_v24  ;;  %v365_v7 = vsel %vm82_vm1, %v292_v52, 0.0  ;;  %2919 = vst [vmem:[#allocation17_spill] sm:$0xff] %v2008_v57  ;;  %v2043_v14 = vsub.f32 %v1600_v23, %v1858_v38 }
  0x9e   :  { %2920 = vst [vmem:[#allocation18_spill] sm:$0xff] %v2015_v60  ;;  %2921 = vst [vmem:[#allocation19_spill] sm:$0xff] %v2022_v63  ;;  %v2050_v19 = vsub.f32 %v1607_v28, %v1858_v38  ;;  %v2057_v23 = vsub.f32 %v1614_v32, %v1858_v38  ;;  %v2064_v28 = vsub.f32 %v1621_v37, %v1858_v38 }
  0x9f   :  { %v358_v25 = vadd.f32 %v357_v47, %v356_v61  ;;  %v294_v47 = vmul.f32 %v1938_v27, %v1938_v27  ;;  %v367_v15 = vsel %vm82_vm1, %v293_v5, 0.0  ;;  %2922 = vst [vmem:[#allocation20_spill] sm:$0xff] %v2029_v6  ;;  %2923 = vst [vmem:[#allocation21_spill] sm:$0xff] %v2036_v10  ;;  %v2071_v32 = vsub.f32 %v1628_v41, %v1858_v38 }
  0xa0   :  { %2924 = vst [vmem:[#allocation22_spill] sm:$0xff] %v2043_v14  ;;  %2925 = vst [vmem:[#allocation23_spill] sm:$0xff] %v2050_v19  ;;  %v2078_v37 = vsub.f32 %v1635_v46, %v1858_v38  ;;  %v2085_v41 = vsub.f32 %v1642_v50, %v1858_v38  ;;  %v2092_v46 = vsub.f32 %v1649_v55, %v1858_v38 }
  0xa1   :  { %v360_v2 = vadd.f32 %v359_v34, %v358_v25  ;;  %v295_v34 = vmul.f32 %v1945_v30, %v1945_v30  ;;  %v369_v52 = vsel %vm82_vm1, %v294_v47, 0.0  ;;  %2926 = vst [vmem:[#allocation24_spill] sm:$0xff] %v2057_v23  ;;  %2927 = vst [vmem:[#allocation25_spill] sm:$0xff] %v2064_v28  ;;  %v2099_v50 = vsub.f32 %v1656_v59, %v1858_v38 }
  0xa2   :  { %2928 = vst [vmem:[#allocation26_spill] sm:$0xff] %v2071_v32  ;;  %v2106_v55 = vsub.f32 %v1663_v0, %v1858_v38  ;;  %v2113_v59 = vsub.f32 %v1670_v9, %v1858_v38  ;;  %v2120_v0 = vsub.f32 %v1677_v16, %v1858_v38  ;;  %v2127_v9 = vsub.f32 %v1684_v22, %v1858_v38 }
  0xa3   :  { %v362_v44 = vadd.f32 %v361_v1, %v360_v2  ;;  %v296_v1 = vmul.f32 %v1952_v33, %v1952_v33  ;;  %v371_v5 = vsel %vm82_vm1, %v295_v34, 0.0  ;;  %v2134_v16 = vsub.f32 %v1691_v29, %v1858_v38 }
  0xa4   :  { %v2141_v22 = vsub.f32 %v1698_v35, %v1858_v38  ;;  %v2148_v29 = vsub.f32 %v1705_v43, %v1858_v38  ;;  %v2155_v35 = vsub.f32 %v1712_v49, %v1858_v38  ;;  %v2162_v43 = vsub.f32 %v1719_v56, %v1858_v38 }
  0xa5   :  { %v364_v61 = vadd.f32 %v363_v26, %v362_v44  ;;  %v297_v26 = vmul.f32 %v1959_v36, %v1959_v36  ;;  %v373_v47 = vsel %vm82_vm1, %v296_v1, 0.0  ;;  %v2169_v49 = vsub.f32 %v1726_v62, %v1858_v38 }
  0xa6   :  { %v2176_v56 = vsub.f32 %v1733_v11, %v1858_v38  ;;  %v2183_v62 = vsub.f32 %v1740_v20, %v1858_v38  ;;  %v2190_v11 = vsub.f32 %v1747_v31, %v1858_v38 }
  0xa7   :  { %v366_v25 = vadd.f32 %v365_v7, %v364_v61  ;;  %v298_v7 = vmul.f32 %v1966_v39, %v1966_v39  ;;  %v375_v34 = vsel %vm82_vm1, %v297_v26, 0.0 }
  0xa9   :  { %v368_v2 = vadd.f32 %v367_v15, %v366_v25  ;;  %v299_v15 = vmul.f32 %v1973_v42, %v1973_v42  ;;  %v377_v1 = vsel %vm82_vm1, %v298_v7, 0.0 }
  0xab   :  { %v370_v44 = vadd.f32 %v369_v52, %v368_v2  ;;  %v300_v52 = vmul.f32 %v1980_v45, %v1980_v45  ;;  %v379_v26 = vsel %vm82_vm1, %v299_v15, 0.0 }
  0xad   :  { %v372_v61 = vadd.f32 %v371_v5, %v370_v44  ;;  %v301_v5 = vmul.f32 %v1987_v48, %v1987_v48  ;;  %v381_v7 = vsel %vm82_vm1, %v300_v52, 0.0 }
  0xaf   :  { %v374_v25 = vadd.f32 %v373_v47, %v372_v61  ;;  %v302_v47 = vmul.f32 %v1994_v51, %v1994_v51  ;;  %v383_v15 = vsel %vm82_vm1, %v301_v5, 0.0 }
  0xb1   :  { %v376_v2 = vadd.f32 %v375_v34, %v374_v25  ;;  %v303_v34 = vmul.f32 %v2001_v54, %v2001_v54  ;;  %v385_v52 = vsel %vm82_vm1, %v302_v47, 0.0 }
  0xb3   :  { %v378_v44 = vadd.f32 %v377_v1, %v376_v2  ;;  %v304_v1 = vmul.f32 %v2008_v57, %v2008_v57  ;;  %v387_v5 = vsel %vm82_vm1, %v303_v34, 0.0 }
  0xb5   :  { %v380_v61 = vadd.f32 %v379_v26, %v378_v44  ;;  %v305_v26 = vmul.f32 %v2015_v60, %v2015_v60  ;;  %v389_v47 = vsel %vm82_vm1, %v304_v1, 0.0 }
  0xb7   :  { %v382_v25 = vadd.f32 %v381_v7, %v380_v61  ;;  %v306_v7 = vmul.f32 %v2022_v63, %v2022_v63  ;;  %v391_v34 = vsel %vm82_vm1, %v305_v26, 0.0 }
  0xb9   :  { %v384_v2 = vadd.f32 %v383_v15, %v382_v25  ;;  %v307_v15 = vmul.f32 %v2029_v6, %v2029_v6  ;;  %v393_v1 = vsel %vm82_vm1, %v306_v7, 0.0 }
  0xbb   :  { %v386_v44 = vadd.f32 %v385_v52, %v384_v2  ;;  %v308_v52 = vmul.f32 %v2036_v10, %v2036_v10  ;;  %v395_v26 = vsel %vm82_vm1, %v307_v15, 0.0 }
  0xbd   :  { %v388_v61 = vadd.f32 %v387_v5, %v386_v44  ;;  %v309_v5 = vmul.f32 %v2043_v14, %v2043_v14  ;;  %v397_v7 = vsel %vm82_vm1, %v308_v52, 0.0 }
  0xbf   :  { %v390_v25 = vadd.f32 %v389_v47, %v388_v61  ;;  %v310_v47 = vmul.f32 %v2050_v19, %v2050_v19  ;;  %v399_v15 = vsel %vm82_vm1, %v309_v5, 0.0 }
  0xc1   :  { %v392_v2 = vadd.f32 %v391_v34, %v390_v25  ;;  %v311_v34 = vmul.f32 %v2057_v23, %v2057_v23  ;;  %v401_v52 = vsel %vm82_vm1, %v310_v47, 0.0 }
  0xc3   :  { %v394_v44 = vadd.f32 %v393_v1, %v392_v2  ;;  %v312_v1 = vmul.f32 %v2064_v28, %v2064_v28  ;;  %v403_v5 = vsel %vm82_vm1, %v311_v34, 0.0 }
  0xc5   :  { %v396_v61 = vadd.f32 %v395_v26, %v394_v44  ;;  %v313_v26 = vmul.f32 %v2071_v32, %v2071_v32  ;;  %v405_v47 = vsel %vm82_vm1, %v312_v1, 0.0  ;;  %v330_v32 = vmul.f32 %v2190_v11, %v2190_v11 }
  0xc7   :  { %v398_v25 = vadd.f32 %v397_v7, %v396_v61  ;;  %v314_v7 = vmul.f32 %v2078_v37, %v2078_v37  ;;  %v407_v34 = vsel %vm82_vm1, %v313_v26, 0.0 }
  0xc9   :  { %v400_v2 = vadd.f32 %v399_v15, %v398_v25  ;;  %v315_v15 = vmul.f32 %v2085_v41, %v2085_v41  ;;  %v409_v1 = vsel %vm82_vm1, %v314_v7, 0.0 }
  0xcb   :  { %v402_v44 = vadd.f32 %v401_v52, %v400_v2  ;;  %v316_v52 = vmul.f32 %v2092_v46, %v2092_v46  ;;  %v411_v26 = vsel %vm82_vm1, %v315_v15, 0.0 }
  0xcd   :  { %v404_v61 = vadd.f32 %v403_v5, %v402_v44  ;;  %v317_v5 = vmul.f32 %v2099_v50, %v2099_v50  ;;  %v413_v7 = vsel %vm82_vm1, %v316_v52, 0.0 }
  0xcf   :  { %v406_v25 = vadd.f32 %v405_v47, %v404_v61  ;;  %v318_v47 = vmul.f32 %v2106_v55, %v2106_v55  ;;  %v415_v15 = vsel %vm82_vm1, %v317_v5, 0.0 }
  0xd1   :  { %v408_v2 = vadd.f32 %v407_v34, %v406_v25  ;;  %v319_v34 = vmul.f32 %v2113_v59, %v2113_v59  ;;  %v417_v52 = vsel %vm82_vm1, %v318_v47, 0.0 }
  0xd3   :  { %v410_v44 = vadd.f32 %v409_v1, %v408_v2  ;;  %v320_v1 = vmul.f32 %v2120_v0, %v2120_v0  ;;  %v419_v5 = vsel %vm82_vm1, %v319_v34, 0.0 }
  0xd5   :  { %v412_v61 = vadd.f32 %v411_v26, %v410_v44  ;;  %v321_v26 = vmul.f32 %v2127_v9, %v2127_v9  ;;  %v421_v47 = vsel %vm82_vm1, %v320_v1, 0.0 }
  0xd7   :  { %v414_v25 = vadd.f32 %v413_v7, %v412_v61  ;;  %v322_v7 = vmul.f32 %v2134_v16, %v2134_v16  ;;  %v423_v34 = vsel %vm82_vm1, %v321_v26, 0.0 }
  0xd9   :  { %v416_v2 = vadd.f32 %v415_v15, %v414_v25  ;;  %v323_v15 = vmul.f32 %v2141_v22, %v2141_v22  ;;  %v425_v1 = vsel %vm82_vm1, %v322_v7, 0.0 }
  0xdb   :  { %v418_v44 = vadd.f32 %v417_v52, %v416_v2  ;;  %v324_v52 = vmul.f32 %v2148_v29, %v2148_v29  ;;  %v427_v26 = vsel %vm82_vm1, %v323_v15, 0.0 }
  0xdd   :  { %v420_v61 = vadd.f32 %v419_v5, %v418_v44  ;;  %v325_v5 = vmul.f32 %v2155_v35, %v2155_v35  ;;  %v429_v7 = vsel %vm82_vm1, %v324_v52, 0.0 }
  0xdf   :  { %v422_v25 = vadd.f32 %v421_v47, %v420_v61  ;;  %v326_v47 = vmul.f32 %v2162_v43, %v2162_v43  ;;  %v431_v15 = vsel %vm82_vm1, %v325_v5, 0.0 }
  0xe1   :  { %v424_v2 = vadd.f32 %v423_v34, %v422_v25  ;;  %v327_v34 = vmul.f32 %v2169_v49, %v2169_v49  ;;  %v433_v52 = vsel %vm82_vm1, %v326_v47, 0.0 }
  0xe3   :  { %v426_v44 = vadd.f32 %v425_v1, %v424_v2  ;;  %v328_v1 = vmul.f32 %v2176_v56, %v2176_v56  ;;  %v435_v5 = vsel %vm82_vm1, %v327_v34, 0.0 }
  0xe5   :  { %v428_v61 = vadd.f32 %v427_v26, %v426_v44  ;;  %v2929_v26 = vld [vmem:[#allocation2_spill] sm:$0xff]  ;;  %v329_v44 = vmul.f32 %v2183_v62, %v2183_v62  ;;  %v437_v47 = vsel %vm82_vm1, %v328_v1, 0.0  ;;  %v441_v1 = vsel %vm82_vm1, %v330_v32, 0.0 }
  0xe6   :  { %v2197_v20 = vsub.f32 %v2929_v26, %v1858_v38 }
  0xe7   :  { %v430_v25 = vadd.f32 %v429_v7, %v428_v61  ;;  %v2930_v61 = vld [vmem:[#allocation3_spill] sm:$0xff]  ;;  %v439_v34 = vsel %vm82_vm1, %v329_v44, 0.0 }
  0xe8   :  { %v2204_v31 = vsub.f32 %v2930_v61, %v1858_v38  ;;  %v331_v28 = vmul.f32 %v2197_v20, %v2197_v20 }
  0xe9   :  { %v432_v2 = vadd.f32 %v431_v15, %v430_v25  ;;  %v2931_v25 = vld [vmem:[#allocation4_spill] sm:$0xff] }
  0xea   :  { %v2211_v26 = vsub.f32 %v2931_v25, %v1858_v38  ;;  %v332_v23 = vmul.f32 %v2204_v31, %v2204_v31  ;;  %v443_v44 = vsel %vm82_vm1, %v331_v28, 0.0 }
  0xeb   :  { %v434_v7 = vadd.f32 %v433_v52, %v432_v2  ;;  %v2932_v2 = vld [vmem:[#allocation5_spill] sm:$0xff] }
  0xec   :  { %v2218_v61 = vsub.f32 %v2932_v2, %v1858_v38  ;;  %v333_v19 = vmul.f32 %v2211_v26, %v2211_v26  ;;  %v445_v32 = vsel %vm82_vm1, %v332_v23, 0.0 }
  0xed   :  { %v436_v15 = vadd.f32 %v435_v5, %v434_v7  ;;  %v2933_v7 = vld [vmem:[#allocation6_spill] sm:$0xff] }
  0xee   :  { %v2225_v25 = vsub.f32 %v2933_v7, %v1858_v38  ;;  %v334_v14 = vmul.f32 %v2218_v61, %v2218_v61  ;;  %v447_v28 = vsel %vm82_vm1, %v333_v19, 0.0 }
  0xef   :  { %v438_v52 = vadd.f32 %v437_v47, %v436_v15  ;;  %v2934_v15 = vld [vmem:[#allocation7_spill] sm:$0xff] }
  0xf0   :  { %v2232_v2 = vsub.f32 %v2934_v15, %v1858_v38  ;;  %v335_v10 = vmul.f32 %v2225_v25, %v2225_v25  ;;  %v449_v23 = vsel %vm82_vm1, %v334_v14, 0.0 }
  0xf1   :  { %v440_v5 = vadd.f32 %v439_v34, %v438_v52  ;;  %v2936_v52 = vld [vmem:[#allocation8_spill] sm:$0xff] }
  0xf2   :  { %2935 = vst [vmem:[#allocation2_spill] sm:$0xff] %v2232_v2  ;;  %v2239_v7 = vsub.f32 %v2936_v52, %v1858_v38  ;;  %v336_v6 = vmul.f32 %v2232_v2, %v2232_v2  ;;  %v451_v19 = vsel %vm82_vm1, %v335_v10, 0.0 }
  0xf3   :  { %v442_v47 = vadd.f32 %v441_v1, %v440_v5  ;;  %v2938_v5 = vld [vmem:[#allocation9_spill] sm:$0xff] }
  0xf4   :  { %2937 = vst [vmem:[#allocation3_spill] sm:$0xff] %v2239_v7  ;;  %v2246_v15 = vsub.f32 %v2938_v5, %v1858_v38  ;;  %v337_v63 = vmul.f32 %v2239_v7, %v2239_v7  ;;  %v453_v14 = vsel %vm82_vm1, %v336_v6, 0.0 }
  0xf5   :  { %v444_v34 = vadd.f32 %v443_v44, %v442_v47  ;;  %v2940_v47 = vld [vmem:[#allocation10_spill] sm:$0xff] }
  0xf6   :  { %2939 = vst [vmem:[#allocation4_spill] sm:$0xff] %v2246_v15  ;;  %v2253_v52 = vsub.f32 %v2940_v47, %v1858_v38  ;;  %v338_v2 = vmul.f32 %v2246_v15, %v2246_v15  ;;  %v455_v10 = vsel %vm82_vm1, %v337_v63, 0.0 }
  0xf7   :  { %v446_v1 = vadd.f32 %v445_v32, %v444_v34  ;;  %v2942_v34 = vld [vmem:[#allocation11_spill] sm:$0xff] }
  0xf8   :  { %2941 = vst [vmem:[#allocation5_spill] sm:$0xff] %v2253_v52  ;;  %v2260_v5 = vsub.f32 %v2942_v34, %v1858_v38  ;;  %v339_v7 = vmul.f32 %v2253_v52, %v2253_v52  ;;  %v457_v6 = vsel %vm82_vm1, %v338_v2, 0.0 }
  0xf9   :  { %v448_v44 = vadd.f32 %v447_v28, %v446_v1  ;;  %v2944_v1 = vld [vmem:[#allocation12_spill] sm:$0xff] }
  0xfa   :  { %2943 = vst [vmem:[#allocation6_spill] sm:$0xff] %v2260_v5  ;;  %v2267_v47 = vsub.f32 %v2944_v1, %v1858_v38  ;;  %v340_v15 = vmul.f32 %v2260_v5, %v2260_v5  ;;  %v459_v63 = vsel %vm82_vm1, %v339_v7, 0.0 }
  0xfb   :  { %v450_v32 = vadd.f32 %v449_v23, %v448_v44  ;;  %v2946_v44 = vld [vmem:[#allocation13_spill] sm:$0xff] }
  0xfc   :  { %2945 = vst [vmem:[#allocation7_spill] sm:$0xff] %v2267_v47  ;;  %v2274_v34 = vsub.f32 %v2946_v44, %v1858_v38  ;;  %v341_v52 = vmul.f32 %v2267_v47, %v2267_v47  ;;  %v461_v2 = vsel %vm82_vm1, %v340_v15, 0.0 }
  0xfd   :  { %v452_v28 = vadd.f32 %v451_v19, %v450_v32  ;;  %v2948_v32 = vld [vmem:[#allocation14_spill] sm:$0xff] }
  0xfe   :  { %2947 = vst [vmem:[#allocation8_spill] sm:$0xff] %v2274_v34  ;;  %v2281_v1 = vsub.f32 %v2948_v32, %v1858_v38  ;;  %v342_v5 = vmul.f32 %v2274_v34, %v2274_v34  ;;  %v463_v7 = vsel %vm82_vm1, %v341_v52, 0.0 }
  0xff   :  { %v454_v23 = vadd.f32 %v453_v14, %v452_v28  ;;  %v2950_v28 = vld [vmem:[#allocation15_spill] sm:$0xff] }
 0x100   :  { %2949 = vst [vmem:[#allocation9_spill] sm:$0xff] %v2281_v1  ;;  %v2288_v44 = vsub.f32 %v2950_v28, %v1858_v38  ;;  %v343_v32 = vmul.f32 %v2281_v1, %v2281_v1  ;;  %v465_v28 = vsel %vm82_vm1, %v342_v5, 0.0 }
 0x101   :  { %v456_v19 = vadd.f32 %v455_v10, %v454_v23  ;;  %v2295_v23 = vsub.f32 %v1854_v13, %v1858_v38 }
 0x102   :  { %2951 = vst [vmem:[#allocation10_spill] sm:$0xff] %v2288_v44 }
 0x103   :  { %v458_v14 = vadd.f32 %v457_v6, %v456_v19  ;;  %2952 = vst [vmem:[#allocation11_spill] sm:$0xff] %v2295_v23  ;;  %v344_v19 = vmul.f32 %v2288_v44, %v2288_v44  ;;  %v345_v15 = vmul.f32 %v2295_v23, %v2295_v23 }
 0x105   :  { %v460_v10 = vadd.f32 %v459_v63, %v458_v14  ;;  %v467_v63 = vsel %vm82_vm1, %v343_v32, 0.0  ;;  %v469_v13 = vsel %vm82_vm1, %v344_v19, 0.0  ;;  %v471_v1 = vsel %vm82_vm1, %v345_v15, 0.0 }
 0x107   :  { %v462_v6 = vadd.f32 %v461_v2, %v460_v10 }
 0x109   :  { %v464_v47 = vadd.f32 %v463_v7, %v462_v6 }
 0x10b   :  { %v466_v14 = vadd.f32 %v465_v28, %v464_v47  ;;  %v2313_v47 = vld [vmem:[%s2866_s1] ss:$0 sm:$0xff] }
 0x10d   :  { %v468_v38 = vadd.f32 %v467_v63, %v466_v14 }
 0x10f   :  { %v470_v34 = vadd.f32 %v469_v13, %v468_v38 }
 0x111   :  { %v472_v52 = vadd.f32 %v471_v1, %v470_v34  ;;  %v2326_v1 = vld [vmem:[%s2867_s2] ss:$0 sm:$0xff] }
 0x113   :  { %v473_v2 = vrot.slane %v472_v52, 4 }
 0x115   :  { %v474_v10 = vadd.f32 %v473_v2, %v472_v52 }
 0x117   :  { %v475_v60 = vrot.slane %v474_v10, 2 }
 0x119   :  { %v476_v44 = vadd.f32 %v475_v60, %v474_v10 }
 0x11b   :  { %v477_v57 = vrot.slane %v476_v44, 1 }
 0x11d   :  { %v478_v5 = vadd.f32 %v477_v57, %v476_v44 }
 0x11f   :  { %v479_v7 = vmul.f32 0.001953125, %v478_v5 }
 0x121   :  { %v480_v6 = vadd.f32 1e-05, %v479_v7 }
 0x123   :  { %1380 = vrsqrt.f32 %v480_v6 }
 0x12d   :  { %v2308_v23 = vpop.eup %1380 }
 0x12e   :  { %v482_v32 = vmul.f32 %v2308_v23, %v1862_v58  ;;  %v483_v34 = vmul.f32 %v2308_v23, %v1866_v53  ;;  %v514_v60 = vmul.f32 %v2308_v23, %v2078_v37  ;;  %v515_v57 = vmul.f32 %v2308_v23, %v2085_v41 }
 0x12f   :  { %v484_v44 = vmul.f32 %v2308_v23, %v1870_v3  ;;  %v485_v58 = vmul.f32 %v2308_v23, %v1874_v17  ;;  %v516_v53 = vmul.f32 %v2308_v23, %v2092_v46  ;;  %v517_v37 = vmul.f32 %v2308_v23, %v2099_v50 }
 0x130   :  { %v553_v19 = vmul.f32 %v2313_v47, %v482_v32  ;;  %v554_v41 = vmul.f32 %v2313_v47, %v483_v34  ;;  %v585_v28 = vmul.f32 %v2313_v47, %v514_v60  ;;  %v586_v15 = vmul.f32 %v2313_v47, %v515_v57 }
 0x131   :  { %v555_v63 = vmul.f32 %v2313_v47, %v484_v44  ;;  %v556_v3 = vmul.f32 %v2313_v47, %v485_v58  ;;  %v587_v17 = vmul.f32 %v2313_v47, %v516_v53  ;;  %v588_v14 = vmul.f32 %v2313_v47, %v517_v37 }
 0x132   :  { %v624_v46 = vadd.f32 %v2326_v1, %v553_v19  ;;  %v625_v50 = vadd.f32 %v2326_v1, %v554_v41  ;;  %v656_v13 = vadd.f32 %v2326_v1, %v585_v28  ;;  %v657_v38 = vadd.f32 %v2326_v1, %v586_v15  ;;  %v2953_v19 = vld [vmem:[#allocation16_spill] sm:$0xff] }
 0x133   :  { %v626_v52 = vadd.f32 %v2326_v1, %v555_v63  ;;  %v627_v2 = vadd.f32 %v2326_v1, %v556_v3  ;;  %v658_v10 = vadd.f32 %v2326_v1, %v587_v17  ;;  %v659_v5 = vadd.f32 %v2326_v1, %v588_v14 }
 0x134   :  { %v688_v7 = vmax.f32 %v624_v46, 0.0  ;;  %v689_v6 = vmax.f32 %v625_v50, 0.0  ;;  %v720_v32 = vmax.f32 %v656_v13, 0.0  ;;  %v721_v34 = vmax.f32 %v657_v38, 0.0 }
 0x135   :  { %v690_v60 = vmax.f32 %v626_v52, 0.0  ;;  %v691_v57 = vmax.f32 %v627_v2, 0.0  ;;  %v722_v44 = vmax.f32 %v658_v10, 0.0  ;;  %v723_v58 = vmax.f32 %v659_v5, 0.0 }
 0x136   :  { %v752_v53 = vpack.c.bf16 %v689_v6, %v688_v7  ;;  %v768_v37 = vpack.c.bf16 %v721_v34, %v720_v32  ;;  %v486_v41 = vmul.f32 %v2308_v23, %v2953_v19  ;;  %v487_v28 = vmul.f32 %v2308_v23, %v1888_v4 }
 0x137   :  { %v753_v15 = vpack.c.bf16 %v691_v57, %v690_v60  ;;  %v769_v63 = vpack.c.bf16 %v723_v58, %v722_v44  ;;  %v518_v3 = vmul.f32 %v2308_v23, %v2106_v55  ;;  %v519_v17 = vmul.f32 %v2308_v23, %v2113_v59 }
 0x138   :  { %1312 = vmatprep.mubr.msk.bf16.mxu0 %vm82_vm1, %v752_v53  ;;  %1344 = vmatprep.mubr.msk.bf16.mxu1 %vm82_vm1, %v768_v37  ;;  %v557_v14 = vmul.f32 %v2313_v47, %v486_v41  ;;  %v558_v46 = vmul.f32 %v2313_v47, %v487_v28  ;;  %v488_v50 = vmul.f32 %v2308_v23, %v1894_v8 }
 0x139   :  { %1313 = vmatmul.mubr.msk.bf16.vlgmr.msra.gmra.mrb[0].mxu0 %vm82_vm1, %v753_v15  ;;  %1345 = vmatmul.mubr.msk.bf16.vlgmr.msra.gmra.mrb[0].mxu1 %vm82_vm1, %v769_v63  ;;  %v589_v4 = vmul.f32 %v2313_v47, %v518_v3  ;;  %v590_v55 = vmul.f32 %v2313_v47, %v519_v17  ;;  %v489_v59 = vmul.f32 %v2308_v23, %v1903_v12 }
 0x13a   :  { %v628_v13 = vadd.f32 %v2326_v1, %v557_v14  ;;  %v629_v38 = vadd.f32 %v2326_v1, %v558_v46  ;;  %v559_v52 = vmul.f32 %v2313_v47, %v488_v50  ;;  %v520_v8 = vmul.f32 %v2308_v23, %v2120_v0 }
 0x13b   :  { %v660_v2 = vadd.f32 %v2326_v1, %v589_v4  ;;  %v661_v10 = vadd.f32 %v2326_v1, %v590_v55  ;;  %v560_v5 = vmul.f32 %v2313_v47, %v489_v59  ;;  %v521_v7 = vmul.f32 %v2308_v23, %v2127_v9 }
 0x13c   :  { %v692_v6 = vmax.f32 %v628_v13, 0.0  ;;  %v693_v12 = vmax.f32 %v629_v38, 0.0  ;;  %v630_v32 = vadd.f32 %v2326_v1, %v559_v52  ;;  %v591_v34 = vmul.f32 %v2313_v47, %v520_v8 }
 0x13d   :  { %v724_v60 = vmax.f32 %v660_v2, 0.0  ;;  %v725_v57 = vmax.f32 %v661_v10, 0.0  ;;  %v631_v44 = vadd.f32 %v2326_v1, %v560_v5  ;;  %v592_v0 = vmul.f32 %v2313_v47, %v521_v7 }
 0x13e   :  { %v754_v58 = vpack.c.bf16 %v693_v12, %v692_v6  ;;  %v694_v53 = vmax.f32 %v630_v32, 0.0  ;;  %v662_v37 = vadd.f32 %v2326_v1, %v591_v34  ;;  %v490_v19 = vmul.f32 %v2308_v23, %v1910_v40 }
 0x13f   :  { %v770_v9 = vpack.c.bf16 %v725_v57, %v724_v60  ;;  %v695_v41 = vmax.f32 %v631_v44, 0.0  ;;  %v663_v28 = vadd.f32 %v2326_v1, %v592_v0  ;;  %v491_v15 = vmul.f32 %v2308_v23, %v1917_v18 }
 0x140   :  { %1316 = vmatprep.mubr.msk.bf16.mxu0 %vm82_vm1, %v754_v58  ;;  %v726_v63 = vmax.f32 %v662_v37, 0.0  ;;  %v561_v3 = vmul.f32 %v2313_v47, %v490_v19  ;;  %v522_v17 = vmul.f32 %v2308_v23, %v2134_v16  ;;  %v523_v14 = vmul.f32 %v2308_v23, %v2141_v22 }
 0x141   :  { %1348 = vmatprep.mubr.msk.bf16.mxu1 %vm82_vm1, %v770_v9  ;;  %v755_v40 = vpack.c.bf16 %v695_v41, %v694_v53  ;;  %v727_v46 = vmax.f32 %v663_v28, 0.0  ;;  %v562_v50 = vmul.f32 %v2313_v47, %v491_v15  ;;  %v492_v18 = vmul.f32 %v2308_v23, %v1924_v21 }
 0x142   :  { %v632_v4 = vadd.f32 %v2326_v1, %v561_v3  ;;  %v593_v55 = vmul.f32 %v2313_v47, %v522_v17  ;;  %v594_v59 = vmul.f32 %v2313_v47, %v523_v14  ;;  %v493_v16 = vmul.f32 %v2308_v23, %v1931_v24 }
 0x143   :  { %1317 = vmatmul.mubr.msk.bf16.gmra.mrb[4].mxu0 %vm82_vm1, %v755_v40  ;;  %v771_v22 = vpack.c.bf16 %v727_v46, %v726_v63  ;;  %v633_v13 = vadd.f32 %v2326_v1, %v562_v50  ;;  %v563_v38 = vmul.f32 %v2313_v47, %v492_v18  ;;  %v524_v52 = vmul.f32 %v2308_v23, %v2148_v29 }
 0x144   :  { %v696_v21 = vmax.f32 %v632_v4, 0.0  ;;  %v664_v8 = vadd.f32 %v2326_v1, %v593_v55  ;;  %v665_v2 = vadd.f32 %v2326_v1, %v594_v59  ;;  %v564_v10 = vmul.f32 %v2313_v47, %v493_v16 }
 0x145   :  { %1349 = vmatmul.mubr.msk.bf16.gmra.mrb[4].mxu1 %vm82_vm1, %v771_v22  ;;  %v697_v24 = vmax.f32 %v633_v13, 0.0  ;;  %v634_v5 = vadd.f32 %v2326_v1, %v563_v38  ;;  %v525_v7 = vmul.f32 %v2308_v23, %v2155_v35  ;;  %v595_v6 = vmul.f32 %v2313_v47, %v524_v52 }
 0x146   :  { %v728_v12 = vmax.f32 %v664_v8, 0.0  ;;  %v729_v32 = vmax.f32 %v665_v2, 0.0  ;;  %v635_v29 = vadd.f32 %v2326_v1, %v564_v10  ;;  %v494_v34 = vmul.f32 %v2308_v23, %v1938_v27 }
 0x147   :  { %v756_v60 = vpack.c.bf16 %v697_v24, %v696_v21  ;;  %v698_v57 = vmax.f32 %v634_v5, 0.0  ;;  %v596_v44 = vmul.f32 %v2313_v47, %v525_v7  ;;  %v666_v0 = vadd.f32 %v2326_v1, %v595_v6 }
 0x148   :  { %v772_v58 = vpack.c.bf16 %v729_v32, %v728_v12  ;;  %v699_v53 = vmax.f32 %v635_v29, 0.0  ;;  %v495_v35 = vmul.f32 %v2308_v23, %v1945_v30  ;;  %v565_v37 = vmul.f32 %v2313_v47, %v494_v34 }
 0x149   :  { %1320 = vmatprep.mubr.msk.bf16.mxu0 %vm82_vm1, %v756_v60  ;;  %v667_v19 = vadd.f32 %v2326_v1, %v596_v44  ;;  %v730_v9 = vmax.f32 %v666_v0, 0.0  ;;  %v526_v27 = vmul.f32 %v2308_v23, %v2162_v43  ;;  %v527_v41 = vmul.f32 %v2308_v23, %v2169_v49 }
 0x14a   :  { %1352 = vmatprep.mubr.msk.bf16.mxu1 %vm82_vm1, %v772_v58  ;;  %v757_v28 = vpack.c.bf16 %v699_v53, %v698_v57  ;;  %v566_v15 = vmul.f32 %v2313_v47, %v495_v35  ;;  %v636_v30 = vadd.f32 %v2326_v1, %v565_v37  ;;  %v496_v63 = vmul.f32 %v2308_v23, %v1952_v33 }
 0x14b   :  { %v731_v3 = vmax.f32 %v667_v19, 0.0  ;;  %v597_v17 = vmul.f32 %v2313_v47, %v526_v27  ;;  %v598_v14 = vmul.f32 %v2313_v47, %v527_v41  ;;  %v497_v43 = vmul.f32 %v2308_v23, %v1959_v36 }
 0x14c   :  { %1321 = vmatmul.mubr.msk.bf16.gmra.mrb[8].mxu0 %vm82_vm1, %v757_v28  ;;  %v637_v49 = vadd.f32 %v2326_v1, %v566_v15  ;;  %v700_v40 = vmax.f32 %v636_v30, 0.0  ;;  %v567_v46 = vmul.f32 %v2313_v47, %v496_v63  ;;  %v528_v50 = vmul.f32 %v2308_v23, %v2176_v56 }
 0x14d   :  { %v773_v18 = vpack.c.bf16 %v731_v3, %v730_v9  ;;  %v668_v33 = vadd.f32 %v2326_v1, %v597_v17  ;;  %v669_v4 = vadd.f32 %v2326_v1, %v598_v14  ;;  %v568_v55 = vmul.f32 %v2313_v47, %v497_v43 }
 0x14e   :  { %v701_v59 = vmax.f32 %v637_v49, 0.0  ;;  %v638_v36 = vadd.f32 %v2326_v1, %v567_v46  ;;  %v529_v16 = vmul.f32 %v2308_v23, %v2183_v62  ;;  %v599_v22 = vmul.f32 %v2313_v47, %v528_v50 }
 0x14f   :  { %1353 = vmatmul.mubr.msk.bf16.gmra.mrb[8].mxu1 %vm82_vm1, %v773_v18  ;;  %v732_v13 = vmax.f32 %v668_v33, 0.0  ;;  %v733_v38 = vmax.f32 %v669_v4, 0.0  ;;  %v639_v56 = vadd.f32 %v2326_v1, %v568_v55  ;;  %v498_v52 = vmul.f32 %v2308_v23, %v1966_v39 }
 0x150   :  { %v758_v21 = vpack.c.bf16 %v701_v59, %v700_v40  ;;  %v702_v8 = vmax.f32 %v638_v36, 0.0  ;;  %v600_v2 = vmul.f32 %v2313_v47, %v529_v16  ;;  %v670_v10 = vadd.f32 %v2326_v1, %v599_v22  ;;  %v2954_v59 = vld [vmem:[#allocation17_spill] sm:$0xff] }
 0x151   :  { %v774_v24 = vpack.c.bf16 %v733_v38, %v732_v13  ;;  %v703_v5 = vmax.f32 %v639_v56, 0.0  ;;  %v499_v62 = vmul.f32 %v2308_v23, %v1973_v42  ;;  %v569_v7 = vmul.f32 %v2313_v47, %v498_v52  ;;  %v2955_v38 = vld [vmem:[#allocation18_spill] sm:$0xff] }
 0x152   :  { %1324 = vmatprep.mubr.msk.bf16.mxu0 %vm82_vm1, %v758_v21  ;;  %v671_v6 = vadd.f32 %v2326_v1, %v600_v2  ;;  %v734_v12 = vmax.f32 %v670_v10, 0.0  ;;  %v530_v39 = vmul.f32 %v2308_v23, %v2190_v11  ;;  %v531_v32 = vmul.f32 %v2308_v23, %v2197_v20  ;;  %v2956_v21 = vld [vmem:[#allocation2_spill] sm:$0xff] }
 0x153   :  { %1356 = vmatprep.mubr.msk.bf16.mxu1 %vm82_vm1, %v774_v24  ;;  %v759_v29 = vpack.c.bf16 %v703_v5, %v702_v8  ;;  %v570_v34 = vmul.f32 %v2313_v47, %v499_v62  ;;  %v640_v42 = vadd.f32 %v2326_v1, %v569_v7  ;;  %v500_v60 = vmul.f32 %v2308_v23, %v1980_v45 }
 0x154   :  { %v735_v57 = vmax.f32 %v671_v6, 0.0  ;;  %v601_v44 = vmul.f32 %v2313_v47, %v530_v39  ;;  %v602_v0 = vmul.f32 %v2313_v47, %v531_v32  ;;  %v501_v11 = vmul.f32 %v2308_v23, %v1987_v48  ;;  %v2957_v6 = vld [vmem:[#allocation3_spill] sm:$0xff] }
 0x155   :  { %1325 = vmatmul.mubr.msk.bf16.gmra.mrb[12].mxu0 %vm82_vm1, %v759_v29  ;;  %v641_v20 = vadd.f32 %v2326_v1, %v570_v34  ;;  %v704_v58 = vmax.f32 %v640_v42, 0.0  ;;  %v571_v53 = vmul.f32 %v2313_v47, %v500_v60  ;;  %v532_v35 = vmul.f32 %v2308_v23, %v2204_v31  ;;  %v2958_v42 = vld [vmem:[#allocation19_spill] sm:$0xff] }
 0x156   :  { %v775_v37 = vpack.c.bf16 %v735_v57, %v734_v12  ;;  %v672_v45 = vadd.f32 %v2326_v1, %v601_v44  ;;  %v673_v19 = vadd.f32 %v2326_v1, %v602_v0  ;;  %v572_v9 = vmul.f32 %v2313_v47, %v501_v11 }
 0x157   :  { %v705_v27 = vmax.f32 %v641_v20, 0.0  ;;  %v642_v48 = vadd.f32 %v2326_v1, %v571_v53  ;;  %v533_v41 = vmul.f32 %v2308_v23, %v2211_v26  ;;  %v603_v28 = vmul.f32 %v2313_v47, %v532_v35  ;;  %v2959_v53 = vld [vmem:[#allocation20_spill] sm:$0xff] }
 0x158   :  { %1357 = vmatmul.mubr.msk.bf16.gmra.mrb[12].mxu1 %vm82_vm1, %v775_v37  ;;  %v736_v15 = vmax.f32 %v672_v45, 0.0  ;;  %v737_v30 = vmax.f32 %v673_v19, 0.0  ;;  %v643_v31 = vadd.f32 %v2326_v1, %v572_v9  ;;  %v502_v63 = vmul.f32 %v2308_v23, %v1994_v51  ;;  %v2960_v9 = vld [vmem:[#allocation4_spill] sm:$0xff] }
 0x159   :  { %v760_v3 = vpack.c.bf16 %v705_v27, %v704_v58  ;;  %v706_v17 = vmax.f32 %v642_v48, 0.0  ;;  %v604_v14 = vmul.f32 %v2313_v47, %v533_v41  ;;  %v674_v43 = vadd.f32 %v2326_v1, %v603_v28  ;;  %v2961_v48 = vld [vmem:[#allocation5_spill] sm:$0xff] }
 0x15a   :  { %v776_v49 = vpack.c.bf16 %v737_v30, %v736_v15  ;;  %v707_v40 = vmax.f32 %v643_v31, 0.0  ;;  %v503_v26 = vmul.f32 %v2308_v23, %v2001_v54  ;;  %v573_v46 = vmul.f32 %v2313_v47, %v502_v63  ;;  %v2962_v31 = vld [vmem:[#allocation21_spill] sm:$0xff] }
 0x15b   :  { %1328 = vmatprep.mubr.msk.bf16.mxu0 %vm82_vm1, %v760_v3  ;;  %v675_v50 = vadd.f32 %v2326_v1, %v604_v14  ;;  %v738_v18 = vmax.f32 %v674_v43, 0.0  ;;  %v534_v51 = vmul.f32 %v2308_v23, %v2218_v61  ;;  %v535_v33 = vmul.f32 %v2308_v23, %v2225_v25  ;;  %v2963_v43 = vld [vmem:[#allocation22_spill] sm:$0xff] }
 0x15c   :  { %1360 = vmatprep.mubr.msk.bf16.mxu1 %vm82_vm1, %v776_v49  ;;  %v761_v4 = vpack.c.bf16 %v707_v40, %v706_v17  ;;  %v574_v55 = vmul.f32 %v2313_v47, %v503_v26  ;;  %v644_v54 = vadd.f32 %v2326_v1, %v573_v46  ;;  %v504_v36 = vmul.f32 %v2308_v23, %v2954_v59 }
 0x15d   :  { %v739_v16 = vmax.f32 %v675_v50, 0.0  ;;  %v605_v22 = vmul.f32 %v2313_v47, %v534_v51  ;;  %v606_v13 = vmul.f32 %v2313_v47, %v535_v33  ;;  %v505_v61 = vmul.f32 %v2308_v23, %v2955_v38  ;;  %v2964_v50 = vld [vmem:[#allocation6_spill] sm:$0xff] }
 0x15e   :  { %1329 = vmatmul.mubr.msk.bf16.gmra.mrb[16].mxu0 %vm82_vm1, %v761_v4  ;;  %v645_v25 = vadd.f32 %v2326_v1, %v574_v55  ;;  %v708_v56 = vmax.f32 %v644_v54, 0.0  ;;  %v575_v52 = vmul.f32 %v2313_v47, %v504_v36  ;;  %v536_v8 = vmul.f32 %v2308_v23, %v2956_v21  ;;  %v2965_v36 = vld [vmem:[#allocation7_spill] sm:$0xff] }
 0x15f   :  { %v777_v2 = vpack.c.bf16 %v739_v16, %v738_v18  ;;  %v676_v10 = vadd.f32 %v2326_v1, %v605_v22  ;;  %v677_v24 = vadd.f32 %v2326_v1, %v606_v13  ;;  %v576_v5 = vmul.f32 %v2313_v47, %v505_v61 }
 0x160   :  { %v709_v62 = vmax.f32 %v645_v25, 0.0  ;;  %v646_v7 = vadd.f32 %v2326_v1, %v575_v52  ;;  %v537_v12 = vmul.f32 %v2308_v23, %v2957_v6  ;;  %v607_v39 = vmul.f32 %v2313_v47, %v536_v8  ;;  %v2966_v25 = vld [vmem:[#allocation23_spill] sm:$0xff] }
 0x161   :  { %1361 = vmatmul.mubr.msk.bf16.gmra.mrb[16].mxu1 %vm82_vm1, %v777_v2  ;;  %v740_v32 = vmax.f32 %v676_v10, 0.0  ;;  %v741_v29 = vmax.f32 %v677_v24, 0.0  ;;  %v647_v34 = vadd.f32 %v2326_v1, %v576_v5  ;;  %v506_v60 = vmul.f32 %v2308_v23, %v2958_v42  ;;  %v2967_v5 = vld [vmem:[#allocation24_spill] sm:$0xff] }
 0x162   :  { %v762_v57 = vpack.c.bf16 %v709_v62, %v708_v56  ;;  %v710_v44 = vmax.f32 %v646_v7, 0.0  ;;  %v608_v0 = vmul.f32 %v2313_v47, %v537_v12  ;;  %v678_v11 = vadd.f32 %v2326_v1, %v607_v39  ;;  %v2968_v39 = vld [vmem:[#allocation8_spill] sm:$0xff] }
 0x163   :  { %v778_v20 = vpack.c.bf16 %v741_v29, %v740_v32  ;;  %v711_v58 = vmax.f32 %v647_v34, 0.0  ;;  %v507_v35 = vmul.f32 %v2308_v23, %v2959_v53  ;;  %v577_v37 = vmul.f32 %v2313_v47, %v506_v60  ;;  %v2969_v29 = vld [vmem:[#allocation9_spill] sm:$0xff]  ;;  %v2971_v53 = vld [vmem:[#allocation26_spill] sm:$0xff] }
 0x164   :  { %1332 = vmatprep.mubr.msk.bf16.mxu0 %vm82_vm1, %v762_v57  ;;  %v679_v45 = vadd.f32 %v2326_v1, %v608_v0  ;;  %v742_v19 = vmax.f32 %v678_v11, 0.0  ;;  %v538_v27 = vmul.f32 %v2308_v23, %v2960_v9  ;;  %v539_v41 = vmul.f32 %v2308_v23, %v2961_v48  ;;  %v2972_v9 = vld [vmem:[#allocation10_spill] sm:$0xff] }
 0x165   :  { %1364 = vmatprep.mubr.msk.bf16.mxu1 %vm82_vm1, %v778_v20  ;;  %v763_v28 = vpack.c.bf16 %v711_v58, %v710_v44  ;;  %v578_v15 = vmul.f32 %v2313_v47, %v507_v35  ;;  %v648_v30 = vadd.f32 %v2326_v1, %v577_v37  ;;  %v508_v63 = vmul.f32 %v2308_v23, %v2962_v31  ;;  %v2970_v44 = vld [vmem:[#allocation25_spill] sm:$0xff] }
 0x166   :  { %v743_v3 = vmax.f32 %v679_v45, 0.0  ;;  %v609_v17 = vmul.f32 %v2313_v47, %v538_v27  ;;  %v610_v14 = vmul.f32 %v2313_v47, %v539_v41  ;;  %v509_v49 = vmul.f32 %v2308_v23, %v2963_v43 }
 0x167   :  { %1333 = vmatmul.mubr.msk.bf16.gmra.mrb[20].mxu0 %vm82_vm1, %v763_v28  ;;  %v649_v40 = vadd.f32 %v2326_v1, %v578_v15  ;;  %v712_v26 = vmax.f32 %v648_v30, 0.0  ;;  %v579_v46 = vmul.f32 %v2313_v47, %v508_v63  ;;  %v540_v18 = vmul.f32 %v2308_v23, %v2964_v50  ;;  %v2973_v63 = vld [vmem:[#allocation11_spill] sm:$0xff] }
 0x168   :  { %v779_v51 = vpack.c.bf16 %v743_v3, %v742_v19  ;;  %v680_v33 = vadd.f32 %v2326_v1, %v609_v17  ;;  %v681_v4 = vadd.f32 %v2326_v1, %v610_v14  ;;  %v580_v55 = vmul.f32 %v2313_v47, %v509_v49 }
 0x169   :  { %v713_v54 = vmax.f32 %v649_v40, 0.0  ;;  %v650_v59 = vadd.f32 %v2326_v1, %v579_v46  ;;  %v541_v16 = vmul.f32 %v2308_v23, %v2965_v36  ;;  %v611_v22 = vmul.f32 %v2313_v47, %v540_v18 }
 0x16a   :  { %1365 = vmatmul.mubr.msk.bf16.gmra.mrb[20].mxu1 %vm82_vm1, %v779_v51  ;;  %v744_v13 = vmax.f32 %v680_v33, 0.0  ;;  %v745_v38 = vmax.f32 %v681_v4, 0.0  ;;  %v651_v61 = vadd.f32 %v2326_v1, %v580_v55  ;;  %v510_v56 = vmul.f32 %v2308_v23, %v2966_v25 }
 0x16b   :  { %v764_v52 = vpack.c.bf16 %v713_v54, %v712_v26  ;;  %v714_v21 = vmax.f32 %v650_v59, 0.0  ;;  %v612_v8 = vmul.f32 %v2313_v47, %v541_v16  ;;  %v682_v2 = vadd.f32 %v2326_v1, %v611_v22 }
 0x16c   :  { %v780_v10 = vpack.c.bf16 %v745_v38, %v744_v13  ;;  %v715_v24 = vmax.f32 %v651_v61, 0.0  ;;  %v511_v62 = vmul.f32 %v2308_v23, %v2967_v5  ;;  %v581_v7 = vmul.f32 %v2313_v47, %v510_v56 }
 0x16d   :  { %1336 = vmatprep.mubr.msk.bf16.mxu0 %vm82_vm1, %v764_v52  ;;  %v683_v6 = vadd.f32 %v2326_v1, %v612_v8  ;;  %v746_v12 = vmax.f32 %v682_v2, 0.0  ;;  %v542_v32 = vmul.f32 %v2308_v23, %v2968_v39  ;;  %v543_v34 = vmul.f32 %v2308_v23, %v2969_v29 }
 0x16e   :  { %1368 = vmatprep.mubr.msk.bf16.mxu1 %vm82_vm1, %v780_v10  ;;  %v765_v42 = vpack.c.bf16 %v715_v24, %v714_v21  ;;  %v582_v60 = vmul.f32 %v2313_v47, %v511_v62  ;;  %v652_v57 = vadd.f32 %v2326_v1, %v581_v7  ;;  %v512_v0 = vmul.f32 %v2308_v23, %v2970_v44 }
 0x16f   :  { %v747_v11 = vmax.f32 %v683_v6, 0.0  ;;  %v613_v20 = vmul.f32 %v2313_v47, %v542_v32  ;;  %v614_v58 = vmul.f32 %v2313_v47, %v543_v34  ;;  %v513_v35 = vmul.f32 %v2308_v23, %v2971_v53 }
 0x170   :  { %1337 = vmatmul.mubr.msk.bf16.gmra.mrb[24].mxu0 %vm82_vm1, %v765_v42  ;;  %v653_v37 = vadd.f32 %v2326_v1, %v582_v60  ;;  %v716_v45 = vmax.f32 %v652_v57, 0.0  ;;  %v583_v19 = vmul.f32 %v2313_v47, %v512_v0  ;;  %v544_v27 = vmul.f32 %v2308_v23, %v2972_v9 }
 0x171   :  { %v781_v48 = vpack.c.bf16 %v747_v11, %v746_v12  ;;  %v684_v41 = vadd.f32 %v2326_v1, %v613_v20  ;;  %v685_v28 = vadd.f32 %v2326_v1, %v614_v58  ;;  %v584_v15 = vmul.f32 %v2313_v47, %v513_v35 }
 0x172   :  { %v717_v30 = vmax.f32 %v653_v37, 0.0  ;;  %v654_v31 = vadd.f32 %v2326_v1, %v583_v19  ;;  %v545_v3 = vmul.f32 %v2308_v23, %v2973_v63  ;;  %v615_v17 = vmul.f32 %v2313_v47, %v544_v27 }
 0x173   :  { %1369 = vmatmul.mubr.msk.bf16.gmra.mrb[24].mxu1 %vm82_vm1, %v781_v48  ;;  %v748_v14 = vmax.f32 %v684_v41, 0.0  ;;  %v749_v43 = vmax.f32 %v685_v28, 0.0  ;;  %v655_v49 = vadd.f32 %v2326_v1, %v584_v15 }
 0x174   :  { %v766_v40 = vpack.c.bf16 %v717_v30, %v716_v45  ;;  %v718_v26 = vmax.f32 %v654_v31, 0.0  ;;  %v616_v46 = vmul.f32 %v2313_v47, %v545_v3  ;;  %v686_v50 = vadd.f32 %v2326_v1, %v615_v17 }
 0x175   :  { %v782_v18 = vpack.c.bf16 %v749_v43, %v748_v14  ;;  %v719_v51 = vmax.f32 %v655_v49, 0.0 }
 0x176   :  { %1340 = vmatprep.mubr.msk.bf16.mxu0 %vm82_vm1, %v766_v40  ;;  %v687_v23 = vadd.f32 %v2326_v1, %v616_v46  ;;  %v750_v33 = vmax.f32 %v686_v50, 0.0 }
 0x177   :  { %1372 = vmatprep.mubr.msk.bf16.mxu1 %vm82_vm1, %v782_v18  ;;  %v767_v4 = vpack.c.bf16 %v719_v51, %v718_v26 }
 0x178   :  { %v751_v55 = vmax.f32 %v687_v23, 0.0 }
 0x179   :  { %1341 = vmatmul.mubr.msk.bf16.gmra.mrb[28].mxu0 %vm82_vm1, %v767_v4 }
 0x17a   :  { %v783_v54 = vpack.c.bf16 %v751_v55, %v750_v33 }
 0x17c   :  { %1373 = vmatmul.mubr.msk.bf16.gmra.mrb[28].mxu1 %vm82_vm1, %v783_v54 }
 0x20c   :  { %v1314_v47 = vpop.f32.mrb[0].mxu0  ;;  %v1346_v59 = vpop.f32.mrb[0].mxu1 }
 0x20d   :  { %1177 = vst.msk [vmem:[%s2868_s4 + $0x10] sm:$0xff] %vm1174_vm2, %v1314_v47  ;;  %1209 = vst.msk [vmem:[%s2868_s4 + $0x110] sm:$0xff] %vm1174_vm2, %v1346_v59  ;;  %v919_v1 = vpop.f32.mrb[1].mxu0  ;;  %v1047_v36 = vpop.f32.mrb[1].mxu1 }
 0x20e   :  { %1175 = vst.msk [vmem:[%s2868_s4] sm:$0xff] %vm1174_vm2, %v919_v1  ;;  %1207 = vst.msk [vmem:[%s2868_s4 + $0x100] sm:$0xff] %vm1174_vm2, %v1047_v36  ;;  %v1315_v16 = vpop.f32.mrb[2].mxu0  ;;  %v1347_v22 = vpop.f32.mrb[2].mxu1 }
 0x20f   :  { %1178 = vst.msk [vmem:[%s2868_s4 + $0x18] sm:$0xff] %vm1174_vm2, %v1315_v16  ;;  %1210 = vst.msk [vmem:[%s2868_s4 + $0x118] sm:$0xff] %vm1174_vm2, %v1347_v22  ;;  %v922_v13 = vpop.f32.mrb[3].mxu0  ;;  %v1050_v38 = vpop.f32.mrb[3].mxu1 }
 0x210   :  { %1176 = vst.msk [vmem:[%s2868_s4 + $0x8] sm:$0xff] %vm1174_vm2, %v922_v13  ;;  %1208 = vst.msk [vmem:[%s2868_s4 + $0x108] sm:$0xff] %vm1174_vm2, %v1050_v38 }
 0x216   :  { %v1318_v61 = vpop.f32.mrb[4].mxu0 }
 0x217   :  { %1181 = vst.msk [vmem:[%s2868_s4 + $0x30] sm:$0xff] %vm1174_vm2, %v1318_v61  ;;  %v935_v25 = vpop.f32.mrb[5].mxu0 }
 0x218   :  { %v1350_v56 = vpop.f32.mrb[4].mxu1  ;;  %1179 = vst.msk [vmem:[%s2868_s4 + $0x20] sm:$0xff] %vm1174_vm2, %v935_v25  ;;  %v1319_v52 = vpop.f32.mrb[6].mxu0 }
 0x219   :  { %1213 = vst.msk [vmem:[%s2868_s4 + $0x130] sm:$0xff] %vm1174_vm2, %v1350_v56  ;;  %v1063_v21 = vpop.f32.mrb[5].mxu1  ;;  %1182 = vst.msk [vmem:[%s2868_s4 + $0x38] sm:$0xff] %vm1174_vm2, %v1319_v52  ;;  %v938_v8 = vpop.f32.mrb[7].mxu0 }
 0x21a   :  { %1211 = vst.msk [vmem:[%s2868_s4 + $0x120] sm:$0xff] %vm1174_vm2, %v1063_v21  ;;  %v1351_v2 = vpop.f32.mrb[6].mxu1  ;;  %1180 = vst.msk [vmem:[%s2868_s4 + $0x28] sm:$0xff] %vm1174_vm2, %v938_v8 }
 0x21b   :  { %1214 = vst.msk [vmem:[%s2868_s4 + $0x138] sm:$0xff] %vm1174_vm2, %v1351_v2  ;;  %v1066_v10 = vpop.f32.mrb[7].mxu1 }
 0x21c   :  { %1212 = vst.msk [vmem:[%s2868_s4 + $0x128] sm:$0xff] %vm1174_vm2, %v1066_v10 }
 0x21f   :  { %v1322_v24 = vpop.f32.mrb[8].mxu0 }
 0x220   :  { %1185 = vst.msk [vmem:[%s2868_s4 + $0x50] sm:$0xff] %vm1174_vm2, %v1322_v24  ;;  %v951_v5 = vpop.f32.mrb[9].mxu0 }
 0x221   :  { %1183 = vst.msk [vmem:[%s2868_s4 + $0x40] sm:$0xff] %vm1174_vm2, %v951_v5  ;;  %v1323_v62 = vpop.f32.mrb[10].mxu0 }
 0x222   :  { %v1354_v7 = vpop.f32.mrb[8].mxu1  ;;  %1186 = vst.msk [vmem:[%s2868_s4 + $0x58] sm:$0xff] %vm1174_vm2, %v1323_v62  ;;  %v954_v6 = vpop.f32.mrb[11].mxu0 }
 0x223   :  { %1217 = vst.msk [vmem:[%s2868_s4 + $0x150] sm:$0xff] %vm1174_vm2, %v1354_v7  ;;  %v1079_v12 = vpop.f32.mrb[9].mxu1  ;;  %1184 = vst.msk [vmem:[%s2868_s4 + $0x48] sm:$0xff] %vm1174_vm2, %v954_v6 }
 0x224   :  { %1215 = vst.msk [vmem:[%s2868_s4 + $0x140] sm:$0xff] %vm1174_vm2, %v1079_v12  ;;  %v1355_v39 = vpop.f32.mrb[10].mxu1 }
 0x225   :  { %1218 = vst.msk [vmem:[%s2868_s4 + $0x158] sm:$0xff] %vm1174_vm2, %v1355_v39  ;;  %v1082_v32 = vpop.f32.mrb[11].mxu1 }
 0x226   :  { %1216 = vst.msk [vmem:[%s2868_s4 + $0x148] sm:$0xff] %vm1174_vm2, %v1082_v32 }
 0x228   :  { %v1326_v29 = vpop.f32.mrb[12].mxu0 }
 0x229   :  { %1189 = vst.msk [vmem:[%s2868_s4 + $0x70] sm:$0xff] %vm1174_vm2, %v1326_v29  ;;  %v967_v34 = vpop.f32.mrb[13].mxu0 }
 0x22a   :  { %1187 = vst.msk [vmem:[%s2868_s4 + $0x60] sm:$0xff] %vm1174_vm2, %v967_v34  ;;  %v1327_v42 = vpop.f32.mrb[14].mxu0 }
 0x22b   :  { %v1358_v60 = vpop.f32.mrb[12].mxu1  ;;  %1190 = vst.msk [vmem:[%s2868_s4 + $0x78] sm:$0xff] %vm1174_vm2, %v1327_v42  ;;  %v970_v57 = vpop.f32.mrb[15].mxu0 }
 0x22c   :  { %1221 = vst.msk [vmem:[%s2868_s4 + $0x170] sm:$0xff] %vm1174_vm2, %v1358_v60  ;;  %v1095_v44 = vpop.f32.mrb[13].mxu1  ;;  %1188 = vst.msk [vmem:[%s2868_s4 + $0x68] sm:$0xff] %vm1174_vm2, %v970_v57 }
 0x22d   :  { %1219 = vst.msk [vmem:[%s2868_s4 + $0x160] sm:$0xff] %vm1174_vm2, %v1095_v44  ;;  %v1359_v0 = vpop.f32.mrb[14].mxu1 }
 0x22e   :  { %1222 = vst.msk [vmem:[%s2868_s4 + $0x178] sm:$0xff] %vm1174_vm2, %v1359_v0  ;;  %v1098_v11 = vpop.f32.mrb[15].mxu1 }
 0x22f   :  { %1220 = vst.msk [vmem:[%s2868_s4 + $0x168] sm:$0xff] %vm1174_vm2, %v1098_v11 }
 0x231   :  { %v1330_v20 = vpop.f32.mrb[16].mxu0 }
 0x232   :  { %1193 = vst.msk [vmem:[%s2868_s4 + $0x90] sm:$0xff] %vm1174_vm2, %v1330_v20  ;;  %v983_v58 = vpop.f32.mrb[17].mxu0 }
 0x233   :  { %1191 = vst.msk [vmem:[%s2868_s4 + $0x80] sm:$0xff] %vm1174_vm2, %v983_v58  ;;  %v1331_v53 = vpop.f32.mrb[18].mxu0 }
 0x234   :  { %v1362_v35 = vpop.f32.mrb[16].mxu1  ;;  %1194 = vst.msk [vmem:[%s2868_s4 + $0x98] sm:$0xff] %vm1174_vm2, %v1331_v53  ;;  %v986_v37 = vpop.f32.mrb[19].mxu0 }
 0x235   :  { %1225 = vst.msk [vmem:[%s2868_s4 + $0x190] sm:$0xff] %vm1174_vm2, %v1362_v35  ;;  %v1111_v45 = vpop.f32.mrb[17].mxu1  ;;  %1192 = vst.msk [vmem:[%s2868_s4 + $0x88] sm:$0xff] %vm1174_vm2, %v986_v37 }
 0x236   :  { %1223 = vst.msk [vmem:[%s2868_s4 + $0x180] sm:$0xff] %vm1174_vm2, %v1111_v45  ;;  %v1363_v19 = vpop.f32.mrb[18].mxu1 }
 0x237   :  { %1226 = vst.msk [vmem:[%s2868_s4 + $0x198] sm:$0xff] %vm1174_vm2, %v1363_v19  ;;  %v1114_v9 = vpop.f32.mrb[19].mxu1 }
 0x238   :  { %1224 = vst.msk [vmem:[%s2868_s4 + $0x188] sm:$0xff] %vm1174_vm2, %v1114_v9 }
 0x23a   :  { %v1334_v27 = vpop.f32.mrb[20].mxu0 }
 0x23b   :  { %1197 = vst.msk [vmem:[%s2868_s4 + $0xb0] sm:$0xff] %vm1174_vm2, %v1334_v27  ;;  %v999_v48 = vpop.f32.mrb[21].mxu0 }
 0x23c   :  { %1195 = vst.msk [vmem:[%s2868_s4 + $0xa0] sm:$0xff] %vm1174_vm2, %v999_v48  ;;  %v1335_v41 = vpop.f32.mrb[22].mxu0 }
 0x23d   :  { %v1366_v28 = vpop.f32.mrb[20].mxu1  ;;  %1198 = vst.msk [vmem:[%s2868_s4 + $0xb8] sm:$0xff] %vm1174_vm2, %v1335_v41  ;;  %v1002_v15 = vpop.f32.mrb[23].mxu0 }
 0x23e   :  { %1229 = vst.msk [vmem:[%s2868_s4 + $0x1b0] sm:$0xff] %vm1174_vm2, %v1366_v28  ;;  %v1127_v30 = vpop.f32.mrb[21].mxu1  ;;  %1196 = vst.msk [vmem:[%s2868_s4 + $0xa8] sm:$0xff] %vm1174_vm2, %v1002_v15 }
 0x23f   :  { %1227 = vst.msk [vmem:[%s2868_s4 + $0x1a0] sm:$0xff] %vm1174_vm2, %v1127_v30  ;;  %v1367_v31 = vpop.f32.mrb[22].mxu1 }
 0x240   :  { %1230 = vst.msk [vmem:[%s2868_s4 + $0x1b8] sm:$0xff] %vm1174_vm2, %v1367_v31  ;;  %v1130_v63 = vpop.f32.mrb[23].mxu1 }
 0x241   :  { %1228 = vst.msk [vmem:[%s2868_s4 + $0x1a8] sm:$0xff] %vm1174_vm2, %v1130_v63 }
 0x243   :  { %v1338_v3 = vpop.f32.mrb[24].mxu0 }
 0x244   :  { %1201 = vst.msk [vmem:[%s2868_s4 + $0xd0] sm:$0xff] %vm1174_vm2, %v1338_v3  ;;  %v1015_v17 = vpop.f32.mrb[25].mxu0 }
 0x245   :  { %1199 = vst.msk [vmem:[%s2868_s4 + $0xc0] sm:$0xff] %vm1174_vm2, %v1015_v17  ;;  %v1339_v14 = vpop.f32.mrb[26].mxu0 }
 0x246   :  { %v1370_v43 = vpop.f32.mrb[24].mxu1  ;;  %1202 = vst.msk [vmem:[%s2868_s4 + $0xd8] sm:$0xff] %vm1174_vm2, %v1339_v14  ;;  %v1018_v49 = vpop.f32.mrb[27].mxu0 }
 0x247   :  { %1233 = vst.msk [vmem:[%s2868_s4 + $0x1d0] sm:$0xff] %vm1174_vm2, %v1370_v43  ;;  %v1143_v40 = vpop.f32.mrb[25].mxu1  ;;  %1200 = vst.msk [vmem:[%s2868_s4 + $0xc8] sm:$0xff] %vm1174_vm2, %v1018_v49 }
 0x248   :  { %1231 = vst.msk [vmem:[%s2868_s4 + $0x1c0] sm:$0xff] %vm1174_vm2, %v1143_v40  ;;  %v1371_v26 = vpop.f32.mrb[26].mxu1 }
 0x249   :  { %1234 = vst.msk [vmem:[%s2868_s4 + $0x1d8] sm:$0xff] %vm1174_vm2, %v1371_v26  ;;  %v1146_v46 = vpop.f32.mrb[27].mxu1 }
 0x24a   :  { %1232 = vst.msk [vmem:[%s2868_s4 + $0x1c8] sm:$0xff] %vm1174_vm2, %v1146_v46 }
 0x24c   :  { %v1342_v50 = vpop.f32.mrb[28].mxu0 }
 0x24d   :  { %1205 = vst.msk [vmem:[%s2868_s4 + $0xf0] sm:$0xff] %vm1174_vm2, %v1342_v50  ;;  %v1031_v18 = vpop.f32.mrb[29].mxu0 }
 0x24e   :  { %1203 = vst.msk [vmem:[%s2868_s4 + $0xe0] sm:$0xff] %vm1174_vm2, %v1031_v18  ;;  %v1343_v51 = vpop.f32.mrb[30].mxu0 }
 0x24f   :  { %v1374_v23 = vpop.f32.mrb[28].mxu1  ;;  %1206 = vst.msk [vmem:[%s2868_s4 + $0xf8] sm:$0xff] %vm1174_vm2, %v1343_v51  ;;  %v1034_v33 = vpop.f32.mrb[31].mxu0 }
 0x250   :  { %1237 = vst.msk [vmem:[%s2868_s4 + $0x1f0] sm:$0xff] %vm1174_vm2, %v1374_v23  ;;  %v1159_v4 = vpop.f32.mrb[29].mxu1  ;;  %1204 = vst.msk [vmem:[%s2868_s4 + $0xe8] sm:$0xff] %vm1174_vm2, %v1034_v33 }
 0x251   :  { %1235 = vst.msk [vmem:[%s2868_s4 + $0x1e0] sm:$0xff] %vm1174_vm2, %v1159_v4  ;;  %v1375_v55 = vpop.f32.mrb[30].mxu1 }
 0x252   :  { %1238 = vst.msk [vmem:[%s2868_s4 + $0x1f8] sm:$0xff] %vm1174_vm2, %v1375_v55  ;;  %v1162_v54 = vpop.f32.mrb[31].mxu1 }
 0x253   :  { %1236 = vst.msk [vmem:[%s2868_s4 + $0x1e8] sm:$0xff] %vm1174_vm2, %v1162_v54 }

// kernel: generator_forward.10
= control target key start
LH: loop header
LB: loop body
LE: loop exit
PB: predicated region body
PF: predicated region fallthrough
CT: control target
= control target key end

     0   :  { %vm3377_vm0 = vcmask 1041408   ;;  %vm274_vm1 = vcmask 31744   ;;  %vm4438_vm2 = vcmask 130048   ;;  %s11072_s3 = inlined_call_operand.vmem [shape: bf16[4,16], index: 3, kind: input, shape index: {}]   ;;  %s11073_s0 = inlined_call_operand.vmem [shape: f32[2048,4], index: 0, kind: input, shape index: {}]   ;;  %s11074_s1 = inlined_call_operand.vmem [shape: f32[1,4], index: 1, kind: input, shape index: {}]   ;;  %s11075_s2 = inlined_call_operand.vmem [shape: f32[1,4], index: 2, kind: input, shape index: {}]   ;;  %s11076_s4 = inlined_call_operand.vmem [shape: f32[2048,16], index: 4, kind: output, shape index: {}]  }
   0x1   :  { %v2992_v0 = vld [vmem:[%s11072_s3] sm:$0x3]  ;;  %v19_v2 = vld [vmem:[%s11073_s0 + $0x8] sm:$0xff]  ;;  %v20_v4 = vld [vmem:[%s11073_s0 + $0x10] sm:$0xff] }
   0x2   :  { %v18_v1 = vld [vmem:[%s11073_s0] sm:$0xff]  ;;  %5218 = vmatprep.subr.msk.bf16.mxu0 %vm3377_vm0, %v2992_v0  ;;  %5219 = vmatprep.subr.msk.bf16.mxu1 %vm3377_vm0, %v2992_v0  ;;  %v3379_v3 = vsel %vm3377_vm0, %v2992_v0, 0  ;;  %v21_v5 = vld [vmem:[%s11073_s0 + $0x18] sm:$0xff]  ;;  %v276_v7 = vsel %vm274_vm1, %v19_v2, 0.0  ;;  %v278_v10 = vsel %vm274_vm1, %v20_v4, 0.0  ;;  %v23_v12 = vld [vmem:[%s11073_s0 + $0x28] sm:$0xff] }
   0x3   :  { %v275_v6 = vsel %vm274_vm1, %v18_v1, 0.0  ;;  %4959 = vmatpush3.bf16.msra.mxu0 %v3379_v3  ;;  %5217 = vmatpush3.bf16.msra.mxu1 %v3379_v3  ;;  %v22_v8 = vld [vmem:[%s11073_s0 + $0x20] sm:$0xff]  ;;  %v280_v11 = vsel %vm274_vm1, %v21_v5, 0.0  ;;  %v24_v15 = vld [vmem:[%s11073_s0 + $0x30] sm:$0xff]  ;;  %v284_v17 = vsel %vm274_vm1, %v23_v12, 0.0  ;;  %v25_v18 = vld [vmem:[%s11073_s0 + $0x38] sm:$0xff] }
   0x4   :  { %v277_v9 = vadd.f32 %v276_v7, %v275_v6  ;;  %v282_v14 = vsel %vm274_vm1, %v22_v8, 0.0  ;;  %v286_v20 = vsel %vm274_vm1, %v24_v15, 0.0  ;;  %v26_v21 = vld [vmem:[%s11073_s0 + $0x40] sm:$0xff]  ;;  %v288_v23 = vsel %vm274_vm1, %v25_v18, 0.0  ;;  %v27_v24 = vld [vmem:[%s11073_s0 + $0x48] sm:$0xff]  ;;  %v28_v27 = vld [vmem:[%s11073_s0 + $0x50] sm:$0xff] }
   0x5   :  { %v290_v26 = vsel %vm274_vm1, %v26_v21, 0.0  ;;  %v292_v29 = vsel %vm274_vm1, %v27_v24, 0.0  ;;  %v29_v30 = vld [vmem:[%s11073_s0 + $0x58] sm:$0xff]  ;;  %v294_v32 = vsel %vm274_vm1, %v28_v27, 0.0  ;;  %v30_v33 = vld [vmem:[%s11073_s0 + $0x60] sm:$0xff]  ;;  %v31_v36 = vld [vmem:[%s11073_s0 + $0x68] sm:$0xff] }
   0x6   :  { %v279_v13 = vadd.f32 %v278_v10, %v277_v9  ;;  %v296_v35 = vsel %vm274_vm1, %v29_v30, 0.0  ;;  %v298_v38 = vsel %vm274_vm1, %v30_v33, 0.0  ;;  %v32_v39 = vld [vmem:[%s11073_s0 + $0x70] sm:$0xff]  ;;  %v300_v41 = vsel %vm274_vm1, %v31_v36, 0.0  ;;  %v33_v42 = vld [vmem:[%s11073_s0 + $0x78] sm:$0xff]  ;;  %v34_v45 = vld [vmem:[%s11073_s0 + $0x80] sm:$0xff] }
   0x7   :  { %v302_v44 = vsel %vm274_vm1, %v32_v39, 0.0  ;;  %v304_v47 = vsel %vm274_vm1, %v33_v42, 0.0  ;;  %v35_v48 = vld [vmem:[%s11073_s0 + $0x88] sm:$0xff]  ;;  %v306_v50 = vsel %vm274_vm1, %v34_v45, 0.0  ;;  %v36_v51 = vld [vmem:[%s11073_s0 + $0x90] sm:$0xff]  ;;  %v37_v54 = vld [vmem:[%s11073_s0 + $0x98] sm:$0xff] }
   0x8   :  { %v281_v16 = vadd.f32 %v280_v11, %v279_v13  ;;  %v308_v53 = vsel %vm274_vm1, %v35_v48, 0.0  ;;  %v310_v56 = vsel %vm274_vm1, %v36_v51, 0.0  ;;  %v38_v57 = vld [vmem:[%s11073_s0 + $0xa0] sm:$0xff]  ;;  %v312_v59 = vsel %vm274_vm1, %v37_v54, 0.0  ;;  %v39_v60 = vld [vmem:[%s11073_s0 + $0xa8] sm:$0xff]  ;;  %v40_v63 = vld [vmem:[%s11073_s0 + $0xb0] sm:$0xff] }
   0x9   :  { %v314_v62 = vsel %vm274_vm1, %v38_v57, 0.0  ;;  %v316_v1 = vsel %vm274_vm1, %v39_v60, 0.0  ;;  %v41_v2 = vld [vmem:[%s11073_s0 + $0xb8] sm:$0xff]  ;;  %v318_v4 = vsel %vm274_vm1, %v40_v63, 0.0  ;;  %v42_v5 = vld [vmem:[%s11073_s0 + $0xc0] sm:$0xff]  ;;  %v43_v8 = vld [vmem:[%s11073_s0 + $0xc8] sm:$0xff] }
   0xa   :  { %v283_v19 = vadd.f32 %v282_v14, %v281_v16  ;;  %v320_v7 = vsel %vm274_vm1, %v41_v2, 0.0  ;;  %v322_v10 = vsel %vm274_vm1, %v42_v5, 0.0  ;;  %v44_v11 = vld [vmem:[%s11073_s0 + $0xd0] sm:$0xff]  ;;  %v324_v13 = vsel %vm274_vm1, %v43_v8, 0.0  ;;  %v45_v14 = vld [vmem:[%s11073_s0 + $0xd8] sm:$0xff] }
   0xb   :  { %v326_v16 = vsel %vm274_vm1, %v44_v11, 0.0 }
   0xc   :  { %v285_v22 = vadd.f32 %v284_v17, %v283_v19  ;;  %v46_v17 = vld [vmem:[%s11073_s0 + $0xe0] sm:$0xff]  ;;  %v328_v19 = vsel %vm274_vm1, %v45_v14, 0.0 }
   0xe   :  { %v287_v25 = vadd.f32 %v286_v20, %v285_v22  ;;  %v47_v20 = vld [vmem:[%s11073_s0 + $0xe8] sm:$0xff]  ;;  %v330_v22 = vsel %vm274_vm1, %v46_v17, 0.0 }
  0x10   :  { %v289_v28 = vadd.f32 %v288_v23, %v287_v25  ;;  %v48_v23 = vld [vmem:[%s11073_s0 + $0xf0] sm:$0xff]  ;;  %v332_v25 = vsel %vm274_vm1, %v47_v20, 0.0 }
  0x12   :  { %v291_v31 = vadd.f32 %v290_v26, %v289_v28  ;;  %v49_v26 = vld [vmem:[%s11073_s0 + $0xf8] sm:$0xff]  ;;  %v334_v28 = vsel %vm274_vm1, %v48_v23, 0.0 }
  0x14   :  { %v293_v34 = vadd.f32 %v292_v29, %v291_v31  ;;  %v50_v29 = vld [vmem:[%s11073_s0 + $0x100] sm:$0xff]  ;;  %v336_v31 = vsel %vm274_vm1, %v49_v26, 0.0 }
  0x16   :  { %v295_v37 = vadd.f32 %v294_v32, %v293_v34  ;;  %v51_v32 = vld [vmem:[%s11073_s0 + $0x108] sm:$0xff]  ;;  %v338_v34 = vsel %vm274_vm1, %v50_v29, 0.0 }
  0x18   :  { %v297_v40 = vadd.f32 %v296_v35, %v295_v37  ;;  %v52_v35 = vld [vmem:[%s11073_s0 + $0x110] sm:$0xff]  ;;  %v340_v37 = vsel %vm274_vm1, %v51_v32, 0.0 }
  0x1a   :  { %v299_v43 = vadd.f32 %v298_v38, %v297_v40  ;;  %v53_v38 = vld [vmem:[%s11073_s0 + $0x118] sm:$0xff]  ;;  %v342_v40 = vsel %vm274_vm1, %v52_v35, 0.0 }
  0x1c   :  { %v301_v46 = vadd.f32 %v300_v41, %v299_v43  ;;  %v54_v41 = vld [vmem:[%s11073_s0 + $0x120] sm:$0xff]  ;;  %v344_v43 = vsel %vm274_vm1, %v53_v38, 0.0 }
  0x1e   :  { %v303_v49 = vadd.f32 %v302_v44, %v301_v46  ;;  %v55_v44 = vld [vmem:[%s11073_s0 + $0x128] sm:$0xff]  ;;  %v346_v46 = vsel %vm274_vm1, %v54_v41, 0.0 }
  0x20   :  { %v305_v52 = vadd.f32 %v304_v47, %v303_v49  ;;  %v56_v47 = vld [vmem:[%s11073_s0 + $0x130] sm:$0xff]  ;;  %v348_v49 = vsel %vm274_vm1, %v55_v44, 0.0 }
  0x22   :  { %v307_v55 = vadd.f32 %v306_v50, %v305_v52  ;;  %v57_v50 = vld [vmem:[%s11073_s0 + $0x138] sm:$0xff]  ;;  %v350_v52 = vsel %vm274_vm1, %v56_v47, 0.0 }
  0x24   :  { %v309_v58 = vadd.f32 %v308_v53, %v307_v55  ;;  %v58_v53 = vld [vmem:[%s11073_s0 + $0x140] sm:$0xff]  ;;  %v352_v55 = vsel %vm274_vm1, %v57_v50, 0.0 }
  0x26   :  { %v311_v61 = vadd.f32 %v310_v56, %v309_v58  ;;  %v59_v56 = vld [vmem:[%s11073_s0 + $0x148] sm:$0xff]  ;;  %v354_v58 = vsel %vm274_vm1, %v58_v53, 0.0 }
  0x28   :  { %v313_v0 = vadd.f32 %v312_v59, %v311_v61  ;;  %v60_v59 = vld [vmem:[%s11073_s0 + $0x150] sm:$0xff]  ;;  %v356_v61 = vsel %vm274_vm1, %v59_v56, 0.0 }
  0x2a   :  { %v315_v3 = vadd.f32 %v314_v62, %v313_v0  ;;  %v61_v62 = vld [vmem:[%s11073_s0 + $0x158] sm:$0xff]  ;;  %v358_v0 = vsel %vm274_vm1, %v60_v59, 0.0 }
  0x2c   :  { %v317_v6 = vadd.f32 %v316_v1, %v315_v3  ;;  %v62_v1 = vld [vmem:[%s11073_s0 + $0x160] sm:$0xff]  ;;  %v360_v3 = vsel %vm274_vm1, %v61_v62, 0.0 }
  0x2e   :  { %v319_v9 = vadd.f32 %v318_v4, %v317_v6  ;;  %v63_v4 = vld [vmem:[%s11073_s0 + $0x168] sm:$0xff]  ;;  %v362_v6 = vsel %vm274_vm1, %v62_v1, 0.0 }
  0x30   :  { %v321_v12 = vadd.f32 %v320_v7, %v319_v9  ;;  %v64_v7 = vld [vmem:[%s11073_s0 + $0x170] sm:$0xff]  ;;  %v364_v9 = vsel %vm274_vm1, %v63_v4, 0.0 }
  0x32   :  { %v323_v15 = vadd.f32 %v322_v10, %v321_v12  ;;  %v65_v10 = vld [vmem:[%s11073_s0 + $0x178] sm:$0xff]  ;;  %v366_v12 = vsel %vm274_vm1, %v64_v7, 0.0 }
  0x34   :  { %v325_v18 = vadd.f32 %v324_v13, %v323_v15  ;;  %v66_v13 = vld [vmem:[%s11073_s0 + $0x180] sm:$0xff]  ;;  %v368_v15 = vsel %vm274_vm1, %v65_v10, 0.0 }
  0x36   :  { %v327_v21 = vadd.f32 %v326_v16, %v325_v18  ;;  %v67_v16 = vld [vmem:[%s11073_s0 + $0x188] sm:$0xff]  ;;  %v370_v18 = vsel %vm274_vm1, %v66_v13, 0.0 }
  0x38   :  { %v329_v24 = vadd.f32 %v328_v19, %v327_v21  ;;  %v68_v19 = vld [vmem:[%s11073_s0 + $0x190] sm:$0xff]  ;;  %v372_v21 = vsel %vm274_vm1, %v67_v16, 0.0 }
  0x3a   :  { %v331_v27 = vadd.f32 %v330_v22, %v329_v24  ;;  %v69_v22 = vld [vmem:[%s11073_s0 + $0x198] sm:$0xff]  ;;  %v374_v24 = vsel %vm274_vm1, %v68_v19, 0.0 }
  0x3c   :  { %v333_v30 = vadd.f32 %v332_v25, %v331_v27  ;;  %v70_v25 = vld [vmem:[%s11073_s0 + $0x1a0] sm:$0xff]  ;;  %v376_v27 = vsel %vm274_vm1, %v69_v22, 0.0 }
  0x3e   :  { %v335_v33 = vadd.f32 %v334_v28, %v333_v30  ;;  %v71_v28 = vld [vmem:[%s11073_s0 + $0x1a8] sm:$0xff]  ;;  %v378_v30 = vsel %vm274_vm1, %v70_v25, 0.0 }
  0x40   :  { %v337_v36 = vadd.f32 %v336_v31, %v335_v33  ;;  %v72_v31 = vld [vmem:[%s11073_s0 + $0x1b0] sm:$0xff]  ;;  %v380_v33 = vsel %vm274_vm1, %v71_v28, 0.0 }
  0x42   :  { %v339_v39 = vadd.f32 %v338_v34, %v337_v36  ;;  %v73_v34 = vld [vmem:[%s11073_s0 + $0x1b8] sm:$0xff]  ;;  %v382_v36 = vsel %vm274_vm1, %v72_v31, 0.0 }
  0x44   :  { %v341_v42 = vadd.f32 %v340_v37, %v339_v39  ;;  %v74_v37 = vld [vmem:[%s11073_s0 + $0x1c0] sm:$0xff]  ;;  %v384_v39 = vsel %vm274_vm1, %v73_v34, 0.0 }
  0x46   :  { %v343_v45 = vadd.f32 %v342_v40, %v341_v42  ;;  %v75_v40 = vld [vmem:[%s11073_s0 + $0x1c8] sm:$0xff]  ;;  %v386_v42 = vsel %vm274_vm1, %v74_v37, 0.0 }
  0x48   :  { %v345_v48 = vadd.f32 %v344_v43, %v343_v45  ;;  %v76_v43 = vld [vmem:[%s11073_s0 + $0x1d0] sm:$0xff]  ;;  %v388_v45 = vsel %vm274_vm1, %v75_v40, 0.0 }
  0x4a   :  { %v347_v51 = vadd.f32 %v346_v46, %v345_v48  ;;  %v77_v46 = vld [vmem:[%s11073_s0 + $0x1d8] sm:$0xff]  ;;  %v390_v48 = vsel %vm274_vm1, %v76_v43, 0.0 }
  0x4c   :  { %v349_v54 = vadd.f32 %v348_v49, %v347_v51  ;;  %v78_v49 = vld [vmem:[%s11073_s0 + $0x1e0] sm:$0xff]  ;;  %v392_v51 = vsel %vm274_vm1, %v77_v46, 0.0 }
  0x4e   :  { %v351_v57 = vadd.f32 %v350_v52, %v349_v54  ;;  %v79_v52 = vld [vmem:[%s11073_s0 + $0x1e8] sm:$0xff]  ;;  %v394_v54 = vsel %vm274_vm1, %v78_v49, 0.0 }
  0x50   :  { %v353_v60 = vadd.f32 %v352_v55, %v351_v57  ;;  %v80_v55 = vld [vmem:[%s11073_s0 + $0x1f0] sm:$0xff]  ;;  %v396_v57 = vsel %vm274_vm1, %v79_v52, 0.0 }
  0x52   :  { %v355_v63 = vadd.f32 %v354_v58, %v353_v60  ;;  %v81_v58 = vld [vmem:[%s11073_s0 + $0x1f8] sm:$0xff]  ;;  %v398_v60 = vsel %vm274_vm1, %v80_v55, 0.0 }
  0x54   :  { %v357_v2 = vadd.f32 %v356_v61, %v355_v63  ;;  %v82_v61 = vld [vmem:[%s11073_s0 + $0x200] sm:$0xff]  ;;  %v400_v63 = vsel %vm274_vm1, %v81_v58, 0.0 }
  0x56   :  { %v359_v5 = vadd.f32 %v358_v0, %v357_v2  ;;  %v83_v0 = vld [vmem:[%s11073_s0 + $0x208] sm:$0xff]  ;;  %v402_v2 = vsel %vm274_vm1, %v82_v61, 0.0 }
  0x58   :  { %v361_v8 = vadd.f32 %v360_v3, %v359_v5  ;;  %v84_v3 = vld [vmem:[%s11073_s0 + $0x210] sm:$0xff]  ;;  %v404_v5 = vsel %vm274_vm1, %v83_v0, 0.0 }
  0x5a   :  { %v363_v11 = vadd.f32 %v362_v6, %v361_v8  ;;  %v85_v6 = vld [vmem:[%s11073_s0 + $0x218] sm:$0xff]  ;;  %v406_v8 = vsel %vm274_vm1, %v84_v3, 0.0 }
  0x5c   :  { %v365_v14 = vadd.f32 %v364_v9, %v363_v11  ;;  %v86_v9 = vld [vmem:[%s11073_s0 + $0x220] sm:$0xff]  ;;  %v408_v11 = vsel %vm274_vm1, %v85_v6, 0.0 }
  0x5e   :  { %v367_v17 = vadd.f32 %v366_v12, %v365_v14  ;;  %v87_v12 = vld [vmem:[%s11073_s0 + $0x228] sm:$0xff]  ;;  %v410_v14 = vsel %vm274_vm1, %v86_v9, 0.0 }
  0x60   :  { %v369_v20 = vadd.f32 %v368_v15, %v367_v17  ;;  %v88_v15 = vld [vmem:[%s11073_s0 + $0x230] sm:$0xff]  ;;  %v412_v17 = vsel %vm274_vm1, %v87_v12, 0.0 }
  0x62   :  { %v371_v23 = vadd.f32 %v370_v18, %v369_v20  ;;  %v89_v18 = vld [vmem:[%s11073_s0 + $0x238] sm:$0xff]  ;;  %v414_v20 = vsel %vm274_vm1, %v88_v15, 0.0 }
  0x64   :  { %v373_v26 = vadd.f32 %v372_v21, %v371_v23  ;;  %v90_v21 = vld [vmem:[%s11073_s0 + $0x240] sm:$0xff]  ;;  %v416_v23 = vsel %vm274_vm1, %v89_v18, 0.0 }
  0x66   :  { %v375_v29 = vadd.f32 %v374_v24, %v373_v26  ;;  %v91_v24 = vld [vmem:[%s11073_s0 + $0x248] sm:$0xff]  ;;  %v418_v26 = vsel %vm274_vm1, %v90_v21, 0.0 }
  0x68   :  { %v377_v32 = vadd.f32 %v376_v27, %v375_v29  ;;  %v92_v27 = vld [vmem:[%s11073_s0 + $0x250] sm:$0xff]  ;;  %v420_v29 = vsel %vm274_vm1, %v91_v24, 0.0 }
  0x6a   :  { %v379_v35 = vadd.f32 %v378_v30, %v377_v32  ;;  %v93_v30 = vld [vmem:[%s11073_s0 + $0x258] sm:$0xff]  ;;  %v422_v32 = vsel %vm274_vm1, %v92_v27, 0.0 }
  0x6c   :  { %v381_v38 = vadd.f32 %v380_v33, %v379_v35  ;;  %v94_v33 = vld [vmem:[%s11073_s0 + $0x260] sm:$0xff]  ;;  %v424_v35 = vsel %vm274_vm1, %v93_v30, 0.0 }
  0x6e   :  { %v383_v41 = vadd.f32 %v382_v36, %v381_v38  ;;  %v95_v36 = vld [vmem:[%s11073_s0 + $0x268] sm:$0xff]  ;;  %v426_v38 = vsel %vm274_vm1, %v94_v33, 0.0 }
  0x70   :  { %v385_v44 = vadd.f32 %v384_v39, %v383_v41  ;;  %v96_v39 = vld [vmem:[%s11073_s0 + $0x270] sm:$0xff]  ;;  %v428_v41 = vsel %vm274_vm1, %v95_v36, 0.0 }
  0x72   :  { %v387_v47 = vadd.f32 %v386_v42, %v385_v44  ;;  %v97_v42 = vld [vmem:[%s11073_s0 + $0x278] sm:$0xff]  ;;  %v430_v44 = vsel %vm274_vm1, %v96_v39, 0.0 }
  0x74   :  { %v389_v50 = vadd.f32 %v388_v45, %v387_v47  ;;  %v98_v45 = vld [vmem:[%s11073_s0 + $0x280] sm:$0xff]  ;;  %v432_v47 = vsel %vm274_vm1, %v97_v42, 0.0 }
  0x76   :  { %v391_v53 = vadd.f32 %v390_v48, %v389_v50  ;;  %v99_v48 = vld [vmem:[%s11073_s0 + $0x288] sm:$0xff]  ;;  %v434_v50 = vsel %vm274_vm1, %v98_v45, 0.0 }
  0x78   :  { %v393_v56 = vadd.f32 %v392_v51, %v391_v53  ;;  %v100_v51 = vld [vmem:[%s11073_s0 + $0x290] sm:$0xff]  ;;  %v436_v53 = vsel %vm274_vm1, %v99_v48, 0.0 }
  0x7a   :  { %v395_v59 = vadd.f32 %v394_v54, %v393_v56  ;;  %v101_v54 = vld [vmem:[%s11073_s0 + $0x298] sm:$0xff]  ;;  %v438_v56 = vsel %vm274_vm1, %v100_v51, 0.0 }
  0x7c   :  { %v397_v62 = vadd.f32 %v396_v57, %v395_v59  ;;  %v102_v57 = vld [vmem:[%s11073_s0 + $0x2a0] sm:$0xff]  ;;  %v440_v59 = vsel %vm274_vm1, %v101_v54, 0.0 }
  0x7e   :  { %v399_v1 = vadd.f32 %v398_v60, %v397_v62  ;;  %v103_v60 = vld [vmem:[%s11073_s0 + $0x2a8] sm:$0xff]  ;;  %v442_v62 = vsel %vm274_vm1, %v102_v57, 0.0 }
  0x80   :  { %v401_v4 = vadd.f32 %v400_v63, %v399_v1  ;;  %v104_v63 = vld [vmem:[%s11073_s0 + $0x2b0] sm:$0xff]  ;;  %v444_v1 = vsel %vm274_vm1, %v103_v60, 0.0 }
  0x82   :  { %v403_v7 = vadd.f32 %v402_v2, %v401_v4  ;;  %v105_v2 = vld [vmem:[%s11073_s0 + $0x2b8] sm:$0xff]  ;;  %v446_v4 = vsel %vm274_vm1, %v104_v63, 0.0 }
  0x84   :  { %v405_v10 = vadd.f32 %v404_v5, %v403_v7  ;;  %v106_v5 = vld [vmem:[%s11073_s0 + $0x2c0] sm:$0xff]  ;;  %v448_v7 = vsel %vm274_vm1, %v105_v2, 0.0 }
  0x86   :  { %v407_v13 = vadd.f32 %v406_v8, %v405_v10  ;;  %v107_v8 = vld [vmem:[%s11073_s0 + $0x2c8] sm:$0xff]  ;;  %v450_v10 = vsel %vm274_vm1, %v106_v5, 0.0 }
  0x88   :  { %v409_v16 = vadd.f32 %v408_v11, %v407_v13  ;;  %v108_v11 = vld [vmem:[%s11073_s0 + $0x2d0] sm:$0xff]  ;;  %v452_v13 = vsel %vm274_vm1, %v107_v8, 0.0 }
  0x8a   :  { %v411_v19 = vadd.f32 %v410_v14, %v409_v16  ;;  %v109_v14 = vld [vmem:[%s11073_s0 + $0x2d8] sm:$0xff]  ;;  %v454_v16 = vsel %vm274_vm1, %v108_v11, 0.0 }
  0x8c   :  { %v413_v22 = vadd.f32 %v412_v17, %v411_v19  ;;  %v110_v17 = vld [vmem:[%s11073_s0 + $0x2e0] sm:$0xff]  ;;  %v456_v19 = vsel %vm274_vm1, %v109_v14, 0.0 }
  0x8e   :  { %v415_v25 = vadd.f32 %v414_v20, %v413_v22  ;;  %v111_v20 = vld [vmem:[%s11073_s0 + $0x2e8] sm:$0xff]  ;;  %v458_v22 = vsel %vm274_vm1, %v110_v17, 0.0 }
  0x90   :  { %v417_v28 = vadd.f32 %v416_v23, %v415_v25  ;;  %v112_v23 = vld [vmem:[%s11073_s0 + $0x2f0] sm:$0xff]  ;;  %v460_v25 = vsel %vm274_vm1, %v111_v20, 0.0 }
  0x92   :  { %v419_v31 = vadd.f32 %v418_v26, %v417_v28  ;;  %v113_v26 = vld [vmem:[%s11073_s0 + $0x2f8] sm:$0xff]  ;;  %v462_v28 = vsel %vm274_vm1, %v112_v23, 0.0 }
  0x94   :  { %v421_v34 = vadd.f32 %v420_v29, %v419_v31  ;;  %v114_v29 = vld [vmem:[%s11073_s0 + $0x300] sm:$0xff]  ;;  %v464_v31 = vsel %vm274_vm1, %v113_v26, 0.0 }
  0x96   :  { %v423_v37 = vadd.f32 %v422_v32, %v421_v34  ;;  %v115_v32 = vld [vmem:[%s11073_s0 + $0x308] sm:$0xff]  ;;  %v466_v34 = vsel %vm274_vm1, %v114_v29, 0.0 }
  0x98   :  { %v425_v40 = vadd.f32 %v424_v35, %v423_v37  ;;  %v116_v35 = vld [vmem:[%s11073_s0 + $0x310] sm:$0xff]  ;;  %v468_v37 = vsel %vm274_vm1, %v115_v32, 0.0 }
  0x9a   :  { %v427_v43 = vadd.f32 %v426_v38, %v425_v40  ;;  %v117_v38 = vld [vmem:[%s11073_s0 + $0x318] sm:$0xff]  ;;  %v470_v40 = vsel %vm274_vm1, %v116_v35, 0.0 }
  0x9c   :  { %v429_v46 = vadd.f32 %v428_v41, %v427_v43  ;;  %v118_v41 = vld [vmem:[%s11073_s0 + $0x320] sm:$0xff]  ;;  %v472_v43 = vsel %vm274_vm1, %v117_v38, 0.0 }
  0x9e   :  { %v431_v49 = vadd.f32 %v430_v44, %v429_v46  ;;  %v119_v44 = vld [vmem:[%s11073_s0 + $0x328] sm:$0xff]  ;;  %v474_v46 = vsel %vm274_vm1, %v118_v41, 0.0 }
  0xa0   :  { %v433_v52 = vadd.f32 %v432_v47, %v431_v49  ;;  %v120_v47 = vld [vmem:[%s11073_s0 + $0x330] sm:$0xff]  ;;  %v476_v49 = vsel %vm274_vm1, %v119_v44, 0.0 }
  0xa2   :  { %v435_v55 = vadd.f32 %v434_v50, %v433_v52  ;;  %v121_v50 = vld [vmem:[%s11073_s0 + $0x338] sm:$0xff]  ;;  %v478_v52 = vsel %vm274_vm1, %v120_v47, 0.0 }
  0xa4   :  { %v437_v58 = vadd.f32 %v436_v53, %v435_v55  ;;  %v122_v53 = vld [vmem:[%s11073_s0 + $0x340] sm:$0xff]  ;;  %v480_v55 = vsel %vm274_vm1, %v121_v50, 0.0 }
  0xa6   :  { %v439_v61 = vadd.f32 %v438_v56, %v437_v58  ;;  %v123_v56 = vld [vmem:[%s11073_s0 + $0x348] sm:$0xff]  ;;  %v482_v58 = vsel %vm274_vm1, %v122_v53, 0.0 }
  0xa8   :  { %v441_v0 = vadd.f32 %v440_v59, %v439_v61  ;;  %v124_v59 = vld [vmem:[%s11073_s0 + $0x350] sm:$0xff]  ;;  %v484_v61 = vsel %vm274_vm1, %v123_v56, 0.0 }
  0xaa   :  { %v443_v3 = vadd.f32 %v442_v62, %v441_v0  ;;  %v125_v62 = vld [vmem:[%s11073_s0 + $0x358] sm:$0xff]  ;;  %v486_v0 = vsel %vm274_vm1, %v124_v59, 0.0 }
  0xac   :  { %v445_v6 = vadd.f32 %v444_v1, %v443_v3  ;;  %v126_v1 = vld [vmem:[%s11073_s0 + $0x360] sm:$0xff]  ;;  %v488_v3 = vsel %vm274_vm1, %v125_v62, 0.0 }
  0xae   :  { %v447_v9 = vadd.f32 %v446_v4, %v445_v6  ;;  %v127_v4 = vld [vmem:[%s11073_s0 + $0x368] sm:$0xff]  ;;  %v490_v6 = vsel %vm274_vm1, %v126_v1, 0.0 }
  0xb0   :  { %v449_v12 = vadd.f32 %v448_v7, %v447_v9  ;;  %v128_v7 = vld [vmem:[%s11073_s0 + $0x370] sm:$0xff]  ;;  %v492_v9 = vsel %vm274_vm1, %v127_v4, 0.0 }
  0xb2   :  { %v451_v15 = vadd.f32 %v450_v10, %v449_v12  ;;  %v129_v10 = vld [vmem:[%s11073_s0 + $0x378] sm:$0xff]  ;;  %v494_v12 = vsel %vm274_vm1, %v128_v7, 0.0 }
  0xb4   :  { %v453_v18 = vadd.f32 %v452_v13, %v451_v15  ;;  %v130_v13 = vld [vmem:[%s11073_s0 + $0x380] sm:$0xff]  ;;  %v496_v15 = vsel %vm274_vm1, %v129_v10, 0.0 }
  0xb6   :  { %v455_v21 = vadd.f32 %v454_v16, %v453_v18  ;;  %v131_v16 = vld [vmem:[%s11073_s0 + $0x388] sm:$0xff]  ;;  %v498_v18 = vsel %vm274_vm1, %v130_v13, 0.0 }
  0xb8   :  { %v457_v24 = vadd.f32 %v456_v19, %v455_v21  ;;  %v132_v19 = vld [vmem:[%s11073_s0 + $0x390] sm:$0xff]  ;;  %v500_v21 = vsel %vm274_vm1, %v131_v16, 0.0 }
  0xba   :  { %v459_v27 = vadd.f32 %v458_v22, %v457_v24  ;;  %v133_v22 = vld [vmem:[%s11073_s0 + $0x398] sm:$0xff]  ;;  %v502_v24 = vsel %vm274_vm1, %v132_v19, 0.0 }
  0xbc   :  { %v461_v30 = vadd.f32 %v460_v25, %v459_v27  ;;  %v134_v25 = vld [vmem:[%s11073_s0 + $0x3a0] sm:$0xff]  ;;  %v504_v27 = vsel %vm274_vm1, %v133_v22, 0.0 }
  0xbe   :  { %v463_v33 = vadd.f32 %v462_v28, %v461_v30  ;;  %v135_v28 = vld [vmem:[%s11073_s0 + $0x3a8] sm:$0xff]  ;;  %v506_v30 = vsel %vm274_vm1, %v134_v25, 0.0 }
  0xc0   :  { %v465_v36 = vadd.f32 %v464_v31, %v463_v33  ;;  %v136_v31 = vld [vmem:[%s11073_s0 + $0x3b0] sm:$0xff]  ;;  %v508_v33 = vsel %vm274_vm1, %v135_v28, 0.0 }
  0xc2   :  { %v467_v39 = vadd.f32 %v466_v34, %v465_v36  ;;  %v137_v34 = vld [vmem:[%s11073_s0 + $0x3b8] sm:$0xff]  ;;  %v510_v36 = vsel %vm274_vm1, %v136_v31, 0.0 }
  0xc4   :  { %v469_v42 = vadd.f32 %v468_v37, %v467_v39  ;;  %v138_v37 = vld [vmem:[%s11073_s0 + $0x3c0] sm:$0xff]  ;;  %v512_v39 = vsel %vm274_vm1, %v137_v34, 0.0 }
  0xc6   :  { %v471_v45 = vadd.f32 %v470_v40, %v469_v42  ;;  %v139_v40 = vld [vmem:[%s11073_s0 + $0x3c8] sm:$0xff]  ;;  %v514_v42 = vsel %vm274_vm1, %v138_v37, 0.0 }
  0xc8   :  { %v473_v48 = vadd.f32 %v472_v43, %v471_v45  ;;  %v140_v43 = vld [vmem:[%s11073_s0 + $0x3d0] sm:$0xff]  ;;  %v516_v45 = vsel %vm274_vm1, %v139_v40, 0.0 }
  0xca   :  { %v475_v51 = vadd.f32 %v474_v46, %v473_v48  ;;  %v141_v46 = vld [vmem:[%s11073_s0 + $0x3d8] sm:$0xff]  ;;  %v518_v48 = vsel %vm274_vm1, %v140_v43, 0.0 }
  0xcc   :  { %v477_v54 = vadd.f32 %v476_v49, %v475_v51  ;;  %v142_v49 = vld [vmem:[%s11073_s0 + $0x3e0] sm:$0xff]  ;;  %v520_v51 = vsel %vm274_vm1, %v141_v46, 0.0 }
  0xce   :  { %v479_v57 = vadd.f32 %v478_v52, %v477_v54  ;;  %v143_v52 = vld [vmem:[%s11073_s0 + $0x3e8] sm:$0xff]  ;;  %v522_v54 = vsel %vm274_vm1, %v142_v49, 0.0 }
  0xd0   :  { %v481_v60 = vadd.f32 %v480_v55, %v479_v57  ;;  %v144_v55 = vld [vmem:[%s11073_s0 + $0x3f0] sm:$0xff]  ;;  %v524_v57 = vsel %vm274_vm1, %v143_v52, 0.0 }
  0xd2   :  { %v483_v63 = vadd.f32 %v482_v58, %v481_v60  ;;  %v145_v58 = vld [vmem:[%s11073_s0 + $0x3f8] sm:$0xff]  ;;  %v526_v60 = vsel %vm274_vm1, %v144_v55, 0.0 }
  0xd4   :  { %v485_v2 = vadd.f32 %v484_v61, %v483_v63  ;;  %v146_v61 = vld [vmem:[%s11073_s0 + $0x400] sm:$0xff]  ;;  %v528_v63 = vsel %vm274_vm1, %v145_v58, 0.0 }
  0xd6   :  { %v487_v5 = vadd.f32 %v486_v0, %v485_v2  ;;  %v147_v0 = vld [vmem:[%s11073_s0 + $0x408] sm:$0xff]  ;;  %v530_v2 = vsel %vm274_vm1, %v146_v61, 0.0 }
  0xd8   :  { %v489_v8 = vadd.f32 %v488_v3, %v487_v5  ;;  %v148_v3 = vld [vmem:[%s11073_s0 + $0x410] sm:$0xff]  ;;  %v532_v5 = vsel %vm274_vm1, %v147_v0, 0.0 }
  0xda   :  { %v491_v11 = vadd.f32 %v490_v6, %v489_v8  ;;  %v149_v6 = vld [vmem:[%s11073_s0 + $0x418] sm:$0xff]  ;;  %v534_v8 = vsel %vm274_vm1, %v148_v3, 0.0 }
  0xdc   :  { %v493_v14 = vadd.f32 %v492_v9, %v491_v11  ;;  %v150_v9 = vld [vmem:[%s11073_s0 + $0x420] sm:$0xff]  ;;  %v536_v11 = vsel %vm274_vm1, %v149_v6, 0.0 }
  0xde   :  { %v495_v17 = vadd.f32 %v494_v12, %v493_v14  ;;  %v151_v12 = vld [vmem:[%s11073_s0 + $0x428] sm:$0xff]  ;;  %v538_v14 = vsel %vm274_vm1, %v150_v9, 0.0 }
  0xe0   :  { %v497_v20 = vadd.f32 %v496_v15, %v495_v17  ;;  %v152_v15 = vld [vmem:[%s11073_s0 + $0x430] sm:$0xff]  ;;  %v540_v17 = vsel %vm274_vm1, %v151_v12, 0.0 }
  0xe2   :  { %v499_v23 = vadd.f32 %v498_v18, %v497_v20  ;;  %v153_v18 = vld [vmem:[%s11073_s0 + $0x438] sm:$0xff]  ;;  %v542_v20 = vsel %vm274_vm1, %v152_v15, 0.0 }
  0xe4   :  { %v501_v26 = vadd.f32 %v500_v21, %v499_v23  ;;  %v154_v21 = vld [vmem:[%s11073_s0 + $0x440] sm:$0xff]  ;;  %v544_v23 = vsel %vm274_vm1, %v153_v18, 0.0 }
  0xe6   :  { %v503_v29 = vadd.f32 %v502_v24, %v501_v26  ;;  %v155_v24 = vld [vmem:[%s11073_s0 + $0x448] sm:$0xff]  ;;  %v546_v26 = vsel %vm274_vm1, %v154_v21, 0.0 }
  0xe8   :  { %v505_v32 = vadd.f32 %v504_v27, %v503_v29  ;;  %v156_v27 = vld [vmem:[%s11073_s0 + $0x450] sm:$0xff]  ;;  %v548_v29 = vsel %vm274_vm1, %v155_v24, 0.0 }
  0xea   :  { %v507_v35 = vadd.f32 %v506_v30, %v505_v32  ;;  %v157_v30 = vld [vmem:[%s11073_s0 + $0x458] sm:$0xff]  ;;  %v550_v32 = vsel %vm274_vm1, %v156_v27, 0.0 }
  0xec   :  { %v509_v38 = vadd.f32 %v508_v33, %v507_v35  ;;  %v158_v33 = vld [vmem:[%s11073_s0 + $0x460] sm:$0xff]  ;;  %v552_v35 = vsel %vm274_vm1, %v157_v30, 0.0 }
  0xee   :  { %v511_v41 = vadd.f32 %v510_v36, %v509_v38  ;;  %v159_v36 = vld [vmem:[%s11073_s0 + $0x468] sm:$0xff]  ;;  %v554_v38 = vsel %vm274_vm1, %v158_v33, 0.0 }
  0xf0   :  { %v513_v44 = vadd.f32 %v512_v39, %v511_v41  ;;  %v160_v39 = vld [vmem:[%s11073_s0 + $0x470] sm:$0xff]  ;;  %v556_v41 = vsel %vm274_vm1, %v159_v36, 0.0 }
  0xf2   :  { %v515_v47 = vadd.f32 %v514_v42, %v513_v44  ;;  %v161_v42 = vld [vmem:[%s11073_s0 + $0x478] sm:$0xff]  ;;  %v558_v44 = vsel %vm274_vm1, %v160_v39, 0.0 }
  0xf4   :  { %v517_v50 = vadd.f32 %v516_v45, %v515_v47  ;;  %v162_v45 = vld [vmem:[%s11073_s0 + $0x480] sm:$0xff]  ;;  %v560_v47 = vsel %vm274_vm1, %v161_v42, 0.0 }
  0xf6   :  { %v519_v53 = vadd.f32 %v518_v48, %v517_v50  ;;  %v163_v48 = vld [vmem:[%s11073_s0 + $0x488] sm:$0xff]  ;;  %v562_v50 = vsel %vm274_vm1, %v162_v45, 0.0 }
  0xf8   :  { %v521_v56 = vadd.f32 %v520_v51, %v519_v53  ;;  %v164_v51 = vld [vmem:[%s11073_s0 + $0x490] sm:$0xff]  ;;  %v564_v53 = vsel %vm274_vm1, %v163_v48, 0.0 }
  0xfa   :  { %v523_v59 = vadd.f32 %v522_v54, %v521_v56  ;;  %v165_v54 = vld [vmem:[%s11073_s0 + $0x498] sm:$0xff]  ;;  %v566_v56 = vsel %vm274_vm1, %v164_v51, 0.0 }
  0xfc   :  { %v525_v62 = vadd.f32 %v524_v57, %v523_v59  ;;  %v166_v57 = vld [vmem:[%s11073_s0 + $0x4a0] sm:$0xff]  ;;  %v568_v59 = vsel %vm274_vm1, %v165_v54, 0.0 }
  0xfe   :  { %v527_v1 = vadd.f32 %v526_v60, %v525_v62  ;;  %v167_v60 = vld [vmem:[%s11073_s0 + $0x4a8] sm:$0xff]  ;;  %v570_v62 = vsel %vm274_vm1, %v166_v57, 0.0 }
 0x100   :  { %v529_v4 = vadd.f32 %v528_v63, %v527_v1  ;;  %v168_v63 = vld [vmem:[%s11073_s0 + $0x4b0] sm:$0xff]  ;;  %v572_v1 = vsel %vm274_vm1, %v167_v60, 0.0 }
 0x102   :  { %v531_v7 = vadd.f32 %v530_v2, %v529_v4  ;;  %v169_v2 = vld [vmem:[%s11073_s0 + $0x4b8] sm:$0xff]  ;;  %v574_v4 = vsel %vm274_vm1, %v168_v63, 0.0 }
 0x104   :  { %v533_v10 = vadd.f32 %v532_v5, %v531_v7  ;;  %v170_v5 = vld [vmem:[%s11073_s0 + $0x4c0] sm:$0xff]  ;;  %v576_v7 = vsel %vm274_vm1, %v169_v2, 0.0 }
 0x106   :  { %v535_v13 = vadd.f32 %v534_v8, %v533_v10  ;;  %v171_v8 = vld [vmem:[%s11073_s0 + $0x4c8] sm:$0xff]  ;;  %v578_v10 = vsel %vm274_vm1, %v170_v5, 0.0 }
 0x108   :  { %v537_v16 = vadd.f32 %v536_v11, %v535_v13  ;;  %v172_v11 = vld [vmem:[%s11073_s0 + $0x4d0] sm:$0xff]  ;;  %v580_v13 = vsel %vm274_vm1, %v171_v8, 0.0 }
 0x10a   :  { %v539_v19 = vadd.f32 %v538_v14, %v537_v16  ;;  %v173_v14 = vld [vmem:[%s11073_s0 + $0x4d8] sm:$0xff]  ;;  %v582_v16 = vsel %vm274_vm1, %v172_v11, 0.0 }
 0x10c   :  { %v541_v22 = vadd.f32 %v540_v17, %v539_v19  ;;  %v174_v17 = vld [vmem:[%s11073_s0 + $0x4e0] sm:$0xff]  ;;  %v584_v19 = vsel %vm274_vm1, %v173_v14, 0.0 }
 0x10e   :  { %v543_v25 = vadd.f32 %v542_v20, %v541_v22  ;;  %v175_v20 = vld [vmem:[%s11073_s0 + $0x4e8] sm:$0xff]  ;;  %v586_v22 = vsel %vm274_vm1, %v174_v17, 0.0 }
 0x110   :  { %v545_v28 = vadd.f32 %v544_v23, %v543_v25  ;;  %v176_v23 = vld [vmem:[%s11073_s0 + $0x4f0] sm:$0xff]  ;;  %v588_v25 = vsel %vm274_vm1, %v175_v20, 0.0 }
 0x112   :  { %v547_v31 = vadd.f32 %v546_v26, %v545_v28  ;;  %v177_v26 = vld [vmem:[%s11073_s0 + $0x4f8] sm:$0xff]  ;;  %v590_v28 = vsel %vm274_vm1, %v176_v23, 0.0 }
 0x114   :  { %v549_v34 = vadd.f32 %v548_v29, %v547_v31  ;;  %v178_v29 = vld [vmem:[%s11073_s0 + $0x500] sm:$0xff]  ;;  %v592_v31 = vsel %vm274_vm1, %v177_v26, 0.0 }
 0x116   :  { %v551_v37 = vadd.f32 %v550_v32, %v549_v34  ;;  %v179_v32 = vld [vmem:[%s11073_s0 + $0x508] sm:$0xff]  ;;  %v594_v34 = vsel %vm274_vm1, %v178_v29, 0.0 }
 0x118   :  { %v553_v40 = vadd.f32 %v552_v35, %v551_v37  ;;  %v180_v35 = vld [vmem:[%s11073_s0 + $0x510] sm:$0xff]  ;;  %v596_v37 = vsel %vm274_vm1, %v179_v32, 0.0 }
 0x11a   :  { %v555_v43 = vadd.f32 %v554_v38, %v553_v40  ;;  %v181_v38 = vld [vmem:[%s11073_s0 + $0x518] sm:$0xff]  ;;  %v598_v40 = vsel %vm274_vm1, %v180_v35, 0.0 }
 0x11c   :  { %v557_v46 = vadd.f32 %v556_v41, %v555_v43  ;;  %v182_v41 = vld [vmem:[%s11073_s0 + $0x520] sm:$0xff]  ;;  %v600_v43 = vsel %vm274_vm1, %v181_v38, 0.0 }
 0x11e   :  { %v559_v49 = vadd.f32 %v558_v44, %v557_v46  ;;  %v183_v44 = vld [vmem:[%s11073_s0 + $0x528] sm:$0xff]  ;;  %v602_v46 = vsel %vm274_vm1, %v182_v41, 0.0 }
 0x120   :  { %v561_v52 = vadd.f32 %v560_v47, %v559_v49  ;;  %v184_v47 = vld [vmem:[%s11073_s0 + $0x530] sm:$0xff]  ;;  %v604_v49 = vsel %vm274_vm1, %v183_v44, 0.0 }
 0x122   :  { %v563_v55 = vadd.f32 %v562_v50, %v561_v52  ;;  %v185_v50 = vld [vmem:[%s11073_s0 + $0x538] sm:$0xff]  ;;  %v606_v52 = vsel %vm274_vm1, %v184_v47, 0.0 }
 0x124   :  { %v565_v58 = vadd.f32 %v564_v53, %v563_v55  ;;  %v186_v53 = vld [vmem:[%s11073_s0 + $0x540] sm:$0xff]  ;;  %v608_v55 = vsel %vm274_vm1, %v185_v50, 0.0 }
 0x126   :  { %v567_v61 = vadd.f32 %v566_v56, %v565_v58  ;;  %v187_v56 = vld [vmem:[%s11073_s0 + $0x548] sm:$0xff]  ;;  %v610_v58 = vsel %vm274_vm1, %v186_v53, 0.0 }
 0x128   :  { %v569_v0 = vadd.f32 %v568_v59, %v567_v61  ;;  %v188_v59 = vld [vmem:[%s11073_s0 + $0x550] sm:$0xff]  ;;  %v612_v61 = vsel %vm274_vm1, %v187_v56, 0.0 }
 0x12a   :  { %v571_v3 = vadd.f32 %v570_v62, %v569_v0  ;;  %v189_v62 = vld [vmem:[%s11073_s0 + $0x558] sm:$0xff]  ;;  %v614_v0 = vsel %vm274_vm1, %v188_v59, 0.0 }
 0x12c   :  { %v573_v6 = vadd.f32 %v572_v1, %v571_v3  ;;  %v190_v1 = vld [vmem:[%s11073_s0 + $0x560] sm:$0xff]  ;;  %v616_v3 = vsel %vm274_vm1, %v189_v62, 0.0 }
 0x12e   :  { %v575_v9 = vadd.f32 %v574_v4, %v573_v6  ;;  %v191_v4 = vld [vmem:[%s11073_s0 + $0x568] sm:$0xff]  ;;  %v618_v6 = vsel %vm274_vm1, %v190_v1, 0.0 }
 0x130   :  { %v577_v12 = vadd.f32 %v576_v7, %v575_v9  ;;  %v192_v7 = vld [vmem:[%s11073_s0 + $0x570] sm:$0xff]  ;;  %v620_v9 = vsel %vm274_vm1, %v191_v4, 0.0 }
 0x132   :  { %v579_v15 = vadd.f32 %v578_v10, %v577_v12  ;;  %v193_v10 = vld [vmem:[%s11073_s0 + $0x578] sm:$0xff]  ;;  %v622_v12 = vsel %vm274_vm1, %v192_v7, 0.0 }
 0x134   :  { %v581_v18 = vadd.f32 %v580_v13, %v579_v15  ;;  %v194_v13 = vld [vmem:[%s11073_s0 + $0x580] sm:$0xff]  ;;  %v624_v15 = vsel %vm274_vm1, %v193_v10, 0.0 }
 0x136   :  { %v583_v21 = vadd.f32 %v582_v16, %v581_v18  ;;  %v195_v16 = vld [vmem:[%s11073_s0 + $0x588] sm:$0xff]  ;;  %v626_v18 = vsel %vm274_vm1, %v194_v13, 0.0 }
 0x138   :  { %v585_v24 = vadd.f32 %v584_v19, %v583_v21  ;;  %v196_v19 = vld [vmem:[%s11073_s0 + $0x590] sm:$0xff]  ;;  %v628_v21 = vsel %vm274_vm1, %v195_v16, 0.0 }
 0x13a   :  { %v587_v27 = vadd.f32 %v586_v22, %v585_v24  ;;  %v197_v22 = vld [vmem:[%s11073_s0 + $0x598] sm:$0xff]  ;;  %v630_v24 = vsel %vm274_vm1, %v196_v19, 0.0 }
 0x13c   :  { %v589_v30 = vadd.f32 %v588_v25, %v587_v27  ;;  %v198_v25 = vld [vmem:[%s11073_s0 + $0x5a0] sm:$0xff]  ;;  %v632_v27 = vsel %vm274_vm1, %v197_v22, 0.0 }
 0x13e   :  { %v591_v33 = vadd.f32 %v590_v28, %v589_v30  ;;  %v199_v28 = vld [vmem:[%s11073_s0 + $0x5a8] sm:$0xff]  ;;  %v634_v30 = vsel %vm274_vm1, %v198_v25, 0.0 }
 0x140   :  { %v593_v36 = vadd.f32 %v592_v31, %v591_v33  ;;  %v200_v31 = vld [vmem:[%s11073_s0 + $0x5b0] sm:$0xff]  ;;  %v636_v33 = vsel %vm274_vm1, %v199_v28, 0.0 }
 0x142   :  { %v595_v39 = vadd.f32 %v594_v34, %v593_v36  ;;  %v201_v34 = vld [vmem:[%s11073_s0 + $0x5b8] sm:$0xff]  ;;  %v638_v36 = vsel %vm274_vm1, %v200_v31, 0.0 }
 0x144   :  { %v597_v42 = vadd.f32 %v596_v37, %v595_v39  ;;  %v202_v37 = vld [vmem:[%s11073_s0 + $0x5c0] sm:$0xff]  ;;  %v640_v39 = vsel %vm274_vm1, %v201_v34, 0.0 }
 0x146   :  { %v599_v45 = vadd.f32 %v598_v40, %v597_v42  ;;  %v203_v40 = vld [vmem:[%s11073_s0 + $0x5c8] sm:$0xff]  ;;  %v642_v42 = vsel %vm274_vm1, %v202_v37, 0.0 }
 0x148   :  { %v601_v48 = vadd.f32 %v600_v43, %v599_v45  ;;  %v204_v43 = vld [vmem:[%s11073_s0 + $0x5d0] sm:$0xff]  ;;  %v644_v45 = vsel %vm274_vm1, %v203_v40, 0.0 }
 0x14a   :  { %v603_v51 = vadd.f32 %v602_v46, %v601_v48  ;;  %v205_v46 = vld [vmem:[%s11073_s0 + $0x5d8] sm:$0xff]  ;;  %v646_v48 = vsel %vm274_vm1, %v204_v43, 0.0 }
 0x14c   :  { %v605_v54 = vadd.f32 %v604_v49, %v603_v51  ;;  %v206_v49 = vld [vmem:[%s11073_s0 + $0x5e0] sm:$0xff]  ;;  %v648_v51 = vsel %vm274_vm1, %v205_v46, 0.0 }
 0x14e   :  { %v607_v57 = vadd.f32 %v606_v52, %v605_v54  ;;  %v207_v52 = vld [vmem:[%s11073_s0 + $0x5e8] sm:$0xff]  ;;  %v650_v54 = vsel %vm274_vm1, %v206_v49, 0.0 }
 0x150   :  { %v609_v60 = vadd.f32 %v608_v55, %v607_v57  ;;  %v208_v55 = vld [vmem:[%s11073_s0 + $0x5f0] sm:$0xff]  ;;  %v652_v57 = vsel %vm274_vm1, %v207_v52, 0.0 }
 0x152   :  { %v611_v63 = vadd.f32 %v610_v58, %v609_v60  ;;  %v209_v58 = vld [vmem:[%s11073_s0 + $0x5f8] sm:$0xff]  ;;  %v654_v60 = vsel %vm274_vm1, %v208_v55, 0.0 }
 0x154   :  { %v613_v2 = vadd.f32 %v612_v61, %v611_v63  ;;  %v210_v61 = vld [vmem:[%s11073_s0 + $0x600] sm:$0xff]  ;;  %v656_v63 = vsel %vm274_vm1, %v209_v58, 0.0 }
 0x156   :  { %v615_v5 = vadd.f32 %v614_v0, %v613_v2  ;;  %v211_v0 = vld [vmem:[%s11073_s0 + $0x608] sm:$0xff]  ;;  %v658_v2 = vsel %vm274_vm1, %v210_v61, 0.0 }
 0x158   :  { %v617_v8 = vadd.f32 %v616_v3, %v615_v5  ;;  %v212_v3 = vld [vmem:[%s11073_s0 + $0x610] sm:$0xff]  ;;  %v660_v5 = vsel %vm274_vm1, %v211_v0, 0.0 }
 0x15a   :  { %v619_v11 = vadd.f32 %v618_v6, %v617_v8  ;;  %v213_v6 = vld [vmem:[%s11073_s0 + $0x618] sm:$0xff]  ;;  %v662_v8 = vsel %vm274_vm1, %v212_v3, 0.0 }
 0x15c   :  { %v621_v14 = vadd.f32 %v620_v9, %v619_v11  ;;  %v214_v9 = vld [vmem:[%s11073_s0 + $0x620] sm:$0xff]  ;;  %v664_v11 = vsel %vm274_vm1, %v213_v6, 0.0 }
 0x15e   :  { %v623_v17 = vadd.f32 %v622_v12, %v621_v14  ;;  %v215_v12 = vld [vmem:[%s11073_s0 + $0x628] sm:$0xff]  ;;  %v666_v14 = vsel %vm274_vm1, %v214_v9, 0.0 }
 0x160   :  { %v625_v20 = vadd.f32 %v624_v15, %v623_v17  ;;  %v216_v15 = vld [vmem:[%s11073_s0 + $0x630] sm:$0xff]  ;;  %v668_v17 = vsel %vm274_vm1, %v215_v12, 0.0 }
 0x162   :  { %v627_v23 = vadd.f32 %v626_v18, %v625_v20  ;;  %v217_v18 = vld [vmem:[%s11073_s0 + $0x638] sm:$0xff]  ;;  %v670_v20 = vsel %vm274_vm1, %v216_v15, 0.0 }
 0x164   :  { %v629_v26 = vadd.f32 %v628_v21, %v627_v23  ;;  %v218_v21 = vld [vmem:[%s11073_s0 + $0x640] sm:$0xff]  ;;  %v672_v23 = vsel %vm274_vm1, %v217_v18, 0.0 }
 0x166   :  { %v631_v29 = vadd.f32 %v630_v24, %v629_v26  ;;  %v219_v24 = vld [vmem:[%s11073_s0 + $0x648] sm:$0xff]  ;;  %v674_v26 = vsel %vm274_vm1, %v218_v21, 0.0 }
 0x168   :  { %v633_v32 = vadd.f32 %v632_v27, %v631_v29  ;;  %v220_v27 = vld [vmem:[%s11073_s0 + $0x650] sm:$0xff]  ;;  %v676_v29 = vsel %vm274_vm1, %v219_v24, 0.0 }
 0x16a   :  { %v635_v35 = vadd.f32 %v634_v30, %v633_v32  ;;  %v221_v30 = vld [vmem:[%s11073_s0 + $0x658] sm:$0xff]  ;;  %v678_v32 = vsel %vm274_vm1, %v220_v27, 0.0 }
 0x16b   :  { %v680_v34 = vsel %vm274_vm1, %v221_v30, 0.0 }
 0x16c   :  { %v637_v38 = vadd.f32 %v636_v33, %v635_v35  ;;  %v222_v35 = vld [vmem:[%s11073_s0 + $0x660] sm:$0xff] }
 0x16e   :  { %v639_v41 = vadd.f32 %v638_v36, %v637_v38  ;;  %v682_v38 = vsel %vm274_vm1, %v222_v35, 0.0  ;;  %v243_v35 = vld [vmem:[%s11073_s0 + $0x708] sm:$0xff] }
 0x170   :  { %v641_v44 = vadd.f32 %v640_v39, %v639_v41  ;;  %v223_v39 = vld [vmem:[%s11073_s0 + $0x668] sm:$0xff] }
 0x171   :  { %v684_v41 = vsel %vm274_vm1, %v223_v39, 0.0 }
 0x172   :  { %v643_v47 = vadd.f32 %v642_v42, %v641_v44  ;;  %v224_v42 = vld [vmem:[%s11073_s0 + $0x670] sm:$0xff] }
 0x173   :  { %v686_v44 = vsel %vm274_vm1, %v224_v42, 0.0 }
 0x174   :  { %v645_v50 = vadd.f32 %v644_v45, %v643_v47  ;;  %v225_v45 = vld [vmem:[%s11073_s0 + $0x678] sm:$0xff] }
 0x175   :  { %v688_v47 = vsel %vm274_vm1, %v225_v45, 0.0 }
 0x176   :  { %v647_v53 = vadd.f32 %v646_v48, %v645_v50  ;;  %v226_v48 = vld [vmem:[%s11073_s0 + $0x680] sm:$0xff] }
 0x177   :  { %v690_v50 = vsel %vm274_vm1, %v226_v48, 0.0 }
 0x178   :  { %v649_v56 = vadd.f32 %v648_v51, %v647_v53  ;;  %v227_v51 = vld [vmem:[%s11073_s0 + $0x688] sm:$0xff] }
 0x179   :  { %v692_v53 = vsel %vm274_vm1, %v227_v51, 0.0 }
 0x17a   :  { %v651_v59 = vadd.f32 %v650_v54, %v649_v56  ;;  %v228_v54 = vld [vmem:[%s11073_s0 + $0x690] sm:$0xff] }
 0x17b   :  { %v694_v56 = vsel %vm274_vm1, %v228_v54, 0.0 }
 0x17c   :  { %v653_v62 = vadd.f32 %v652_v57, %v651_v59  ;;  %v229_v57 = vld [vmem:[%s11073_s0 + $0x698] sm:$0xff] }
 0x17d   :  { %v696_v59 = vsel %vm274_vm1, %v229_v57, 0.0 }
 0x17e   :  { %v655_v1 = vadd.f32 %v654_v60, %v653_v62  ;;  %v230_v60 = vld [vmem:[%s11073_s0 + $0x6a0] sm:$0xff] }
 0x17f   :  { %v698_v62 = vsel %vm274_vm1, %v230_v60, 0.0 }
 0x180   :  { %v657_v4 = vadd.f32 %v656_v63, %v655_v1  ;;  %v231_v63 = vld [vmem:[%s11073_s0 + $0x6a8] sm:$0xff] }
 0x181   :  { %v700_v1 = vsel %vm274_vm1, %v231_v63, 0.0 }
 0x182   :  { %v659_v7 = vadd.f32 %v658_v2, %v657_v4  ;;  %v232_v2 = vld [vmem:[%s11073_s0 + $0x6b0] sm:$0xff] }
 0x183   :  { %v702_v4 = vsel %vm274_vm1, %v232_v2, 0.0 }
 0x184   :  { %v661_v10 = vadd.f32 %v660_v5, %v659_v7  ;;  %v233_v5 = vld [vmem:[%s11073_s0 + $0x6b8] sm:$0xff] }
 0x185   :  { %v704_v7 = vsel %vm274_vm1, %v233_v5, 0.0 }
 0x186   :  { %v663_v13 = vadd.f32 %v662_v8, %v661_v10  ;;  %v234_v8 = vld [vmem:[%s11073_s0 + $0x6c0] sm:$0xff] }
 0x187   :  { %v706_v10 = vsel %vm274_vm1, %v234_v8, 0.0 }
 0x188   :  { %v665_v16 = vadd.f32 %v664_v11, %v663_v13  ;;  %v235_v11 = vld [vmem:[%s11073_s0 + $0x6c8] sm:$0xff] }
 0x189   :  { %v708_v13 = vsel %vm274_vm1, %v235_v11, 0.0 }
 0x18a   :  { %v667_v19 = vadd.f32 %v666_v14, %v665_v16  ;;  %v236_v14 = vld [vmem:[%s11073_s0 + $0x6d0] sm:$0xff] }
 0x18b   :  { %v710_v16 = vsel %vm274_vm1, %v236_v14, 0.0 }
 0x18c   :  { %v669_v22 = vadd.f32 %v668_v17, %v667_v19  ;;  %v237_v17 = vld [vmem:[%s11073_s0 + $0x6d8] sm:$0xff] }
 0x18d   :  { %v712_v19 = vsel %vm274_vm1, %v237_v17, 0.0 }
 0x18e   :  { %v671_v25 = vadd.f32 %v670_v20, %v669_v22  ;;  %v238_v20 = vld [vmem:[%s11073_s0 + $0x6e0] sm:$0xff] }
 0x18f   :  { %v714_v22 = vsel %vm274_vm1, %v238_v20, 0.0 }
 0x190   :  { %v673_v28 = vadd.f32 %v672_v23, %v671_v25  ;;  %v239_v23 = vld [vmem:[%s11073_s0 + $0x6e8] sm:$0xff] }
 0x191   :  { %v716_v25 = vsel %vm274_vm1, %v239_v23, 0.0 }
 0x192   :  { %v675_v31 = vadd.f32 %v674_v26, %v673_v28  ;;  %v240_v26 = vld [vmem:[%s11073_s0 + $0x6f0] sm:$0xff] }
 0x193   :  { %v718_v28 = vsel %vm274_vm1, %v240_v26, 0.0 }
 0x194   :  { %v677_v33 = vadd.f32 %v676_v29, %v675_v31  ;;  %v241_v29 = vld [vmem:[%s11073_s0 + $0x6f8] sm:$0xff] }
 0x195   :  { %v720_v31 = vsel %vm274_vm1, %v241_v29, 0.0 }
 0x196   :  { %v679_v36 = vadd.f32 %v678_v32, %v677_v33  ;;  %v242_v32 = vld [vmem:[%s11073_s0 + $0x700] sm:$0xff] }
 0x198   :  { %v681_v37 = vadd.f32 %v680_v34, %v679_v36  ;;  %v722_v34 = vsel %vm274_vm1, %v242_v32, 0.0 }
 0x19a   :  { %v683_v40 = vadd.f32 %v682_v38, %v681_v37  ;;  %v724_v37 = vsel %vm274_vm1, %v243_v35, 0.0  ;;  %v244_v38 = vld [vmem:[%s11073_s0 + $0x710] sm:$0xff] }
 0x19c   :  { %v685_v43 = vadd.f32 %v684_v41, %v683_v40  ;;  %v726_v40 = vsel %vm274_vm1, %v244_v38, 0.0  ;;  %v245_v41 = vld [vmem:[%s11073_s0 + $0x718] sm:$0xff] }
 0x19e   :  { %v687_v46 = vadd.f32 %v686_v44, %v685_v43  ;;  %v728_v43 = vsel %vm274_vm1, %v245_v41, 0.0  ;;  %v246_v44 = vld [vmem:[%s11073_s0 + $0x720] sm:$0xff] }
 0x1a0   :  { %v689_v49 = vadd.f32 %v688_v47, %v687_v46  ;;  %v730_v46 = vsel %vm274_vm1, %v246_v44, 0.0  ;;  %v247_v47 = vld [vmem:[%s11073_s0 + $0x728] sm:$0xff] }
 0x1a2   :  { %v691_v52 = vadd.f32 %v690_v50, %v689_v49  ;;  %v732_v49 = vsel %vm274_vm1, %v247_v47, 0.0  ;;  %v248_v50 = vld [vmem:[%s11073_s0 + $0x730] sm:$0xff] }
 0x1a4   :  { %v693_v55 = vadd.f32 %v692_v53, %v691_v52  ;;  %v734_v52 = vsel %vm274_vm1, %v248_v50, 0.0  ;;  %v249_v53 = vld [vmem:[%s11073_s0 + $0x738] sm:$0xff] }
 0x1a6   :  { %v695_v58 = vadd.f32 %v694_v56, %v693_v55  ;;  %v736_v55 = vsel %vm274_vm1, %v249_v53, 0.0  ;;  %v250_v56 = vld [vmem:[%s11073_s0 + $0x740] sm:$0xff] }
 0x1a8   :  { %v697_v61 = vadd.f32 %v696_v59, %v695_v58  ;;  %v738_v58 = vsel %vm274_vm1, %v250_v56, 0.0  ;;  %v251_v59 = vld [vmem:[%s11073_s0 + $0x748] sm:$0xff] }
 0x1aa   :  { %v699_v0 = vadd.f32 %v698_v62, %v697_v61  ;;  %v740_v61 = vsel %vm274_vm1, %v251_v59, 0.0  ;;  %v252_v62 = vld [vmem:[%s11073_s0 + $0x750] sm:$0xff] }
 0x1ac   :  { %v701_v3 = vadd.f32 %v700_v1, %v699_v0  ;;  %v742_v0 = vsel %vm274_vm1, %v252_v62, 0.0  ;;  %v253_v1 = vld [vmem:[%s11073_s0 + $0x758] sm:$0xff] }
 0x1ae   :  { %v703_v6 = vadd.f32 %v702_v4, %v701_v3  ;;  %v744_v3 = vsel %vm274_vm1, %v253_v1, 0.0  ;;  %v254_v4 = vld [vmem:[%s11073_s0 + $0x760] sm:$0xff] }
 0x1b0   :  { %v705_v9 = vadd.f32 %v704_v7, %v703_v6  ;;  %v746_v6 = vsel %vm274_vm1, %v254_v4, 0.0  ;;  %v255_v7 = vld [vmem:[%s11073_s0 + $0x768] sm:$0xff] }
 0x1b2   :  { %v707_v12 = vadd.f32 %v706_v10, %v705_v9  ;;  %v748_v9 = vsel %vm274_vm1, %v255_v7, 0.0  ;;  %v256_v10 = vld [vmem:[%s11073_s0 + $0x770] sm:$0xff] }
 0x1b4   :  { %v709_v15 = vadd.f32 %v708_v13, %v707_v12  ;;  %v750_v12 = vsel %vm274_vm1, %v256_v10, 0.0  ;;  %v257_v13 = vld [vmem:[%s11073_s0 + $0x778] sm:$0xff]  ;;  %v5223_v10 = vld [vmem:[%s11073_s0 + $0x8] sm:$0xff] }
 0x1b6   :  { %v711_v18 = vadd.f32 %v710_v16, %v709_v15  ;;  %v752_v15 = vsel %vm274_vm1, %v257_v13, 0.0  ;;  %v258_v16 = vld [vmem:[%s11073_s0 + $0x780] sm:$0xff] }
 0x1b8   :  { %v713_v21 = vadd.f32 %v712_v19, %v711_v18  ;;  %v754_v18 = vsel %vm274_vm1, %v258_v16, 0.0  ;;  %v259_v19 = vld [vmem:[%s11073_s0 + $0x788] sm:$0xff]  ;;  %v5226_v16 = vld [vmem:[%s11073_s0 + $0x20] sm:$0xff] }
 0x1ba   :  { %v715_v24 = vadd.f32 %v714_v22, %v713_v21  ;;  %v756_v21 = vsel %vm274_vm1, %v259_v19, 0.0  ;;  %v260_v22 = vld [vmem:[%s11073_s0 + $0x790] sm:$0xff] }
 0x1bc   :  { %v717_v27 = vadd.f32 %v716_v25, %v715_v24  ;;  %v758_v24 = vsel %vm274_vm1, %v260_v22, 0.0  ;;  %v261_v25 = vld [vmem:[%s11073_s0 + $0x798] sm:$0xff] }
 0x1be   :  { %v719_v30 = vadd.f32 %v718_v28, %v717_v27  ;;  %v760_v27 = vsel %vm274_vm1, %v261_v25, 0.0  ;;  %v262_v28 = vld [vmem:[%s11073_s0 + $0x7a0] sm:$0xff] }
 0x1c0   :  { %v721_v33 = vadd.f32 %v720_v31, %v719_v30  ;;  %v762_v30 = vsel %vm274_vm1, %v262_v28, 0.0  ;;  %v263_v31 = vld [vmem:[%s11073_s0 + $0x7a8] sm:$0xff] }
 0x1c2   :  { %v723_v36 = vadd.f32 %v722_v34, %v721_v33  ;;  %v764_v33 = vsel %vm274_vm1, %v263_v31, 0.0  ;;  %v264_v34 = vld [vmem:[%s11073_s0 + $0x7b0] sm:$0xff]  ;;  %v5229_v31 = vld [vmem:[%s11073_s0 + $0x38] sm:$0xff] }
 0x1c4   :  { %v725_v39 = vadd.f32 %v724_v37, %v723_v36  ;;  %v766_v36 = vsel %vm274_vm1, %v264_v34, 0.0  ;;  %v265_v37 = vld [vmem:[%s11073_s0 + $0x7b8] sm:$0xff] }
 0x1c6   :  { %v727_v42 = vadd.f32 %v726_v40, %v725_v39  ;;  %v768_v39 = vsel %vm274_vm1, %v265_v37, 0.0  ;;  %v266_v40 = vld [vmem:[%s11073_s0 + $0x7c0] sm:$0xff] }
 0x1c8   :  { %v729_v45 = vadd.f32 %v728_v43, %v727_v42  ;;  %v770_v42 = vsel %vm274_vm1, %v266_v40, 0.0  ;;  %v267_v43 = vld [vmem:[%s11073_s0 + $0x7c8] sm:$0xff] }
 0x1ca   :  { %v731_v48 = vadd.f32 %v730_v46, %v729_v45  ;;  %v772_v45 = vsel %vm274_vm1, %v267_v43, 0.0  ;;  %v268_v46 = vld [vmem:[%s11073_s0 + $0x7d0] sm:$0xff] }
 0x1cc   :  { %v733_v51 = vadd.f32 %v732_v49, %v731_v48  ;;  %v774_v48 = vsel %vm274_vm1, %v268_v46, 0.0  ;;  %v269_v49 = vld [vmem:[%s11073_s0 + $0x7d8] sm:$0xff]  ;;  %v5232_v46 = vld [vmem:[%s11073_s0 + $0x50] sm:$0xff] }
 0x1ce   :  { %v735_v54 = vadd.f32 %v734_v52, %v733_v51  ;;  %v776_v51 = vsel %vm274_vm1, %v269_v49, 0.0  ;;  %v270_v52 = vld [vmem:[%s11073_s0 + $0x7e0] sm:$0xff] }
 0x1d0   :  { %v737_v57 = vadd.f32 %v736_v55, %v735_v54  ;;  %v778_v54 = vsel %vm274_vm1, %v270_v52, 0.0  ;;  %v271_v55 = vld [vmem:[%s11073_s0 + $0x7e8] sm:$0xff] }
 0x1d2   :  { %v739_v60 = vadd.f32 %v738_v58, %v737_v57  ;;  %v780_v57 = vsel %vm274_vm1, %v271_v55, 0.0  ;;  %v272_v58 = vld [vmem:[%s11073_s0 + $0x7f0] sm:$0xff] }
 0x1d4   :  { %v741_v63 = vadd.f32 %v740_v61, %v739_v60  ;;  %v782_v60 = vsel %vm274_vm1, %v272_v58, 0.0  ;;  %v273_v61 = vld [vmem:[%s11073_s0 + $0x7f8] sm:$0xff] }
 0x1d6   :  { %v743_v2 = vadd.f32 %v742_v0, %v741_v63  ;;  %v784_v63 = vsel %vm274_vm1, %v273_v61, 0.0  ;;  %v5235_v61 = vld [vmem:[%s11073_s0 + $0x68] sm:$0xff] }
 0x1d8   :  { %v745_v5 = vadd.f32 %v744_v3, %v743_v2 }
 0x1da   :  { %v747_v8 = vadd.f32 %v746_v6, %v745_v5 }
 0x1dc   :  { %v749_v11 = vadd.f32 %v748_v9, %v747_v8  ;;  %v5222_v8 = vld [vmem:[%s11073_s0] sm:$0xff] }
 0x1de   :  { %v751_v14 = vadd.f32 %v750_v12, %v749_v11  ;;  %v5224_v12 = vld [vmem:[%s11073_s0 + $0x10] sm:$0xff] }
 0x1e0   :  { %v753_v17 = vadd.f32 %v752_v15, %v751_v14  ;;  %v5225_v14 = vld [vmem:[%s11073_s0 + $0x18] sm:$0xff] }
 0x1e2   :  { %v755_v20 = vadd.f32 %v754_v18, %v753_v17 }
 0x1e4   :  { %v757_v23 = vadd.f32 %v756_v21, %v755_v20  ;;  %v5227_v21 = vld [vmem:[%s11073_s0 + $0x28] sm:$0xff] }
 0x1e6   :  { %v759_v26 = vadd.f32 %v758_v24, %v757_v23  ;;  %v5228_v24 = vld [vmem:[%s11073_s0 + $0x30] sm:$0xff] }
 0x1e8   :  { %v761_v29 = vadd.f32 %v760_v27, %v759_v26 }
 0x1ea   :  { %v763_v32 = vadd.f32 %v762_v30, %v761_v29 }
 0x1ec   :  { %v765_v35 = vadd.f32 %v764_v33, %v763_v32 }
 0x1ee   :  { %v767_v38 = vadd.f32 %v766_v36, %v765_v35  ;;  %v5230_v36 = vld [vmem:[%s11073_s0 + $0x40] sm:$0xff] }
 0x1f0   :  { %v769_v41 = vadd.f32 %v768_v39, %v767_v38 }
 0x1f2   :  { %v771_v44 = vadd.f32 %v770_v42, %v769_v41  ;;  %v5231_v41 = vld [vmem:[%s11073_s0 + $0x48] sm:$0xff] }
 0x1f4   :  { %v773_v47 = vadd.f32 %v772_v45, %v771_v44 }
 0x1f6   :  { %v775_v50 = vadd.f32 %v774_v48, %v773_v47 }
 0x1f8   :  { %v777_v53 = vadd.f32 %v776_v51, %v775_v50  ;;  %v5233_v51 = vld [vmem:[%s11073_s0 + $0x58] sm:$0xff] }
 0x1fa   :  { %v779_v56 = vadd.f32 %v778_v54, %v777_v53 }
 0x1fc   :  { %v781_v59 = vadd.f32 %v780_v57, %v779_v56  ;;  %v5234_v56 = vld [vmem:[%s11073_s0 + $0x60] sm:$0xff] }
 0x1fe   :  { %v783_v62 = vadd.f32 %v782_v60, %v781_v59 }
 0x200   :  { %v785_v0 = vadd.f32 %v784_v63, %v783_v62 }
 0x202   :  { %v786_v1 = vrot.slane %v785_v0, 4 }
 0x204   :  { %v787_v2 = vadd.f32 %v786_v1, %v785_v0 }
 0x206   :  { %v788_v3 = vrot.slane %v787_v2, 2 }
 0x208   :  { %v789_v4 = vadd.f32 %v788_v3, %v787_v2  ;;  %v5236_v2 = vld [vmem:[%s11073_s0 + $0x70] sm:$0xff] }
 0x20a   :  { %v790_v5 = vrot.slane %v789_v4, 1 }
 0x20c   :  { %v791_v6 = vadd.f32 %v790_v5, %v789_v4 }
 0x20e   :  { %v6534_v7 = vmul.f32 0.00048828125, %v791_v6 }
 0x210   :  { %v6540_v9 = vsub.f32 %v5222_v8, %v6534_v7  ;;  %v6546_v11 = vsub.f32 %v5223_v10, %v6534_v7  ;;  %v6552_v13 = vsub.f32 %v5224_v12, %v6534_v7  ;;  %v6558_v15 = vsub.f32 %v5225_v14, %v6534_v7  ;;  %v5237_v8 = vld [vmem:[%s11073_s0 + $0x78] sm:$0xff] }
 0x211   :  { %v6564_v17 = vsub.f32 %v5226_v16, %v6534_v7  ;;  %v6576_v22 = vsub.f32 %v5227_v21, %v6534_v7  ;;  %v6584_v25 = vsub.f32 %v5228_v24, %v6534_v7  ;;  %v6595_v32 = vsub.f32 %v5229_v31, %v6534_v7  ;;  %v5239_v24 = vld [vmem:[%s11073_s0 + $0x88] sm:$0xff] }
 0x212   :  { %v1050_v18 = vmul.f32 %v6540_v9, %v6540_v9  ;;  %v1051_v19 = vmul.f32 %v6546_v11, %v6546_v11  ;;  %v1052_v20 = vmul.f32 %v6552_v13, %v6552_v13  ;;  %v1053_v23 = vmul.f32 %v6558_v15, %v6558_v15 }
 0x213   :  { %v1054_v26 = vmul.f32 %v6564_v17, %v6564_v17  ;;  %v1055_v33 = vmul.f32 %v6576_v22, %v6576_v22  ;;  %v6604_v37 = vsub.f32 %v5230_v36, %v6534_v7  ;;  %v1056_v38 = vmul.f32 %v6584_v25, %v6584_v25  ;;  %v5241_v36 = vld [vmem:[%s11073_s0 + $0x98] sm:$0xff] }
 0x214   :  { %v1306_v27 = vsel %vm274_vm1, %v1050_v18, 0.0  ;;  %v1307_v28 = vsel %vm274_vm1, %v1051_v19, 0.0  ;;  %v1309_v29 = vsel %vm274_vm1, %v1052_v20, 0.0  ;;  %v1311_v34 = vsel %vm274_vm1, %v1053_v23, 0.0  ;;  %v5238_v18 = vld [vmem:[%s11073_s0 + $0x80] sm:$0xff] }
 0x215   :  { %v1308_v30 = vadd.f32 %v1307_v28, %v1306_v27  ;;  %v1313_v39 = vsel %vm274_vm1, %v1054_v26, 0.0  ;;  %v6613_v42 = vsub.f32 %v5231_v41, %v6534_v7  ;;  %v1057_v43 = vmul.f32 %v6595_v32, %v6595_v32 }
 0x216   :  { %v1315_v44 = vsel %vm274_vm1, %v1055_v33, 0.0  ;;  %v6622_v47 = vsub.f32 %v5232_v46, %v6534_v7  ;;  %v1058_v48 = vmul.f32 %v6604_v37, %v6604_v37  ;;  %v1317_v49 = vsel %vm274_vm1, %v1056_v38, 0.0 }
 0x217   :  { %v1310_v35 = vadd.f32 %v1309_v29, %v1308_v30  ;;  %v6631_v52 = vsub.f32 %v5233_v51, %v6534_v7  ;;  %v1059_v53 = vmul.f32 %v6613_v42, %v6613_v42  ;;  %v1319_v54 = vsel %vm274_vm1, %v1057_v43, 0.0  ;;  %v5240_v30 = vld [vmem:[%s11073_s0 + $0x90] sm:$0xff]  ;;  %v5242_v43 = vld [vmem:[%s11073_s0 + $0xa0] sm:$0xff] }
 0x218   :  { %v6640_v57 = vsub.f32 %v5234_v56, %v6534_v7  ;;  %v1060_v58 = vmul.f32 %v6622_v47, %v6622_v47  ;;  %v1321_v59 = vsel %vm274_vm1, %v1058_v48, 0.0  ;;  %v6649_v62 = vsub.f32 %v5235_v61, %v6534_v7  ;;  %v5245_v61 = vld [vmem:[%s11073_s0 + $0xb8] sm:$0xff] }
 0x219   :  { %v1312_v40 = vadd.f32 %v1311_v34, %v1310_v35  ;;  %v1061_v63 = vmul.f32 %v6631_v52, %v6631_v52  ;;  %v1323_v0 = vsel %vm274_vm1, %v1059_v53, 0.0  ;;  %v6658_v3 = vsub.f32 %v5236_v2, %v6534_v7 }
 0x21a   :  { %v1062_v4 = vmul.f32 %v6640_v57, %v6640_v57  ;;  %v1325_v5 = vsel %vm274_vm1, %v1060_v58, 0.0  ;;  %v6667_v10 = vsub.f32 %v5237_v8, %v6534_v7  ;;  %v1063_v12 = vmul.f32 %v6649_v62, %v6649_v62 }
 0x21b   :  { %v1314_v45 = vadd.f32 %v1313_v39, %v1312_v40  ;;  %v1327_v14 = vsel %vm274_vm1, %v1061_v63, 0.0  ;;  %v6676_v19 = vsub.f32 %v5238_v18, %v6534_v7  ;;  %v1064_v20 = vmul.f32 %v6658_v3, %v6658_v3 }
 0x21c   :  { %v1329_v21 = vsel %vm274_vm1, %v1062_v4, 0.0  ;;  %v6685_v26 = vsub.f32 %v5239_v24, %v6534_v7  ;;  %v1065_v27 = vmul.f32 %v6667_v10, %v6667_v10  ;;  %v1331_v28 = vsel %vm274_vm1, %v1063_v12, 0.0  ;;  %v5246_v4 = vld [vmem:[%s11073_s0 + $0xc0] sm:$0xff] }
 0x21d   :  { %v1316_v50 = vadd.f32 %v1315_v44, %v1314_v45  ;;  %v6694_v31 = vsub.f32 %v5240_v30, %v6534_v7  ;;  %v1066_v33 = vmul.f32 %v6676_v19, %v6676_v19  ;;  %v1333_v34 = vsel %vm274_vm1, %v1064_v20, 0.0  ;;  %v5249_v30 = vld [vmem:[%s11073_s0 + $0xd8] sm:$0xff] }
 0x21e   :  { %v6703_v38 = vsub.f32 %v5241_v36, %v6534_v7  ;;  %v1067_v39 = vmul.f32 %v6685_v26, %v6685_v26  ;;  %v1335_v40 = vsel %vm274_vm1, %v1065_v27, 0.0  ;;  %v6712_v44 = vsub.f32 %v5242_v43, %v6534_v7 }
 0x21f   :  { %v1318_v55 = vadd.f32 %v1317_v49, %v1316_v50  ;;  %v1068_v45 = vmul.f32 %v6694_v31, %v6694_v31  ;;  %v1337_v46 = vsel %vm274_vm1, %v1066_v33, 0.0  ;;  %v5243_v49 = vld [vmem:[%s11073_s0 + $0xa8] sm:$0xff]  ;;  %v6739_v63 = vsub.f32 %v5245_v61, %v6534_v7  ;;  %v5253_v61 = vld [vmem:[%s11073_s0 + $0xf8] sm:$0xff] }
 0x220   :  { %v6721_v50 = vsub.f32 %v5243_v49, %v6534_v7  ;;  %v1069_v51 = vmul.f32 %v6703_v38, %v6703_v38  ;;  %v1339_v53 = vsel %vm274_vm1, %v1067_v39, 0.0  ;;  %v1070_v58 = vmul.f32 %v6712_v44, %v6712_v44  ;;  %v5250_v39 = vld [vmem:[%s11073_s0 + $0xe0] sm:$0xff] }
 0x221   :  { %v1320_v60 = vadd.f32 %v1319_v54, %v1318_v55  ;;  %v5244_v55 = vld [vmem:[%s11073_s0 + $0xb0] sm:$0xff]  ;;  %11291 = vst [vmem:[#allocation3_spill] sm:$0xff] %v6739_v63  ;;  %v1073_v18 = vmul.f32 %v6739_v63, %v6739_v63  ;;  %v6775_v33 = vsub.f32 %v5249_v30, %v6534_v7 }
 0x222   :  { %v6730_v56 = vsub.f32 %v5244_v55, %v6534_v7  ;;  %v1345_v8 = vsel %vm274_vm1, %v1070_v58, 0.0 }
 0x223   :  { %v1322_v1 = vadd.f32 %v1321_v59, %v1320_v60  ;;  %v1341_v59 = vsel %vm274_vm1, %v1068_v45, 0.0  ;;  %11295 = vst [vmem:[#allocation7_spill] sm:$0xff] %v6775_v33  ;;  %v1077_v49 = vmul.f32 %v6775_v33, %v6775_v33  ;;  %v5374_v33 = vld [vmem:[%s11073_s0 + $0x4c0] sm:$0xff] }
 0x224   :  { %11290 = vst [vmem:[#allocation2_spill] sm:$0xff] %v6730_v56 }
 0x225   :  { %v1324_v6 = vadd.f32 %v1323_v0, %v1322_v1  ;;  %v1071_v0 = vmul.f32 %v6721_v50, %v6721_v50  ;;  %v1343_v1 = vsel %vm274_vm1, %v1069_v51, 0.0 }
 0x227   :  { %v1326_v16 = vadd.f32 %v1325_v5, %v1324_v6  ;;  %v6748_v5 = vsub.f32 %v5246_v4, %v6534_v7  ;;  %v1072_v6 = vmul.f32 %v6730_v56, %v6730_v56  ;;  %v1347_v20 = vsel %vm274_vm1, %v1071_v0, 0.0 }
 0x228   :  { %v6811_v0 = vsub.f32 %v5253_v61, %v6534_v7 }
 0x229   :  { %v1328_v23 = vadd.f32 %v1327_v14, %v1326_v16  ;;  %11292 = vst [vmem:[#allocation4_spill] sm:$0xff] %v6748_v5  ;;  %v5247_v14 = vld [vmem:[%s11073_s0 + $0xc8] sm:$0xff]  ;;  %v1074_v27 = vmul.f32 %v6748_v5, %v6748_v5  ;;  %v5377_v5 = vld [vmem:[%s11073_s0 + $0x4d8] sm:$0xff] }
 0x22a   :  { %v6757_v16 = vsub.f32 %v5247_v14, %v6534_v7  ;;  %11299 = vst [vmem:[#allocation11_spill] sm:$0xff] %v6811_v0 }
 0x22b   :  { %v1330_v29 = vadd.f32 %v1329_v21, %v1328_v23  ;;  %v5248_v23 = vld [vmem:[%s11073_s0 + $0xd0] sm:$0xff]  ;;  %v1353_v43 = vsel %vm274_vm1, %v1074_v27, 0.0 }
 0x22c   :  { %11293 = vst [vmem:[#allocation5_spill] sm:$0xff] %v6757_v16  ;;  %v6766_v24 = vsub.f32 %v5248_v23, %v6534_v7  ;;  %v1081_v23 = vmul.f32 %v6811_v0, %v6811_v0  ;;  %v5370_v0 = vld [vmem:[%s11073_s0 + $0x4a0] sm:$0xff] }
 0x22d   :  { %v1332_v35 = vadd.f32 %v1331_v28, %v1330_v29  ;;  %v1349_v28 = vsel %vm274_vm1, %v1072_v6, 0.0  ;;  %v5254_v6 = vld [vmem:[%s11073_s0 + $0x100] sm:$0xff] }
 0x22e   :  { %11294 = vst [vmem:[#allocation6_spill] sm:$0xff] %v6766_v24 }
 0x22f   :  { %v1334_v41 = vadd.f32 %v1333_v34, %v1332_v35  ;;  %v1075_v34 = vmul.f32 %v6757_v16, %v6757_v16  ;;  %v1351_v35 = vsel %vm274_vm1, %v1073_v18, 0.0  ;;  %v5376_v16 = vld [vmem:[%s11073_s0 + $0x4d0] sm:$0xff] }
 0x231   :  { %v1336_v48 = vadd.f32 %v1335_v40, %v1334_v41  ;;  %v6784_v40 = vsub.f32 %v5250_v39, %v6534_v7  ;;  %v1076_v41 = vmul.f32 %v6766_v24, %v6766_v24  ;;  %v1355_v51 = vsel %vm274_vm1, %v1075_v34, 0.0  ;;  %v5257_v39 = vld [vmem:[%s11073_s0 + $0x118] sm:$0xff]  ;;  %v5375_v24 = vld [vmem:[%s11073_s0 + $0x4c8] sm:$0xff] }
 0x233   :  { %v1338_v54 = vadd.f32 %v1337_v46, %v1336_v48  ;;  %11296 = vst [vmem:[#allocation8_spill] sm:$0xff] %v6784_v40  ;;  %v5251_v46 = vld [vmem:[%s11073_s0 + $0xe8] sm:$0xff]  ;;  %v1078_v58 = vmul.f32 %v6784_v40, %v6784_v40  ;;  %v5373_v40 = vld [vmem:[%s11073_s0 + $0x4b8] sm:$0xff] }
 0x234   :  { %v6793_v48 = vsub.f32 %v5251_v46, %v6534_v7 }
 0x235   :  { %v1340_v60 = vadd.f32 %v1339_v53, %v1338_v54  ;;  %v5252_v54 = vld [vmem:[%s11073_s0 + $0xf0] sm:$0xff]  ;;  %v1361_v14 = vsel %vm274_vm1, %v1078_v58, 0.0 }
 0x236   :  { %11297 = vst [vmem:[#allocation9_spill] sm:$0xff] %v6793_v48  ;;  %v6802_v55 = vsub.f32 %v5252_v54, %v6534_v7 }
 0x237   :  { %v1342_v2 = vadd.f32 %v1341_v59, %v1340_v60  ;;  %v1357_v59 = vsel %vm274_vm1, %v1076_v41, 0.0  ;;  %v6847_v41 = vsub.f32 %v5257_v39, %v6534_v7 }
 0x238   :  { %11298 = vst [vmem:[#allocation10_spill] sm:$0xff] %v6802_v55 }
 0x239   :  { %v1344_v12 = vadd.f32 %v1343_v1, %v1342_v2  ;;  %v1079_v1 = vmul.f32 %v6793_v48, %v6793_v48  ;;  %v1359_v2 = vsel %vm274_vm1, %v1077_v49, 0.0  ;;  %11303 = vst [vmem:[#allocation15_spill] sm:$0xff] %v6847_v41  ;;  %v5258_v49 = vld [vmem:[%s11073_s0 + $0x120] sm:$0xff]  ;;  %v1085_v61 = vmul.f32 %v6847_v41, %v6847_v41  ;;  %v5372_v48 = vld [vmem:[%s11073_s0 + $0x4b0] sm:$0xff] }
 0x23a   :  { %v5366_v41 = vld [vmem:[%s11073_s0 + $0x480] sm:$0xff] }
 0x23b   :  { %v1346_v21 = vadd.f32 %v1345_v8, %v1344_v12  ;;  %v6820_v8 = vsub.f32 %v5254_v6, %v6534_v7  ;;  %v1080_v12 = vmul.f32 %v6802_v55, %v6802_v55  ;;  %v1363_v27 = vsel %vm274_vm1, %v1079_v1, 0.0  ;;  %v5371_v55 = vld [vmem:[%s11073_s0 + $0x4a8] sm:$0xff] }
 0x23d   :  { %v1348_v29 = vadd.f32 %v1347_v20, %v1346_v21  ;;  %11300 = vst [vmem:[#allocation12_spill] sm:$0xff] %v6820_v8  ;;  %v5255_v20 = vld [vmem:[%s11073_s0 + $0x108] sm:$0xff]  ;;  %v1082_v34 = vmul.f32 %v6820_v8, %v6820_v8  ;;  %v5369_v8 = vld [vmem:[%s11073_s0 + $0x498] sm:$0xff] }
 0x23e   :  { %v6829_v21 = vsub.f32 %v5255_v20, %v6534_v7  ;;  %v5261_v20 = vld [vmem:[%s11073_s0 + $0x138] sm:$0xff] }
 0x23f   :  { %v1350_v36 = vadd.f32 %v1349_v28, %v1348_v29  ;;  %v5256_v29 = vld [vmem:[%s11073_s0 + $0x110] sm:$0xff]  ;;  %v1369_v54 = vsel %vm274_vm1, %v1082_v34, 0.0  ;;  %v5262_v34 = vld [vmem:[%s11073_s0 + $0x140] sm:$0xff] }
 0x240   :  { %11301 = vst [vmem:[#allocation13_spill] sm:$0xff] %v6829_v21  ;;  %v6838_v30 = vsub.f32 %v5256_v29, %v6534_v7 }
 0x241   :  { %v1352_v45 = vadd.f32 %v1351_v35, %v1350_v36  ;;  %v1365_v35 = vsel %vm274_vm1, %v1080_v12, 0.0 }
 0x242   :  { %11302 = vst [vmem:[#allocation14_spill] sm:$0xff] %v6838_v30 }
 0x243   :  { %v1354_v53 = vadd.f32 %v1353_v43, %v1352_v45  ;;  %v1083_v43 = vmul.f32 %v6829_v21, %v6829_v21  ;;  %v1367_v45 = vsel %vm274_vm1, %v1081_v23, 0.0  ;;  %v6883_v23 = vsub.f32 %v5261_v20, %v6534_v7  ;;  %v5368_v21 = vld [vmem:[%s11073_s0 + $0x490] sm:$0xff] }
 0x245   :  { %v1356_v60 = vadd.f32 %v1355_v51, %v1354_v53  ;;  %v6856_v51 = vsub.f32 %v5258_v49, %v6534_v7  ;;  %v1084_v53 = vmul.f32 %v6838_v30, %v6838_v30  ;;  %v1371_v1 = vsel %vm274_vm1, %v1083_v43, 0.0  ;;  %11307 = vst [vmem:[#allocation19_spill] sm:$0xff] %v6883_v23  ;;  %v5367_v30 = vld [vmem:[%s11073_s0 + $0x488] sm:$0xff] }
 0x246   :  { %v1089_v49 = vmul.f32 %v6883_v23, %v6883_v23  ;;  %v5362_v23 = vld [vmem:[%s11073_s0 + $0x460] sm:$0xff] }
 0x247   :  { %v1358_v4 = vadd.f32 %v1357_v59, %v1356_v60  ;;  %11304 = vst [vmem:[#allocation16_spill] sm:$0xff] %v6856_v51  ;;  %v5259_v59 = vld [vmem:[%s11073_s0 + $0x128] sm:$0xff]  ;;  %v1086_v12 = vmul.f32 %v6856_v51, %v6856_v51  ;;  %v5365_v51 = vld [vmem:[%s11073_s0 + $0x478] sm:$0xff] }
 0x248   :  { %v6865_v60 = vsub.f32 %v5259_v59, %v6534_v7 }
 0x249   :  { %v1360_v18 = vadd.f32 %v1359_v2, %v1358_v4  ;;  %v5260_v4 = vld [vmem:[%s11073_s0 + $0x130] sm:$0xff]  ;;  %v1377_v39 = vsel %vm274_vm1, %v1086_v12, 0.0 }
 0x24a   :  { %11305 = vst [vmem:[#allocation17_spill] sm:$0xff] %v6865_v60  ;;  %v6874_v6 = vsub.f32 %v5260_v4, %v6534_v7  ;;  %v5265_v4 = vld [vmem:[%s11073_s0 + $0x158] sm:$0xff] }
 0x24b   :  { %v1362_v28 = vadd.f32 %v1361_v14, %v1360_v18  ;;  %v1373_v14 = vsel %vm274_vm1, %v1084_v53, 0.0  ;;  %v6919_v12 = vsub.f32 %v5265_v4, %v6534_v7  ;;  %v5269_v4 = vld [vmem:[%s11073_s0 + $0x178] sm:$0xff] }
 0x24c   :  { %11306 = vst [vmem:[#allocation18_spill] sm:$0xff] %v6874_v6 }
 0x24d   :  { %v1364_v36 = vadd.f32 %v1363_v27, %v1362_v28  ;;  %v1087_v27 = vmul.f32 %v6865_v60, %v6865_v60  ;;  %v1375_v28 = vsel %vm274_vm1, %v1085_v61, 0.0  ;;  %11311 = vst [vmem:[#allocation23_spill] sm:$0xff] %v6919_v12  ;;  %v5364_v60 = vld [vmem:[%s11073_s0 + $0x470] sm:$0xff] }
 0x24f   :  { %v1366_v46 = vadd.f32 %v1365_v35, %v1364_v36  ;;  %v6892_v35 = vsub.f32 %v5262_v34, %v6534_v7  ;;  %v1088_v36 = vmul.f32 %v6874_v6, %v6874_v6  ;;  %v1379_v53 = vsel %vm274_vm1, %v1087_v27, 0.0  ;;  %v5266_v27 = vld [vmem:[%s11073_s0 + $0x160] sm:$0xff]  ;;  %v5363_v6 = vld [vmem:[%s11073_s0 + $0x468] sm:$0xff] }
 0x251   :  { %v1368_v58 = vadd.f32 %v1367_v45, %v1366_v46  ;;  %11308 = vst [vmem:[#allocation20_spill] sm:$0xff] %v6892_v35  ;;  %v5263_v45 = vld [vmem:[%s11073_s0 + $0x148] sm:$0xff]  ;;  %v1090_v61 = vmul.f32 %v6892_v35, %v6892_v35  ;;  %v5361_v35 = vld [vmem:[%s11073_s0 + $0x458] sm:$0xff] }
 0x252   :  { %v6901_v46 = vsub.f32 %v5263_v45, %v6534_v7  ;;  %v1093_v45 = vmul.f32 %v6919_v12, %v6919_v12  ;;  %v5358_v12 = vld [vmem:[%s11073_s0 + $0x440] sm:$0xff] }
 0x253   :  { %v1370_v2 = vadd.f32 %v1369_v54, %v1368_v58  ;;  %v5264_v58 = vld [vmem:[%s11073_s0 + $0x150] sm:$0xff]  ;;  %v1385_v34 = vsel %vm274_vm1, %v1090_v61, 0.0 }
 0x254   :  { %11309 = vst [vmem:[#allocation21_spill] sm:$0xff] %v6901_v46  ;;  %v6910_v59 = vsub.f32 %v5264_v58, %v6534_v7 }
 0x255   :  { %v1372_v18 = vadd.f32 %v1371_v1, %v1370_v2  ;;  %v1381_v1 = vsel %vm274_vm1, %v1088_v36, 0.0 }
 0x256   :  { %11310 = vst [vmem:[#allocation22_spill] sm:$0xff] %v6910_v59 }
 0x257   :  { %v1374_v29 = vadd.f32 %v1373_v14, %v1372_v18  ;;  %v1091_v14 = vmul.f32 %v6901_v46, %v6901_v46  ;;  %v1383_v18 = vsel %vm274_vm1, %v1089_v49, 0.0  ;;  %v5360_v46 = vld [vmem:[%s11073_s0 + $0x450] sm:$0xff] }
 0x259   :  { %v1376_v43 = vadd.f32 %v1375_v28, %v1374_v29  ;;  %v6928_v28 = vsub.f32 %v5266_v27, %v6534_v7  ;;  %v1092_v29 = vmul.f32 %v6910_v59, %v6910_v59  ;;  %v1387_v49 = vsel %vm274_vm1, %v1091_v14, 0.0  ;;  %v5359_v59 = vld [vmem:[%s11073_s0 + $0x448] sm:$0xff] }
 0x25a   :  { %v6955_v14 = vsub.f32 %v5269_v4, %v6534_v7  ;;  %v5272_v4 = vld [vmem:[%s11073_s0 + $0x190] sm:$0xff] }
 0x25b   :  { %v1378_v54 = vadd.f32 %v1377_v39, %v1376_v43  ;;  %11312 = vst [vmem:[#allocation24_spill] sm:$0xff] %v6928_v28  ;;  %v5267_v39 = vld [vmem:[%s11073_s0 + $0x168] sm:$0xff]  ;;  %v1094_v61 = vmul.f32 %v6928_v28, %v6928_v28  ;;  %v5357_v28 = vld [vmem:[%s11073_s0 + $0x438] sm:$0xff] }
 0x25c   :  { %v6937_v43 = vsub.f32 %v5267_v39, %v6534_v7  ;;  %11315 = vst [vmem:[#allocation27_spill] sm:$0xff] %v6955_v14 }
 0x25d   :  { %v1380_v2 = vadd.f32 %v1379_v53, %v1378_v54  ;;  %v5268_v54 = vld [vmem:[%s11073_s0 + $0x170] sm:$0xff]  ;;  %v1393_v39 = vsel %vm274_vm1, %v1094_v61, 0.0  ;;  %v6982_v61 = vsub.f32 %v5272_v4, %v6534_v7 }
 0x25e   :  { %11313 = vst [vmem:[#allocation25_spill] sm:$0xff] %v6937_v43  ;;  %v6946_v58 = vsub.f32 %v5268_v54, %v6534_v7  ;;  %v1097_v54 = vmul.f32 %v6955_v14, %v6955_v14  ;;  %v5354_v14 = vld [vmem:[%s11073_s0 + $0x420] sm:$0xff] }
 0x25f   :  { %v1382_v20 = vadd.f32 %v1381_v1, %v1380_v2  ;;  %v1389_v1 = vsel %vm274_vm1, %v1092_v29, 0.0  ;;  %11318 = vst [vmem:[#allocation30_spill] sm:$0xff] %v6982_v61 }
 0x260   :  { %11314 = vst [vmem:[#allocation26_spill] sm:$0xff] %v6946_v58 }
 0x261   :  { %v1384_v36 = vadd.f32 %v1383_v18, %v1382_v20  ;;  %v1095_v18 = vmul.f32 %v6937_v43, %v6937_v43  ;;  %v1391_v20 = vsel %vm274_vm1, %v1093_v45, 0.0  ;;  %v5356_v43 = vld [vmem:[%s11073_s0 + $0x430] sm:$0xff] }
 0x263   :  { %v1386_v53 = vadd.f32 %v1385_v34, %v1384_v36  ;;  %v5270_v34 = vld [vmem:[%s11073_s0 + $0x180] sm:$0xff]  ;;  %v1096_v36 = vmul.f32 %v6946_v58, %v6946_v58  ;;  %v5355_v58 = vld [vmem:[%s11073_s0 + $0x428] sm:$0xff] }
 0x264   :  { %v6964_v29 = vsub.f32 %v5270_v34, %v6534_v7 }
 0x265   :  { %v1388_v2 = vadd.f32 %v1387_v49, %v1386_v53  ;;  %v5271_v53 = vld [vmem:[%s11073_s0 + $0x188] sm:$0xff] }
 0x266   :  { %11316 = vst [vmem:[#allocation28_spill] sm:$0xff] %v6964_v29  ;;  %v6973_v45 = vsub.f32 %v5271_v53, %v6534_v7  ;;  %v5273_v53 = vld [vmem:[%s11073_s0 + $0x198] sm:$0xff] }
 0x267   :  { %v1390_v27 = vadd.f32 %v1389_v1, %v1388_v2  ;;  %v1395_v1 = vsel %vm274_vm1, %v1095_v18, 0.0  ;;  %v6991_v18 = vsub.f32 %v5273_v53, %v6534_v7 }
 0x268   :  { %11317 = vst [vmem:[#allocation29_spill] sm:$0xff] %v6973_v45 }
 0x269   :  { %v1392_v49 = vadd.f32 %v1391_v20, %v1390_v27  ;;  %v1098_v20 = vmul.f32 %v6964_v29, %v6964_v29  ;;  %v1397_v27 = vsel %vm274_vm1, %v1096_v36, 0.0  ;;  %11319 = vst [vmem:[#allocation31_spill] sm:$0xff] %v6991_v18  ;;  %v5274_v29 = vld [vmem:[%s11073_s0 + $0x1a0] sm:$0xff] }
 0x26a   :  { %v7000_v36 = vsub.f32 %v5274_v29, %v6534_v7 }
 0x26b   :  { %v1394_v2 = vadd.f32 %v1393_v39, %v1392_v49  ;;  %v1099_v39 = vmul.f32 %v6973_v45, %v6973_v45  ;;  %v1399_v49 = vsel %vm274_vm1, %v1097_v54, 0.0  ;;  %v5275_v45 = vld [vmem:[%s11073_s0 + $0x1a8] sm:$0xff] }
 0x26c   :  { %11320 = vst [vmem:[#allocation32_spill] sm:$0xff] %v7000_v36  ;;  %v7009_v54 = vsub.f32 %v5275_v45, %v6534_v7 }
 0x26d   :  { %v1396_v34 = vadd.f32 %v1395_v1, %v1394_v2  ;;  %v1100_v1 = vmul.f32 %v6982_v61, %v6982_v61  ;;  %v1401_v2 = vsel %vm274_vm1, %v1098_v20, 0.0  ;;  %v5276_v61 = vld [vmem:[%s11073_s0 + $0x1b0] sm:$0xff] }
 0x26e   :  { %11321 = vst [vmem:[#allocation33_spill] sm:$0xff] %v7009_v54  ;;  %v7018_v20 = vsub.f32 %v5276_v61, %v6534_v7 }
 0x26f   :  { %v1398_v4 = vadd.f32 %v1397_v27, %v1396_v34  ;;  %v1101_v27 = vmul.f32 %v6991_v18, %v6991_v18  ;;  %v1403_v34 = vsel %vm274_vm1, %v1099_v39, 0.0  ;;  %v5277_v18 = vld [vmem:[%s11073_s0 + $0x1b8] sm:$0xff] }
 0x270   :  { %11322 = vst [vmem:[#allocation34_spill] sm:$0xff] %v7018_v20  ;;  %v7027_v39 = vsub.f32 %v5277_v18, %v6534_v7 }
 0x271   :  { %v1400_v53 = vadd.f32 %v1399_v49, %v1398_v4  ;;  %v1102_v49 = vmul.f32 %v7000_v36, %v7000_v36  ;;  %v1405_v4 = vsel %vm274_vm1, %v1100_v1, 0.0  ;;  %v5278_v36 = vld [vmem:[%s11073_s0 + $0x1c0] sm:$0xff] }
 0x272   :  { %11323 = vst [vmem:[#allocation35_spill] sm:$0xff] %v7027_v39  ;;  %v7036_v1 = vsub.f32 %v5278_v36, %v6534_v7 }
 0x273   :  { %v1402_v29 = vadd.f32 %v1401_v2, %v1400_v53  ;;  %v1103_v2 = vmul.f32 %v7009_v54, %v7009_v54  ;;  %v1407_v53 = vsel %vm274_vm1, %v1101_v27, 0.0  ;;  %v5279_v54 = vld [vmem:[%s11073_s0 + $0x1c8] sm:$0xff] }
 0x274   :  { %11324 = vst [vmem:[#allocation36_spill] sm:$0xff] %v7036_v1  ;;  %v7045_v27 = vsub.f32 %v5279_v54, %v6534_v7 }
 0x275   :  { %v1404_v45 = vadd.f32 %v1403_v34, %v1402_v29  ;;  %v1104_v34 = vmul.f32 %v7018_v20, %v7018_v20  ;;  %v1409_v29 = vsel %vm274_vm1, %v1102_v49, 0.0  ;;  %v5280_v20 = vld [vmem:[%s11073_s0 + $0x1d0] sm:$0xff] }
 0x276   :  { %11325 = vst [vmem:[#allocation37_spill] sm:$0xff] %v7045_v27  ;;  %v7054_v49 = vsub.f32 %v5280_v20, %v6534_v7 }
 0x277   :  { %v1406_v61 = vadd.f32 %v1405_v4, %v1404_v45  ;;  %v1105_v4 = vmul.f32 %v7027_v39, %v7027_v39  ;;  %v1411_v45 = vsel %vm274_vm1, %v1103_v2, 0.0  ;;  %v5281_v39 = vld [vmem:[%s11073_s0 + $0x1d8] sm:$0xff] }
 0x278   :  { %11326 = vst [vmem:[#allocation38_spill] sm:$0xff] %v7054_v49  ;;  %v7063_v2 = vsub.f32 %v5281_v39, %v6534_v7 }
 0x279   :  { %v1408_v18 = vadd.f32 %v1407_v53, %v1406_v61  ;;  %v1106_v53 = vmul.f32 %v7036_v1, %v7036_v1  ;;  %v1413_v61 = vsel %vm274_vm1, %v1104_v34, 0.0  ;;  %v5282_v1 = vld [vmem:[%s11073_s0 + $0x1e0] sm:$0xff] }
 0x27a   :  { %11327 = vst [vmem:[#allocation39_spill] sm:$0xff] %v7063_v2  ;;  %v7072_v34 = vsub.f32 %v5282_v1, %v6534_v7 }
 0x27b   :  { %v1410_v36 = vadd.f32 %v1409_v29, %v1408_v18  ;;  %v1107_v29 = vmul.f32 %v7045_v27, %v7045_v27  ;;  %v1415_v18 = vsel %vm274_vm1, %v1105_v4, 0.0  ;;  %v5283_v27 = vld [vmem:[%s11073_s0 + $0x1e8] sm:$0xff] }
 0x27c   :  { %11328 = vst [vmem:[#allocation40_spill] sm:$0xff] %v7072_v34  ;;  %v7081_v4 = vsub.f32 %v5283_v27, %v6534_v7 }
 0x27d   :  { %v1412_v54 = vadd.f32 %v1411_v45, %v1410_v36  ;;  %v1108_v45 = vmul.f32 %v7054_v49, %v7054_v49  ;;  %v1417_v36 = vsel %vm274_vm1, %v1106_v53, 0.0  ;;  %v5284_v49 = vld [vmem:[%s11073_s0 + $0x1f0] sm:$0xff] }
 0x27e   :  { %11329 = vst [vmem:[#allocation41_spill] sm:$0xff] %v7081_v4  ;;  %v7090_v53 = vsub.f32 %v5284_v49, %v6534_v7 }
 0x27f   :  { %v1414_v20 = vadd.f32 %v1413_v61, %v1412_v54  ;;  %v1109_v61 = vmul.f32 %v7063_v2, %v7063_v2  ;;  %v1419_v54 = vsel %vm274_vm1, %v1107_v29, 0.0  ;;  %v5285_v2 = vld [vmem:[%s11073_s0 + $0x1f8] sm:$0xff] }
 0x280   :  { %11330 = vst [vmem:[#allocation42_spill] sm:$0xff] %v7090_v53  ;;  %v7099_v29 = vsub.f32 %v5285_v2, %v6534_v7 }
 0x281   :  { %v1416_v39 = vadd.f32 %v1415_v18, %v1414_v20  ;;  %v1110_v18 = vmul.f32 %v7072_v34, %v7072_v34  ;;  %v1421_v20 = vsel %vm274_vm1, %v1108_v45, 0.0  ;;  %v5286_v34 = vld [vmem:[%s11073_s0 + $0x200] sm:$0xff] }
 0x282   :  { %11331 = vst [vmem:[#allocation43_spill] sm:$0xff] %v7099_v29  ;;  %v7108_v45 = vsub.f32 %v5286_v34, %v6534_v7 }
 0x283   :  { %v1418_v1 = vadd.f32 %v1417_v36, %v1416_v39  ;;  %v1111_v36 = vmul.f32 %v7081_v4, %v7081_v4  ;;  %v1423_v39 = vsel %vm274_vm1, %v1109_v61, 0.0  ;;  %v5287_v4 = vld [vmem:[%s11073_s0 + $0x208] sm:$0xff] }
 0x284   :  { %11332 = vst [vmem:[#allocation44_spill] sm:$0xff] %v7108_v45  ;;  %v7117_v61 = vsub.f32 %v5287_v4, %v6534_v7 }
 0x285   :  { %v1420_v27 = vadd.f32 %v1419_v54, %v1418_v1  ;;  %v1112_v54 = vmul.f32 %v7090_v53, %v7090_v53  ;;  %v1425_v1 = vsel %vm274_vm1, %v1110_v18, 0.0  ;;  %v5288_v53 = vld [vmem:[%s11073_s0 + $0x210] sm:$0xff] }
 0x286   :  { %11333 = vst [vmem:[#allocation45_spill] sm:$0xff] %v7117_v61  ;;  %v7126_v18 = vsub.f32 %v5288_v53, %v6534_v7 }
 0x287   :  { %v1422_v49 = vadd.f32 %v1421_v20, %v1420_v27  ;;  %v1113_v20 = vmul.f32 %v7099_v29, %v7099_v29  ;;  %v1427_v27 = vsel %vm274_vm1, %v1111_v36, 0.0  ;;  %v5289_v29 = vld [vmem:[%s11073_s0 + $0x218] sm:$0xff] }
 0x288   :  { %11334 = vst [vmem:[#allocation46_spill] sm:$0xff] %v7126_v18  ;;  %v7135_v36 = vsub.f32 %v5289_v29, %v6534_v7 }
 0x289   :  { %v1424_v2 = vadd.f32 %v1423_v39, %v1422_v49  ;;  %v1114_v39 = vmul.f32 %v7108_v45, %v7108_v45  ;;  %v1429_v49 = vsel %vm274_vm1, %v1112_v54, 0.0  ;;  %v5290_v45 = vld [vmem:[%s11073_s0 + $0x220] sm:$0xff] }
 0x28a   :  { %11335 = vst [vmem:[#allocation47_spill] sm:$0xff] %v7135_v36  ;;  %v7144_v54 = vsub.f32 %v5290_v45, %v6534_v7 }
 0x28b   :  { %v1426_v34 = vadd.f32 %v1425_v1, %v1424_v2  ;;  %v1115_v1 = vmul.f32 %v7117_v61, %v7117_v61  ;;  %v1431_v2 = vsel %vm274_vm1, %v1113_v20, 0.0  ;;  %v5291_v61 = vld [vmem:[%s11073_s0 + $0x228] sm:$0xff] }
 0x28c   :  { %11336 = vst [vmem:[#allocation48_spill] sm:$0xff] %v7144_v54  ;;  %v7153_v20 = vsub.f32 %v5291_v61, %v6534_v7 }
 0x28d   :  { %v1428_v4 = vadd.f32 %v1427_v27, %v1426_v34  ;;  %v1116_v27 = vmul.f32 %v7126_v18, %v7126_v18  ;;  %v1433_v34 = vsel %vm274_vm1, %v1114_v39, 0.0  ;;  %v5292_v18 = vld [vmem:[%s11073_s0 + $0x230] sm:$0xff] }
 0x28e   :  { %11337 = vst [vmem:[#allocation49_spill] sm:$0xff] %v7153_v20  ;;  %v7162_v39 = vsub.f32 %v5292_v18, %v6534_v7 }
 0x28f   :  { %v1430_v53 = vadd.f32 %v1429_v49, %v1428_v4  ;;  %v1117_v49 = vmul.f32 %v7135_v36, %v7135_v36  ;;  %v1435_v4 = vsel %vm274_vm1, %v1115_v1, 0.0  ;;  %v5293_v36 = vld [vmem:[%s11073_s0 + $0x238] sm:$0xff] }
 0x290   :  { %11338 = vst [vmem:[#allocation50_spill] sm:$0xff] %v7162_v39  ;;  %v7171_v1 = vsub.f32 %v5293_v36, %v6534_v7 }
 0x291   :  { %v1432_v29 = vadd.f32 %v1431_v2, %v1430_v53  ;;  %v1118_v2 = vmul.f32 %v7144_v54, %v7144_v54  ;;  %v1437_v53 = vsel %vm274_vm1, %v1116_v27, 0.0  ;;  %v5294_v54 = vld [vmem:[%s11073_s0 + $0x240] sm:$0xff] }
 0x292   :  { %11339 = vst [vmem:[#allocation51_spill] sm:$0xff] %v7171_v1  ;;  %v7180_v27 = vsub.f32 %v5294_v54, %v6534_v7 }
 0x293   :  { %v1434_v45 = vadd.f32 %v1433_v34, %v1432_v29  ;;  %v1119_v34 = vmul.f32 %v7153_v20, %v7153_v20  ;;  %v1439_v29 = vsel %vm274_vm1, %v1117_v49, 0.0  ;;  %v5295_v20 = vld [vmem:[%s11073_s0 + $0x248] sm:$0xff] }
 0x294   :  { %11340 = vst [vmem:[#allocation52_spill] sm:$0xff] %v7180_v27  ;;  %v7189_v49 = vsub.f32 %v5295_v20, %v6534_v7 }
 0x295   :  { %v1436_v61 = vadd.f32 %v1435_v4, %v1434_v45  ;;  %v1120_v4 = vmul.f32 %v7162_v39, %v7162_v39  ;;  %v1441_v45 = vsel %vm274_vm1, %v1118_v2, 0.0  ;;  %v5296_v39 = vld [vmem:[%s11073_s0 + $0x250] sm:$0xff] }
 0x296   :  { %11341 = vst [vmem:[#allocation53_spill] sm:$0xff] %v7189_v49  ;;  %v7198_v2 = vsub.f32 %v5296_v39, %v6534_v7 }
 0x297   :  { %v1438_v18 = vadd.f32 %v1437_v53, %v1436_v61  ;;  %v1121_v53 = vmul.f32 %v7171_v1, %v7171_v1  ;;  %v1443_v61 = vsel %vm274_vm1, %v1119_v34, 0.0  ;;  %v5297_v1 = vld [vmem:[%s11073_s0 + $0x258] sm:$0xff] }
 0x298   :  { %11342 = vst [vmem:[#allocation54_spill] sm:$0xff] %v7198_v2  ;;  %v7207_v34 = vsub.f32 %v5297_v1, %v6534_v7 }
 0x299   :  { %v1440_v36 = vadd.f32 %v1439_v29, %v1438_v18  ;;  %v1122_v29 = vmul.f32 %v7180_v27, %v7180_v27  ;;  %v1445_v18 = vsel %vm274_vm1, %v1120_v4, 0.0  ;;  %v5298_v27 = vld [vmem:[%s11073_s0 + $0x260] sm:$0xff] }
 0x29a   :  { %11343 = vst [vmem:[#allocation55_spill] sm:$0xff] %v7207_v34  ;;  %v7216_v4 = vsub.f32 %v5298_v27, %v6534_v7 }
 0x29b   :  { %v1442_v54 = vadd.f32 %v1441_v45, %v1440_v36  ;;  %v1123_v45 = vmul.f32 %v7189_v49, %v7189_v49  ;;  %v1447_v36 = vsel %vm274_vm1, %v1121_v53, 0.0  ;;  %v5299_v49 = vld [vmem:[%s11073_s0 + $0x268] sm:$0xff] }
 0x29c   :  { %11344 = vst [vmem:[#allocation56_spill] sm:$0xff] %v7216_v4  ;;  %v7225_v53 = vsub.f32 %v5299_v49, %v6534_v7 }
 0x29d   :  { %v1444_v20 = vadd.f32 %v1443_v61, %v1442_v54  ;;  %v1124_v61 = vmul.f32 %v7198_v2, %v7198_v2  ;;  %v1449_v54 = vsel %vm274_vm1, %v1122_v29, 0.0  ;;  %v5300_v2 = vld [vmem:[%s11073_s0 + $0x270] sm:$0xff] }
 0x29e   :  { %11345 = vst [vmem:[#allocation57_spill] sm:$0xff] %v7225_v53  ;;  %v7234_v29 = vsub.f32 %v5300_v2, %v6534_v7 }
 0x29f   :  { %v1446_v39 = vadd.f32 %v1445_v18, %v1444_v20  ;;  %v1125_v18 = vmul.f32 %v7207_v34, %v7207_v34  ;;  %v1451_v20 = vsel %vm274_vm1, %v1123_v45, 0.0  ;;  %v5301_v34 = vld [vmem:[%s11073_s0 + $0x278] sm:$0xff] }
 0x2a0   :  { %11346 = vst [vmem:[#allocation58_spill] sm:$0xff] %v7234_v29  ;;  %v7243_v45 = vsub.f32 %v5301_v34, %v6534_v7 }
 0x2a1   :  { %v1448_v1 = vadd.f32 %v1447_v36, %v1446_v39  ;;  %v1126_v36 = vmul.f32 %v7216_v4, %v7216_v4  ;;  %v1453_v39 = vsel %vm274_vm1, %v1124_v61, 0.0  ;;  %v5302_v4 = vld [vmem:[%s11073_s0 + $0x280] sm:$0xff] }
 0x2a2   :  { %11347 = vst [vmem:[#allocation59_spill] sm:$0xff] %v7243_v45  ;;  %v7252_v61 = vsub.f32 %v5302_v4, %v6534_v7 }
 0x2a3   :  { %v1450_v27 = vadd.f32 %v1449_v54, %v1448_v1  ;;  %v1127_v54 = vmul.f32 %v7225_v53, %v7225_v53  ;;  %v1455_v1 = vsel %vm274_vm1, %v1125_v18, 0.0  ;;  %v5303_v53 = vld [vmem:[%s11073_s0 + $0x288] sm:$0xff] }
 0x2a4   :  { %11348 = vst [vmem:[#allocation60_spill] sm:$0xff] %v7252_v61  ;;  %v7261_v18 = vsub.f32 %v5303_v53, %v6534_v7 }
 0x2a5   :  { %v1452_v49 = vadd.f32 %v1451_v20, %v1450_v27  ;;  %v1128_v20 = vmul.f32 %v7234_v29, %v7234_v29  ;;  %v1457_v27 = vsel %vm274_vm1, %v1126_v36, 0.0  ;;  %v5304_v29 = vld [vmem:[%s11073_s0 + $0x290] sm:$0xff] }
 0x2a6   :  { %11349 = vst [vmem:[#allocation61_spill] sm:$0xff] %v7261_v18  ;;  %v7270_v36 = vsub.f32 %v5304_v29, %v6534_v7 }
 0x2a7   :  { %v1454_v2 = vadd.f32 %v1453_v39, %v1452_v49  ;;  %v1129_v39 = vmul.f32 %v7243_v45, %v7243_v45  ;;  %v1459_v49 = vsel %vm274_vm1, %v1127_v54, 0.0  ;;  %v5305_v45 = vld [vmem:[%s11073_s0 + $0x298] sm:$0xff] }
 0x2a8   :  { %11350 = vst [vmem:[#allocation62_spill] sm:$0xff] %v7270_v36  ;;  %v7279_v54 = vsub.f32 %v5305_v45, %v6534_v7 }
 0x2a9   :  { %v1456_v34 = vadd.f32 %v1455_v1, %v1454_v2  ;;  %v1130_v1 = vmul.f32 %v7252_v61, %v7252_v61  ;;  %v1461_v2 = vsel %vm274_vm1, %v1128_v20, 0.0  ;;  %v5306_v61 = vld [vmem:[%s11073_s0 + $0x2a0] sm:$0xff] }
 0x2aa   :  { %11351 = vst [vmem:[#allocation63_spill] sm:$0xff] %v7279_v54  ;;  %v7288_v20 = vsub.f32 %v5306_v61, %v6534_v7 }
 0x2ab   :  { %v1458_v4 = vadd.f32 %v1457_v27, %v1456_v34  ;;  %v1131_v27 = vmul.f32 %v7261_v18, %v7261_v18  ;;  %v1463_v34 = vsel %vm274_vm1, %v1129_v39, 0.0  ;;  %v5307_v18 = vld [vmem:[%s11073_s0 + $0x2a8] sm:$0xff] }
 0x2ac   :  { %11352 = vst [vmem:[#allocation64_spill] sm:$0xff] %v7288_v20  ;;  %v7297_v39 = vsub.f32 %v5307_v18, %v6534_v7 }
 0x2ad   :  { %v1460_v53 = vadd.f32 %v1459_v49, %v1458_v4  ;;  %v1132_v49 = vmul.f32 %v7270_v36, %v7270_v36  ;;  %v1465_v4 = vsel %vm274_vm1, %v1130_v1, 0.0  ;;  %v5308_v36 = vld [vmem:[%s11073_s0 + $0x2b0] sm:$0xff] }
 0x2ae   :  { %11353 = vst [vmem:[#allocation65_spill] sm:$0xff] %v7297_v39  ;;  %v7306_v1 = vsub.f32 %v5308_v36, %v6534_v7 }
 0x2af   :  { %v1462_v29 = vadd.f32 %v1461_v2, %v1460_v53  ;;  %v1133_v2 = vmul.f32 %v7279_v54, %v7279_v54  ;;  %v1467_v53 = vsel %vm274_vm1, %v1131_v27, 0.0  ;;  %v5309_v54 = vld [vmem:[%s11073_s0 + $0x2b8] sm:$0xff] }
 0x2b0   :  { %11354 = vst [vmem:[#allocation66_spill] sm:$0xff] %v7306_v1  ;;  %v7315_v27 = vsub.f32 %v5309_v54, %v6534_v7 }
 0x2b1   :  { %v1464_v45 = vadd.f32 %v1463_v34, %v1462_v29  ;;  %v1134_v34 = vmul.f32 %v7288_v20, %v7288_v20  ;;  %v1469_v29 = vsel %vm274_vm1, %v1132_v49, 0.0  ;;  %v5310_v20 = vld [vmem:[%s11073_s0 + $0x2c0] sm:$0xff] }
 0x2b2   :  { %11355 = vst [vmem:[#allocation67_spill] sm:$0xff] %v7315_v27  ;;  %v7324_v49 = vsub.f32 %v5310_v20, %v6534_v7 }
 0x2b3   :  { %v1466_v61 = vadd.f32 %v1465_v4, %v1464_v45  ;;  %v1135_v4 = vmul.f32 %v7297_v39, %v7297_v39  ;;  %v1471_v45 = vsel %vm274_vm1, %v1133_v2, 0.0  ;;  %v5311_v39 = vld [vmem:[%s11073_s0 + $0x2c8] sm:$0xff] }
 0x2b4   :  { %11356 = vst [vmem:[#allocation68_spill] sm:$0xff] %v7324_v49  ;;  %v7333_v2 = vsub.f32 %v5311_v39, %v6534_v7 }
 0x2b5   :  { %v1468_v18 = vadd.f32 %v1467_v53, %v1466_v61  ;;  %v1136_v53 = vmul.f32 %v7306_v1, %v7306_v1  ;;  %v1473_v61 = vsel %vm274_vm1, %v1134_v34, 0.0  ;;  %v5312_v1 = vld [vmem:[%s11073_s0 + $0x2d0] sm:$0xff] }
 0x2b6   :  { %11357 = vst [vmem:[#allocation69_spill] sm:$0xff] %v7333_v2  ;;  %v7342_v34 = vsub.f32 %v5312_v1, %v6534_v7 }
 0x2b7   :  { %v1470_v36 = vadd.f32 %v1469_v29, %v1468_v18  ;;  %v1137_v29 = vmul.f32 %v7315_v27, %v7315_v27  ;;  %v1475_v18 = vsel %vm274_vm1, %v1135_v4, 0.0  ;;  %v5313_v27 = vld [vmem:[%s11073_s0 + $0x2d8] sm:$0xff] }
 0x2b8   :  { %11358 = vst [vmem:[#allocation70_spill] sm:$0xff] %v7342_v34  ;;  %v7351_v4 = vsub.f32 %v5313_v27, %v6534_v7 }
 0x2b9   :  { %v1472_v54 = vadd.f32 %v1471_v45, %v1470_v36  ;;  %v1138_v45 = vmul.f32 %v7324_v49, %v7324_v49  ;;  %v1477_v36 = vsel %vm274_vm1, %v1136_v53, 0.0  ;;  %v5314_v49 = vld [vmem:[%s11073_s0 + $0x2e0] sm:$0xff] }
 0x2ba   :  { %11359 = vst [vmem:[#allocation71_spill] sm:$0xff] %v7351_v4  ;;  %v7360_v53 = vsub.f32 %v5314_v49, %v6534_v7 }
 0x2bb   :  { %v1474_v20 = vadd.f32 %v1473_v61, %v1472_v54  ;;  %v1139_v61 = vmul.f32 %v7333_v2, %v7333_v2  ;;  %v1479_v54 = vsel %vm274_vm1, %v1137_v29, 0.0  ;;  %v5315_v2 = vld [vmem:[%s11073_s0 + $0x2e8] sm:$0xff] }
 0x2bc   :  { %11360 = vst [vmem:[#allocation72_spill] sm:$0xff] %v7360_v53  ;;  %v7369_v29 = vsub.f32 %v5315_v2, %v6534_v7 }
 0x2bd   :  { %v1476_v39 = vadd.f32 %v1475_v18, %v1474_v20  ;;  %v1140_v18 = vmul.f32 %v7342_v34, %v7342_v34  ;;  %v1481_v20 = vsel %vm274_vm1, %v1138_v45, 0.0  ;;  %v5316_v34 = vld [vmem:[%s11073_s0 + $0x2f0] sm:$0xff] }
 0x2be   :  { %11361 = vst [vmem:[#allocation73_spill] sm:$0xff] %v7369_v29  ;;  %v7378_v45 = vsub.f32 %v5316_v34, %v6534_v7 }
 0x2bf   :  { %v1478_v1 = vadd.f32 %v1477_v36, %v1476_v39  ;;  %v1141_v36 = vmul.f32 %v7351_v4, %v7351_v4  ;;  %v1483_v39 = vsel %vm274_vm1, %v1139_v61, 0.0  ;;  %v5317_v4 = vld [vmem:[%s11073_s0 + $0x2f8] sm:$0xff] }
 0x2c0   :  { %11362 = vst [vmem:[#allocation74_spill] sm:$0xff] %v7378_v45  ;;  %v7387_v61 = vsub.f32 %v5317_v4, %v6534_v7 }
 0x2c1   :  { %v1480_v27 = vadd.f32 %v1479_v54, %v1478_v1  ;;  %v1142_v54 = vmul.f32 %v7360_v53, %v7360_v53  ;;  %v1485_v1 = vsel %vm274_vm1, %v1140_v18, 0.0  ;;  %v5318_v53 = vld [vmem:[%s11073_s0 + $0x300] sm:$0xff] }
 0x2c2   :  { %11363 = vst [vmem:[#allocation75_spill] sm:$0xff] %v7387_v61  ;;  %v7396_v18 = vsub.f32 %v5318_v53, %v6534_v7 }
 0x2c3   :  { %v1482_v49 = vadd.f32 %v1481_v20, %v1480_v27  ;;  %v1143_v20 = vmul.f32 %v7369_v29, %v7369_v29  ;;  %v1487_v27 = vsel %vm274_vm1, %v1141_v36, 0.0  ;;  %v5319_v29 = vld [vmem:[%s11073_s0 + $0x308] sm:$0xff] }
 0x2c4   :  { %11364 = vst [vmem:[#allocation76_spill] sm:$0xff] %v7396_v18  ;;  %v7405_v36 = vsub.f32 %v5319_v29, %v6534_v7 }
 0x2c5   :  { %v1484_v2 = vadd.f32 %v1483_v39, %v1482_v49  ;;  %v1144_v39 = vmul.f32 %v7378_v45, %v7378_v45  ;;  %v1489_v49 = vsel %vm274_vm1, %v1142_v54, 0.0  ;;  %v5320_v45 = vld [vmem:[%s11073_s0 + $0x310] sm:$0xff] }
 0x2c6   :  { %11365 = vst [vmem:[#allocation77_spill] sm:$0xff] %v7405_v36  ;;  %v7414_v54 = vsub.f32 %v5320_v45, %v6534_v7 }
 0x2c7   :  { %v1486_v34 = vadd.f32 %v1485_v1, %v1484_v2  ;;  %v1145_v1 = vmul.f32 %v7387_v61, %v7387_v61  ;;  %v1491_v2 = vsel %vm274_vm1, %v1143_v20, 0.0  ;;  %v5321_v61 = vld [vmem:[%s11073_s0 + $0x318] sm:$0xff] }
 0x2c8   :  { %11366 = vst [vmem:[#allocation78_spill] sm:$0xff] %v7414_v54  ;;  %v7423_v20 = vsub.f32 %v5321_v61, %v6534_v7 }
 0x2c9   :  { %v1488_v4 = vadd.f32 %v1487_v27, %v1486_v34  ;;  %v1146_v27 = vmul.f32 %v7396_v18, %v7396_v18  ;;  %v1493_v34 = vsel %vm274_vm1, %v1144_v39, 0.0  ;;  %v5322_v18 = vld [vmem:[%s11073_s0 + $0x320] sm:$0xff] }
 0x2ca   :  { %11367 = vst [vmem:[#allocation79_spill] sm:$0xff] %v7423_v20  ;;  %v7432_v39 = vsub.f32 %v5322_v18, %v6534_v7 }
 0x2cb   :  { %v1490_v53 = vadd.f32 %v1489_v49, %v1488_v4  ;;  %v1147_v49 = vmul.f32 %v7405_v36, %v7405_v36  ;;  %v1495_v4 = vsel %vm274_vm1, %v1145_v1, 0.0  ;;  %v5323_v36 = vld [vmem:[%s11073_s0 + $0x328] sm:$0xff] }
 0x2cc   :  { %11368 = vst [vmem:[#allocation80_spill] sm:$0xff] %v7432_v39  ;;  %v7441_v1 = vsub.f32 %v5323_v36, %v6534_v7 }
 0x2cd   :  { %v1492_v29 = vadd.f32 %v1491_v2, %v1490_v53  ;;  %v1148_v2 = vmul.f32 %v7414_v54, %v7414_v54  ;;  %v1497_v53 = vsel %vm274_vm1, %v1146_v27, 0.0  ;;  %v5324_v54 = vld [vmem:[%s11073_s0 + $0x330] sm:$0xff] }
 0x2ce   :  { %11369 = vst [vmem:[#allocation81_spill] sm:$0xff] %v7441_v1  ;;  %v7450_v27 = vsub.f32 %v5324_v54, %v6534_v7 }
 0x2cf   :  { %v1494_v45 = vadd.f32 %v1493_v34, %v1492_v29  ;;  %v1149_v34 = vmul.f32 %v7423_v20, %v7423_v20  ;;  %v1499_v29 = vsel %vm274_vm1, %v1147_v49, 0.0  ;;  %v5325_v20 = vld [vmem:[%s11073_s0 + $0x338] sm:$0xff] }
 0x2d0   :  { %11370 = vst [vmem:[#allocation82_spill] sm:$0xff] %v7450_v27  ;;  %v7459_v49 = vsub.f32 %v5325_v20, %v6534_v7 }
 0x2d1   :  { %v1496_v61 = vadd.f32 %v1495_v4, %v1494_v45  ;;  %v1150_v4 = vmul.f32 %v7432_v39, %v7432_v39  ;;  %v1501_v45 = vsel %vm274_vm1, %v1148_v2, 0.0  ;;  %v5326_v39 = vld [vmem:[%s11073_s0 + $0x340] sm:$0xff] }
 0x2d2   :  { %11371 = vst [vmem:[#allocation83_spill] sm:$0xff] %v7459_v49  ;;  %v7468_v2 = vsub.f32 %v5326_v39, %v6534_v7 }
 0x2d3   :  { %v1498_v18 = vadd.f32 %v1497_v53, %v1496_v61  ;;  %v1151_v53 = vmul.f32 %v7441_v1, %v7441_v1  ;;  %v1503_v61 = vsel %vm274_vm1, %v1149_v34, 0.0  ;;  %v5327_v1 = vld [vmem:[%s11073_s0 + $0x348] sm:$0xff] }
 0x2d4   :  { %11372 = vst [vmem:[#allocation84_spill] sm:$0xff] %v7468_v2  ;;  %v7477_v34 = vsub.f32 %v5327_v1, %v6534_v7 }
 0x2d5   :  { %v1500_v36 = vadd.f32 %v1499_v29, %v1498_v18  ;;  %v1152_v29 = vmul.f32 %v7450_v27, %v7450_v27  ;;  %v1505_v18 = vsel %vm274_vm1, %v1150_v4, 0.0  ;;  %v5328_v27 = vld [vmem:[%s11073_s0 + $0x350] sm:$0xff] }
 0x2d6   :  { %11373 = vst [vmem:[#allocation85_spill] sm:$0xff] %v7477_v34  ;;  %v7486_v4 = vsub.f32 %v5328_v27, %v6534_v7 }
 0x2d7   :  { %v1502_v54 = vadd.f32 %v1501_v45, %v1500_v36  ;;  %v1153_v45 = vmul.f32 %v7459_v49, %v7459_v49  ;;  %v1507_v36 = vsel %vm274_vm1, %v1151_v53, 0.0  ;;  %v5329_v49 = vld [vmem:[%s11073_s0 + $0x358] sm:$0xff] }
 0x2d8   :  { %11374 = vst [vmem:[#allocation86_spill] sm:$0xff] %v7486_v4  ;;  %v7495_v53 = vsub.f32 %v5329_v49, %v6534_v7 }
 0x2d9   :  { %v1504_v20 = vadd.f32 %v1503_v61, %v1502_v54  ;;  %v1154_v61 = vmul.f32 %v7468_v2, %v7468_v2  ;;  %v1509_v54 = vsel %vm274_vm1, %v1152_v29, 0.0  ;;  %v5330_v2 = vld [vmem:[%s11073_s0 + $0x360] sm:$0xff] }
 0x2da   :  { %11375 = vst [vmem:[#allocation87_spill] sm:$0xff] %v7495_v53  ;;  %v7504_v29 = vsub.f32 %v5330_v2, %v6534_v7 }
 0x2db   :  { %v1506_v39 = vadd.f32 %v1505_v18, %v1504_v20  ;;  %v1155_v18 = vmul.f32 %v7477_v34, %v7477_v34  ;;  %v1511_v20 = vsel %vm274_vm1, %v1153_v45, 0.0  ;;  %v5331_v34 = vld [vmem:[%s11073_s0 + $0x368] sm:$0xff] }
 0x2dc   :  { %11376 = vst [vmem:[#allocation88_spill] sm:$0xff] %v7504_v29  ;;  %v7513_v45 = vsub.f32 %v5331_v34, %v6534_v7 }
 0x2dd   :  { %v1508_v1 = vadd.f32 %v1507_v36, %v1506_v39  ;;  %v1156_v36 = vmul.f32 %v7486_v4, %v7486_v4  ;;  %v1513_v39 = vsel %vm274_vm1, %v1154_v61, 0.0  ;;  %v5332_v4 = vld [vmem:[%s11073_s0 + $0x370] sm:$0xff] }
 0x2de   :  { %11377 = vst [vmem:[#allocation89_spill] sm:$0xff] %v7513_v45  ;;  %v7522_v61 = vsub.f32 %v5332_v4, %v6534_v7 }
 0x2df   :  { %v1510_v27 = vadd.f32 %v1509_v54, %v1508_v1  ;;  %v1157_v54 = vmul.f32 %v7495_v53, %v7495_v53  ;;  %v1515_v1 = vsel %vm274_vm1, %v1155_v18, 0.0  ;;  %v5333_v53 = vld [vmem:[%s11073_s0 + $0x378] sm:$0xff] }
 0x2e0   :  { %11378 = vst [vmem:[#allocation90_spill] sm:$0xff] %v7522_v61  ;;  %v7531_v18 = vsub.f32 %v5333_v53, %v6534_v7 }
 0x2e1   :  { %v1512_v49 = vadd.f32 %v1511_v20, %v1510_v27  ;;  %v1158_v20 = vmul.f32 %v7504_v29, %v7504_v29  ;;  %v1517_v27 = vsel %vm274_vm1, %v1156_v36, 0.0  ;;  %v5334_v29 = vld [vmem:[%s11073_s0 + $0x380] sm:$0xff] }
 0x2e2   :  { %11379 = vst [vmem:[#allocation91_spill] sm:$0xff] %v7531_v18  ;;  %v7540_v36 = vsub.f32 %v5334_v29, %v6534_v7 }
 0x2e3   :  { %v1514_v2 = vadd.f32 %v1513_v39, %v1512_v49  ;;  %v1159_v39 = vmul.f32 %v7513_v45, %v7513_v45  ;;  %v1519_v49 = vsel %vm274_vm1, %v1157_v54, 0.0  ;;  %v5335_v45 = vld [vmem:[%s11073_s0 + $0x388] sm:$0xff] }
 0x2e4   :  { %11380 = vst [vmem:[#allocation92_spill] sm:$0xff] %v7540_v36  ;;  %v7549_v54 = vsub.f32 %v5335_v45, %v6534_v7 }
 0x2e5   :  { %v1516_v34 = vadd.f32 %v1515_v1, %v1514_v2  ;;  %v1160_v1 = vmul.f32 %v7522_v61, %v7522_v61  ;;  %v1521_v2 = vsel %vm274_vm1, %v1158_v20, 0.0  ;;  %v5336_v61 = vld [vmem:[%s11073_s0 + $0x390] sm:$0xff] }
 0x2e6   :  { %11381 = vst [vmem:[#allocation93_spill] sm:$0xff] %v7549_v54  ;;  %v7558_v20 = vsub.f32 %v5336_v61, %v6534_v7 }
 0x2e7   :  { %v1518_v4 = vadd.f32 %v1517_v27, %v1516_v34  ;;  %v1161_v27 = vmul.f32 %v7531_v18, %v7531_v18  ;;  %v1523_v34 = vsel %vm274_vm1, %v1159_v39, 0.0  ;;  %v5337_v18 = vld [vmem:[%s11073_s0 + $0x398] sm:$0xff] }
 0x2e8   :  { %11382 = vst [vmem:[#allocation94_spill] sm:$0xff] %v7558_v20  ;;  %v7567_v39 = vsub.f32 %v5337_v18, %v6534_v7 }
 0x2e9   :  { %v1520_v53 = vadd.f32 %v1519_v49, %v1518_v4  ;;  %v1162_v49 = vmul.f32 %v7540_v36, %v7540_v36  ;;  %v1525_v4 = vsel %vm274_vm1, %v1160_v1, 0.0  ;;  %v5338_v36 = vld [vmem:[%s11073_s0 + $0x3a0] sm:$0xff] }
 0x2ea   :  { %11383 = vst [vmem:[#allocation95_spill] sm:$0xff] %v7567_v39  ;;  %v7576_v1 = vsub.f32 %v5338_v36, %v6534_v7 }
 0x2eb   :  { %v1522_v29 = vadd.f32 %v1521_v2, %v1520_v53  ;;  %v1163_v2 = vmul.f32 %v7549_v54, %v7549_v54  ;;  %v1527_v53 = vsel %vm274_vm1, %v1161_v27, 0.0  ;;  %v5339_v54 = vld [vmem:[%s11073_s0 + $0x3a8] sm:$0xff] }
 0x2ec   :  { %11384 = vst [vmem:[#allocation96_spill] sm:$0xff] %v7576_v1  ;;  %v7585_v27 = vsub.f32 %v5339_v54, %v6534_v7 }
 0x2ed   :  { %v1524_v45 = vadd.f32 %v1523_v34, %v1522_v29  ;;  %v1164_v34 = vmul.f32 %v7558_v20, %v7558_v20  ;;  %v1529_v29 = vsel %vm274_vm1, %v1162_v49, 0.0  ;;  %v5340_v20 = vld [vmem:[%s11073_s0 + $0x3b0] sm:$0xff] }
 0x2ee   :  { %11385 = vst [vmem:[#allocation97_spill] sm:$0xff] %v7585_v27  ;;  %v7594_v49 = vsub.f32 %v5340_v20, %v6534_v7 }
 0x2ef   :  { %v1526_v61 = vadd.f32 %v1525_v4, %v1524_v45  ;;  %v1165_v4 = vmul.f32 %v7567_v39, %v7567_v39  ;;  %v1531_v45 = vsel %vm274_vm1, %v1163_v2, 0.0  ;;  %v5341_v39 = vld [vmem:[%s11073_s0 + $0x3b8] sm:$0xff] }
 0x2f0   :  { %11386 = vst [vmem:[#allocation98_spill] sm:$0xff] %v7594_v49  ;;  %v7603_v2 = vsub.f32 %v5341_v39, %v6534_v7 }
 0x2f1   :  { %v1528_v18 = vadd.f32 %v1527_v53, %v1526_v61  ;;  %v1166_v53 = vmul.f32 %v7576_v1, %v7576_v1  ;;  %v1533_v61 = vsel %vm274_vm1, %v1164_v34, 0.0  ;;  %v5342_v1 = vld [vmem:[%s11073_s0 + $0x3c0] sm:$0xff] }
 0x2f2   :  { %11387 = vst [vmem:[#allocation99_spill] sm:$0xff] %v7603_v2  ;;  %v7612_v34 = vsub.f32 %v5342_v1, %v6534_v7 }
 0x2f3   :  { %v1530_v36 = vadd.f32 %v1529_v29, %v1528_v18  ;;  %v1167_v29 = vmul.f32 %v7585_v27, %v7585_v27  ;;  %v1535_v18 = vsel %vm274_vm1, %v1165_v4, 0.0  ;;  %v5343_v27 = vld [vmem:[%s11073_s0 + $0x3c8] sm:$0xff] }
 0x2f4   :  { %11388 = vst [vmem:[#allocation100_spill] sm:$0xff] %v7612_v34  ;;  %v7621_v4 = vsub.f32 %v5343_v27, %v6534_v7 }
 0x2f5   :  { %v1532_v54 = vadd.f32 %v1531_v45, %v1530_v36  ;;  %v1168_v45 = vmul.f32 %v7594_v49, %v7594_v49  ;;  %v1537_v36 = vsel %vm274_vm1, %v1166_v53, 0.0  ;;  %v5344_v49 = vld [vmem:[%s11073_s0 + $0x3d0] sm:$0xff] }
 0x2f6   :  { %11389 = vst [vmem:[#allocation101_spill] sm:$0xff] %v7621_v4  ;;  %v7630_v53 = vsub.f32 %v5344_v49, %v6534_v7 }
 0x2f7   :  { %v1534_v20 = vadd.f32 %v1533_v61, %v1532_v54  ;;  %v1169_v61 = vmul.f32 %v7603_v2, %v7603_v2  ;;  %v1539_v54 = vsel %vm274_vm1, %v1167_v29, 0.0  ;;  %v5345_v2 = vld [vmem:[%s11073_s0 + $0x3d8] sm:$0xff] }
 0x2f8   :  { %11390 = vst [vmem:[#allocation102_spill] sm:$0xff] %v7630_v53  ;;  %v7639_v29 = vsub.f32 %v5345_v2, %v6534_v7 }
 0x2f9   :  { %v1536_v39 = vadd.f32 %v1535_v18, %v1534_v20  ;;  %v1170_v18 = vmul.f32 %v7612_v34, %v7612_v34  ;;  %v1541_v20 = vsel %vm274_vm1, %v1168_v45, 0.0  ;;  %v5346_v34 = vld [vmem:[%s11073_s0 + $0x3e0] sm:$0xff] }
 0x2fa   :  { %11391 = vst [vmem:[#allocation103_spill] sm:$0xff] %v7639_v29  ;;  %v7648_v45 = vsub.f32 %v5346_v34, %v6534_v7 }
 0x2fb   :  { %v1538_v1 = vadd.f32 %v1537_v36, %v1536_v39  ;;  %v1171_v36 = vmul.f32 %v7621_v4, %v7621_v4  ;;  %v1543_v39 = vsel %vm274_vm1, %v1169_v61, 0.0  ;;  %v5347_v4 = vld [vmem:[%s11073_s0 + $0x3e8] sm:$0xff] }
 0x2fc   :  { %11392 = vst [vmem:[#allocation104_spill] sm:$0xff] %v7648_v45  ;;  %v7657_v61 = vsub.f32 %v5347_v4, %v6534_v7 }
 0x2fd   :  { %v1540_v27 = vadd.f32 %v1539_v54, %v1538_v1  ;;  %v1172_v54 = vmul.f32 %v7630_v53, %v7630_v53  ;;  %v1545_v1 = vsel %vm274_vm1, %v1170_v18, 0.0  ;;  %v5348_v53 = vld [vmem:[%s11073_s0 + $0x3f0] sm:$0xff] }
 0x2fe   :  { %11393 = vst [vmem:[#allocation105_spill] sm:$0xff] %v7657_v61  ;;  %v7666_v18 = vsub.f32 %v5348_v53, %v6534_v7 }
 0x2ff   :  { %v1542_v49 = vadd.f32 %v1541_v20, %v1540_v27  ;;  %v1173_v20 = vmul.f32 %v7639_v29, %v7639_v29  ;;  %v1547_v27 = vsel %vm274_vm1, %v1171_v36, 0.0  ;;  %v5349_v29 = vld [vmem:[%s11073_s0 + $0x3f8] sm:$0xff] }
 0x300   :  { %11394 = vst [vmem:[#allocation106_spill] sm:$0xff] %v7666_v18  ;;  %v7675_v36 = vsub.f32 %v5349_v29, %v6534_v7 }
 0x301   :  { %v1544_v2 = vadd.f32 %v1543_v39, %v1542_v49  ;;  %v1174_v39 = vmul.f32 %v7648_v45, %v7648_v45  ;;  %v1549_v49 = vsel %vm274_vm1, %v1172_v54, 0.0  ;;  %v5350_v45 = vld [vmem:[%s11073_s0 + $0x400] sm:$0xff] }
 0x302   :  { %11395 = vst [vmem:[#allocation107_spill] sm:$0xff] %v7675_v36  ;;  %v7684_v54 = vsub.f32 %v5350_v45, %v6534_v7 }
 0x303   :  { %v1546_v34 = vadd.f32 %v1545_v1, %v1544_v2  ;;  %v1175_v1 = vmul.f32 %v7657_v61, %v7657_v61  ;;  %v1551_v2 = vsel %vm274_vm1, %v1173_v20, 0.0  ;;  %v5351_v61 = vld [vmem:[%s11073_s0 + $0x408] sm:$0xff] }
 0x304   :  { %v7693_v20 = vsub.f32 %v5351_v61, %v6534_v7 }
 0x305   :  { %v1548_v4 = vadd.f32 %v1547_v27, %v1546_v34  ;;  %v1176_v27 = vmul.f32 %v7666_v18, %v7666_v18  ;;  %v1553_v34 = vsel %vm274_vm1, %v1174_v39, 0.0  ;;  %v5352_v18 = vld [vmem:[%s11073_s0 + $0x410] sm:$0xff] }
 0x306   :  { %v7702_v39 = vsub.f32 %v5352_v18, %v6534_v7 }
 0x307   :  { %v1550_v53 = vadd.f32 %v1549_v49, %v1548_v4  ;;  %v1177_v49 = vmul.f32 %v7675_v36, %v7675_v36  ;;  %v1555_v4 = vsel %vm274_vm1, %v1175_v1, 0.0  ;;  %v5353_v36 = vld [vmem:[%s11073_s0 + $0x418] sm:$0xff] }
 0x308   :  { %v7711_v1 = vsub.f32 %v5353_v36, %v6534_v7 }
 0x309   :  { %v1552_v29 = vadd.f32 %v1551_v2, %v1550_v53  ;;  %v1178_v2 = vmul.f32 %v7684_v54, %v7684_v54  ;;  %v1557_v53 = vsel %vm274_vm1, %v1176_v27, 0.0  ;;  %v7720_v27 = vsub.f32 %v5354_v14, %v6534_v7 }
 0x30b   :  { %v1554_v45 = vadd.f32 %v1553_v34, %v1552_v29  ;;  %v1179_v34 = vmul.f32 %v7693_v20, %v7693_v20  ;;  %v1559_v29 = vsel %vm274_vm1, %v1177_v49, 0.0  ;;  %v7729_v49 = vsub.f32 %v5355_v58, %v6534_v7 }
 0x30d   :  { %v1556_v61 = vadd.f32 %v1555_v4, %v1554_v45  ;;  %v1180_v4 = vmul.f32 %v7702_v39, %v7702_v39  ;;  %v1561_v45 = vsel %vm274_vm1, %v1178_v2, 0.0  ;;  %v7738_v2 = vsub.f32 %v5356_v43, %v6534_v7 }
 0x30f   :  { %v1558_v18 = vadd.f32 %v1557_v53, %v1556_v61  ;;  %v1181_v53 = vmul.f32 %v7711_v1, %v7711_v1  ;;  %v1563_v61 = vsel %vm274_vm1, %v1179_v34, 0.0  ;;  %v7747_v34 = vsub.f32 %v5357_v28, %v6534_v7 }
 0x311   :  { %v1560_v36 = vadd.f32 %v1559_v29, %v1558_v18  ;;  %v1182_v29 = vmul.f32 %v7720_v27, %v7720_v27  ;;  %v1565_v18 = vsel %vm274_vm1, %v1180_v4, 0.0  ;;  %v7756_v4 = vsub.f32 %v5358_v12, %v6534_v7 }
 0x313   :  { %v1562_v14 = vadd.f32 %v1561_v45, %v1560_v36  ;;  %v1183_v45 = vmul.f32 %v7729_v49, %v7729_v49  ;;  %v1567_v36 = vsel %vm274_vm1, %v1181_v53, 0.0  ;;  %v7765_v53 = vsub.f32 %v5359_v59, %v6534_v7 }
 0x315   :  { %v1564_v58 = vadd.f32 %v1563_v61, %v1562_v14  ;;  %v1184_v61 = vmul.f32 %v7738_v2, %v7738_v2  ;;  %v1569_v14 = vsel %vm274_vm1, %v1182_v29, 0.0  ;;  %v7774_v29 = vsub.f32 %v5360_v46, %v6534_v7 }
 0x317   :  { %v1566_v43 = vadd.f32 %v1565_v18, %v1564_v58  ;;  %v1185_v18 = vmul.f32 %v7747_v34, %v7747_v34  ;;  %v1571_v58 = vsel %vm274_vm1, %v1183_v45, 0.0  ;;  %v7783_v45 = vsub.f32 %v5361_v35, %v6534_v7 }
 0x319   :  { %v1568_v28 = vadd.f32 %v1567_v36, %v1566_v43  ;;  %v1186_v36 = vmul.f32 %v7756_v4, %v7756_v4  ;;  %v1573_v43 = vsel %vm274_vm1, %v1184_v61, 0.0  ;;  %v7792_v61 = vsub.f32 %v5362_v23, %v6534_v7 }
 0x31b   :  { %v1570_v12 = vadd.f32 %v1569_v14, %v1568_v28  ;;  %v1187_v14 = vmul.f32 %v7765_v53, %v7765_v53  ;;  %v1575_v28 = vsel %vm274_vm1, %v1185_v18, 0.0  ;;  %v7801_v18 = vsub.f32 %v5363_v6, %v6534_v7 }
 0x31d   :  { %v1572_v59 = vadd.f32 %v1571_v58, %v1570_v12  ;;  %v1188_v58 = vmul.f32 %v7774_v29, %v7774_v29  ;;  %v1577_v12 = vsel %vm274_vm1, %v1186_v36, 0.0  ;;  %v7810_v36 = vsub.f32 %v5364_v60, %v6534_v7 }
 0x31f   :  { %v1574_v46 = vadd.f32 %v1573_v43, %v1572_v59  ;;  %v1189_v43 = vmul.f32 %v7783_v45, %v7783_v45  ;;  %v1579_v59 = vsel %vm274_vm1, %v1187_v14, 0.0  ;;  %v7819_v14 = vsub.f32 %v5365_v51, %v6534_v7 }
 0x321   :  { %v1576_v35 = vadd.f32 %v1575_v28, %v1574_v46  ;;  %v1190_v28 = vmul.f32 %v7792_v61, %v7792_v61  ;;  %v1581_v46 = vsel %vm274_vm1, %v1188_v58, 0.0  ;;  %v7828_v58 = vsub.f32 %v5366_v41, %v6534_v7 }
 0x323   :  { %v1578_v23 = vadd.f32 %v1577_v12, %v1576_v35  ;;  %v1191_v12 = vmul.f32 %v7801_v18, %v7801_v18  ;;  %v1583_v35 = vsel %vm274_vm1, %v1189_v43, 0.0  ;;  %v7837_v43 = vsub.f32 %v5367_v30, %v6534_v7 }
 0x325   :  { %v1580_v6 = vadd.f32 %v1579_v59, %v1578_v23  ;;  %v1192_v59 = vmul.f32 %v7810_v36, %v7810_v36  ;;  %v1585_v23 = vsel %vm274_vm1, %v1190_v28, 0.0  ;;  %v7846_v28 = vsub.f32 %v5368_v21, %v6534_v7 }
 0x327   :  { %v1582_v60 = vadd.f32 %v1581_v46, %v1580_v6  ;;  %v1193_v46 = vmul.f32 %v7819_v14, %v7819_v14  ;;  %v1587_v6 = vsel %vm274_vm1, %v1191_v12, 0.0  ;;  %v7855_v12 = vsub.f32 %v5369_v8, %v6534_v7 }
 0x329   :  { %v1584_v51 = vadd.f32 %v1583_v35, %v1582_v60  ;;  %v1194_v35 = vmul.f32 %v7828_v58, %v7828_v58  ;;  %v1589_v60 = vsel %vm274_vm1, %v1192_v59, 0.0  ;;  %v7864_v59 = vsub.f32 %v5370_v0, %v6534_v7 }
 0x32b   :  { %v1586_v41 = vadd.f32 %v1585_v23, %v1584_v51  ;;  %v1195_v23 = vmul.f32 %v7837_v43, %v7837_v43  ;;  %v1591_v51 = vsel %vm274_vm1, %v1193_v46, 0.0  ;;  %v7873_v46 = vsub.f32 %v5371_v55, %v6534_v7 }
 0x32d   :  { %v1588_v30 = vadd.f32 %v1587_v6, %v1586_v41  ;;  %v1196_v6 = vmul.f32 %v7846_v28, %v7846_v28  ;;  %v1593_v41 = vsel %vm274_vm1, %v1194_v35, 0.0  ;;  %11396 = vst [vmem:[#allocation108_spill] sm:$0xff] %v7873_v46  ;;  %v7882_v35 = vsub.f32 %v5372_v48, %v6534_v7 }
 0x32f   :  { %v1590_v21 = vadd.f32 %v1589_v60, %v1588_v30  ;;  %v1197_v60 = vmul.f32 %v7855_v12, %v7855_v12  ;;  %v1595_v30 = vsel %vm274_vm1, %v1195_v23, 0.0  ;;  %11397 = vst [vmem:[#allocation109_spill] sm:$0xff] %v7882_v35  ;;  %v7891_v23 = vsub.f32 %v5373_v40, %v6534_v7 }
 0x331   :  { %v1592_v8 = vadd.f32 %v1591_v51, %v1590_v21  ;;  %v1198_v51 = vmul.f32 %v7864_v59, %v7864_v59  ;;  %v1597_v21 = vsel %vm274_vm1, %v1196_v6, 0.0  ;;  %11398 = vst [vmem:[#allocation110_spill] sm:$0xff] %v7891_v23  ;;  %v7900_v6 = vsub.f32 %v5374_v33, %v6534_v7 }
 0x333   :  { %v1594_v0 = vadd.f32 %v1593_v41, %v1592_v8  ;;  %v1199_v41 = vmul.f32 %v7873_v46, %v7873_v46  ;;  %v1599_v8 = vsel %vm274_vm1, %v1197_v60, 0.0  ;;  %11399 = vst [vmem:[#allocation111_spill] sm:$0xff] %v7900_v6  ;;  %v7909_v60 = vsub.f32 %v5375_v24, %v6534_v7 }
 0x335   :  { %v1596_v55 = vadd.f32 %v1595_v30, %v1594_v0  ;;  %v1200_v30 = vmul.f32 %v7882_v35, %v7882_v35  ;;  %v1601_v0 = vsel %vm274_vm1, %v1198_v51, 0.0  ;;  %11400 = vst [vmem:[#allocation112_spill] sm:$0xff] %v7909_v60  ;;  %v7918_v51 = vsub.f32 %v5376_v16, %v6534_v7 }
 0x337   :  { %v1598_v48 = vadd.f32 %v1597_v21, %v1596_v55  ;;  %v1201_v21 = vmul.f32 %v7891_v23, %v7891_v23  ;;  %v1603_v55 = vsel %vm274_vm1, %v1199_v41, 0.0  ;;  %11401 = vst [vmem:[#allocation113_spill] sm:$0xff] %v7918_v51  ;;  %v7927_v41 = vsub.f32 %v5377_v5, %v6534_v7 }
 0x339   :  { %v1600_v40 = vadd.f32 %v1599_v8, %v1598_v48  ;;  %v1202_v8 = vmul.f32 %v7900_v6, %v7900_v6  ;;  %v1605_v48 = vsel %vm274_vm1, %v1200_v30, 0.0  ;;  %11402 = vst [vmem:[#allocation114_spill] sm:$0xff] %v7927_v41  ;;  %v5378_v6 = vld [vmem:[%s11073_s0 + $0x4e0] sm:$0xff] }
 0x33a   :  { %v7936_v30 = vsub.f32 %v5378_v6, %v6534_v7 }
 0x33b   :  { %v1602_v33 = vadd.f32 %v1601_v0, %v1600_v40  ;;  %v1203_v0 = vmul.f32 %v7909_v60, %v7909_v60  ;;  %v1607_v40 = vsel %vm274_vm1, %v1201_v21, 0.0  ;;  %v5379_v60 = vld [vmem:[%s11073_s0 + $0x4e8] sm:$0xff] }
 0x33c   :  { %11403 = vst [vmem:[#allocation115_spill] sm:$0xff] %v7936_v30  ;;  %v7945_v21 = vsub.f32 %v5379_v60, %v6534_v7 }
 0x33d   :  { %v1604_v24 = vadd.f32 %v1603_v55, %v1602_v33  ;;  %v1204_v55 = vmul.f32 %v7918_v51, %v7918_v51  ;;  %v1609_v33 = vsel %vm274_vm1, %v1202_v8, 0.0  ;;  %v5380_v51 = vld [vmem:[%s11073_s0 + $0x4f0] sm:$0xff] }
 0x33e   :  { %11404 = vst [vmem:[#allocation116_spill] sm:$0xff] %v7945_v21  ;;  %v7954_v8 = vsub.f32 %v5380_v51, %v6534_v7 }
 0x33f   :  { %v1606_v16 = vadd.f32 %v1605_v48, %v1604_v24  ;;  %v1205_v48 = vmul.f32 %v7927_v41, %v7927_v41  ;;  %v1611_v24 = vsel %vm274_vm1, %v1203_v0, 0.0  ;;  %v5381_v41 = vld [vmem:[%s11073_s0 + $0x4f8] sm:$0xff] }
 0x340   :  { %11405 = vst [vmem:[#allocation117_spill] sm:$0xff] %v7954_v8  ;;  %v7963_v0 = vsub.f32 %v5381_v41, %v6534_v7 }
 0x341   :  { %v1608_v5 = vadd.f32 %v1607_v40, %v1606_v16  ;;  %v1206_v40 = vmul.f32 %v7936_v30, %v7936_v30  ;;  %v1613_v16 = vsel %vm274_vm1, %v1204_v55, 0.0  ;;  %v5382_v30 = vld [vmem:[%s11073_s0 + $0x500] sm:$0xff] }
 0x342   :  { %11406 = vst [vmem:[#allocation118_spill] sm:$0xff] %v7963_v0  ;;  %v7972_v55 = vsub.f32 %v5382_v30, %v6534_v7 }
 0x343   :  { %v1610_v6 = vadd.f32 %v1609_v33, %v1608_v5  ;;  %v1207_v33 = vmul.f32 %v7945_v21, %v7945_v21  ;;  %v1615_v5 = vsel %vm274_vm1, %v1205_v48, 0.0  ;;  %v5383_v21 = vld [vmem:[%s11073_s0 + $0x508] sm:$0xff] }
 0x344   :  { %11407 = vst [vmem:[#allocation119_spill] sm:$0xff] %v7972_v55  ;;  %v7981_v48 = vsub.f32 %v5383_v21, %v6534_v7 }
 0x345   :  { %v1612_v60 = vadd.f32 %v1611_v24, %v1610_v6  ;;  %v1208_v24 = vmul.f32 %v7954_v8, %v7954_v8  ;;  %v1617_v6 = vsel %vm274_vm1, %v1206_v40, 0.0  ;;  %v5384_v8 = vld [vmem:[%s11073_s0 + $0x510] sm:$0xff] }
 0x346   :  { %11408 = vst [vmem:[#allocation120_spill] sm:$0xff] %v7981_v48  ;;  %v7990_v40 = vsub.f32 %v5384_v8, %v6534_v7 }
 0x347   :  { %v1614_v51 = vadd.f32 %v1613_v16, %v1612_v60  ;;  %v1209_v16 = vmul.f32 %v7963_v0, %v7963_v0  ;;  %v1619_v60 = vsel %vm274_vm1, %v1207_v33, 0.0  ;;  %v5385_v0 = vld [vmem:[%s11073_s0 + $0x518] sm:$0xff] }
 0x348   :  { %11409 = vst [vmem:[#allocation121_spill] sm:$0xff] %v7990_v40  ;;  %v7999_v33 = vsub.f32 %v5385_v0, %v6534_v7 }
 0x349   :  { %v1616_v41 = vadd.f32 %v1615_v5, %v1614_v51  ;;  %v1210_v5 = vmul.f32 %v7972_v55, %v7972_v55  ;;  %v1621_v51 = vsel %vm274_vm1, %v1208_v24, 0.0  ;;  %v5386_v55 = vld [vmem:[%s11073_s0 + $0x520] sm:$0xff] }
 0x34a   :  { %11410 = vst [vmem:[#allocation122_spill] sm:$0xff] %v7999_v33  ;;  %v8008_v24 = vsub.f32 %v5386_v55, %v6534_v7 }
 0x34b   :  { %v1618_v30 = vadd.f32 %v1617_v6, %v1616_v41  ;;  %v1211_v6 = vmul.f32 %v7981_v48, %v7981_v48  ;;  %v1623_v41 = vsel %vm274_vm1, %v1209_v16, 0.0  ;;  %v5387_v48 = vld [vmem:[%s11073_s0 + $0x528] sm:$0xff] }
 0x34c   :  { %11411 = vst [vmem:[#allocation123_spill] sm:$0xff] %v8008_v24  ;;  %v8017_v16 = vsub.f32 %v5387_v48, %v6534_v7 }
 0x34d   :  { %v1620_v21 = vadd.f32 %v1619_v60, %v1618_v30  ;;  %v1212_v60 = vmul.f32 %v7990_v40, %v7990_v40  ;;  %v1625_v30 = vsel %vm274_vm1, %v1210_v5, 0.0  ;;  %v5388_v40 = vld [vmem:[%s11073_s0 + $0x530] sm:$0xff] }
 0x34e   :  { %11412 = vst [vmem:[#allocation124_spill] sm:$0xff] %v8017_v16  ;;  %v8026_v5 = vsub.f32 %v5388_v40, %v6534_v7 }
 0x34f   :  { %v1622_v8 = vadd.f32 %v1621_v51, %v1620_v21  ;;  %v1213_v51 = vmul.f32 %v7999_v33, %v7999_v33  ;;  %v1627_v21 = vsel %vm274_vm1, %v1211_v6, 0.0  ;;  %v5389_v33 = vld [vmem:[%s11073_s0 + $0x538] sm:$0xff] }
 0x350   :  { %11413 = vst [vmem:[#allocation125_spill] sm:$0xff] %v8026_v5  ;;  %v8035_v6 = vsub.f32 %v5389_v33, %v6534_v7 }
 0x351   :  { %v1624_v0 = vadd.f32 %v1623_v41, %v1622_v8  ;;  %v1214_v41 = vmul.f32 %v8008_v24, %v8008_v24  ;;  %v1629_v8 = vsel %vm274_vm1, %v1212_v60, 0.0  ;;  %v5390_v24 = vld [vmem:[%s11073_s0 + $0x540] sm:$0xff] }
 0x352   :  { %11414 = vst [vmem:[#allocation126_spill] sm:$0xff] %v8035_v6  ;;  %v8044_v60 = vsub.f32 %v5390_v24, %v6534_v7 }
 0x353   :  { %v1626_v55 = vadd.f32 %v1625_v30, %v1624_v0  ;;  %v1215_v30 = vmul.f32 %v8017_v16, %v8017_v16  ;;  %v1631_v0 = vsel %vm274_vm1, %v1213_v51, 0.0  ;;  %v5391_v16 = vld [vmem:[%s11073_s0 + $0x548] sm:$0xff] }
 0x354   :  { %11415 = vst [vmem:[#allocation127_spill] sm:$0xff] %v8044_v60  ;;  %v8053_v51 = vsub.f32 %v5391_v16, %v6534_v7 }
 0x355   :  { %v1628_v48 = vadd.f32 %v1627_v21, %v1626_v55  ;;  %v1216_v21 = vmul.f32 %v8026_v5, %v8026_v5  ;;  %v1633_v55 = vsel %vm274_vm1, %v1214_v41, 0.0  ;;  %v5392_v5 = vld [vmem:[%s11073_s0 + $0x550] sm:$0xff] }
 0x356   :  { %11416 = vst [vmem:[#allocation128_spill] sm:$0xff] %v8053_v51  ;;  %v8062_v41 = vsub.f32 %v5392_v5, %v6534_v7 }
 0x357   :  { %v1630_v40 = vadd.f32 %v1629_v8, %v1628_v48  ;;  %v1217_v8 = vmul.f32 %v8035_v6, %v8035_v6  ;;  %v1635_v48 = vsel %vm274_vm1, %v1215_v30, 0.0  ;;  %v5393_v6 = vld [vmem:[%s11073_s0 + $0x558] sm:$0xff] }
 0x358   :  { %11417 = vst [vmem:[#allocation129_spill] sm:$0xff] %v8062_v41  ;;  %v8071_v30 = vsub.f32 %v5393_v6, %v6534_v7 }
 0x359   :  { %v1632_v33 = vadd.f32 %v1631_v0, %v1630_v40  ;;  %v1218_v0 = vmul.f32 %v8044_v60, %v8044_v60  ;;  %v1637_v40 = vsel %vm274_vm1, %v1216_v21, 0.0  ;;  %v5394_v60 = vld [vmem:[%s11073_s0 + $0x560] sm:$0xff] }
 0x35a   :  { %11418 = vst [vmem:[#allocation130_spill] sm:$0xff] %v8071_v30  ;;  %v8080_v21 = vsub.f32 %v5394_v60, %v6534_v7 }
 0x35b   :  { %v1634_v24 = vadd.f32 %v1633_v55, %v1632_v33  ;;  %v1219_v55 = vmul.f32 %v8053_v51, %v8053_v51  ;;  %v1639_v33 = vsel %vm274_vm1, %v1217_v8, 0.0  ;;  %v5395_v51 = vld [vmem:[%s11073_s0 + $0x568] sm:$0xff] }
 0x35c   :  { %11419 = vst [vmem:[#allocation131_spill] sm:$0xff] %v8080_v21  ;;  %v8089_v8 = vsub.f32 %v5395_v51, %v6534_v7 }
 0x35d   :  { %v1636_v16 = vadd.f32 %v1635_v48, %v1634_v24  ;;  %v1220_v48 = vmul.f32 %v8062_v41, %v8062_v41  ;;  %v1641_v24 = vsel %vm274_vm1, %v1218_v0, 0.0  ;;  %v5396_v41 = vld [vmem:[%s11073_s0 + $0x570] sm:$0xff] }
 0x35e   :  { %11420 = vst [vmem:[#allocation132_spill] sm:$0xff] %v8089_v8  ;;  %v8098_v0 = vsub.f32 %v5396_v41, %v6534_v7 }
 0x35f   :  { %v1638_v5 = vadd.f32 %v1637_v40, %v1636_v16  ;;  %v1221_v40 = vmul.f32 %v8071_v30, %v8071_v30  ;;  %v1643_v16 = vsel %vm274_vm1, %v1219_v55, 0.0  ;;  %v5397_v30 = vld [vmem:[%s11073_s0 + $0x578] sm:$0xff] }
 0x360   :  { %11421 = vst [vmem:[#allocation133_spill] sm:$0xff] %v8098_v0  ;;  %v8107_v55 = vsub.f32 %v5397_v30, %v6534_v7 }
 0x361   :  { %v1640_v6 = vadd.f32 %v1639_v33, %v1638_v5  ;;  %v1222_v33 = vmul.f32 %v8080_v21, %v8080_v21  ;;  %v1645_v5 = vsel %vm274_vm1, %v1220_v48, 0.0  ;;  %v5398_v21 = vld [vmem:[%s11073_s0 + $0x580] sm:$0xff] }
 0x362   :  { %11422 = vst [vmem:[#allocation134_spill] sm:$0xff] %v8107_v55  ;;  %v8116_v48 = vsub.f32 %v5398_v21, %v6534_v7 }
 0x363   :  { %v1642_v60 = vadd.f32 %v1641_v24, %v1640_v6  ;;  %v1223_v24 = vmul.f32 %v8089_v8, %v8089_v8  ;;  %v1647_v6 = vsel %vm274_vm1, %v1221_v40, 0.0  ;;  %v5399_v8 = vld [vmem:[%s11073_s0 + $0x588] sm:$0xff] }
 0x364   :  { %11423 = vst [vmem:[#allocation135_spill] sm:$0xff] %v8116_v48  ;;  %v8125_v40 = vsub.f32 %v5399_v8, %v6534_v7 }
 0x365   :  { %v1644_v51 = vadd.f32 %v1643_v16, %v1642_v60  ;;  %v1224_v16 = vmul.f32 %v8098_v0, %v8098_v0  ;;  %v1649_v60 = vsel %vm274_vm1, %v1222_v33, 0.0  ;;  %v5400_v0 = vld [vmem:[%s11073_s0 + $0x590] sm:$0xff] }
 0x366   :  { %11424 = vst [vmem:[#allocation136_spill] sm:$0xff] %v8125_v40  ;;  %v8134_v33 = vsub.f32 %v5400_v0, %v6534_v7 }
 0x367   :  { %v1646_v41 = vadd.f32 %v1645_v5, %v1644_v51  ;;  %v1225_v5 = vmul.f32 %v8107_v55, %v8107_v55  ;;  %v1651_v51 = vsel %vm274_vm1, %v1223_v24, 0.0  ;;  %v5401_v55 = vld [vmem:[%s11073_s0 + $0x598] sm:$0xff] }
 0x368   :  { %11425 = vst [vmem:[#allocation137_spill] sm:$0xff] %v8134_v33  ;;  %v8143_v24 = vsub.f32 %v5401_v55, %v6534_v7 }
 0x369   :  { %v1648_v30 = vadd.f32 %v1647_v6, %v1646_v41  ;;  %v1226_v6 = vmul.f32 %v8116_v48, %v8116_v48  ;;  %v1653_v41 = vsel %vm274_vm1, %v1224_v16, 0.0  ;;  %v5402_v48 = vld [vmem:[%s11073_s0 + $0x5a0] sm:$0xff] }
 0x36a   :  { %11426 = vst [vmem:[#allocation138_spill] sm:$0xff] %v8143_v24  ;;  %v8152_v16 = vsub.f32 %v5402_v48, %v6534_v7 }
 0x36b   :  { %v1650_v21 = vadd.f32 %v1649_v60, %v1648_v30  ;;  %v1227_v60 = vmul.f32 %v8125_v40, %v8125_v40  ;;  %v1655_v30 = vsel %vm274_vm1, %v1225_v5, 0.0  ;;  %v5403_v40 = vld [vmem:[%s11073_s0 + $0x5a8] sm:$0xff] }
 0x36c   :  { %11427 = vst [vmem:[#allocation139_spill] sm:$0xff] %v8152_v16  ;;  %v8161_v5 = vsub.f32 %v5403_v40, %v6534_v7 }
 0x36d   :  { %v1652_v8 = vadd.f32 %v1651_v51, %v1650_v21  ;;  %v1228_v51 = vmul.f32 %v8134_v33, %v8134_v33  ;;  %v1657_v21 = vsel %vm274_vm1, %v1226_v6, 0.0  ;;  %v5404_v33 = vld [vmem:[%s11073_s0 + $0x5b0] sm:$0xff] }
 0x36e   :  { %11428 = vst [vmem:[#allocation140_spill] sm:$0xff] %v8161_v5  ;;  %v8170_v6 = vsub.f32 %v5404_v33, %v6534_v7 }
 0x36f   :  { %v1654_v0 = vadd.f32 %v1653_v41, %v1652_v8  ;;  %v1229_v41 = vmul.f32 %v8143_v24, %v8143_v24  ;;  %v1659_v8 = vsel %vm274_vm1, %v1227_v60, 0.0  ;;  %v5405_v24 = vld [vmem:[%s11073_s0 + $0x5b8] sm:$0xff] }
 0x370   :  { %11429 = vst [vmem:[#allocation141_spill] sm:$0xff] %v8170_v6  ;;  %v8179_v60 = vsub.f32 %v5405_v24, %v6534_v7 }
 0x371   :  { %v1656_v55 = vadd.f32 %v1655_v30, %v1654_v0  ;;  %v1230_v30 = vmul.f32 %v8152_v16, %v8152_v16  ;;  %v1661_v0 = vsel %vm274_vm1, %v1228_v51, 0.0  ;;  %v5406_v16 = vld [vmem:[%s11073_s0 + $0x5c0] sm:$0xff] }
 0x372   :  { %11430 = vst [vmem:[#allocation142_spill] sm:$0xff] %v8179_v60  ;;  %v8188_v51 = vsub.f32 %v5406_v16, %v6534_v7 }
 0x373   :  { %v1658_v48 = vadd.f32 %v1657_v21, %v1656_v55  ;;  %v1231_v21 = vmul.f32 %v8161_v5, %v8161_v5  ;;  %v1663_v55 = vsel %vm274_vm1, %v1229_v41, 0.0  ;;  %v5407_v5 = vld [vmem:[%s11073_s0 + $0x5c8] sm:$0xff] }
 0x374   :  { %11431 = vst [vmem:[#allocation143_spill] sm:$0xff] %v8188_v51  ;;  %v8197_v41 = vsub.f32 %v5407_v5, %v6534_v7 }
 0x375   :  { %v1660_v40 = vadd.f32 %v1659_v8, %v1658_v48  ;;  %v1232_v8 = vmul.f32 %v8170_v6, %v8170_v6  ;;  %v1665_v48 = vsel %vm274_vm1, %v1230_v30, 0.0  ;;  %v5408_v6 = vld [vmem:[%s11073_s0 + $0x5d0] sm:$0xff] }
 0x376   :  { %11432 = vst [vmem:[#allocation144_spill] sm:$0xff] %v8197_v41  ;;  %v8206_v30 = vsub.f32 %v5408_v6, %v6534_v7 }
 0x377   :  { %v1662_v33 = vadd.f32 %v1661_v0, %v1660_v40  ;;  %v1233_v0 = vmul.f32 %v8179_v60, %v8179_v60  ;;  %v1667_v40 = vsel %vm274_vm1, %v1231_v21, 0.0  ;;  %v5409_v60 = vld [vmem:[%s11073_s0 + $0x5d8] sm:$0xff] }
 0x378   :  { %11433 = vst [vmem:[#allocation145_spill] sm:$0xff] %v8206_v30  ;;  %v8215_v21 = vsub.f32 %v5409_v60, %v6534_v7 }
 0x379   :  { %v1664_v24 = vadd.f32 %v1663_v55, %v1662_v33  ;;  %v1234_v55 = vmul.f32 %v8188_v51, %v8188_v51  ;;  %v1669_v33 = vsel %vm274_vm1, %v1232_v8, 0.0  ;;  %v5410_v51 = vld [vmem:[%s11073_s0 + $0x5e0] sm:$0xff] }
 0x37a   :  { %11434 = vst [vmem:[#allocation146_spill] sm:$0xff] %v8215_v21  ;;  %v8224_v8 = vsub.f32 %v5410_v51, %v6534_v7 }
 0x37b   :  { %v1666_v16 = vadd.f32 %v1665_v48, %v1664_v24  ;;  %v1235_v48 = vmul.f32 %v8197_v41, %v8197_v41  ;;  %v1671_v24 = vsel %vm274_vm1, %v1233_v0, 0.0  ;;  %v5411_v41 = vld [vmem:[%s11073_s0 + $0x5e8] sm:$0xff] }
 0x37c   :  { %11435 = vst [vmem:[#allocation147_spill] sm:$0xff] %v8224_v8  ;;  %v8233_v0 = vsub.f32 %v5411_v41, %v6534_v7 }
 0x37d   :  { %v1668_v5 = vadd.f32 %v1667_v40, %v1666_v16  ;;  %v1236_v40 = vmul.f32 %v8206_v30, %v8206_v30  ;;  %v1673_v16 = vsel %vm274_vm1, %v1234_v55, 0.0  ;;  %v5412_v30 = vld [vmem:[%s11073_s0 + $0x5f0] sm:$0xff] }
 0x37e   :  { %11436 = vst [vmem:[#allocation148_spill] sm:$0xff] %v8233_v0  ;;  %v8242_v55 = vsub.f32 %v5412_v30, %v6534_v7 }
 0x37f   :  { %v1670_v6 = vadd.f32 %v1669_v33, %v1668_v5  ;;  %v1237_v33 = vmul.f32 %v8215_v21, %v8215_v21  ;;  %v1675_v5 = vsel %vm274_vm1, %v1235_v48, 0.0  ;;  %v5413_v21 = vld [vmem:[%s11073_s0 + $0x5f8] sm:$0xff] }
 0x380   :  { %11437 = vst [vmem:[#allocation149_spill] sm:$0xff] %v8242_v55  ;;  %v8251_v48 = vsub.f32 %v5413_v21, %v6534_v7 }
 0x381   :  { %v1672_v60 = vadd.f32 %v1671_v24, %v1670_v6  ;;  %v1238_v24 = vmul.f32 %v8224_v8, %v8224_v8  ;;  %v1677_v6 = vsel %vm274_vm1, %v1236_v40, 0.0  ;;  %v5414_v8 = vld [vmem:[%s11073_s0 + $0x600] sm:$0xff] }
 0x382   :  { %11438 = vst [vmem:[#allocation150_spill] sm:$0xff] %v8251_v48  ;;  %v8260_v40 = vsub.f32 %v5414_v8, %v6534_v7 }
 0x383   :  { %v1674_v51 = vadd.f32 %v1673_v16, %v1672_v60  ;;  %v1239_v16 = vmul.f32 %v8233_v0, %v8233_v0  ;;  %v1679_v60 = vsel %vm274_vm1, %v1237_v33, 0.0  ;;  %v5415_v0 = vld [vmem:[%s11073_s0 + $0x608] sm:$0xff] }
 0x384   :  { %11439 = vst [vmem:[#allocation151_spill] sm:$0xff] %v8260_v40  ;;  %v8269_v33 = vsub.f32 %v5415_v0, %v6534_v7 }
 0x385   :  { %v1676_v41 = vadd.f32 %v1675_v5, %v1674_v51  ;;  %v1240_v5 = vmul.f32 %v8242_v55, %v8242_v55  ;;  %v1681_v51 = vsel %vm274_vm1, %v1238_v24, 0.0  ;;  %v5416_v55 = vld [vmem:[%s11073_s0 + $0x610] sm:$0xff] }
 0x386   :  { %11440 = vst [vmem:[#allocation152_spill] sm:$0xff] %v8269_v33  ;;  %v8278_v24 = vsub.f32 %v5416_v55, %v6534_v7 }
 0x387   :  { %v1678_v30 = vadd.f32 %v1677_v6, %v1676_v41  ;;  %v1241_v6 = vmul.f32 %v8251_v48, %v8251_v48  ;;  %v1683_v41 = vsel %vm274_vm1, %v1239_v16, 0.0  ;;  %v5417_v48 = vld [vmem:[%s11073_s0 + $0x618] sm:$0xff] }
 0x388   :  { %11441 = vst [vmem:[#allocation153_spill] sm:$0xff] %v8278_v24  ;;  %v8287_v16 = vsub.f32 %v5417_v48, %v6534_v7 }
 0x389   :  { %v1680_v21 = vadd.f32 %v1679_v60, %v1678_v30  ;;  %v1242_v60 = vmul.f32 %v8260_v40, %v8260_v40  ;;  %v1685_v30 = vsel %vm274_vm1, %v1240_v5, 0.0  ;;  %v5418_v40 = vld [vmem:[%s11073_s0 + $0x620] sm:$0xff] }
 0x38a   :  { %11442 = vst [vmem:[#allocation154_spill] sm:$0xff] %v8287_v16  ;;  %v8296_v5 = vsub.f32 %v5418_v40, %v6534_v7 }
 0x38b   :  { %v1682_v8 = vadd.f32 %v1681_v51, %v1680_v21  ;;  %v1243_v51 = vmul.f32 %v8269_v33, %v8269_v33  ;;  %v1687_v21 = vsel %vm274_vm1, %v1241_v6, 0.0  ;;  %v5419_v33 = vld [vmem:[%s11073_s0 + $0x628] sm:$0xff] }
 0x38c   :  { %11443 = vst [vmem:[#allocation155_spill] sm:$0xff] %v8296_v5  ;;  %v8305_v6 = vsub.f32 %v5419_v33, %v6534_v7 }
 0x38d   :  { %v1684_v0 = vadd.f32 %v1683_v41, %v1682_v8  ;;  %v1244_v41 = vmul.f32 %v8278_v24, %v8278_v24  ;;  %v1689_v8 = vsel %vm274_vm1, %v1242_v60, 0.0  ;;  %v5420_v24 = vld [vmem:[%s11073_s0 + $0x630] sm:$0xff] }
 0x38e   :  { %11444 = vst [vmem:[#allocation156_spill] sm:$0xff] %v8305_v6  ;;  %v8314_v60 = vsub.f32 %v5420_v24, %v6534_v7 }
 0x38f   :  { %v1686_v55 = vadd.f32 %v1685_v30, %v1684_v0  ;;  %v1245_v30 = vmul.f32 %v8287_v16, %v8287_v16  ;;  %v1691_v0 = vsel %vm274_vm1, %v1243_v51, 0.0  ;;  %v5421_v16 = vld [vmem:[%s11073_s0 + $0x638] sm:$0xff] }
 0x390   :  { %11445 = vst [vmem:[#allocation157_spill] sm:$0xff] %v8314_v60  ;;  %v8323_v51 = vsub.f32 %v5421_v16, %v6534_v7 }
 0x391   :  { %v1688_v48 = vadd.f32 %v1687_v21, %v1686_v55  ;;  %v1246_v21 = vmul.f32 %v8296_v5, %v8296_v5  ;;  %v1693_v55 = vsel %vm274_vm1, %v1244_v41, 0.0  ;;  %v5422_v5 = vld [vmem:[%s11073_s0 + $0x640] sm:$0xff] }
 0x392   :  { %11446 = vst [vmem:[#allocation158_spill] sm:$0xff] %v8323_v51  ;;  %v8332_v41 = vsub.f32 %v5422_v5, %v6534_v7 }
 0x393   :  { %v1690_v40 = vadd.f32 %v1689_v8, %v1688_v48  ;;  %v1247_v8 = vmul.f32 %v8305_v6, %v8305_v6  ;;  %v1695_v48 = vsel %vm274_vm1, %v1245_v30, 0.0  ;;  %v5423_v6 = vld [vmem:[%s11073_s0 + $0x648] sm:$0xff] }
 0x394   :  { %11447 = vst [vmem:[#allocation159_spill] sm:$0xff] %v8332_v41  ;;  %v8341_v30 = vsub.f32 %v5423_v6, %v6534_v7 }
 0x395   :  { %v1692_v33 = vadd.f32 %v1691_v0, %v1690_v40  ;;  %v1248_v0 = vmul.f32 %v8314_v60, %v8314_v60  ;;  %v1697_v40 = vsel %vm274_vm1, %v1246_v21, 0.0  ;;  %v5424_v60 = vld [vmem:[%s11073_s0 + $0x650] sm:$0xff] }
 0x396   :  { %11448 = vst [vmem:[#allocation160_spill] sm:$0xff] %v8341_v30  ;;  %v8350_v21 = vsub.f32 %v5424_v60, %v6534_v7 }
 0x397   :  { %v1694_v24 = vadd.f32 %v1693_v55, %v1692_v33  ;;  %v1249_v55 = vmul.f32 %v8323_v51, %v8323_v51  ;;  %v1699_v33 = vsel %vm274_vm1, %v1247_v8, 0.0  ;;  %v5425_v51 = vld [vmem:[%s11073_s0 + $0x658] sm:$0xff] }
 0x398   :  { %11449 = vst [vmem:[#allocation161_spill] sm:$0xff] %v8350_v21  ;;  %v8359_v8 = vsub.f32 %v5425_v51, %v6534_v7 }
 0x399   :  { %v1696_v16 = vadd.f32 %v1695_v48, %v1694_v24  ;;  %v1250_v48 = vmul.f32 %v8332_v41, %v8332_v41  ;;  %v1701_v24 = vsel %vm274_vm1, %v1248_v0, 0.0  ;;  %v5426_v41 = vld [vmem:[%s11073_s0 + $0x660] sm:$0xff] }
 0x39a   :  { %11450 = vst [vmem:[#allocation162_spill] sm:$0xff] %v8359_v8  ;;  %v8368_v0 = vsub.f32 %v5426_v41, %v6534_v7 }
 0x39b   :  { %v1698_v5 = vadd.f32 %v1697_v40, %v1696_v16  ;;  %v1251_v40 = vmul.f32 %v8341_v30, %v8341_v30  ;;  %v1703_v16 = vsel %vm274_vm1, %v1249_v55, 0.0  ;;  %v5427_v30 = vld [vmem:[%s11073_s0 + $0x668] sm:$0xff] }
 0x39c   :  { %11451 = vst [vmem:[#allocation163_spill] sm:$0xff] %v8368_v0  ;;  %v8377_v55 = vsub.f32 %v5427_v30, %v6534_v7 }
 0x39d   :  { %v1700_v6 = vadd.f32 %v1699_v33, %v1698_v5  ;;  %v1252_v33 = vmul.f32 %v8350_v21, %v8350_v21  ;;  %v1705_v5 = vsel %vm274_vm1, %v1250_v48, 0.0  ;;  %v5428_v21 = vld [vmem:[%s11073_s0 + $0x670] sm:$0xff] }
 0x39e   :  { %11452 = vst [vmem:[#allocation164_spill] sm:$0xff] %v8377_v55  ;;  %v8386_v48 = vsub.f32 %v5428_v21, %v6534_v7 }
 0x39f   :  { %v1702_v60 = vadd.f32 %v1701_v24, %v1700_v6  ;;  %v1253_v24 = vmul.f32 %v8359_v8, %v8359_v8  ;;  %v1707_v6 = vsel %vm274_vm1, %v1251_v40, 0.0  ;;  %v5429_v8 = vld [vmem:[%s11073_s0 + $0x678] sm:$0xff] }
 0x3a0   :  { %11453 = vst [vmem:[#allocation165_spill] sm:$0xff] %v8386_v48  ;;  %v8395_v40 = vsub.f32 %v5429_v8, %v6534_v7 }
 0x3a1   :  { %v1704_v51 = vadd.f32 %v1703_v16, %v1702_v60  ;;  %v1254_v16 = vmul.f32 %v8368_v0, %v8368_v0  ;;  %v1709_v60 = vsel %vm274_vm1, %v1252_v33, 0.0  ;;  %v5430_v0 = vld [vmem:[%s11073_s0 + $0x680] sm:$0xff] }
 0x3a2   :  { %11454 = vst [vmem:[#allocation166_spill] sm:$0xff] %v8395_v40  ;;  %v8404_v33 = vsub.f32 %v5430_v0, %v6534_v7 }
 0x3a3   :  { %v1706_v41 = vadd.f32 %v1705_v5, %v1704_v51  ;;  %v1255_v5 = vmul.f32 %v8377_v55, %v8377_v55  ;;  %v1711_v51 = vsel %vm274_vm1, %v1253_v24, 0.0  ;;  %v5431_v55 = vld [vmem:[%s11073_s0 + $0x688] sm:$0xff] }
 0x3a4   :  { %11455 = vst [vmem:[#allocation167_spill] sm:$0xff] %v8404_v33  ;;  %v8413_v24 = vsub.f32 %v5431_v55, %v6534_v7 }
 0x3a5   :  { %v1708_v30 = vadd.f32 %v1707_v6, %v1706_v41  ;;  %v1256_v6 = vmul.f32 %v8386_v48, %v8386_v48  ;;  %v1713_v41 = vsel %vm274_vm1, %v1254_v16, 0.0  ;;  %v5432_v48 = vld [vmem:[%s11073_s0 + $0x690] sm:$0xff] }
 0x3a6   :  { %11456 = vst [vmem:[#allocation168_spill] sm:$0xff] %v8413_v24  ;;  %v8422_v16 = vsub.f32 %v5432_v48, %v6534_v7 }
 0x3a7   :  { %v1710_v21 = vadd.f32 %v1709_v60, %v1708_v30  ;;  %v1257_v60 = vmul.f32 %v8395_v40, %v8395_v40  ;;  %v1715_v30 = vsel %vm274_vm1, %v1255_v5, 0.0  ;;  %v5433_v40 = vld [vmem:[%s11073_s0 + $0x698] sm:$0xff] }
 0x3a8   :  { %11457 = vst [vmem:[#allocation169_spill] sm:$0xff] %v8422_v16  ;;  %v8431_v5 = vsub.f32 %v5433_v40, %v6534_v7 }
 0x3a9   :  { %v1712_v8 = vadd.f32 %v1711_v51, %v1710_v21  ;;  %v1258_v51 = vmul.f32 %v8404_v33, %v8404_v33  ;;  %v1717_v21 = vsel %vm274_vm1, %v1256_v6, 0.0  ;;  %v5434_v33 = vld [vmem:[%s11073_s0 + $0x6a0] sm:$0xff] }
 0x3aa   :  { %11458 = vst [vmem:[#allocation170_spill] sm:$0xff] %v8431_v5  ;;  %v8440_v6 = vsub.f32 %v5434_v33, %v6534_v7 }
 0x3ab   :  { %v1714_v0 = vadd.f32 %v1713_v41, %v1712_v8  ;;  %v1259_v41 = vmul.f32 %v8413_v24, %v8413_v24  ;;  %v1719_v8 = vsel %vm274_vm1, %v1257_v60, 0.0  ;;  %v5435_v24 = vld [vmem:[%s11073_s0 + $0x6a8] sm:$0xff] }
 0x3ac   :  { %11459 = vst [vmem:[#allocation171_spill] sm:$0xff] %v8440_v6  ;;  %v8449_v60 = vsub.f32 %v5435_v24, %v6534_v7 }
 0x3ad   :  { %v1716_v55 = vadd.f32 %v1715_v30, %v1714_v0  ;;  %v1260_v30 = vmul.f32 %v8422_v16, %v8422_v16  ;;  %v1721_v0 = vsel %vm274_vm1, %v1258_v51, 0.0  ;;  %v5436_v16 = vld [vmem:[%s11073_s0 + $0x6b0] sm:$0xff] }
 0x3ae   :  { %11460 = vst [vmem:[#allocation172_spill] sm:$0xff] %v8449_v60  ;;  %v8458_v51 = vsub.f32 %v5436_v16, %v6534_v7 }
 0x3af   :  { %v1718_v48 = vadd.f32 %v1717_v21, %v1716_v55  ;;  %v1261_v21 = vmul.f32 %v8431_v5, %v8431_v5  ;;  %v1723_v55 = vsel %vm274_vm1, %v1259_v41, 0.0  ;;  %v5437_v5 = vld [vmem:[%s11073_s0 + $0x6b8] sm:$0xff] }
 0x3b0   :  { %11461 = vst [vmem:[#allocation173_spill] sm:$0xff] %v8458_v51  ;;  %v8467_v41 = vsub.f32 %v5437_v5, %v6534_v7 }
 0x3b1   :  { %v1720_v40 = vadd.f32 %v1719_v8, %v1718_v48  ;;  %v1262_v8 = vmul.f32 %v8440_v6, %v8440_v6  ;;  %v1725_v48 = vsel %vm274_vm1, %v1260_v30, 0.0  ;;  %v5438_v6 = vld [vmem:[%s11073_s0 + $0x6c0] sm:$0xff] }
 0x3b2   :  { %11462 = vst [vmem:[#allocation174_spill] sm:$0xff] %v8467_v41  ;;  %v8476_v30 = vsub.f32 %v5438_v6, %v6534_v7 }
 0x3b3   :  { %v1722_v33 = vadd.f32 %v1721_v0, %v1720_v40  ;;  %v1263_v0 = vmul.f32 %v8449_v60, %v8449_v60  ;;  %v1727_v40 = vsel %vm274_vm1, %v1261_v21, 0.0  ;;  %v5439_v60 = vld [vmem:[%s11073_s0 + $0x6c8] sm:$0xff] }
 0x3b4   :  { %11463 = vst [vmem:[#allocation175_spill] sm:$0xff] %v8476_v30  ;;  %v8485_v21 = vsub.f32 %v5439_v60, %v6534_v7 }
 0x3b5   :  { %v1724_v24 = vadd.f32 %v1723_v55, %v1722_v33  ;;  %v1264_v55 = vmul.f32 %v8458_v51, %v8458_v51  ;;  %v1729_v33 = vsel %vm274_vm1, %v1262_v8, 0.0  ;;  %v5440_v51 = vld [vmem:[%s11073_s0 + $0x6d0] sm:$0xff] }
 0x3b6   :  { %11464 = vst [vmem:[#allocation176_spill] sm:$0xff] %v8485_v21  ;;  %v8494_v8 = vsub.f32 %v5440_v51, %v6534_v7 }
 0x3b7   :  { %v1726_v16 = vadd.f32 %v1725_v48, %v1724_v24  ;;  %v1265_v48 = vmul.f32 %v8467_v41, %v8467_v41  ;;  %v1731_v24 = vsel %vm274_vm1, %v1263_v0, 0.0  ;;  %v5441_v41 = vld [vmem:[%s11073_s0 + $0x6d8] sm:$0xff] }
 0x3b8   :  { %11465 = vst [vmem:[#allocation177_spill] sm:$0xff] %v8494_v8  ;;  %v8503_v0 = vsub.f32 %v5441_v41, %v6534_v7 }
 0x3b9   :  { %v1728_v5 = vadd.f32 %v1727_v40, %v1726_v16  ;;  %v1266_v40 = vmul.f32 %v8476_v30, %v8476_v30  ;;  %v1733_v16 = vsel %vm274_vm1, %v1264_v55, 0.0  ;;  %v5442_v30 = vld [vmem:[%s11073_s0 + $0x6e0] sm:$0xff] }
 0x3ba   :  { %11466 = vst [vmem:[#allocation178_spill] sm:$0xff] %v8503_v0  ;;  %v8512_v55 = vsub.f32 %v5442_v30, %v6534_v7 }
 0x3bb   :  { %v1730_v6 = vadd.f32 %v1729_v33, %v1728_v5  ;;  %v1267_v33 = vmul.f32 %v8485_v21, %v8485_v21  ;;  %v1735_v5 = vsel %vm274_vm1, %v1265_v48, 0.0  ;;  %v5443_v21 = vld [vmem:[%s11073_s0 + $0x6e8] sm:$0xff] }
 0x3bc   :  { %11467 = vst [vmem:[#allocation179_spill] sm:$0xff] %v8512_v55  ;;  %v8521_v48 = vsub.f32 %v5443_v21, %v6534_v7 }
 0x3bd   :  { %v1732_v60 = vadd.f32 %v1731_v24, %v1730_v6  ;;  %v1268_v24 = vmul.f32 %v8494_v8, %v8494_v8  ;;  %v1737_v6 = vsel %vm274_vm1, %v1266_v40, 0.0  ;;  %v5444_v8 = vld [vmem:[%s11073_s0 + $0x6f0] sm:$0xff] }
 0x3be   :  { %11468 = vst [vmem:[#allocation180_spill] sm:$0xff] %v8521_v48  ;;  %v8530_v40 = vsub.f32 %v5444_v8, %v6534_v7 }
 0x3bf   :  { %v1734_v51 = vadd.f32 %v1733_v16, %v1732_v60  ;;  %v1269_v16 = vmul.f32 %v8503_v0, %v8503_v0  ;;  %v1739_v60 = vsel %vm274_vm1, %v1267_v33, 0.0  ;;  %v5445_v0 = vld [vmem:[%s11073_s0 + $0x6f8] sm:$0xff] }
 0x3c0   :  { %11469 = vst [vmem:[#allocation181_spill] sm:$0xff] %v8530_v40  ;;  %v8539_v33 = vsub.f32 %v5445_v0, %v6534_v7 }
 0x3c1   :  { %v1736_v41 = vadd.f32 %v1735_v5, %v1734_v51  ;;  %v1270_v5 = vmul.f32 %v8512_v55, %v8512_v55  ;;  %v1741_v51 = vsel %vm274_vm1, %v1268_v24, 0.0  ;;  %v5446_v55 = vld [vmem:[%s11073_s0 + $0x700] sm:$0xff] }
 0x3c2   :  { %11470 = vst [vmem:[#allocation182_spill] sm:$0xff] %v8539_v33  ;;  %v8548_v24 = vsub.f32 %v5446_v55, %v6534_v7 }
 0x3c3   :  { %v1738_v30 = vadd.f32 %v1737_v6, %v1736_v41  ;;  %v1271_v6 = vmul.f32 %v8521_v48, %v8521_v48  ;;  %v1743_v41 = vsel %vm274_vm1, %v1269_v16, 0.0  ;;  %v5447_v48 = vld [vmem:[%s11073_s0 + $0x708] sm:$0xff] }
 0x3c4   :  { %11471 = vst [vmem:[#allocation183_spill] sm:$0xff] %v8548_v24  ;;  %v8557_v16 = vsub.f32 %v5447_v48, %v6534_v7 }
 0x3c5   :  { %v1740_v21 = vadd.f32 %v1739_v60, %v1738_v30  ;;  %v1272_v60 = vmul.f32 %v8530_v40, %v8530_v40  ;;  %v1745_v30 = vsel %vm274_vm1, %v1270_v5, 0.0  ;;  %v5448_v40 = vld [vmem:[%s11073_s0 + $0x710] sm:$0xff] }
 0x3c6   :  { %11472 = vst [vmem:[#allocation184_spill] sm:$0xff] %v8557_v16  ;;  %v8566_v5 = vsub.f32 %v5448_v40, %v6534_v7 }
 0x3c7   :  { %v1742_v8 = vadd.f32 %v1741_v51, %v1740_v21  ;;  %v1273_v51 = vmul.f32 %v8539_v33, %v8539_v33  ;;  %v1747_v21 = vsel %vm274_vm1, %v1271_v6, 0.0  ;;  %v5449_v33 = vld [vmem:[%s11073_s0 + $0x718] sm:$0xff] }
 0x3c8   :  { %11473 = vst [vmem:[#allocation185_spill] sm:$0xff] %v8566_v5  ;;  %v8575_v6 = vsub.f32 %v5449_v33, %v6534_v7 }
 0x3c9   :  { %v1744_v0 = vadd.f32 %v1743_v41, %v1742_v8  ;;  %v1274_v41 = vmul.f32 %v8548_v24, %v8548_v24  ;;  %v1749_v8 = vsel %vm274_vm1, %v1272_v60, 0.0  ;;  %v5450_v24 = vld [vmem:[%s11073_s0 + $0x720] sm:$0xff] }
 0x3ca   :  { %11474 = vst [vmem:[#allocation186_spill] sm:$0xff] %v8575_v6  ;;  %v8584_v60 = vsub.f32 %v5450_v24, %v6534_v7 }
 0x3cb   :  { %v1746_v55 = vadd.f32 %v1745_v30, %v1744_v0  ;;  %v1275_v30 = vmul.f32 %v8557_v16, %v8557_v16  ;;  %v1751_v0 = vsel %vm274_vm1, %v1273_v51, 0.0  ;;  %v5451_v16 = vld [vmem:[%s11073_s0 + $0x728] sm:$0xff] }
 0x3cc   :  { %11475 = vst [vmem:[#allocation187_spill] sm:$0xff] %v8584_v60  ;;  %v8593_v51 = vsub.f32 %v5451_v16, %v6534_v7 }
 0x3cd   :  { %v1748_v48 = vadd.f32 %v1747_v21, %v1746_v55  ;;  %v1276_v21 = vmul.f32 %v8566_v5, %v8566_v5  ;;  %v1753_v55 = vsel %vm274_vm1, %v1274_v41, 0.0  ;;  %v5452_v5 = vld [vmem:[%s11073_s0 + $0x730] sm:$0xff] }
 0x3ce   :  { %11476 = vst [vmem:[#allocation188_spill] sm:$0xff] %v8593_v51  ;;  %v8602_v41 = vsub.f32 %v5452_v5, %v6534_v7 }
 0x3cf   :  { %v1750_v40 = vadd.f32 %v1749_v8, %v1748_v48  ;;  %v1277_v8 = vmul.f32 %v8575_v6, %v8575_v6  ;;  %v1755_v48 = vsel %vm274_vm1, %v1275_v30, 0.0  ;;  %v5453_v6 = vld [vmem:[%s11073_s0 + $0x738] sm:$0xff] }
 0x3d0   :  { %11477 = vst [vmem:[#allocation189_spill] sm:$0xff] %v8602_v41  ;;  %v8611_v30 = vsub.f32 %v5453_v6, %v6534_v7 }
 0x3d1   :  { %v1752_v33 = vadd.f32 %v1751_v0, %v1750_v40  ;;  %v1278_v0 = vmul.f32 %v8584_v60, %v8584_v60  ;;  %v1757_v40 = vsel %vm274_vm1, %v1276_v21, 0.0  ;;  %v5454_v60 = vld [vmem:[%s11073_s0 + $0x740] sm:$0xff] }
 0x3d2   :  { %11478 = vst [vmem:[#allocation190_spill] sm:$0xff] %v8611_v30  ;;  %v8620_v21 = vsub.f32 %v5454_v60, %v6534_v7 }
 0x3d3   :  { %v1754_v24 = vadd.f32 %v1753_v55, %v1752_v33  ;;  %v1279_v55 = vmul.f32 %v8593_v51, %v8593_v51  ;;  %v1759_v33 = vsel %vm274_vm1, %v1277_v8, 0.0  ;;  %v5455_v51 = vld [vmem:[%s11073_s0 + $0x748] sm:$0xff] }
 0x3d4   :  { %11479 = vst [vmem:[#allocation191_spill] sm:$0xff] %v8620_v21  ;;  %v8629_v8 = vsub.f32 %v5455_v51, %v6534_v7 }
 0x3d5   :  { %v1756_v16 = vadd.f32 %v1755_v48, %v1754_v24  ;;  %v1280_v48 = vmul.f32 %v8602_v41, %v8602_v41  ;;  %v1761_v24 = vsel %vm274_vm1, %v1278_v0, 0.0  ;;  %v5456_v41 = vld [vmem:[%s11073_s0 + $0x750] sm:$0xff] }
 0x3d6   :  { %11480 = vst [vmem:[#allocation192_spill] sm:$0xff] %v8629_v8  ;;  %v8638_v0 = vsub.f32 %v5456_v41, %v6534_v7 }
 0x3d7   :  { %v1758_v5 = vadd.f32 %v1757_v40, %v1756_v16  ;;  %v1281_v40 = vmul.f32 %v8611_v30, %v8611_v30  ;;  %v1763_v16 = vsel %vm274_vm1, %v1279_v55, 0.0  ;;  %v5457_v30 = vld [vmem:[%s11073_s0 + $0x758] sm:$0xff] }
 0x3d8   :  { %11481 = vst [vmem:[#allocation193_spill] sm:$0xff] %v8638_v0  ;;  %v8647_v55 = vsub.f32 %v5457_v30, %v6534_v7 }
 0x3d9   :  { %v1760_v6 = vadd.f32 %v1759_v33, %v1758_v5  ;;  %v1282_v33 = vmul.f32 %v8620_v21, %v8620_v21  ;;  %v1765_v5 = vsel %vm274_vm1, %v1280_v48, 0.0  ;;  %v5458_v21 = vld [vmem:[%s11073_s0 + $0x760] sm:$0xff] }
 0x3da   :  { %11482 = vst [vmem:[#allocation194_spill] sm:$0xff] %v8647_v55  ;;  %v8656_v48 = vsub.f32 %v5458_v21, %v6534_v7 }
 0x3db   :  { %v1762_v60 = vadd.f32 %v1761_v24, %v1760_v6  ;;  %v1283_v24 = vmul.f32 %v8629_v8, %v8629_v8  ;;  %v1767_v6 = vsel %vm274_vm1, %v1281_v40, 0.0  ;;  %v5459_v8 = vld [vmem:[%s11073_s0 + $0x768] sm:$0xff] }
 0x3dc   :  { %11483 = vst [vmem:[#allocation195_spill] sm:$0xff] %v8656_v48  ;;  %v8665_v40 = vsub.f32 %v5459_v8, %v6534_v7 }
 0x3dd   :  { %v1764_v51 = vadd.f32 %v1763_v16, %v1762_v60  ;;  %v1284_v16 = vmul.f32 %v8638_v0, %v8638_v0  ;;  %v1769_v60 = vsel %vm274_vm1, %v1282_v33, 0.0  ;;  %v5460_v0 = vld [vmem:[%s11073_s0 + $0x770] sm:$0xff] }
 0x3de   :  { %11484 = vst [vmem:[#allocation196_spill] sm:$0xff] %v8665_v40  ;;  %v8674_v33 = vsub.f32 %v5460_v0, %v6534_v7 }
 0x3df   :  { %v1766_v41 = vadd.f32 %v1765_v5, %v1764_v51  ;;  %v1285_v5 = vmul.f32 %v8647_v55, %v8647_v55  ;;  %v1771_v51 = vsel %vm274_vm1, %v1283_v24, 0.0  ;;  %v5461_v55 = vld [vmem:[%s11073_s0 + $0x778] sm:$0xff] }
 0x3e0   :  { %11485 = vst [vmem:[#allocation197_spill] sm:$0xff] %v8674_v33  ;;  %v8683_v24 = vsub.f32 %v5461_v55, %v6534_v7 }
 0x3e1   :  { %v1768_v30 = vadd.f32 %v1767_v6, %v1766_v41  ;;  %v1286_v6 = vmul.f32 %v8656_v48, %v8656_v48  ;;  %v1773_v41 = vsel %vm274_vm1, %v1284_v16, 0.0  ;;  %v5462_v48 = vld [vmem:[%s11073_s0 + $0x780] sm:$0xff] }
 0x3e2   :  { %11486 = vst [vmem:[#allocation198_spill] sm:$0xff] %v8683_v24  ;;  %v8692_v16 = vsub.f32 %v5462_v48, %v6534_v7 }
 0x3e3   :  { %v1770_v21 = vadd.f32 %v1769_v60, %v1768_v30  ;;  %v1287_v60 = vmul.f32 %v8665_v40, %v8665_v40  ;;  %v1775_v30 = vsel %vm274_vm1, %v1285_v5, 0.0  ;;  %v5463_v40 = vld [vmem:[%s11073_s0 + $0x788] sm:$0xff] }
 0x3e4   :  { %11487 = vst [vmem:[#allocation199_spill] sm:$0xff] %v8692_v16  ;;  %v8701_v5 = vsub.f32 %v5463_v40, %v6534_v7 }
 0x3e5   :  { %v1772_v8 = vadd.f32 %v1771_v51, %v1770_v21  ;;  %v1288_v51 = vmul.f32 %v8674_v33, %v8674_v33  ;;  %v1777_v21 = vsel %vm274_vm1, %v1286_v6, 0.0  ;;  %v5464_v33 = vld [vmem:[%s11073_s0 + $0x790] sm:$0xff] }
 0x3e6   :  { %11488 = vst [vmem:[#allocation200_spill] sm:$0xff] %v8701_v5  ;;  %v8710_v6 = vsub.f32 %v5464_v33, %v6534_v7 }
 0x3e7   :  { %v1774_v0 = vadd.f32 %v1773_v41, %v1772_v8  ;;  %v1289_v41 = vmul.f32 %v8683_v24, %v8683_v24  ;;  %v1779_v8 = vsel %vm274_vm1, %v1287_v60, 0.0  ;;  %v5465_v24 = vld [vmem:[%s11073_s0 + $0x798] sm:$0xff] }
 0x3e8   :  { %11489 = vst [vmem:[#allocation201_spill] sm:$0xff] %v8710_v6  ;;  %v8719_v60 = vsub.f32 %v5465_v24, %v6534_v7 }
 0x3e9   :  { %v1776_v55 = vadd.f32 %v1775_v30, %v1774_v0  ;;  %v1290_v30 = vmul.f32 %v8692_v16, %v8692_v16  ;;  %v1781_v0 = vsel %vm274_vm1, %v1288_v51, 0.0  ;;  %v5466_v16 = vld [vmem:[%s11073_s0 + $0x7a0] sm:$0xff] }
 0x3ea   :  { %11490 = vst [vmem:[#allocation202_spill] sm:$0xff] %v8719_v60  ;;  %v8728_v51 = vsub.f32 %v5466_v16, %v6534_v7 }
 0x3eb   :  { %v1778_v48 = vadd.f32 %v1777_v21, %v1776_v55  ;;  %v1291_v21 = vmul.f32 %v8701_v5, %v8701_v5  ;;  %v1783_v55 = vsel %vm274_vm1, %v1289_v41, 0.0  ;;  %v5467_v5 = vld [vmem:[%s11073_s0 + $0x7a8] sm:$0xff] }
 0x3ec   :  { %11491 = vst [vmem:[#allocation203_spill] sm:$0xff] %v8728_v51  ;;  %v8737_v41 = vsub.f32 %v5467_v5, %v6534_v7 }
 0x3ed   :  { %v1780_v40 = vadd.f32 %v1779_v8, %v1778_v48  ;;  %v1292_v8 = vmul.f32 %v8710_v6, %v8710_v6  ;;  %v1785_v48 = vsel %vm274_vm1, %v1290_v30, 0.0  ;;  %v5468_v6 = vld [vmem:[%s11073_s0 + $0x7b0] sm:$0xff] }
 0x3ee   :  { %11492 = vst [vmem:[#allocation204_spill] sm:$0xff] %v8737_v41  ;;  %v8746_v30 = vsub.f32 %v5468_v6, %v6534_v7 }
 0x3ef   :  { %v1782_v33 = vadd.f32 %v1781_v0, %v1780_v40  ;;  %v1293_v0 = vmul.f32 %v8719_v60, %v8719_v60  ;;  %v1787_v40 = vsel %vm274_vm1, %v1291_v21, 0.0  ;;  %v5469_v60 = vld [vmem:[%s11073_s0 + $0x7b8] sm:$0xff] }
 0x3f0   :  { %11493 = vst [vmem:[#allocation205_spill] sm:$0xff] %v8746_v30  ;;  %v8755_v21 = vsub.f32 %v5469_v60, %v6534_v7 }
 0x3f1   :  { %v1784_v24 = vadd.f32 %v1783_v55, %v1782_v33  ;;  %v1294_v55 = vmul.f32 %v8728_v51, %v8728_v51  ;;  %v1789_v33 = vsel %vm274_vm1, %v1292_v8, 0.0  ;;  %v5470_v51 = vld [vmem:[%s11073_s0 + $0x7c0] sm:$0xff] }
 0x3f2   :  { %11494 = vst [vmem:[#allocation206_spill] sm:$0xff] %v8755_v21  ;;  %v8764_v8 = vsub.f32 %v5470_v51, %v6534_v7 }
 0x3f3   :  { %v1786_v16 = vadd.f32 %v1785_v48, %v1784_v24  ;;  %v1295_v48 = vmul.f32 %v8737_v41, %v8737_v41  ;;  %v1791_v24 = vsel %vm274_vm1, %v1293_v0, 0.0  ;;  %v5471_v41 = vld [vmem:[%s11073_s0 + $0x7c8] sm:$0xff] }
 0x3f4   :  { %11495 = vst [vmem:[#allocation207_spill] sm:$0xff] %v8764_v8  ;;  %v8773_v0 = vsub.f32 %v5471_v41, %v6534_v7 }
 0x3f5   :  { %v1788_v5 = vadd.f32 %v1787_v40, %v1786_v16  ;;  %v1296_v40 = vmul.f32 %v8746_v30, %v8746_v30  ;;  %v1793_v16 = vsel %vm274_vm1, %v1294_v55, 0.0  ;;  %v5472_v30 = vld [vmem:[%s11073_s0 + $0x7d0] sm:$0xff] }
 0x3f6   :  { %11496 = vst [vmem:[#allocation208_spill] sm:$0xff] %v8773_v0  ;;  %v8782_v55 = vsub.f32 %v5472_v30, %v6534_v7 }
 0x3f7   :  { %v1790_v6 = vadd.f32 %v1789_v33, %v1788_v5  ;;  %v1297_v33 = vmul.f32 %v8755_v21, %v8755_v21  ;;  %v1795_v5 = vsel %vm274_vm1, %v1295_v48, 0.0  ;;  %v5473_v21 = vld [vmem:[%s11073_s0 + $0x7d8] sm:$0xff] }
 0x3f8   :  { %11497 = vst [vmem:[#allocation209_spill] sm:$0xff] %v8782_v55  ;;  %v8791_v48 = vsub.f32 %v5473_v21, %v6534_v7 }
 0x3f9   :  { %v1792_v60 = vadd.f32 %v1791_v24, %v1790_v6  ;;  %v1298_v24 = vmul.f32 %v8764_v8, %v8764_v8  ;;  %v1797_v6 = vsel %vm274_vm1, %v1296_v40, 0.0  ;;  %v5474_v8 = vld [vmem:[%s11073_s0 + $0x7e0] sm:$0xff] }
 0x3fa   :  { %11498 = vst [vmem:[#allocation210_spill] sm:$0xff] %v8791_v48  ;;  %v8800_v40 = vsub.f32 %v5474_v8, %v6534_v7 }
 0x3fb   :  { %v1794_v51 = vadd.f32 %v1793_v16, %v1792_v60  ;;  %v1299_v16 = vmul.f32 %v8773_v0, %v8773_v0  ;;  %v1799_v60 = vsel %vm274_vm1, %v1297_v33, 0.0  ;;  %v5475_v0 = vld [vmem:[%s11073_s0 + $0x7e8] sm:$0xff] }
 0x3fc   :  { %11499 = vst [vmem:[#allocation211_spill] sm:$0xff] %v8800_v40  ;;  %v8809_v33 = vsub.f32 %v5475_v0, %v6534_v7 }
 0x3fd   :  { %v1796_v41 = vadd.f32 %v1795_v5, %v1794_v51  ;;  %v1300_v5 = vmul.f32 %v8782_v55, %v8782_v55  ;;  %v1801_v51 = vsel %vm274_vm1, %v1298_v24, 0.0  ;;  %v5476_v55 = vld [vmem:[%s11073_s0 + $0x7f0] sm:$0xff] }
 0x3fe   :  { %11500 = vst [vmem:[#allocation212_spill] sm:$0xff] %v8809_v33  ;;  %v8818_v24 = vsub.f32 %v5476_v55, %v6534_v7 }
 0x3ff   :  { %v1798_v30 = vadd.f32 %v1797_v6, %v1796_v41  ;;  %v1301_v6 = vmul.f32 %v8791_v48, %v8791_v48  ;;  %v1803_v41 = vsel %vm274_vm1, %v1299_v16, 0.0  ;;  %v5477_v48 = vld [vmem:[%s11073_s0 + $0x7f8] sm:$0xff] }
 0x400   :  { %11501 = vst [vmem:[#allocation213_spill] sm:$0xff] %v8818_v24  ;;  %v8827_v16 = vsub.f32 %v5477_v48, %v6534_v7  ;;  %v1304_v23 = vmul.f32 %v8818_v24, %v8818_v24 }
 0x401   :  { %v1800_v21 = vadd.f32 %v1799_v60, %v1798_v30  ;;  %v1302_v60 = vmul.f32 %v8800_v40, %v8800_v40  ;;  %v1805_v30 = vsel %vm274_vm1, %v1300_v5, 0.0 }
 0x402   :  { %11502 = vst [vmem:[#allocation214_spill] sm:$0xff] %v8827_v16  ;;  %v1813_v7 = vsel %vm274_vm1, %v1304_v23, 0.0  ;;  %v8845_v23 = vld [vmem:[%s11074_s1] ss:$0 sm:$0xff] }
 0x403   :  { %v1802_v8 = vadd.f32 %v1801_v51, %v1800_v21  ;;  %v1303_v51 = vmul.f32 %v8809_v33, %v8809_v33  ;;  %v1807_v21 = vsel %vm274_vm1, %v1301_v6, 0.0  ;;  %v1809_v40 = vsel %vm274_vm1, %v1302_v60, 0.0 }
 0x405   :  { %v1804_v0 = vadd.f32 %v1803_v41, %v1802_v8  ;;  %v1305_v41 = vmul.f32 %v8827_v16, %v8827_v16  ;;  %v1811_v8 = vsel %vm274_vm1, %v1303_v51, 0.0 }
 0x407   :  { %v1806_v55 = vadd.f32 %v1805_v30, %v1804_v0  ;;  %v1815_v33 = vsel %vm274_vm1, %v1305_v41, 0.0 }
 0x409   :  { %v1808_v5 = vadd.f32 %v1807_v21, %v1806_v55 }
 0x40b   :  { %v1810_v35 = vadd.f32 %v1809_v40, %v1808_v5  ;;  %v8858_v40 = vld [vmem:[%s11075_s2] ss:$0 sm:$0xff] }
 0x40d   :  { %v1812_v48 = vadd.f32 %v1811_v8, %v1810_v35 }
 0x40f   :  { %v1814_v63 = vadd.f32 %v1813_v7, %v1812_v48 }
 0x411   :  { %v1816_v6 = vadd.f32 %v1815_v33, %v1814_v63 }
 0x413   :  { %v1817_v30 = vrot.slane %v1816_v6, 4 }
 0x415   :  { %v1818_v0 = vadd.f32 %v1817_v30, %v1816_v6 }
 0x417   :  { %v1819_v56 = vrot.slane %v1818_v0, 2 }
 0x419   :  { %v1820_v24 = vadd.f32 %v1819_v56, %v1818_v0 }
 0x41b   :  { %v1821_v46 = vrot.slane %v1820_v24, 1 }
 0x41d   :  { %v1822_v60 = vadd.f32 %v1821_v46, %v1820_v24 }
 0x41f   :  { %v1823_v21 = vmul.f32 0.00048828125, %v1822_v60 }
 0x421   :  { %v1824_v55 = vadd.f32 1e-05, %v1823_v21 }
 0x423   :  { %5220 = vrsqrt.f32 %v1824_v55 }
 0x42d   :  { %v8840_v16 = vpop.eup %5220 }
 0x42e   :  { %v1826_v35 = vmul.f32 %v8840_v16, %v6540_v9  ;;  %v1827_v63 = vmul.f32 %v8840_v16, %v6546_v11  ;;  %v1954_v56 = vmul.f32 %v8840_v16, %v7684_v54  ;;  %v1955_v46 = vmul.f32 %v8840_v16, %v7693_v20 }
 0x42f   :  { %v1828_v33 = vmul.f32 %v8840_v16, %v6552_v13  ;;  %v1829_v9 = vmul.f32 %v8840_v16, %v6558_v15  ;;  %v1956_v11 = vmul.f32 %v8840_v16, %v7702_v39  ;;  %v1957_v54 = vmul.f32 %v8840_v16, %v7711_v1 }
 0x430   :  { %v2089_v24 = vmul.f32 %v8845_v23, %v1826_v35  ;;  %v2090_v20 = vmul.f32 %v8845_v23, %v1827_v63  ;;  %v2217_v51 = vmul.f32 %v8845_v23, %v1954_v56  ;;  %v2218_v5 = vmul.f32 %v8845_v23, %v1955_v46 }
 0x431   :  { %v2091_v41 = vmul.f32 %v8845_v23, %v1828_v33  ;;  %v2092_v13 = vmul.f32 %v8845_v23, %v1829_v9  ;;  %v2219_v15 = vmul.f32 %v8845_v23, %v1956_v11  ;;  %v2220_v8 = vmul.f32 %v8845_v23, %v1957_v54 }
 0x432   :  { %v2352_v39 = vadd.f32 %v8858_v40, %v2089_v24  ;;  %v2353_v1 = vadd.f32 %v8858_v40, %v2090_v20  ;;  %v2480_v7 = vadd.f32 %v8858_v40, %v2217_v51  ;;  %v2481_v48 = vadd.f32 %v8858_v40, %v2218_v5 }
 0x433   :  { %v2354_v6 = vadd.f32 %v8858_v40, %v2091_v41  ;;  %v2355_v30 = vadd.f32 %v8858_v40, %v2092_v13  ;;  %v2482_v0 = vadd.f32 %v8858_v40, %v2219_v15  ;;  %v2483_v60 = vadd.f32 %v8858_v40, %v2220_v8 }
 0x434   :  { %v2608_v21 = vmax.f32 %v2352_v39, 0.0  ;;  %v2609_v55 = vmax.f32 %v2353_v1, 0.0  ;;  %v2736_v35 = vmax.f32 %v2480_v7, 0.0  ;;  %v2737_v63 = vmax.f32 %v2481_v48, 0.0 }
 0x435   :  { %v2610_v56 = vmax.f32 %v2354_v6, 0.0  ;;  %v2611_v46 = vmax.f32 %v2355_v30, 0.0  ;;  %v2738_v33 = vmax.f32 %v2482_v0, 0.0  ;;  %v2739_v9 = vmax.f32 %v2483_v60, 0.0 }
 0x436   :  { %v2864_v11 = vpack.c.bf16 %v2609_v55, %v2608_v21  ;;  %v2928_v54 = vpack.c.bf16 %v2737_v63, %v2736_v35  ;;  %v1830_v24 = vmul.f32 %v8840_v16, %v6564_v17  ;;  %v1831_v20 = vmul.f32 %v8840_v16, %v6576_v22 }
 0x437   :  { %v2865_v51 = vpack.c.bf16 %v2611_v46, %v2610_v56  ;;  %v2929_v5 = vpack.c.bf16 %v2739_v9, %v2738_v33  ;;  %v1958_v41 = vmul.f32 %v8840_v16, %v7720_v27  ;;  %v1959_v13 = vmul.f32 %v8840_v16, %v7729_v49 }
 0x438   :  { %4960 = vmatprep.mubr.msk.bf16.mxu0 %vm274_vm1, %v2864_v11  ;;  %5088 = vmatprep.mubr.msk.bf16.mxu1 %vm274_vm1, %v2928_v54  ;;  %v2093_v15 = vmul.f32 %v8845_v23, %v1830_v24  ;;  %v2094_v8 = vmul.f32 %v8845_v23, %v1831_v20  ;;  %v1832_v17 = vmul.f32 %v8840_v16, %v6584_v25 }
 0x439   :  { %4961 = vmatmul.mubr.msk.bf16.vlgmr.msra.gmra.mrb[0].mxu0 %vm274_vm1, %v2865_v51  ;;  %5089 = vmatmul.mubr.msk.bf16.vlgmr.msra.gmra.mrb[0].mxu1 %vm274_vm1, %v2929_v5  ;;  %v2221_v22 = vmul.f32 %v8845_v23, %v1958_v41  ;;  %v2222_v27 = vmul.f32 %v8845_v23, %v1959_v13  ;;  %v1833_v49 = vmul.f32 %v8840_v16, %v6595_v32 }
 0x43a   :  { %v2356_v39 = vadd.f32 %v8858_v40, %v2093_v15  ;;  %v2357_v1 = vadd.f32 %v8858_v40, %v2094_v8  ;;  %v2095_v7 = vmul.f32 %v8845_v23, %v1832_v17  ;;  %v1960_v25 = vmul.f32 %v8840_v16, %v7738_v2 }
 0x43b   :  { %v2484_v48 = vadd.f32 %v8858_v40, %v2221_v22  ;;  %v2485_v6 = vadd.f32 %v8858_v40, %v2222_v27  ;;  %v2096_v30 = vmul.f32 %v8845_v23, %v1833_v49  ;;  %v1961_v0 = vmul.f32 %v8840_v16, %v7747_v34 }
 0x43c   :  { %v2612_v60 = vmax.f32 %v2356_v39, 0.0  ;;  %v2613_v32 = vmax.f32 %v2357_v1, 0.0  ;;  %v2358_v21 = vadd.f32 %v8858_v40, %v2095_v7  ;;  %v2223_v55 = vmul.f32 %v8845_v23, %v1960_v25 }
 0x43d   :  { %v2740_v35 = vmax.f32 %v2484_v48, 0.0  ;;  %v2741_v63 = vmax.f32 %v2485_v6, 0.0  ;;  %v2359_v56 = vadd.f32 %v8858_v40, %v2096_v30  ;;  %v2224_v2 = vmul.f32 %v8845_v23, %v1961_v0 }
 0x43e   :  { %v2866_v46 = vpack.c.bf16 %v2613_v32, %v2612_v60  ;;  %v2614_v33 = vmax.f32 %v2358_v21, 0.0  ;;  %v2486_v9 = vadd.f32 %v8858_v40, %v2223_v55  ;;  %v1834_v11 = vmul.f32 %v8840_v16, %v6604_v37 }
 0x43f   :  { %v2930_v34 = vpack.c.bf16 %v2741_v63, %v2740_v35  ;;  %v2615_v54 = vmax.f32 %v2359_v56, 0.0  ;;  %v2487_v24 = vadd.f32 %v8858_v40, %v2224_v2  ;;  %v1835_v20 = vmul.f32 %v8840_v16, %v6613_v42 }
 0x440   :  { %4964 = vmatprep.mubr.msk.bf16.mxu0 %vm274_vm1, %v2866_v46  ;;  %v2742_v51 = vmax.f32 %v2486_v9, 0.0  ;;  %v2097_v5 = vmul.f32 %v8845_v23, %v1834_v11  ;;  %v1962_v41 = vmul.f32 %v8840_v16, %v7756_v4  ;;  %v1963_v13 = vmul.f32 %v8840_v16, %v7765_v53 }
 0x441   :  { %5092 = vmatprep.mubr.msk.bf16.mxu1 %vm274_vm1, %v2930_v34  ;;  %v2867_v37 = vpack.c.bf16 %v2615_v54, %v2614_v33  ;;  %v2743_v15 = vmax.f32 %v2487_v24, 0.0  ;;  %v2098_v8 = vmul.f32 %v8845_v23, %v1835_v20  ;;  %v1836_v42 = vmul.f32 %v8840_v16, %v6622_v47 }
 0x442   :  { %v2360_v17 = vadd.f32 %v8858_v40, %v2097_v5  ;;  %v2225_v22 = vmul.f32 %v8845_v23, %v1962_v41  ;;  %v2226_v27 = vmul.f32 %v8845_v23, %v1963_v13  ;;  %v1837_v4 = vmul.f32 %v8840_v16, %v6631_v52 }
 0x443   :  { %4965 = vmatmul.mubr.msk.bf16.gmra.mrb[4].mxu0 %vm274_vm1, %v2867_v37  ;;  %v2931_v53 = vpack.c.bf16 %v2743_v15, %v2742_v51  ;;  %v2361_v49 = vadd.f32 %v8858_v40, %v2098_v8  ;;  %v2099_v39 = vmul.f32 %v8845_v23, %v1836_v42  ;;  %v1964_v1 = vmul.f32 %v8840_v16, %v7774_v29 }
 0x444   :  { %v2616_v47 = vmax.f32 %v2360_v17, 0.0  ;;  %v2488_v7 = vadd.f32 %v8858_v40, %v2225_v22  ;;  %v2489_v25 = vadd.f32 %v8858_v40, %v2226_v27  ;;  %v2100_v48 = vmul.f32 %v8845_v23, %v1837_v4 }
 0x445   :  { %5093 = vmatmul.mubr.msk.bf16.gmra.mrb[4].mxu1 %vm274_vm1, %v2931_v53  ;;  %v2617_v52 = vmax.f32 %v2361_v49, 0.0  ;;  %v2362_v6 = vadd.f32 %v8858_v40, %v2099_v39  ;;  %v1965_v30 = vmul.f32 %v8840_v16, %v7783_v45  ;;  %v2227_v0 = vmul.f32 %v8845_v23, %v1964_v1 }
 0x446   :  { %v2744_v60 = vmax.f32 %v2488_v7, 0.0  ;;  %v2745_v32 = vmax.f32 %v2489_v25, 0.0  ;;  %v2363_v29 = vadd.f32 %v8858_v40, %v2100_v48  ;;  %v1838_v21 = vmul.f32 %v8840_v16, %v6640_v57 }
 0x447   :  { %v2868_v55 = vpack.c.bf16 %v2617_v52, %v2616_v47  ;;  %v2618_v35 = vmax.f32 %v2362_v6, 0.0  ;;  %v2228_v63 = vmul.f32 %v8845_v23, %v1965_v30  ;;  %v2490_v56 = vadd.f32 %v8858_v40, %v2227_v0 }
 0x448   :  { %v2932_v2 = vpack.c.bf16 %v2745_v32, %v2744_v60  ;;  %v2619_v46 = vmax.f32 %v2363_v29, 0.0  ;;  %v1839_v45 = vmul.f32 %v8840_v16, %v6649_v62  ;;  %v2101_v33 = vmul.f32 %v8845_v23, %v1838_v21 }
 0x449   :  { %4968 = vmatprep.mubr.msk.bf16.mxu0 %vm274_vm1, %v2868_v55  ;;  %v2491_v9 = vadd.f32 %v8858_v40, %v2228_v63  ;;  %v2746_v11 = vmax.f32 %v2490_v56, 0.0  ;;  %v1966_v57 = vmul.f32 %v8840_v16, %v7792_v61  ;;  %v1967_v34 = vmul.f32 %v8840_v16, %v7801_v18 }
 0x44a   :  { %5096 = vmatprep.mubr.msk.bf16.mxu1 %vm274_vm1, %v2932_v2  ;;  %v2869_v54 = vpack.c.bf16 %v2619_v46, %v2618_v35  ;;  %v2102_v24 = vmul.f32 %v8845_v23, %v1839_v45  ;;  %v2364_v62 = vadd.f32 %v8858_v40, %v2101_v33  ;;  %v1840_v20 = vmul.f32 %v8840_v16, %v6658_v3 }
 0x44b   :  { %v2747_v51 = vmax.f32 %v2491_v9, 0.0  ;;  %v2229_v5 = vmul.f32 %v8845_v23, %v1966_v57  ;;  %v2230_v41 = vmul.f32 %v8845_v23, %v1967_v34  ;;  %v1841_v61 = vmul.f32 %v8840_v16, %v6667_v10 }
 0x44c   :  { %4969 = vmatmul.mubr.msk.bf16.gmra.mrb[8].mxu0 %vm274_vm1, %v2869_v54  ;;  %v2365_v18 = vadd.f32 %v8858_v40, %v2102_v24  ;;  %v2620_v13 = vmax.f32 %v2364_v62, 0.0  ;;  %v2103_v37 = vmul.f32 %v8845_v23, %v1840_v20  ;;  %v1968_v15 = vmul.f32 %v8840_v16, %v7810_v36 }
 0x44d   :  { %v2933_v8 = vpack.c.bf16 %v2747_v51, %v2746_v11  ;;  %v2492_v3 = vadd.f32 %v8858_v40, %v2229_v5  ;;  %v2493_v42 = vadd.f32 %v8858_v40, %v2230_v41  ;;  %v2104_v17 = vmul.f32 %v8845_v23, %v1841_v61 }
 0x44e   :  { %v2621_v22 = vmax.f32 %v2365_v18, 0.0  ;;  %v2366_v10 = vadd.f32 %v8858_v40, %v2103_v37  ;;  %v1969_v27 = vmul.f32 %v8840_v16, %v7819_v14  ;;  %v2231_v4 = vmul.f32 %v8845_v23, %v1968_v15 }
 0x44f   :  { %5097 = vmatmul.mubr.msk.bf16.gmra.mrb[8].mxu1 %vm274_vm1, %v2933_v8  ;;  %v2748_v53 = vmax.f32 %v2492_v3, 0.0  ;;  %v2749_v49 = vmax.f32 %v2493_v42, 0.0  ;;  %v2367_v36 = vadd.f32 %v8858_v40, %v2104_v17  ;;  %v1842_v39 = vmul.f32 %v8840_v16, %v6676_v19  ;;  %v11503_v8 = vld [vmem:[#allocation108_spill] sm:$0xff] }
 0x450   :  { %v2870_v1 = vpack.c.bf16 %v2621_v22, %v2620_v13  ;;  %v2622_v47 = vmax.f32 %v2366_v10, 0.0  ;;  %v2232_v7 = vmul.f32 %v8845_v23, %v1969_v27  ;;  %v2494_v25 = vadd.f32 %v8858_v40, %v2231_v4  ;;  %v11504_v22 = vld [vmem:[#allocation2_spill] sm:$0xff] }
 0x451   :  { %v2934_v48 = vpack.c.bf16 %v2749_v49, %v2748_v53  ;;  %v2623_v52 = vmax.f32 %v2367_v36, 0.0  ;;  %v1843_v14 = vmul.f32 %v8840_v16, %v6685_v26  ;;  %v2105_v6 = vmul.f32 %v8845_v23, %v1842_v39  ;;  %v11505_v49 = vld [vmem:[#allocation3_spill] sm:$0xff] }
 0x452   :  { %4972 = vmatprep.mubr.msk.bf16.mxu0 %vm274_vm1, %v2870_v1  ;;  %v2495_v30 = vadd.f32 %v8858_v40, %v2232_v7  ;;  %v2750_v0 = vmax.f32 %v2494_v25, 0.0  ;;  %v1970_v19 = vmul.f32 %v8840_v16, %v7828_v58  ;;  %v1971_v60 = vmul.f32 %v8840_v16, %v7837_v43 }
 0x453   :  { %5100 = vmatprep.mubr.msk.bf16.mxu1 %vm274_vm1, %v2934_v48  ;;  %v2871_v32 = vpack.c.bf16 %v2623_v52, %v2622_v47  ;;  %v2106_v29 = vmul.f32 %v8845_v23, %v1843_v14  ;;  %v2368_v26 = vadd.f32 %v8858_v40, %v2105_v6  ;;  %v1844_v21 = vmul.f32 %v8840_v16, %v6694_v31  ;;  %v11506_v47 = vld [vmem:[#allocation109_spill] sm:$0xff] }
 0x454   :  { %v2751_v55 = vmax.f32 %v2495_v30, 0.0  ;;  %v2233_v35 = vmul.f32 %v8845_v23, %v1970_v19  ;;  %v2234_v63 = vmul.f32 %v8845_v23, %v1971_v60  ;;  %v1845_v58 = vmul.f32 %v8840_v16, %v6703_v38 }
 0x455   :  { %4973 = vmatmul.mubr.msk.bf16.gmra.mrb[12].mxu0 %vm274_vm1, %v2871_v32  ;;  %v2369_v43 = vadd.f32 %v8858_v40, %v2106_v29  ;;  %v2624_v56 = vmax.f32 %v2368_v26, 0.0  ;;  %v2107_v2 = vmul.f32 %v8845_v23, %v1844_v21  ;;  %v1972_v46 = vmul.f32 %v8840_v16, %v7846_v28  ;;  %v11508_v21 = vld [vmem:[#allocation4_spill] sm:$0xff] }
 0x456   :  { %v2935_v45 = vpack.c.bf16 %v2751_v55, %v2750_v0  ;;  %v2496_v31 = vadd.f32 %v8858_v40, %v2233_v35  ;;  %v2497_v33 = vadd.f32 %v8858_v40, %v2234_v63  ;;  %v2108_v9 = vmul.f32 %v8845_v23, %v1845_v58  ;;  %v11507_v0 = vld [vmem:[#allocation110_spill] sm:$0xff] }
 0x457   :  { %v2625_v11 = vmax.f32 %v2369_v43, 0.0  ;;  %v2370_v38 = vadd.f32 %v8858_v40, %v2107_v2  ;;  %v1973_v57 = vmul.f32 %v8840_v16, %v7855_v12  ;;  %v2235_v34 = vmul.f32 %v8845_v23, %v1972_v46  ;;  %v11509_v46 = vld [vmem:[#allocation5_spill] sm:$0xff] }
 0x458   :  { %5101 = vmatmul.mubr.msk.bf16.gmra.mrb[12].mxu1 %vm274_vm1, %v2935_v45  ;;  %v2752_v54 = vmax.f32 %v2496_v31, 0.0  ;;  %v2753_v24 = vmax.f32 %v2497_v33, 0.0  ;;  %v2371_v28 = vadd.f32 %v8858_v40, %v2108_v9  ;;  %v1846_v62 = vmul.f32 %v8840_v16, %v6712_v44 }
 0x459   :  { %v2872_v20 = vpack.c.bf16 %v2625_v11, %v2624_v56  ;;  %v2626_v51 = vmax.f32 %v2370_v38, 0.0  ;;  %v2236_v5 = vmul.f32 %v8845_v23, %v1973_v57  ;;  %v2498_v41 = vadd.f32 %v8858_v40, %v2235_v34  ;;  %v11510_v11 = vld [vmem:[#allocation111_spill] sm:$0xff]  ;;  %v11511_v57 = vld [vmem:[#allocation112_spill] sm:$0xff] }
 0x45a   :  { %v2936_v61 = vpack.c.bf16 %v2753_v24, %v2752_v54  ;;  %v2627_v18 = vmax.f32 %v2371_v28, 0.0  ;;  %v1847_v12 = vmul.f32 %v8840_v16, %v6721_v50  ;;  %v2109_v13 = vmul.f32 %v8845_v23, %v1846_v62  ;;  %v11512_v62 = vld [vmem:[#allocation6_spill] sm:$0xff] }
 0x45b   :  { %4976 = vmatprep.mubr.msk.bf16.mxu0 %vm274_vm1, %v2872_v20  ;;  %v2499_v37 = vadd.f32 %v8858_v40, %v2236_v5  ;;  %v2754_v15 = vmax.f32 %v2498_v41, 0.0  ;;  %v1974_v44 = vmul.f32 %v8840_v16, %v7864_v59  ;;  %v1975_v3 = vmul.f32 %v8840_v16, %v11503_v8 }
 0x45c   :  { %5104 = vmatprep.mubr.msk.bf16.mxu1 %vm274_vm1, %v2936_v61  ;;  %v2873_v42 = vpack.c.bf16 %v2627_v18, %v2626_v51  ;;  %v2110_v17 = vmul.f32 %v8845_v23, %v1847_v12  ;;  %v2372_v50 = vadd.f32 %v8858_v40, %v2109_v13  ;;  %v1848_v10 = vmul.f32 %v8840_v16, %v11504_v22  ;;  %v11513_v61 = vld [vmem:[#allocation7_spill] sm:$0xff] }
 0x45d   :  { %v2755_v27 = vmax.f32 %v2499_v37, 0.0  ;;  %v2237_v4 = vmul.f32 %v8845_v23, %v1974_v44  ;;  %v2238_v53 = vmul.f32 %v8845_v23, %v1975_v3  ;;  %v1849_v59 = vmul.f32 %v8840_v16, %v11505_v49 }
 0x45e   :  { %4977 = vmatmul.mubr.msk.bf16.gmra.mrb[16].mxu0 %vm274_vm1, %v2873_v42  ;;  %v2373_v36 = vadd.f32 %v8858_v40, %v2110_v17  ;;  %v2628_v39 = vmax.f32 %v2372_v50, 0.0  ;;  %v2111_v1 = vmul.f32 %v8845_v23, %v1848_v10  ;;  %v1976_v7 = vmul.f32 %v8840_v16, %v11506_v47  ;;  %v11515_v10 = vld [vmem:[#allocation114_spill] sm:$0xff] }
 0x45f   :  { %v2937_v25 = vpack.c.bf16 %v2755_v27, %v2754_v15  ;;  %v2500_v48 = vadd.f32 %v8858_v40, %v2237_v4  ;;  %v2501_v52 = vadd.f32 %v8858_v40, %v2238_v53  ;;  %v2112_v14 = vmul.f32 %v8845_v23, %v1849_v59  ;;  %v11514_v15 = vld [vmem:[#allocation113_spill] sm:$0xff] }
 0x460   :  { %v2629_v6 = vmax.f32 %v2373_v36, 0.0  ;;  %v2374_v30 = vadd.f32 %v8858_v40, %v2111_v1  ;;  %v1977_v19 = vmul.f32 %v8840_v16, %v11507_v0  ;;  %v2239_v60 = vmul.f32 %v8845_v23, %v1976_v7  ;;  %v11516_v36 = vld [vmem:[#allocation8_spill] sm:$0xff] }
 0x461   :  { %5105 = vmatmul.mubr.msk.bf16.gmra.mrb[16].mxu1 %vm274_vm1, %v2937_v25  ;;  %v2756_v32 = vmax.f32 %v2500_v48, 0.0  ;;  %v2757_v29 = vmax.f32 %v2501_v52, 0.0  ;;  %v2375_v26 = vadd.f32 %v8858_v40, %v2112_v14  ;;  %v1850_v55 = vmul.f32 %v8840_v16, %v11508_v21  ;;  %v11517_v14 = vld [vmem:[#allocation9_spill] sm:$0xff] }
 0x462   :  { %v2874_v35 = vpack.c.bf16 %v2629_v6, %v2628_v39  ;;  %v2630_v63 = vmax.f32 %v2374_v30, 0.0  ;;  %v2240_v58 = vmul.f32 %v8845_v23, %v1977_v19  ;;  %v2502_v43 = vadd.f32 %v8858_v40, %v2239_v60  ;;  %v11518_v60 = vld [vmem:[#allocation115_spill] sm:$0xff] }
 0x463   :  { %v2938_v56 = vpack.c.bf16 %v2757_v29, %v2756_v32  ;;  %v2631_v2 = vmax.f32 %v2375_v26, 0.0  ;;  %v1851_v45 = vmul.f32 %v8840_v16, %v11509_v46  ;;  %v2113_v31 = vmul.f32 %v8845_v23, %v1850_v55  ;;  %v11519_v29 = vld [vmem:[#allocation116_spill] sm:$0xff]  ;;  %v11521_v46 = vld [vmem:[#allocation11_spill] sm:$0xff] }
 0x464   :  { %4980 = vmatprep.mubr.msk.bf16.mxu0 %vm274_vm1, %v2874_v35  ;;  %v2503_v33 = vadd.f32 %v8858_v40, %v2240_v58  ;;  %v2758_v9 = vmax.f32 %v2502_v43, 0.0  ;;  %v1978_v38 = vmul.f32 %v8840_v16, %v11510_v11  ;;  %v1979_v34 = vmul.f32 %v8840_v16, %v11511_v57  ;;  %v11522_v11 = vld [vmem:[#allocation117_spill] sm:$0xff] }
 0x465   :  { %5108 = vmatprep.mubr.msk.bf16.mxu1 %vm274_vm1, %v2938_v56  ;;  %v2875_v54 = vpack.c.bf16 %v2631_v2, %v2630_v63  ;;  %v2114_v24 = vmul.f32 %v8845_v23, %v1851_v45  ;;  %v2376_v28 = vadd.f32 %v8858_v40, %v2113_v31  ;;  %v1852_v20 = vmul.f32 %v8840_v16, %v11512_v62  ;;  %v11520_v63 = vld [vmem:[#allocation10_spill] sm:$0xff] }
 0x466   :  { %v2759_v51 = vmax.f32 %v2503_v33, 0.0  ;;  %v2241_v5 = vmul.f32 %v8845_v23, %v1978_v38  ;;  %v2242_v41 = vmul.f32 %v8845_v23, %v1979_v34  ;;  %v1853_v18 = vmul.f32 %v8840_v16, %v11513_v61 }
 0x467   :  { %4981 = vmatmul.mubr.msk.bf16.gmra.mrb[20].mxu0 %vm274_vm1, %v2875_v54  ;;  %v2377_v12 = vadd.f32 %v8858_v40, %v2114_v24  ;;  %v2632_v13 = vmax.f32 %v2376_v28, 0.0  ;;  %v2115_v37 = vmul.f32 %v8845_v23, %v1852_v20  ;;  %v1980_v44 = vmul.f32 %v8840_v16, %v11514_v15  ;;  %v11523_v20 = vld [vmem:[#allocation118_spill] sm:$0xff] }
 0x468   :  { %v2939_v8 = vpack.c.bf16 %v2759_v51, %v2758_v9  ;;  %v2504_v3 = vadd.f32 %v8858_v40, %v2241_v5  ;;  %v2505_v42 = vadd.f32 %v8858_v40, %v2242_v41  ;;  %v2116_v17 = vmul.f32 %v8845_v23, %v1853_v18 }
 0x469   :  { %v2633_v50 = vmax.f32 %v2377_v12, 0.0  ;;  %v2378_v22 = vadd.f32 %v8858_v40, %v2115_v37  ;;  %v1981_v27 = vmul.f32 %v8840_v16, %v11515_v10  ;;  %v2243_v4 = vmul.f32 %v8845_v23, %v1980_v44  ;;  %v11524_v12 = vld [vmem:[#allocation12_spill] sm:$0xff] }
 0x46a   :  { %5109 = vmatmul.mubr.msk.bf16.gmra.mrb[20].mxu1 %vm274_vm1, %v2939_v8  ;;  %v2760_v53 = vmax.f32 %v2504_v3, 0.0  ;;  %v2761_v49 = vmax.f32 %v2505_v42, 0.0  ;;  %v2379_v59 = vadd.f32 %v8858_v40, %v2116_v17  ;;  %v1854_v39 = vmul.f32 %v8840_v16, %v11516_v36  ;;  %v11525_v17 = vld [vmem:[#allocation13_spill] sm:$0xff] }
 0x46b   :  { %v2876_v1 = vpack.c.bf16 %v2633_v50, %v2632_v13  ;;  %v2634_v47 = vmax.f32 %v2378_v22, 0.0  ;;  %v2244_v7 = vmul.f32 %v8845_v23, %v1981_v27  ;;  %v2506_v25 = vadd.f32 %v8858_v40, %v2243_v4  ;;  %v11526_v4 = vld [vmem:[#allocation119_spill] sm:$0xff] }
 0x46c   :  { %v2940_v48 = vpack.c.bf16 %v2761_v49, %v2760_v53  ;;  %v2635_v52 = vmax.f32 %v2379_v59, 0.0  ;;  %v1855_v6 = vmul.f32 %v8840_v16, %v11517_v14  ;;  %v2117_v30 = vmul.f32 %v8845_v23, %v1854_v39  ;;  %v11527_v49 = vld [vmem:[#allocation120_spill] sm:$0xff]  ;;  %v11529_v14 = vld [vmem:[#allocation15_spill] sm:$0xff] }
 0x46d   :  { %4984 = vmatprep.mubr.msk.bf16.mxu0 %vm274_vm1, %v2876_v1  ;;  %v2507_v0 = vadd.f32 %v8858_v40, %v2244_v7  ;;  %v2762_v19 = vmax.f32 %v2506_v25, 0.0  ;;  %v1982_v32 = vmul.f32 %v8840_v16, %v11518_v60  ;;  %v1983_v26 = vmul.f32 %v8840_v16, %v11519_v29  ;;  %v11530_v60 = vld [vmem:[#allocation121_spill] sm:$0xff] }
 0x46e   :  { %5112 = vmatprep.mubr.msk.bf16.mxu1 %vm274_vm1, %v2940_v48  ;;  %v2877_v21 = vpack.c.bf16 %v2635_v52, %v2634_v47  ;;  %v2118_v55 = vmul.f32 %v8845_v23, %v1855_v6  ;;  %v2380_v35 = vadd.f32 %v8858_v40, %v2117_v30  ;;  %v1856_v58 = vmul.f32 %v8840_v16, %v11520_v63  ;;  %v11528_v47 = vld [vmem:[#allocation14_spill] sm:$0xff] }
 0x46f   :  { %v2763_v43 = vmax.f32 %v2507_v0, 0.0  ;;  %v2245_v56 = vmul.f32 %v8845_v23, %v1982_v32  ;;  %v2246_v2 = vmul.f32 %v8845_v23, %v1983_v26  ;;  %v1857_v45 = vmul.f32 %v8840_v16, %v11521_v46 }
 0x470   :  { %4985 = vmatmul.mubr.msk.bf16.gmra.mrb[24].mxu0 %vm274_vm1, %v2877_v21  ;;  %v2381_v31 = vadd.f32 %v8858_v40, %v2118_v55  ;;  %v2636_v33 = vmax.f32 %v2380_v35, 0.0  ;;  %v2119_v9 = vmul.f32 %v8845_v23, %v1856_v58  ;;  %v1984_v38 = vmul.f32 %v8840_v16, %v11522_v11  ;;  %v11531_v58 = vld [vmem:[#allocation122_spill] sm:$0xff] }
 0x471   :  { %v2941_v57 = vpack.c.bf16 %v2763_v43, %v2762_v19  ;;  %v2508_v34 = vadd.f32 %v8858_v40, %v2245_v56  ;;  %v2509_v54 = vadd.f32 %v8858_v40, %v2246_v2  ;;  %v2120_v24 = vmul.f32 %v8845_v23, %v1857_v45 }
 0x472   :  { %v2637_v28 = vmax.f32 %v2381_v31, 0.0  ;;  %v2382_v62 = vadd.f32 %v8858_v40, %v2119_v9  ;;  %v1985_v51 = vmul.f32 %v8840_v16, %v11523_v20  ;;  %v2247_v5 = vmul.f32 %v8845_v23, %v1984_v38  ;;  %v11532_v31 = vld [vmem:[#allocation16_spill] sm:$0xff] }
 0x473   :  { %5113 = vmatmul.mubr.msk.bf16.gmra.mrb[24].mxu1 %vm274_vm1, %v2941_v57  ;;  %v2764_v41 = vmax.f32 %v2508_v34, 0.0  ;;  %v2765_v61 = vmax.f32 %v2509_v54, 0.0  ;;  %v2383_v18 = vadd.f32 %v8858_v40, %v2120_v24  ;;  %v1858_v13 = vmul.f32 %v8840_v16, %v11524_v12  ;;  %v11533_v24 = vld [vmem:[#allocation17_spill] sm:$0xff] }
 0x474   :  { %v2878_v37 = vpack.c.bf16 %v2637_v28, %v2636_v33  ;;  %v2638_v15 = vmax.f32 %v2382_v62, 0.0  ;;  %v2248_v44 = vmul.f32 %v8845_v23, %v1985_v51  ;;  %v2510_v8 = vadd.f32 %v8858_v40, %v2247_v5  ;;  %v11534_v5 = vld [vmem:[#allocation123_spill] sm:$0xff] }
 0x475   :  { %v2942_v3 = vpack.c.bf16 %v2765_v61, %v2764_v41  ;;  %v2639_v42 = vmax.f32 %v2383_v18, 0.0  ;;  %v1859_v50 = vmul.f32 %v8840_v16, %v11525_v17  ;;  %v2121_v22 = vmul.f32 %v8845_v23, %v1858_v13  ;;  %v11535_v61 = vld [vmem:[#allocation124_spill] sm:$0xff]  ;;  %v11537_v17 = vld [vmem:[#allocation19_spill] sm:$0xff] }
 0x476   :  { %4988 = vmatprep.mubr.msk.bf16.mxu0 %vm274_vm1, %v2878_v37  ;;  %v2511_v10 = vadd.f32 %v8858_v40, %v2248_v44  ;;  %v2766_v27 = vmax.f32 %v2510_v8, 0.0  ;;  %v1986_v53 = vmul.f32 %v8840_v16, %v11526_v4  ;;  %v1987_v59 = vmul.f32 %v8840_v16, %v11527_v49  ;;  %v11538_v4 = vld [vmem:[#allocation125_spill] sm:$0xff] }
 0x477   :  { %5116 = vmatprep.mubr.msk.bf16.mxu1 %vm274_vm1, %v2942_v3  ;;  %v2879_v36 = vpack.c.bf16 %v2639_v42, %v2638_v15  ;;  %v2122_v39 = vmul.f32 %v8845_v23, %v1859_v50  ;;  %v2384_v1 = vadd.f32 %v8858_v40, %v2121_v22  ;;  %v1860_v7 = vmul.f32 %v8840_v16, %v11528_v47  ;;  %v11536_v15 = vld [vmem:[#allocation18_spill] sm:$0xff] }
 0x478   :  { %v2767_v25 = vmax.f32 %v2511_v10, 0.0  ;;  %v2249_v48 = vmul.f32 %v8845_v23, %v1986_v53  ;;  %v2250_v52 = vmul.f32 %v8845_v23, %v1987_v59  ;;  %v1861_v6 = vmul.f32 %v8840_v16, %v11529_v14 }
 0x479   :  { %4989 = vmatmul.mubr.msk.bf16.gmra.mrb[28].mxu0 %vm274_vm1, %v2879_v36  ;;  %v2385_v30 = vadd.f32 %v8858_v40, %v2122_v39  ;;  %v2640_v0 = vmax.f32 %v2384_v1, 0.0  ;;  %v2123_v19 = vmul.f32 %v8845_v23, %v1860_v7  ;;  %v1988_v32 = vmul.f32 %v8840_v16, %v11530_v60  ;;  %v11539_v7 = vld [vmem:[#allocation126_spill] sm:$0xff] }
 0x47a   :  { %v2943_v29 = vpack.c.bf16 %v2767_v25, %v2766_v27  ;;  %v2512_v26 = vadd.f32 %v8858_v40, %v2249_v48  ;;  %v2513_v21 = vadd.f32 %v8858_v40, %v2250_v52  ;;  %v2124_v55 = vmul.f32 %v8845_v23, %v1861_v6 }
 0x47b   :  { %v2641_v35 = vmax.f32 %v2385_v30, 0.0  ;;  %v2386_v63 = vadd.f32 %v8858_v40, %v2123_v19  ;;  %v1989_v43 = vmul.f32 %v8840_v16, %v11531_v58  ;;  %v2251_v56 = vmul.f32 %v8845_v23, %v1988_v32  ;;  %v11540_v30 = vld [vmem:[#allocation20_spill] sm:$0xff] }
 0x47c   :  { %5117 = vmatmul.mubr.msk.bf16.gmra.mrb[28].mxu1 %vm274_vm1, %v2943_v29  ;;  %v2768_v2 = vmax.f32 %v2512_v26, 0.0  ;;  %v2769_v46 = vmax.f32 %v2513_v21, 0.0  ;;  %v2387_v45 = vadd.f32 %v8858_v40, %v2124_v55  ;;  %v1862_v33 = vmul.f32 %v8840_v16, %v11532_v31  ;;  %v11541_v55 = vld [vmem:[#allocation21_spill] sm:$0xff] }
 0x47d   :  { %v2880_v9 = vpack.c.bf16 %v2641_v35, %v2640_v0  ;;  %v2642_v11 = vmax.f32 %v2386_v63, 0.0  ;;  %v2252_v38 = vmul.f32 %v8845_v23, %v1989_v43  ;;  %v2514_v57 = vadd.f32 %v8858_v40, %v2251_v56  ;;  %v11542_v56 = vld [vmem:[#allocation127_spill] sm:$0xff] }
 0x47e   :  { %v2944_v34 = vpack.c.bf16 %v2769_v46, %v2768_v2  ;;  %v2643_v54 = vmax.f32 %v2387_v45, 0.0  ;;  %v1863_v28 = vmul.f32 %v8840_v16, %v11533_v24  ;;  %v2125_v62 = vmul.f32 %v8845_v23, %v1862_v33  ;;  %v11543_v46 = vld [vmem:[#allocation128_spill] sm:$0xff]  ;;  %v11545_v24 = vld [vmem:[#allocation23_spill] sm:$0xff] }
 0x47f   :  { %4992 = vmatprep.mubr.msk.bf16.mxu0 %vm274_vm1, %v2880_v9  ;;  %v2515_v20 = vadd.f32 %v8858_v40, %v2252_v38  ;;  %v2770_v51 = vmax.f32 %v2514_v57, 0.0  ;;  %v1990_v41 = vmul.f32 %v8840_v16, %v11534_v5  ;;  %v1991_v18 = vmul.f32 %v8840_v16, %v11535_v61  ;;  %v11546_v5 = vld [vmem:[#allocation129_spill] sm:$0xff] }
 0x480   :  { %5120 = vmatprep.mubr.msk.bf16.mxu1 %vm274_vm1, %v2944_v34  ;;  %v2881_v12 = vpack.c.bf16 %v2643_v54, %v2642_v11  ;;  %v2126_v13 = vmul.f32 %v8845_v23, %v1863_v28  ;;  %v2388_v37 = vadd.f32 %v8858_v40, %v2125_v62  ;;  %v1864_v44 = vmul.f32 %v8840_v16, %v11536_v15  ;;  %v11544_v11 = vld [vmem:[#allocation22_spill] sm:$0xff] }
 0x481   :  { %v2771_v8 = vmax.f32 %v2515_v20, 0.0  ;;  %v2253_v3 = vmul.f32 %v8845_v23, %v1990_v41  ;;  %v2254_v42 = vmul.f32 %v8845_v23, %v1991_v18  ;;  %v1865_v50 = vmul.f32 %v8840_v16, %v11537_v17 }
 0x482   :  { %4993 = vmatmul.mubr.msk.bf16.gmra.mrb[32].mxu0 %vm274_vm1, %v2881_v12  ;;  %v2389_v22 = vadd.f32 %v8858_v40, %v2126_v13  ;;  %v2644_v10 = vmax.f32 %v2388_v37, 0.0  ;;  %v2127_v27 = vmul.f32 %v8845_v23, %v1864_v44  ;;  %v1992_v53 = vmul.f32 %v8840_v16, %v11538_v4  ;;  %v11547_v44 = vld [vmem:[#allocation130_spill] sm:$0xff] }
 0x483   :  { %v2945_v49 = vpack.c.bf16 %v2771_v8, %v2770_v51  ;;  %v2516_v59 = vadd.f32 %v8858_v40, %v2253_v3  ;;  %v2517_v36 = vadd.f32 %v8858_v40, %v2254_v42  ;;  %v2128_v39 = vmul.f32 %v8845_v23, %v1865_v50 }
 0x484   :  { %v2645_v1 = vmax.f32 %v2389_v22, 0.0  ;;  %v2390_v47 = vadd.f32 %v8858_v40, %v2127_v27  ;;  %v1993_v25 = vmul.f32 %v8840_v16, %v11539_v7  ;;  %v2255_v48 = vmul.f32 %v8845_v23, %v1992_v53  ;;  %v11548_v22 = vld [vmem:[#allocation24_spill] sm:$0xff] }
 0x485   :  { %5121 = vmatmul.mubr.msk.bf16.gmra.mrb[32].mxu1 %vm274_vm1, %v2945_v49  ;;  %v2772_v52 = vmax.f32 %v2516_v59, 0.0  ;;  %v2773_v14 = vmax.f32 %v2517_v36, 0.0  ;;  %v2391_v6 = vadd.f32 %v8858_v40, %v2128_v39  ;;  %v1866_v0 = vmul.f32 %v8840_v16, %v11540_v30  ;;  %v11549_v39 = vld [vmem:[#allocation25_spill] sm:$0xff] }
 0x486   :  { %v2882_v19 = vpack.c.bf16 %v2645_v1, %v2644_v10  ;;  %v2646_v60 = vmax.f32 %v2390_v47, 0.0  ;;  %v2256_v32 = vmul.f32 %v8845_v23, %v1993_v25  ;;  %v2518_v29 = vadd.f32 %v8858_v40, %v2255_v48  ;;  %v11550_v48 = vld [vmem:[#allocation131_spill] sm:$0xff] }
 0x487   :  { %v2946_v26 = vpack.c.bf16 %v2773_v14, %v2772_v52  ;;  %v2647_v21 = vmax.f32 %v2391_v6, 0.0  ;;  %v1867_v35 = vmul.f32 %v8840_v16, %v11541_v55  ;;  %v2129_v63 = vmul.f32 %v8845_v23, %v1866_v0  ;;  %v11551_v14 = vld [vmem:[#allocation132_spill] sm:$0xff]  ;;  %v11553_v55 = vld [vmem:[#allocation27_spill] sm:$0xff] }
 0x488   :  { %4996 = vmatprep.mubr.msk.bf16.mxu0 %vm274_vm1, %v2882_v19  ;;  %v2519_v58 = vadd.f32 %v8858_v40, %v2256_v32  ;;  %v2774_v43 = vmax.f32 %v2518_v29, 0.0  ;;  %v1994_v2 = vmul.f32 %v8840_v16, %v11542_v56  ;;  %v1995_v45 = vmul.f32 %v8840_v16, %v11543_v46  ;;  %v11554_v56 = vld [vmem:[#allocation133_spill] sm:$0xff] }
 0x489   :  { %5124 = vmatprep.mubr.msk.bf16.mxu1 %vm274_vm1, %v2946_v26  ;;  %v2883_v31 = vpack.c.bf16 %v2647_v21, %v2646_v60  ;;  %v2130_v33 = vmul.f32 %v8845_v23, %v1867_v35  ;;  %v2392_v9 = vadd.f32 %v8858_v40, %v2129_v63  ;;  %v1868_v38 = vmul.f32 %v8840_v16, %v11544_v11  ;;  %v11552_v60 = vld [vmem:[#allocation26_spill] sm:$0xff] }
 0x48a   :  { %v2775_v57 = vmax.f32 %v2519_v58, 0.0  ;;  %v2257_v34 = vmul.f32 %v8845_v23, %v1994_v2  ;;  %v2258_v54 = vmul.f32 %v8845_v23, %v1995_v45  ;;  %v1869_v28 = vmul.f32 %v8840_v16, %v11545_v24 }
 0x48b   :  { %4997 = vmatmul.mubr.msk.bf16.gmra.mrb[36].mxu0 %vm274_vm1, %v2883_v31  ;;  %v2393_v62 = vadd.f32 %v8858_v40, %v2130_v33  ;;  %v2648_v20 = vmax.f32 %v2392_v9, 0.0  ;;  %v2131_v51 = vmul.f32 %v8845_v23, %v1868_v38  ;;  %v1996_v41 = vmul.f32 %v8840_v16, %v11546_v5  ;;  %v11555_v38 = vld [vmem:[#allocation134_spill] sm:$0xff] }
 0x48c   :  { %v2947_v61 = vpack.c.bf16 %v2775_v57, %v2774_v43  ;;  %v2520_v18 = vadd.f32 %v8858_v40, %v2257_v34  ;;  %v2521_v12 = vadd.f32 %v8858_v40, %v2258_v54  ;;  %v2132_v13 = vmul.f32 %v8845_v23, %v1869_v28 }
 0x48d   :  { %v2649_v37 = vmax.f32 %v2393_v62, 0.0  ;;  %v2394_v15 = vadd.f32 %v8858_v40, %v2131_v51  ;;  %v1997_v8 = vmul.f32 %v8840_v16, %v11547_v44  ;;  %v2259_v3 = vmul.f32 %v8845_v23, %v1996_v41  ;;  %v11556_v62 = vld [vmem:[#allocation28_spill] sm:$0xff] }
 0x48e   :  { %5125 = vmatmul.mubr.msk.bf16.gmra.mrb[36].mxu1 %vm274_vm1, %v2947_v61  ;;  %v2776_v42 = vmax.f32 %v2520_v18, 0.0  ;;  %v2777_v17 = vmax.f32 %v2521_v12, 0.0  ;;  %v2395_v50 = vadd.f32 %v8858_v40, %v2132_v13  ;;  %v1870_v10 = vmul.f32 %v8840_v16, %v11548_v22  ;;  %v11557_v13 = vld [vmem:[#allocation29_spill] sm:$0xff] }
 0x48f   :  { %v2884_v27 = vpack.c.bf16 %v2649_v37, %v2648_v20  ;;  %v2650_v4 = vmax.f32 %v2394_v15, 0.0  ;;  %v2260_v53 = vmul.f32 %v8845_v23, %v1997_v8  ;;  %v2522_v49 = vadd.f32 %v8858_v40, %v2259_v3  ;;  %v11558_v3 = vld [vmem:[#allocation135_spill] sm:$0xff] }
 0x490   :  { %v2948_v59 = vpack.c.bf16 %v2777_v17, %v2776_v42  ;;  %v2651_v36 = vmax.f32 %v2395_v50, 0.0  ;;  %v1871_v1 = vmul.f32 %v8840_v16, %v11549_v39  ;;  %v2133_v47 = vmul.f32 %v8845_v23, %v1870_v10  ;;  %v11559_v17 = vld [vmem:[#allocation136_spill] sm:$0xff]  ;;  %v11561_v39 = vld [vmem:[#allocation31_spill] sm:$0xff] }
 0x491   :  { %5000 = vmatprep.mubr.msk.bf16.mxu0 %vm274_vm1, %v2884_v27  ;;  %v2523_v7 = vadd.f32 %v8858_v40, %v2260_v53  ;;  %v2778_v25 = vmax.f32 %v2522_v49, 0.0  ;;  %v1998_v52 = vmul.f32 %v8840_v16, %v11550_v48  ;;  %v1999_v6 = vmul.f32 %v8840_v16, %v11551_v14  ;;  %v11562_v48 = vld [vmem:[#allocation137_spill] sm:$0xff] }
 0x492   :  { %5128 = vmatprep.mubr.msk.bf16.mxu1 %vm274_vm1, %v2948_v59  ;;  %v2885_v30 = vpack.c.bf16 %v2651_v36, %v2650_v4  ;;  %v2134_v0 = vmul.f32 %v8845_v23, %v1871_v1  ;;  %v2396_v19 = vadd.f32 %v8858_v40, %v2133_v47  ;;  %v1872_v32 = vmul.f32 %v8840_v16, %v11552_v60  ;;  %v11560_v4 = vld [vmem:[#allocation30_spill] sm:$0xff] }
 0x493   :  { %v2779_v29 = vmax.f32 %v2523_v7, 0.0  ;;  %v2261_v26 = vmul.f32 %v8845_v23, %v1998_v52  ;;  %v2262_v21 = vmul.f32 %v8845_v23, %v1999_v6  ;;  %v1873_v35 = vmul.f32 %v8840_v16, %v11553_v55 }
 0x494   :  { %5001 = vmatmul.mubr.msk.bf16.gmra.mrb[40].mxu0 %vm274_vm1, %v2885_v30  ;;  %v2397_v63 = vadd.f32 %v8858_v40, %v2134_v0  ;;  %v2652_v58 = vmax.f32 %v2396_v19, 0.0  ;;  %v2135_v43 = vmul.f32 %v8845_v23, %v1872_v32  ;;  %v2000_v2 = vmul.f32 %v8840_v16, %v11554_v56  ;;  %v11563_v32 = vld [vmem:[#allocation138_spill] sm:$0xff] }
 0x495   :  { %v2949_v46 = vpack.c.bf16 %v2779_v29, %v2778_v25  ;;  %v2524_v45 = vadd.f32 %v8858_v40, %v2261_v26  ;;  %v2525_v31 = vadd.f32 %v8858_v40, %v2262_v21  ;;  %v2136_v33 = vmul.f32 %v8845_v23, %v1873_v35 }
 0x496   :  { %v2653_v9 = vmax.f32 %v2397_v63, 0.0  ;;  %v2398_v11 = vadd.f32 %v8858_v40, %v2135_v43  ;;  %v2001_v57 = vmul.f32 %v8840_v16, %v11555_v38  ;;  %v2263_v34 = vmul.f32 %v8845_v23, %v2000_v2  ;;  %v11564_v63 = vld [vmem:[#allocation32_spill] sm:$0xff] }
 0x497   :  { %5129 = vmatmul.mubr.msk.bf16.gmra.mrb[40].mxu1 %vm274_vm1, %v2949_v46  ;;  %v2780_v54 = vmax.f32 %v2524_v45, 0.0  ;;  %v2781_v24 = vmax.f32 %v2525_v31, 0.0  ;;  %v2399_v28 = vadd.f32 %v8858_v40, %v2136_v33  ;;  %v1874_v20 = vmul.f32 %v8840_v16, %v11556_v62  ;;  %v11565_v33 = vld [vmem:[#allocation33_spill] sm:$0xff] }
 0x498   :  { %v2886_v51 = vpack.c.bf16 %v2653_v9, %v2652_v58  ;;  %v2654_v5 = vmax.f32 %v2398_v11, 0.0  ;;  %v2264_v41 = vmul.f32 %v8845_v23, %v2001_v57  ;;  %v2526_v61 = vadd.f32 %v8858_v40, %v2263_v34  ;;  %v9322_v11 = vld [vmem:[%s11074_s1] ss:$0 sm:$0xff]  ;;  %v11566_v34 = vld [vmem:[#allocation139_spill] sm:$0xff] }
 0x499   :  { %v2950_v18 = vpack.c.bf16 %v2781_v24, %v2780_v54  ;;  %v2655_v12 = vmax.f32 %v2399_v28, 0.0  ;;  %v1875_v37 = vmul.f32 %v8840_v16, %v11557_v13  ;;  %v2137_v15 = vmul.f32 %v8845_v23, %v1874_v20  ;;  %v11567_v24 = vld [vmem:[#allocation140_spill] sm:$0xff]  ;;  %v11569_v13 = vld [vmem:[#allocation35_spill] sm:$0xff] }
 0x49a   :  { %5004 = vmatprep.mubr.msk.bf16.mxu0 %vm274_vm1, %v2886_v51  ;;  %v2527_v44 = vadd.f32 %v8858_v40, %v2264_v41  ;;  %v2782_v8 = vmax.f32 %v2526_v61, 0.0  ;;  %v2002_v42 = vmul.f32 %v8840_v16, %v11558_v3  ;;  %v2003_v50 = vmul.f32 %v8840_v16, %v11559_v17  ;;  %v11570_v3 = vld [vmem:[#allocation141_spill] sm:$0xff] }
 0x49b   :  { %5132 = vmatprep.mubr.msk.bf16.mxu1 %vm274_vm1, %v2950_v18  ;;  %v2887_v22 = vpack.c.bf16 %v2655_v12, %v2654_v5  ;;  %v2138_v10 = vmul.f32 %v8845_v23, %v1875_v37  ;;  %v2400_v27 = vadd.f32 %v8858_v40, %v2137_v15  ;;  %v1876_v53 = vmul.f32 %v8840_v16, %v11560_v4  ;;  %v11568_v5 = vld [vmem:[#allocation34_spill] sm:$0xff] }
 0x49c   :  { %v2783_v49 = vmax.f32 %v2527_v44, 0.0  ;;  %v2265_v59 = vmul.f32 %v8845_v23, %v2002_v42  ;;  %v2266_v36 = vmul.f32 %v8845_v23, %v2003_v50  ;;  %v1877_v1 = vmul.f32 %v8840_v16, %v11561_v39 }
 0x49d   :  { %5005 = vmatmul.mubr.msk.bf16.gmra.mrb[44].mxu0 %vm274_vm1, %v2887_v22  ;;  %v2401_v47 = vadd.f32 %v8858_v40, %v2138_v10  ;;  %v2656_v7 = vmax.f32 %v2400_v27, 0.0  ;;  %v2139_v25 = vmul.f32 %v8845_v23, %v1876_v53  ;;  %v2004_v52 = vmul.f32 %v8840_v16, %v11562_v48  ;;  %v11571_v53 = vld [vmem:[#allocation142_spill] sm:$0xff] }
 0x49e   :  { %v2951_v14 = vpack.c.bf16 %v2783_v49, %v2782_v8  ;;  %v2528_v6 = vadd.f32 %v8858_v40, %v2265_v59  ;;  %v2529_v30 = vadd.f32 %v8858_v40, %v2266_v36  ;;  %v2140_v0 = vmul.f32 %v8845_v23, %v1877_v1 }
 0x49f   :  { %v2657_v19 = vmax.f32 %v2401_v47, 0.0  ;;  %v2402_v60 = vadd.f32 %v8858_v40, %v2139_v25  ;;  %v2005_v29 = vmul.f32 %v8840_v16, %v11563_v32  ;;  %v2267_v26 = vmul.f32 %v8845_v23, %v2004_v52  ;;  %v11572_v47 = vld [vmem:[#allocation36_spill] sm:$0xff] }
 0x4a0   :  { %5133 = vmatmul.mubr.msk.bf16.gmra.mrb[44].mxu1 %vm274_vm1, %v2951_v14  ;;  %v2784_v21 = vmax.f32 %v2528_v6, 0.0  ;;  %v2785_v55 = vmax.f32 %v2529_v30, 0.0  ;;  %v2403_v35 = vadd.f32 %v8858_v40, %v2140_v0  ;;  %v1878_v58 = vmul.f32 %v8840_v16, %v11564_v63  ;;  %v11573_v0 = vld [vmem:[#allocation37_spill] sm:$0xff] }
 0x4a1   :  { %v2888_v43 = vpack.c.bf16 %v2657_v19, %v2656_v7  ;;  %v2658_v56 = vmax.f32 %v2402_v60, 0.0  ;;  %v2268_v2 = vmul.f32 %v8845_v23, %v2005_v29  ;;  %v2530_v46 = vadd.f32 %v8858_v40, %v2267_v26  ;;  %v9329_v23 = vld [vmem:[%s11075_s2] ss:$0 sm:$0xff]  ;;  %v11574_v26 = vld [vmem:[#allocation143_spill] sm:$0xff] }
 0x4a2   :  { %v2952_v45 = vpack.c.bf16 %v2785_v55, %v2784_v21  ;;  %v2659_v31 = vmax.f32 %v2403_v35, 0.0  ;;  %v1879_v9 = vmul.f32 %v8840_v16, %v11565_v33  ;;  %v2141_v38 = vmul.f32 %v9322_v11, %v1878_v58  ;;  %v11575_v55 = vld [vmem:[#allocation144_spill] sm:$0xff]  ;;  %v11577_v33 = vld [vmem:[#allocation39_spill] sm:$0xff] }
 0x4a3   :  { %5008 = vmatprep.mubr.msk.bf16.mxu0 %vm274_vm1, %v2888_v43  ;;  %v2531_v40 = vadd.f32 %v9329_v23, %v2268_v2  ;;  %v2786_v57 = vmax.f32 %v2530_v46, 0.0  ;;  %v2006_v54 = vmul.f32 %v8840_v16, %v11566_v34  ;;  %v2007_v28 = vmul.f32 %v8840_v16, %v11567_v24  ;;  %v11578_v34 = vld [vmem:[#allocation145_spill] sm:$0xff] }
 0x4a4   :  { %5136 = vmatprep.mubr.msk.bf16.mxu1 %vm274_vm1, %v2952_v45  ;;  %v2889_v62 = vpack.c.bf16 %v2659_v31, %v2658_v56  ;;  %v2142_v20 = vmul.f32 %v9322_v11, %v1879_v9  ;;  %v2404_v51 = vadd.f32 %v9329_v23, %v2141_v38  ;;  %v1880_v41 = vmul.f32 %v8840_v16, %v11568_v5  ;;  %v11576_v56 = vld [vmem:[#allocation38_spill] sm:$0xff] }
 0x4a5   :  { %v2787_v61 = vmax.f32 %v2531_v40, 0.0  ;;  %v2269_v18 = vmul.f32 %v9322_v11, %v2006_v54  ;;  %v2270_v12 = vmul.f32 %v9322_v11, %v2007_v28  ;;  %v1881_v37 = vmul.f32 %v8840_v16, %v11569_v13 }
 0x4a6   :  { %5009 = vmatmul.mubr.msk.bf16.gmra.mrb[48].mxu0 %vm274_vm1, %v2889_v62  ;;  %v2405_v15 = vadd.f32 %v9329_v23, %v2142_v20  ;;  %v2660_v44 = vmax.f32 %v2404_v51, 0.0  ;;  %v2143_v8 = vmul.f32 %v9322_v11, %v1880_v41  ;;  %v2008_v42 = vmul.f32 %v8840_v16, %v11570_v3  ;;  %v11579_v41 = vld [vmem:[#allocation146_spill] sm:$0xff] }
 0x4a7   :  { %v2953_v17 = vpack.c.bf16 %v2787_v61, %v2786_v57  ;;  %v2532_v50 = vadd.f32 %v9329_v23, %v2269_v18  ;;  %v2533_v22 = vadd.f32 %v9329_v23, %v2270_v12  ;;  %v2144_v10 = vmul.f32 %v9322_v11, %v1881_v37 }
 0x4a8   :  { %v2661_v27 = vmax.f32 %v2405_v15, 0.0  ;;  %v2406_v4 = vadd.f32 %v9329_v23, %v2143_v8  ;;  %v2009_v49 = vmul.f32 %v8840_v16, %v11571_v53  ;;  %v2271_v59 = vmul.f32 %v9322_v11, %v2008_v42  ;;  %v11580_v15 = vld [vmem:[#allocation40_spill] sm:$0xff] }
 0x4a9   :  { %5137 = vmatmul.mubr.msk.bf16.gmra.mrb[48].mxu1 %vm274_vm1, %v2953_v17  ;;  %v2788_v36 = vmax.f32 %v2532_v50, 0.0  ;;  %v2789_v39 = vmax.f32 %v2533_v22, 0.0  ;;  %v2407_v1 = vadd.f32 %v9329_v23, %v2144_v10  ;;  %v1882_v7 = vmul.f32 %v8840_v16, %v11572_v47  ;;  %v11581_v10 = vld [vmem:[#allocation41_spill] sm:$0xff] }
 0x4aa   :  { %v2890_v25 = vpack.c.bf16 %v2661_v27, %v2660_v44  ;;  %v2662_v48 = vmax.f32 %v2406_v4, 0.0  ;;  %v2272_v52 = vmul.f32 %v9322_v11, %v2009_v49  ;;  %v2534_v14 = vadd.f32 %v9329_v23, %v2271_v59  ;;  %v11582_v59 = vld [vmem:[#allocation147_spill] sm:$0xff] }
 0x4ab   :  { %v2954_v6 = vpack.c.bf16 %v2789_v39, %v2788_v36  ;;  %v2663_v30 = vmax.f32 %v2407_v1, 0.0  ;;  %v1883_v19 = vmul.f32 %v8840_v16, %v11573_v0  ;;  %v2145_v60 = vmul.f32 %v9322_v11, %v1882_v7  ;;  %v11583_v39 = vld [vmem:[#allocation148_spill] sm:$0xff]  ;;  %v11585_v0 = vld [vmem:[#allocation43_spill] sm:$0xff] }
 0x4ac   :  { %5012 = vmatprep.mubr.msk.bf16.mxu0 %vm274_vm1, %v2890_v25  ;;  %v2535_v32 = vadd.f32 %v9329_v23, %v2272_v52  ;;  %v2790_v29 = vmax.f32 %v2534_v14, 0.0  ;;  %v2010_v21 = vmul.f32 %v8840_v16, %v11574_v26  ;;  %v2011_v35 = vmul.f32 %v8840_v16, %v11575_v55  ;;  %v11586_v26 = vld [vmem:[#allocation149_spill] sm:$0xff] }
 0x4ad   :  { %5140 = vmatprep.mubr.msk.bf16.mxu1 %vm274_vm1, %v2954_v6  ;;  %v2891_v63 = vpack.c.bf16 %v2663_v30, %v2662_v48  ;;  %v2146_v58 = vmul.f32 %v9322_v11, %v1883_v19  ;;  %v2408_v43 = vadd.f32 %v9329_v23, %v2145_v60  ;;  %v1884_v2 = vmul.f32 %v8840_v16, %v11576_v56  ;;  %v11584_v48 = vld [vmem:[#allocation42_spill] sm:$0xff] }
 0x4ae   :  { %v2791_v46 = vmax.f32 %v2535_v32, 0.0  ;;  %v2273_v45 = vmul.f32 %v9322_v11, %v2010_v21  ;;  %v2274_v31 = vmul.f32 %v9322_v11, %v2011_v35  ;;  %v1885_v9 = vmul.f32 %v8840_v16, %v11577_v33 }
 0x4af   :  { %5013 = vmatmul.mubr.msk.bf16.gmra.mrb[52].mxu0 %vm274_vm1, %v2891_v63  ;;  %v2409_v38 = vadd.f32 %v9329_v23, %v2146_v58  ;;  %v2664_v40 = vmax.f32 %v2408_v43, 0.0  ;;  %v2147_v57 = vmul.f32 %v9322_v11, %v1884_v2  ;;  %v2012_v54 = vmul.f32 %v8840_v16, %v11578_v34  ;;  %v11587_v2 = vld [vmem:[#allocation150_spill] sm:$0xff] }
 0x4b0   :  { %v2955_v24 = vpack.c.bf16 %v2791_v46, %v2790_v29  ;;  %v2536_v28 = vadd.f32 %v9329_v23, %v2273_v45  ;;  %v2537_v62 = vadd.f32 %v9329_v23, %v2274_v31  ;;  %v2148_v20 = vmul.f32 %v9322_v11, %v1885_v9 }
 0x4b1   :  { %v2665_v51 = vmax.f32 %v2409_v38, 0.0  ;;  %v2410_v5 = vadd.f32 %v9329_v23, %v2147_v57  ;;  %v2013_v61 = vmul.f32 %v8840_v16, %v11579_v41  ;;  %v2275_v18 = vmul.f32 %v9322_v11, %v2012_v54  ;;  %v11588_v38 = vld [vmem:[#allocation44_spill] sm:$0xff] }
 0x4b2   :  { %5141 = vmatmul.mubr.msk.bf16.gmra.mrb[52].mxu1 %vm274_vm1, %v2955_v24  ;;  %v2792_v12 = vmax.f32 %v2536_v28, 0.0  ;;  %v2793_v13 = vmax.f32 %v2537_v62, 0.0  ;;  %v2411_v37 = vadd.f32 %v9329_v23, %v2148_v20  ;;  %v1886_v44 = vmul.f32 %v8840_v16, %v11580_v15  ;;  %v11589_v20 = vld [vmem:[#allocation45_spill] sm:$0xff] }
 0x4b3   :  { %v2892_v8 = vpack.c.bf16 %v2665_v51, %v2664_v40  ;;  %v2666_v3 = vmax.f32 %v2410_v5, 0.0  ;;  %v2276_v42 = vmul.f32 %v9322_v11, %v2013_v61  ;;  %v2538_v17 = vadd.f32 %v9329_v23, %v2275_v18  ;;  %v11590_v18 = vld [vmem:[#allocation151_spill] sm:$0xff] }
 0x4b4   :  { %v2956_v50 = vpack.c.bf16 %v2793_v13, %v2792_v12  ;;  %v2667_v22 = vmax.f32 %v2411_v37, 0.0  ;;  %v1887_v27 = vmul.f32 %v8840_v16, %v11581_v10  ;;  %v2149_v4 = vmul.f32 %v9322_v11, %v1886_v44  ;;  %v11591_v13 = vld [vmem:[#allocation152_spill] sm:$0xff]  ;;  %v11593_v10 = vld [vmem:[#allocation47_spill] sm:$0xff] }
 0x4b5   :  { %5016 = vmatprep.mubr.msk.bf16.mxu0 %vm274_vm1, %v2892_v8  ;;  %v2539_v53 = vadd.f32 %v9329_v23, %v2276_v42  ;;  %v2794_v49 = vmax.f32 %v2538_v17, 0.0  ;;  %v2014_v36 = vmul.f32 %v8840_v16, %v11582_v59  ;;  %v2015_v1 = vmul.f32 %v8840_v16, %v11583_v39  ;;  %v11594_v59 = vld [vmem:[#allocation153_spill] sm:$0xff] }
 0x4b6   :  { %5144 = vmatprep.mubr.msk.bf16.mxu1 %vm274_vm1, %v2956_v50  ;;  %v2893_v47 = vpack.c.bf16 %v2667_v22, %v2666_v3  ;;  %v2150_v7 = vmul.f32 %v9322_v11, %v1887_v27  ;;  %v2412_v25 = vadd.f32 %v9329_v23, %v2149_v4  ;;  %v1888_v52 = vmul.f32 %v8840_v16, %v11584_v48  ;;  %v11592_v3 = vld [vmem:[#allocation46_spill] sm:$0xff] }
 0x4b7   :  { %v2795_v14 = vmax.f32 %v2539_v53, 0.0  ;;  %v2277_v6 = vmul.f32 %v9322_v11, %v2014_v36  ;;  %v2278_v30 = vmul.f32 %v9322_v11, %v2015_v1  ;;  %v1889_v19 = vmul.f32 %v8840_v16, %v11585_v0 }
 0x4b8   :  { %5017 = vmatmul.mubr.msk.bf16.gmra.mrb[56].mxu0 %vm274_vm1, %v2893_v47  ;;  %v2413_v60 = vadd.f32 %v9329_v23, %v2150_v7  ;;  %v2668_v32 = vmax.f32 %v2412_v25, 0.0  ;;  %v2151_v29 = vmul.f32 %v9322_v11, %v1888_v52  ;;  %v2016_v21 = vmul.f32 %v8840_v16, %v11586_v26  ;;  %v11595_v52 = vld [vmem:[#allocation154_spill] sm:$0xff] }
 0x4b9   :  { %v2957_v55 = vpack.c.bf16 %v2795_v14, %v2794_v49  ;;  %v2540_v35 = vadd.f32 %v9329_v23, %v2277_v6  ;;  %v2541_v63 = vadd.f32 %v9329_v23, %v2278_v30  ;;  %v2152_v58 = vmul.f32 %v9322_v11, %v1889_v19 }
 0x4ba   :  { %v2669_v43 = vmax.f32 %v2413_v60, 0.0  ;;  %v2414_v56 = vadd.f32 %v9329_v23, %v2151_v29  ;;  %v2017_v46 = vmul.f32 %v8840_v16, %v11587_v2  ;;  %v2279_v45 = vmul.f32 %v9322_v11, %v2016_v21  ;;  %v11596_v60 = vld [vmem:[#allocation48_spill] sm:$0xff] }
 0x4bb   :  { %5145 = vmatmul.mubr.msk.bf16.gmra.mrb[56].mxu1 %vm274_vm1, %v2957_v55  ;;  %v2796_v31 = vmax.f32 %v2540_v35, 0.0  ;;  %v2797_v33 = vmax.f32 %v2541_v63, 0.0  ;;  %v2415_v9 = vadd.f32 %v9329_v23, %v2152_v58  ;;  %v1890_v40 = vmul.f32 %v8840_v16, %v11588_v38  ;;  %v11597_v58 = vld [vmem:[#allocation49_spill] sm:$0xff] }
 0x4bc   :  { %v2894_v57 = vpack.c.bf16 %v2669_v43, %v2668_v32  ;;  %v2670_v34 = vmax.f32 %v2414_v56, 0.0  ;;  %v2280_v54 = vmul.f32 %v9322_v11, %v2017_v46  ;;  %v2542_v24 = vadd.f32 %v9329_v23, %v2279_v45  ;;  %v11598_v45 = vld [vmem:[#allocation155_spill] sm:$0xff] }
 0x4bd   :  { %v2958_v28 = vpack.c.bf16 %v2797_v33, %v2796_v31  ;;  %v2671_v62 = vmax.f32 %v2415_v9, 0.0  ;;  %v1891_v51 = vmul.f32 %v8840_v16, %v11589_v20  ;;  %v2153_v5 = vmul.f32 %v9322_v11, %v1890_v40  ;;  %v11599_v33 = vld [vmem:[#allocation156_spill] sm:$0xff]  ;;  %v11601_v20 = vld [vmem:[#allocation51_spill] sm:$0xff] }
 0x4be   :  { %5020 = vmatprep.mubr.msk.bf16.mxu0 %vm274_vm1, %v2894_v57  ;;  %v2543_v41 = vadd.f32 %v9329_v23, %v2280_v54  ;;  %v2798_v61 = vmax.f32 %v2542_v24, 0.0  ;;  %v2018_v12 = vmul.f32 %v8840_v16, %v11590_v18  ;;  %v2019_v37 = vmul.f32 %v8840_v16, %v11591_v13  ;;  %v11602_v18 = vld [vmem:[#allocation157_spill] sm:$0xff] }
 0x4bf   :  { %5148 = vmatprep.mubr.msk.bf16.mxu1 %vm274_vm1, %v2958_v28  ;;  %v2895_v15 = vpack.c.bf16 %v2671_v62, %v2670_v34  ;;  %v2154_v44 = vmul.f32 %v9322_v11, %v1891_v51  ;;  %v2416_v8 = vadd.f32 %v9329_v23, %v2153_v5  ;;  %v1892_v42 = vmul.f32 %v8840_v16, %v11592_v3  ;;  %v11600_v34 = vld [vmem:[#allocation50_spill] sm:$0xff] }
 0x4c0   :  { %v2799_v17 = vmax.f32 %v2543_v41, 0.0  ;;  %v2281_v50 = vmul.f32 %v9322_v11, %v2018_v12  ;;  %v2282_v22 = vmul.f32 %v9322_v11, %v2019_v37  ;;  %v1893_v27 = vmul.f32 %v8840_v16, %v11593_v10 }
 0x4c1   :  { %5021 = vmatmul.mubr.msk.bf16.gmra.mrb[60].mxu0 %vm274_vm1, %v2895_v15  ;;  %v2417_v4 = vadd.f32 %v9329_v23, %v2154_v44  ;;  %v2672_v53 = vmax.f32 %v2416_v8, 0.0  ;;  %v2155_v49 = vmul.f32 %v9322_v11, %v1892_v42  ;;  %v2020_v36 = vmul.f32 %v8840_v16, %v11594_v59  ;;  %v11603_v42 = vld [vmem:[#allocation158_spill] sm:$0xff] }
 0x4c2   :  { %v2959_v39 = vpack.c.bf16 %v2799_v17, %v2798_v61  ;;  %v2544_v1 = vadd.f32 %v9329_v23, %v2281_v50  ;;  %v2545_v47 = vadd.f32 %v9329_v23, %v2282_v22  ;;  %v2156_v7 = vmul.f32 %v9322_v11, %v1893_v27 }
 0x4c3   :  { %v2673_v25 = vmax.f32 %v2417_v4, 0.0  ;;  %v2418_v48 = vadd.f32 %v9329_v23, %v2155_v49  ;;  %v2021_v14 = vmul.f32 %v8840_v16, %v11595_v52  ;;  %v2283_v6 = vmul.f32 %v9322_v11, %v2020_v36  ;;  %v11604_v4 = vld [vmem:[#allocation52_spill] sm:$0xff] }
 0x4c4   :  { %5149 = vmatmul.mubr.msk.bf16.gmra.mrb[60].mxu1 %vm274_vm1, %v2959_v39  ;;  %v2800_v30 = vmax.f32 %v2544_v1, 0.0  ;;  %v2801_v0 = vmax.f32 %v2545_v47, 0.0  ;;  %v2419_v19 = vadd.f32 %v9329_v23, %v2156_v7  ;;  %v1894_v32 = vmul.f32 %v8840_v16, %v11596_v60  ;;  %v11605_v7 = vld [vmem:[#allocation53_spill] sm:$0xff] }
 0x4c5   :  { %v2896_v29 = vpack.c.bf16 %v2673_v25, %v2672_v53  ;;  %v2674_v26 = vmax.f32 %v2418_v48, 0.0  ;;  %v2284_v21 = vmul.f32 %v9322_v11, %v2021_v14  ;;  %v2546_v55 = vadd.f32 %v9329_v23, %v2283_v6  ;;  %v11606_v6 = vld [vmem:[#allocation159_spill] sm:$0xff] }
 0x4c6   :  { %v2960_v35 = vpack.c.bf16 %v2801_v0, %v2800_v30  ;;  %v2675_v63 = vmax.f32 %v2419_v19, 0.0  ;;  %v1895_v43 = vmul.f32 %v8840_v16, %v11597_v58  ;;  %v2157_v56 = vmul.f32 %v9322_v11, %v1894_v32  ;;  %v11607_v0 = vld [vmem:[#allocation160_spill] sm:$0xff]  ;;  %v11609_v58 = vld [vmem:[#allocation55_spill] sm:$0xff] }
 0x4c7   :  { %5024 = vmatprep.mubr.msk.bf16.mxu0 %vm274_vm1, %v2896_v29  ;;  %v2547_v2 = vadd.f32 %v9329_v23, %v2284_v21  ;;  %v2802_v46 = vmax.f32 %v2546_v55, 0.0  ;;  %v2022_v31 = vmul.f32 %v8840_v16, %v11598_v45  ;;  %v2023_v9 = vmul.f32 %v8840_v16, %v11599_v33  ;;  %v11610_v45 = vld [vmem:[#allocation161_spill] sm:$0xff] }
 0x4c8   :  { %5152 = vmatprep.mubr.msk.bf16.mxu1 %vm274_vm1, %v2960_v35  ;;  %v2897_v38 = vpack.c.bf16 %v2675_v63, %v2674_v26  ;;  %v2158_v40 = vmul.f32 %v9322_v11, %v1895_v43  ;;  %v2420_v57 = vadd.f32 %v9329_v23, %v2157_v56  ;;  %v1896_v54 = vmul.f32 %v8840_v16, %v11600_v34  ;;  %v11608_v26 = vld [vmem:[#allocation54_spill] sm:$0xff] }
 0x4c9   :  { %v2803_v24 = vmax.f32 %v2547_v2, 0.0  ;;  %v2285_v28 = vmul.f32 %v9322_v11, %v2022_v31  ;;  %v2286_v62 = vmul.f32 %v9322_v11, %v2023_v9  ;;  %v1897_v51 = vmul.f32 %v8840_v16, %v11601_v20 }
 0x4ca   :  { %5025 = vmatmul.mubr.msk.bf16.gmra.mrb[64].mxu0 %vm274_vm1, %v2897_v38  ;;  %v2421_v5 = vadd.f32 %v9329_v23, %v2158_v40  ;;  %v2676_v41 = vmax.f32 %v2420_v57, 0.0  ;;  %v2159_v61 = vmul.f32 %v9322_v11, %v1896_v54  ;;  %v2024_v12 = vmul.f32 %v8840_v16, %v11602_v18  ;;  %v11611_v54 = vld [vmem:[#allocation162_spill] sm:$0xff] }
 0x4cb   :  { %v2961_v13 = vpack.c.bf16 %v2803_v24, %v2802_v46  ;;  %v2548_v37 = vadd.f32 %v9329_v23, %v2285_v28  ;;  %v2549_v15 = vadd.f32 %v9329_v23, %v2286_v62  ;;  %v2160_v44 = vmul.f32 %v9322_v11, %v1897_v51 }
 0x4cc   :  { %v2677_v8 = vmax.f32 %v2421_v5, 0.0  ;;  %v2422_v3 = vadd.f32 %v9329_v23, %v2159_v61  ;;  %v2025_v17 = vmul.f32 %v8840_v16, %v11603_v42  ;;  %v2287_v50 = vmul.f32 %v9322_v11, %v2024_v12  ;;  %v11612_v5 = vld [vmem:[#allocation56_spill] sm:$0xff] }
 0x4cd   :  { %5153 = vmatmul.mubr.msk.bf16.gmra.mrb[64].mxu1 %vm274_vm1, %v2961_v13  ;;  %v2804_v22 = vmax.f32 %v2548_v37, 0.0  ;;  %v2805_v10 = vmax.f32 %v2549_v15, 0.0  ;;  %v2423_v27 = vadd.f32 %v9329_v23, %v2160_v44  ;;  %v1898_v53 = vmul.f32 %v8840_v16, %v11604_v4  ;;  %v11613_v44 = vld [vmem:[#allocation57_spill] sm:$0xff] }
 0x4ce   :  { %v2898_v49 = vpack.c.bf16 %v2677_v8, %v2676_v41  ;;  %v2678_v59 = vmax.f32 %v2422_v3, 0.0  ;;  %v2288_v36 = vmul.f32 %v9322_v11, %v2025_v17  ;;  %v2550_v39 = vadd.f32 %v9329_v23, %v2287_v50  ;;  %v11614_v50 = vld [vmem:[#allocation163_spill] sm:$0xff] }
 0x4cf   :  { %v2962_v1 = vpack.c.bf16 %v2805_v10, %v2804_v22  ;;  %v2679_v47 = vmax.f32 %v2423_v27, 0.0  ;;  %v1899_v25 = vmul.f32 %v8840_v16, %v11605_v7  ;;  %v2161_v48 = vmul.f32 %v9322_v11, %v1898_v53  ;;  %v11615_v10 = vld [vmem:[#allocation164_spill] sm:$0xff]  ;;  %v11617_v7 = vld [vmem:[#allocation59_spill] sm:$0xff] }
 0x4d0   :  { %5028 = vmatprep.mubr.msk.bf16.mxu0 %vm274_vm1, %v2898_v49  ;;  %v2551_v52 = vadd.f32 %v9329_v23, %v2288_v36  ;;  %v2806_v14 = vmax.f32 %v2550_v39, 0.0  ;;  %v2026_v30 = vmul.f32 %v8840_v16, %v11606_v6  ;;  %v2027_v19 = vmul.f32 %v8840_v16, %v11607_v0  ;;  %v11618_v6 = vld [vmem:[#allocation165_spill] sm:$0xff] }
 0x4d1   :  { %5156 = vmatprep.mubr.msk.bf16.mxu1 %vm274_vm1, %v2962_v1  ;;  %v2899_v60 = vpack.c.bf16 %v2679_v47, %v2678_v59  ;;  %v2162_v32 = vmul.f32 %v9322_v11, %v1899_v25  ;;  %v2424_v29 = vadd.f32 %v9329_v23, %v2161_v48  ;;  %v1900_v21 = vmul.f32 %v8840_v16, %v11608_v26  ;;  %v11616_v59 = vld [vmem:[#allocation58_spill] sm:$0xff] }
 0x4d2   :  { %v2807_v55 = vmax.f32 %v2551_v52, 0.0  ;;  %v2289_v35 = vmul.f32 %v9322_v11, %v2026_v30  ;;  %v2290_v63 = vmul.f32 %v9322_v11, %v2027_v19  ;;  %v1901_v43 = vmul.f32 %v8840_v16, %v11609_v58 }
 0x4d3   :  { %5029 = vmatmul.mubr.msk.bf16.gmra.mrb[68].mxu0 %vm274_vm1, %v2899_v60  ;;  %v2425_v56 = vadd.f32 %v9329_v23, %v2162_v32  ;;  %v2680_v2 = vmax.f32 %v2424_v29, 0.0  ;;  %v2163_v46 = vmul.f32 %v9322_v11, %v1900_v21  ;;  %v2028_v31 = vmul.f32 %v8840_v16, %v11610_v45  ;;  %v11619_v21 = vld [vmem:[#allocation166_spill] sm:$0xff] }
 0x4d4   :  { %v2963_v33 = vpack.c.bf16 %v2807_v55, %v2806_v14  ;;  %v2552_v9 = vadd.f32 %v9329_v23, %v2289_v35  ;;  %v2553_v38 = vadd.f32 %v9329_v23, %v2290_v63  ;;  %v2164_v40 = vmul.f32 %v9322_v11, %v1901_v43 }
 0x4d5   :  { %v2681_v57 = vmax.f32 %v2425_v56, 0.0  ;;  %v2426_v34 = vadd.f32 %v9329_v23, %v2163_v46  ;;  %v2029_v24 = vmul.f32 %v8840_v16, %v11611_v54  ;;  %v2291_v28 = vmul.f32 %v9322_v11, %v2028_v31  ;;  %v11620_v56 = vld [vmem:[#allocation60_spill] sm:$0xff] }
 0x4d6   :  { %5157 = vmatmul.mubr.msk.bf16.gmra.mrb[68].mxu1 %vm274_vm1, %v2963_v33  ;;  %v2808_v62 = vmax.f32 %v2552_v9, 0.0  ;;  %v2809_v20 = vmax.f32 %v2553_v38, 0.0  ;;  %v2427_v51 = vadd.f32 %v9329_v23, %v2164_v40  ;;  %v1902_v41 = vmul.f32 %v8840_v16, %v11612_v5  ;;  %v11621_v40 = vld [vmem:[#allocation61_spill] sm:$0xff] }
 0x4d7   :  { %v2900_v61 = vpack.c.bf16 %v2681_v57, %v2680_v2  ;;  %v2682_v18 = vmax.f32 %v2426_v34, 0.0  ;;  %v2292_v12 = vmul.f32 %v9322_v11, %v2029_v24  ;;  %v2554_v13 = vadd.f32 %v9329_v23, %v2291_v28  ;;  %v11622_v28 = vld [vmem:[#allocation167_spill] sm:$0xff] }
 0x4d8   :  { %v2964_v37 = vpack.c.bf16 %v2809_v20, %v2808_v62  ;;  %v2683_v15 = vmax.f32 %v2427_v51, 0.0  ;;  %v1903_v8 = vmul.f32 %v8840_v16, %v11613_v44  ;;  %v2165_v3 = vmul.f32 %v9322_v11, %v1902_v41  ;;  %v11623_v20 = vld [vmem:[#allocation168_spill] sm:$0xff]  ;;  %v11625_v44 = vld [vmem:[#allocation63_spill] sm:$0xff] }
 0x4d9   :  { %5032 = vmatprep.mubr.msk.bf16.mxu0 %vm274_vm1, %v2900_v61  ;;  %v2555_v42 = vadd.f32 %v9329_v23, %v2292_v12  ;;  %v2810_v17 = vmax.f32 %v2554_v13, 0.0  ;;  %v2030_v22 = vmul.f32 %v8840_v16, %v11614_v50  ;;  %v2031_v27 = vmul.f32 %v8840_v16, %v11615_v10  ;;  %v11626_v50 = vld [vmem:[#allocation169_spill] sm:$0xff] }
 0x4da   :  { %5160 = vmatprep.mubr.msk.bf16.mxu1 %vm274_vm1, %v2964_v37  ;;  %v2901_v4 = vpack.c.bf16 %v2683_v15, %v2682_v18  ;;  %v2166_v53 = vmul.f32 %v9322_v11, %v1903_v8  ;;  %v2428_v49 = vadd.f32 %v9329_v23, %v2165_v3  ;;  %v1904_v36 = vmul.f32 %v8840_v16, %v11616_v59  ;;  %v11624_v18 = vld [vmem:[#allocation62_spill] sm:$0xff] }
 0x4db   :  { %v2811_v39 = vmax.f32 %v2555_v42, 0.0  ;;  %v2293_v1 = vmul.f32 %v9322_v11, %v2030_v22  ;;  %v2294_v47 = vmul.f32 %v9322_v11, %v2031_v27  ;;  %v1905_v25 = vmul.f32 %v8840_v16, %v11617_v7 }
 0x4dc   :  { %5033 = vmatmul.mubr.msk.bf16.gmra.mrb[72].mxu0 %vm274_vm1, %v2901_v4  ;;  %v2429_v48 = vadd.f32 %v9329_v23, %v2166_v53  ;;  %v2684_v52 = vmax.f32 %v2428_v49, 0.0  ;;  %v2167_v14 = vmul.f32 %v9322_v11, %v1904_v36  ;;  %v2032_v30 = vmul.f32 %v8840_v16, %v11618_v6  ;;  %v11627_v36 = vld [vmem:[#allocation170_spill] sm:$0xff] }
 0x4dd   :  { %v2965_v0 = vpack.c.bf16 %v2811_v39, %v2810_v17  ;;  %v2556_v19 = vadd.f32 %v9329_v23, %v2293_v1  ;;  %v2557_v60 = vadd.f32 %v9329_v23, %v2294_v47  ;;  %v2168_v32 = vmul.f32 %v9322_v11, %v1905_v25 }
 0x4de   :  { %v2685_v29 = vmax.f32 %v2429_v48, 0.0  ;;  %v2430_v26 = vadd.f32 %v9329_v23, %v2167_v14  ;;  %v2033_v55 = vmul.f32 %v8840_v16, %v11619_v21  ;;  %v2295_v35 = vmul.f32 %v9322_v11, %v2032_v30  ;;  %v11628_v48 = vld [vmem:[#allocation64_spill] sm:$0xff] }
 0x4df   :  { %5161 = vmatmul.mubr.msk.bf16.gmra.mrb[72].mxu1 %vm274_vm1, %v2965_v0  ;;  %v2812_v63 = vmax.f32 %v2556_v19, 0.0  ;;  %v2813_v58 = vmax.f32 %v2557_v60, 0.0  ;;  %v2431_v43 = vadd.f32 %v9329_v23, %v2168_v32  ;;  %v1906_v2 = vmul.f32 %v8840_v16, %v11620_v56  ;;  %v11629_v32 = vld [vmem:[#allocation65_spill] sm:$0xff] }
 0x4e0   :  { %v2902_v46 = vpack.c.bf16 %v2685_v29, %v2684_v52  ;;  %v2686_v45 = vmax.f32 %v2430_v26, 0.0  ;;  %v2296_v31 = vmul.f32 %v9322_v11, %v2033_v55  ;;  %v2558_v33 = vadd.f32 %v9329_v23, %v2295_v35  ;;  %v11630_v35 = vld [vmem:[#allocation171_spill] sm:$0xff] }
 0x4e1   :  { %v2966_v9 = vpack.c.bf16 %v2813_v58, %v2812_v63  ;;  %v2687_v38 = vmax.f32 %v2431_v43, 0.0  ;;  %v1907_v57 = vmul.f32 %v8840_v16, %v11621_v40  ;;  %v2169_v34 = vmul.f32 %v9322_v11, %v1906_v2  ;;  %v11631_v58 = vld [vmem:[#allocation172_spill] sm:$0xff]  ;;  %v11633_v40 = vld [vmem:[#allocation67_spill] sm:$0xff] }
 0x4e2   :  { %5036 = vmatprep.mubr.msk.bf16.mxu0 %vm274_vm1, %v2902_v46  ;;  %v2559_v54 = vadd.f32 %v9329_v23, %v2296_v31  ;;  %v2814_v24 = vmax.f32 %v2558_v33, 0.0  ;;  %v2034_v62 = vmul.f32 %v8840_v16, %v11622_v28  ;;  %v2035_v51 = vmul.f32 %v8840_v16, %v11623_v20  ;;  %v11634_v28 = vld [vmem:[#allocation173_spill] sm:$0xff] }
 0x4e3   :  { %5164 = vmatprep.mubr.msk.bf16.mxu1 %vm274_vm1, %v2966_v9  ;;  %v2903_v5 = vpack.c.bf16 %v2687_v38, %v2686_v45  ;;  %v2170_v41 = vmul.f32 %v9322_v11, %v1907_v57  ;;  %v2432_v61 = vadd.f32 %v9329_v23, %v2169_v34  ;;  %v1908_v12 = vmul.f32 %v8840_v16, %v11624_v18  ;;  %v11632_v45 = vld [vmem:[#allocation66_spill] sm:$0xff] }
 0x4e4   :  { %v2815_v13 = vmax.f32 %v2559_v54, 0.0  ;;  %v2297_v37 = vmul.f32 %v9322_v11, %v2034_v62  ;;  %v2298_v15 = vmul.f32 %v9322_v11, %v2035_v51  ;;  %v1909_v8 = vmul.f32 %v8840_v16, %v11625_v44 }
 0x4e5   :  { %5037 = vmatmul.mubr.msk.bf16.gmra.mrb[76].mxu0 %vm274_vm1, %v2903_v5  ;;  %v2433_v3 = vadd.f32 %v9329_v23, %v2170_v41  ;;  %v2688_v42 = vmax.f32 %v2432_v61, 0.0  ;;  %v2171_v17 = vmul.f32 %v9322_v11, %v1908_v12  ;;  %v2036_v22 = vmul.f32 %v8840_v16, %v11626_v50  ;;  %v11635_v12 = vld [vmem:[#allocation174_spill] sm:$0xff] }
 0x4e6   :  { %v2967_v10 = vpack.c.bf16 %v2815_v13, %v2814_v24  ;;  %v2560_v27 = vadd.f32 %v9329_v23, %v2297_v37  ;;  %v2561_v4 = vadd.f32 %v9329_v23, %v2298_v15  ;;  %v2172_v53 = vmul.f32 %v9322_v11, %v1909_v8 }
 0x4e7   :  { %v2689_v49 = vmax.f32 %v2433_v3, 0.0  ;;  %v2434_v59 = vadd.f32 %v9329_v23, %v2171_v17  ;;  %v2037_v39 = vmul.f32 %v8840_v16, %v11627_v36  ;;  %v2299_v1 = vmul.f32 %v9322_v11, %v2036_v22  ;;  %v11636_v3 = vld [vmem:[#allocation68_spill] sm:$0xff] }
 0x4e8   :  { %5165 = vmatmul.mubr.msk.bf16.gmra.mrb[76].mxu1 %vm274_vm1, %v2967_v10  ;;  %v2816_v47 = vmax.f32 %v2560_v27, 0.0  ;;  %v2817_v7 = vmax.f32 %v2561_v4, 0.0  ;;  %v2435_v25 = vadd.f32 %v9329_v23, %v2172_v53  ;;  %v1910_v52 = vmul.f32 %v8840_v16, %v11628_v48  ;;  %v11637_v53 = vld [vmem:[#allocation69_spill] sm:$0xff] }
 0x4e9   :  { %v2904_v14 = vpack.c.bf16 %v2689_v49, %v2688_v42  ;;  %v2690_v6 = vmax.f32 %v2434_v59, 0.0  ;;  %v2300_v30 = vmul.f32 %v9322_v11, %v2037_v39  ;;  %v2562_v0 = vadd.f32 %v9329_v23, %v2299_v1  ;;  %v11638_v1 = vld [vmem:[#allocation175_spill] sm:$0xff] }
 0x4ea   :  { %v2968_v19 = vpack.c.bf16 %v2817_v7, %v2816_v47  ;;  %v2691_v60 = vmax.f32 %v2435_v25, 0.0  ;;  %v1911_v29 = vmul.f32 %v8840_v16, %v11629_v32  ;;  %v2173_v26 = vmul.f32 %v9322_v11, %v1910_v52  ;;  %v11639_v7 = vld [vmem:[#allocation176_spill] sm:$0xff]  ;;  %v11641_v32 = vld [vmem:[#allocation71_spill] sm:$0xff] }
 0x4eb   :  { %5040 = vmatprep.mubr.msk.bf16.mxu0 %vm274_vm1, %v2904_v14  ;;  %v2563_v21 = vadd.f32 %v9329_v23, %v2300_v30  ;;  %v2818_v55 = vmax.f32 %v2562_v0, 0.0  ;;  %v2038_v63 = vmul.f32 %v8840_v16, %v11630_v35  ;;  %v2039_v43 = vmul.f32 %v8840_v16, %v11631_v58  ;;  %v11642_v35 = vld [vmem:[#allocation177_spill] sm:$0xff] }
 0x4ec   :  { %5168 = vmatprep.mubr.msk.bf16.mxu1 %vm274_vm1, %v2968_v19  ;;  %v2905_v56 = vpack.c.bf16 %v2691_v60, %v2690_v6  ;;  %v2174_v2 = vmul.f32 %v9322_v11, %v1911_v29  ;;  %v2436_v46 = vadd.f32 %v9329_v23, %v2173_v26  ;;  %v1912_v31 = vmul.f32 %v8840_v16, %v11632_v45  ;;  %v11640_v6 = vld [vmem:[#allocation70_spill] sm:$0xff] }
 0x4ed   :  { %v2819_v33 = vmax.f32 %v2563_v21, 0.0  ;;  %v2301_v9 = vmul.f32 %v9322_v11, %v2038_v63  ;;  %v2302_v38 = vmul.f32 %v9322_v11, %v2039_v43  ;;  %v1913_v57 = vmul.f32 %v8840_v16, %v11633_v40 }
 0x4ee   :  { %5041 = vmatmul.mubr.msk.bf16.gmra.mrb[80].mxu0 %vm274_vm1, %v2905_v56  ;;  %v2437_v34 = vadd.f32 %v9329_v23, %v2174_v2  ;;  %v2692_v54 = vmax.f32 %v2436_v46, 0.0  ;;  %v2175_v24 = vmul.f32 %v9322_v11, %v1912_v31  ;;  %v2040_v62 = vmul.f32 %v8840_v16, %v11634_v28  ;;  %v11643_v31 = vld [vmem:[#allocation178_spill] sm:$0xff] }
 0x4ef   :  { %v2969_v20 = vpack.c.bf16 %v2819_v33, %v2818_v55  ;;  %v2564_v51 = vadd.f32 %v9329_v23, %v2301_v9  ;;  %v2565_v5 = vadd.f32 %v9329_v23, %v2302_v38  ;;  %v2176_v41 = vmul.f32 %v9322_v11, %v1913_v57 }
 0x4f0   :  { %v2693_v61 = vmax.f32 %v2437_v34, 0.0  ;;  %v2438_v18 = vadd.f32 %v9329_v23, %v2175_v24  ;;  %v2041_v13 = vmul.f32 %v8840_v16, %v11635_v12  ;;  %v2303_v37 = vmul.f32 %v9322_v11, %v2040_v62  ;;  %v11644_v34 = vld [vmem:[#allocation72_spill] sm:$0xff] }
 0x4f1   :  { %5169 = vmatmul.mubr.msk.bf16.gmra.mrb[80].mxu1 %vm274_vm1, %v2969_v20  ;;  %v2820_v15 = vmax.f32 %v2564_v51, 0.0  ;;  %v2821_v44 = vmax.f32 %v2565_v5, 0.0  ;;  %v2439_v8 = vadd.f32 %v9329_v23, %v2176_v41  ;;  %v1914_v42 = vmul.f32 %v8840_v16, %v11636_v3  ;;  %v11645_v41 = vld [vmem:[#allocation73_spill] sm:$0xff] }
 0x4f2   :  { %v2906_v17 = vpack.c.bf16 %v2693_v61, %v2692_v54  ;;  %v2694_v50 = vmax.f32 %v2438_v18, 0.0  ;;  %v2304_v22 = vmul.f32 %v9322_v11, %v2041_v13  ;;  %v2566_v10 = vadd.f32 %v9329_v23, %v2303_v37  ;;  %v11646_v37 = vld [vmem:[#allocation179_spill] sm:$0xff] }
 0x4f3   :  { %v2970_v27 = vpack.c.bf16 %v2821_v44, %v2820_v15  ;;  %v2695_v4 = vmax.f32 %v2439_v8, 0.0  ;;  %v1915_v49 = vmul.f32 %v8840_v16, %v11637_v53  ;;  %v2177_v59 = vmul.f32 %v9322_v11, %v1914_v42  ;;  %v11647_v44 = vld [vmem:[#allocation180_spill] sm:$0xff]  ;;  %v11649_v53 = vld [vmem:[#allocation75_spill] sm:$0xff] }
 0x4f4   :  { %5044 = vmatprep.mubr.msk.bf16.mxu0 %vm274_vm1, %v2906_v17  ;;  %v2567_v36 = vadd.f32 %v9329_v23, %v2304_v22  ;;  %v2822_v39 = vmax.f32 %v2566_v10, 0.0  ;;  %v2042_v47 = vmul.f32 %v8840_v16, %v11638_v1  ;;  %v2043_v25 = vmul.f32 %v8840_v16, %v11639_v7  ;;  %v11650_v1 = vld [vmem:[#allocation181_spill] sm:$0xff] }
 0x4f5   :  { %5172 = vmatprep.mubr.msk.bf16.mxu1 %vm274_vm1, %v2970_v27  ;;  %v2907_v48 = vpack.c.bf16 %v2695_v4, %v2694_v50  ;;  %v2178_v52 = vmul.f32 %v9322_v11, %v1915_v49  ;;  %v2440_v14 = vadd.f32 %v9329_v23, %v2177_v59  ;;  %v1916_v30 = vmul.f32 %v8840_v16, %v11640_v6  ;;  %v11648_v50 = vld [vmem:[#allocation74_spill] sm:$0xff] }
 0x4f6   :  { %v2823_v0 = vmax.f32 %v2567_v36, 0.0  ;;  %v2305_v19 = vmul.f32 %v9322_v11, %v2042_v47  ;;  %v2306_v60 = vmul.f32 %v9322_v11, %v2043_v25  ;;  %v1917_v29 = vmul.f32 %v8840_v16, %v11641_v32 }
 0x4f7   :  { %5045 = vmatmul.mubr.msk.bf16.gmra.mrb[84].mxu0 %vm274_vm1, %v2907_v48  ;;  %v2441_v26 = vadd.f32 %v9329_v23, %v2178_v52  ;;  %v2696_v21 = vmax.f32 %v2440_v14, 0.0  ;;  %v2179_v55 = vmul.f32 %v9322_v11, %v1916_v30  ;;  %v2044_v63 = vmul.f32 %v8840_v16, %v11642_v35  ;;  %v11651_v30 = vld [vmem:[#allocation182_spill] sm:$0xff] }
 0x4f8   :  { %v2971_v58 = vpack.c.bf16 %v2823_v0, %v2822_v39  ;;  %v2568_v43 = vadd.f32 %v9329_v23, %v2305_v19  ;;  %v2569_v56 = vadd.f32 %v9329_v23, %v2306_v60  ;;  %v2180_v2 = vmul.f32 %v9322_v11, %v1917_v29 }
 0x4f9   :  { %v2697_v46 = vmax.f32 %v2441_v26, 0.0  ;;  %v2442_v45 = vadd.f32 %v9329_v23, %v2179_v55  ;;  %v2045_v33 = vmul.f32 %v8840_v16, %v11643_v31  ;;  %v2307_v9 = vmul.f32 %v9322_v11, %v2044_v63  ;;  %v11652_v26 = vld [vmem:[#allocation76_spill] sm:$0xff] }
 0x4fa   :  { %5173 = vmatmul.mubr.msk.bf16.gmra.mrb[84].mxu1 %vm274_vm1, %v2971_v58  ;;  %v2824_v38 = vmax.f32 %v2568_v43, 0.0  ;;  %v2825_v40 = vmax.f32 %v2569_v56, 0.0  ;;  %v2443_v57 = vadd.f32 %v9329_v23, %v2180_v2  ;;  %v1918_v54 = vmul.f32 %v8840_v16, %v11644_v34  ;;  %v11653_v2 = vld [vmem:[#allocation77_spill] sm:$0xff] }
 0x4fb   :  { %v2908_v24 = vpack.c.bf16 %v2697_v46, %v2696_v21  ;;  %v2698_v28 = vmax.f32 %v2442_v45, 0.0  ;;  %v2308_v62 = vmul.f32 %v9322_v11, %v2045_v33  ;;  %v2570_v20 = vadd.f32 %v9329_v23, %v2307_v9  ;;  %v11654_v9 = vld [vmem:[#allocation183_spill] sm:$0xff] }
 0x4fc   :  { %v2972_v51 = vpack.c.bf16 %v2825_v40, %v2824_v38  ;;  %v2699_v5 = vmax.f32 %v2443_v57, 0.0  ;;  %v1919_v61 = vmul.f32 %v8840_v16, %v11645_v41  ;;  %v2181_v18 = vmul.f32 %v9322_v11, %v1918_v54  ;;  %v11655_v40 = vld [vmem:[#allocation184_spill] sm:$0xff]  ;;  %v11657_v41 = vld [vmem:[#allocation79_spill] sm:$0xff] }
 0x4fd   :  { %5048 = vmatprep.mubr.msk.bf16.mxu0 %vm274_vm1, %v2908_v24  ;;  %v2571_v12 = vadd.f32 %v9329_v23, %v2308_v62  ;;  %v2826_v13 = vmax.f32 %v2570_v20, 0.0  ;;  %v2046_v15 = vmul.f32 %v8840_v16, %v11646_v37  ;;  %v2047_v8 = vmul.f32 %v8840_v16, %v11647_v44  ;;  %v11658_v37 = vld [vmem:[#allocation185_spill] sm:$0xff] }
 0x4fe   :  { %5176 = vmatprep.mubr.msk.bf16.mxu1 %vm274_vm1, %v2972_v51  ;;  %v2909_v3 = vpack.c.bf16 %v2699_v5, %v2698_v28  ;;  %v2182_v42 = vmul.f32 %v9322_v11, %v1919_v61  ;;  %v2444_v17 = vadd.f32 %v9329_v23, %v2181_v18  ;;  %v1920_v22 = vmul.f32 %v8840_v16, %v11648_v50  ;;  %v11656_v28 = vld [vmem:[#allocation78_spill] sm:$0xff] }
 0x4ff   :  { %v2827_v10 = vmax.f32 %v2571_v12, 0.0  ;;  %v2309_v27 = vmul.f32 %v9322_v11, %v2046_v15  ;;  %v2310_v4 = vmul.f32 %v9322_v11, %v2047_v8  ;;  %v1921_v49 = vmul.f32 %v8840_v16, %v11649_v53 }
 0x500   :  { %5049 = vmatmul.mubr.msk.bf16.gmra.mrb[88].mxu0 %vm274_vm1, %v2909_v3  ;;  %v2445_v59 = vadd.f32 %v9329_v23, %v2182_v42  ;;  %v2700_v36 = vmax.f32 %v2444_v17, 0.0  ;;  %v2183_v39 = vmul.f32 %v9322_v11, %v1920_v22  ;;  %v2048_v47 = vmul.f32 %v8840_v16, %v11650_v1  ;;  %v11659_v22 = vld [vmem:[#allocation186_spill] sm:$0xff] }
 0x501   :  { %v2973_v7 = vpack.c.bf16 %v2827_v10, %v2826_v13  ;;  %v2572_v25 = vadd.f32 %v9329_v23, %v2309_v27  ;;  %v2573_v48 = vadd.f32 %v9329_v23, %v2310_v4  ;;  %v2184_v52 = vmul.f32 %v9322_v11, %v1921_v49 }
 0x502   :  { %v2701_v14 = vmax.f32 %v2445_v59, 0.0  ;;  %v2446_v6 = vadd.f32 %v9329_v23, %v2183_v39  ;;  %v2049_v0 = vmul.f32 %v8840_v16, %v11651_v30  ;;  %v2311_v19 = vmul.f32 %v9322_v11, %v2048_v47  ;;  %v11660_v59 = vld [vmem:[#allocation80_spill] sm:$0xff] }
 0x503   :  { %5177 = vmatmul.mubr.msk.bf16.gmra.mrb[88].mxu1 %vm274_vm1, %v2973_v7  ;;  %v2828_v60 = vmax.f32 %v2572_v25, 0.0  ;;  %v2829_v32 = vmax.f32 %v2573_v48, 0.0  ;;  %v2447_v29 = vadd.f32 %v9329_v23, %v2184_v52  ;;  %v1922_v21 = vmul.f32 %v8840_v16, %v11652_v26 }
 0x504   :  { %v2910_v55 = vpack.c.bf16 %v2701_v14, %v2700_v36  ;;  %v2702_v35 = vmax.f32 %v2446_v6, 0.0  ;;  %v2312_v63 = vmul.f32 %v9322_v11, %v2049_v0  ;;  %v2574_v58 = vadd.f32 %v9329_v23, %v2311_v19  ;;  %v11661_v0 = vld [vmem:[#allocation81_spill] sm:$0xff] }
 0x505   :  { %v2974_v43 = vpack.c.bf16 %v2829_v32, %v2828_v60  ;;  %v2703_v56 = vmax.f32 %v2447_v29, 0.0  ;;  %v1923_v46 = vmul.f32 %v8840_v16, %v11653_v2  ;;  %v2185_v45 = vmul.f32 %v9322_v11, %v1922_v21 }
 0x506   :  { %5052 = vmatprep.mubr.msk.bf16.mxu0 %vm274_vm1, %v2910_v55  ;;  %v2575_v31 = vadd.f32 %v9329_v23, %v2312_v63  ;;  %v2830_v33 = vmax.f32 %v2574_v58, 0.0  ;;  %v2050_v38 = vmul.f32 %v8840_v16, %v11654_v9  ;;  %v2051_v57 = vmul.f32 %v8840_v16, %v11655_v40  ;;  %v11662_v55 = vld [vmem:[#allocation187_spill] sm:$0xff]  ;;  %v11663_v63 = vld [vmem:[#allocation188_spill] sm:$0xff] }
 0x507   :  { %5180 = vmatprep.mubr.msk.bf16.mxu1 %vm274_vm1, %v2974_v43  ;;  %v2911_v34 = vpack.c.bf16 %v2703_v56, %v2702_v35  ;;  %v2186_v54 = vmul.f32 %v9322_v11, %v1923_v46  ;;  %v2448_v24 = vadd.f32 %v9329_v23, %v2185_v45  ;;  %v1924_v62 = vmul.f32 %v8840_v16, %v11656_v28 }
 0x508   :  { %v2831_v20 = vmax.f32 %v2575_v31, 0.0  ;;  %v2313_v51 = vmul.f32 %v9322_v11, %v2050_v38  ;;  %v2314_v5 = vmul.f32 %v9322_v11, %v2051_v57  ;;  %v1925_v61 = vmul.f32 %v8840_v16, %v11657_v41  ;;  %v11664_v31 = vld [vmem:[#allocation82_spill] sm:$0xff]  ;;  %v11665_v57 = vld [vmem:[#allocation83_spill] sm:$0xff] }
 0x509   :  { %5053 = vmatmul.mubr.msk.bf16.gmra.mrb[92].mxu0 %vm274_vm1, %v2911_v34  ;;  %v2449_v18 = vadd.f32 %v9329_v23, %v2186_v54  ;;  %v2704_v12 = vmax.f32 %v2448_v24, 0.0  ;;  %v2187_v13 = vmul.f32 %v9322_v11, %v1924_v62  ;;  %v2052_v15 = vmul.f32 %v8840_v16, %v11658_v37  ;;  %v11666_v62 = vld [vmem:[#allocation189_spill] sm:$0xff] }
 0x50a   :  { %v2975_v44 = vpack.c.bf16 %v2831_v20, %v2830_v33  ;;  %v2576_v8 = vadd.f32 %v9329_v23, %v2313_v51  ;;  %v2577_v3 = vadd.f32 %v9329_v23, %v2314_v5  ;;  %v2188_v42 = vmul.f32 %v9322_v11, %v1925_v61 }
 0x50b   :  { %v2705_v17 = vmax.f32 %v2449_v18, 0.0  ;;  %v2450_v50 = vadd.f32 %v9329_v23, %v2187_v13  ;;  %v2053_v10 = vmul.f32 %v8840_v16, %v11659_v22  ;;  %v2315_v27 = vmul.f32 %v9322_v11, %v2052_v15  ;;  %v11667_v13 = vld [vmem:[#allocation190_spill] sm:$0xff] }
 0x50c   :  { %5181 = vmatmul.mubr.msk.bf16.gmra.mrb[92].mxu1 %vm274_vm1, %v2975_v44  ;;  %v2832_v4 = vmax.f32 %v2576_v8, 0.0  ;;  %v2833_v53 = vmax.f32 %v2577_v3, 0.0  ;;  %v2451_v49 = vadd.f32 %v9329_v23, %v2188_v42  ;;  %v1926_v36 = vmul.f32 %v8840_v16, %v11660_v59  ;;  %v9757_v39 = vpop.f32.mrb[0].mxu0  ;;  %v9759_v1 = vpop.f32.mrb[0].mxu1  ;;  %v9807_v15 = vld [vmem:[%s11074_s1] ss:$0 sm:$0xff] }
 0x50d   :  { %v2912_v47 = vpack.c.bf16 %v2705_v17, %v2704_v12  ;;  %v2706_v7 = vmax.f32 %v2450_v50, 0.0  ;;  %v2316_v25 = vmul.f32 %v9322_v11, %v2053_v10  ;;  %v2578_v48 = vadd.f32 %v9329_v23, %v2315_v27  ;;  %v9763_v52 = vpop.f32.mrb[1].mxu0  ;;  %v9765_v14 = vpop.f32.mrb[1].mxu1  ;;  %v11668_v42 = vld [vmem:[#allocation84_spill] sm:$0xff]  ;;  %v11669_v59 = vld [vmem:[#allocation85_spill] sm:$0xff]  ;;  %4441 = vst.msk [vmem:[%s11076_s4 + $0x10] sm:$0xff] %vm4438_vm2, %v9757_v39 }
 0x50e   :  { %v2976_v6 = vpack.c.bf16 %v2833_v53, %v2832_v4  ;;  %v2707_v30 = vmax.f32 %v2451_v49, 0.0  ;;  %v1927_v19 = vmul.f32 %v8840_v16, %v11661_v0  ;;  %v2189_v60 = vmul.f32 %v9322_v11, %v1926_v36  ;;  %v9770_v32 = vpop.f32.mrb[2].mxu0  ;;  %v9772_v29 = vpop.f32.mrb[2].mxu1  ;;  %v11671_v0 = vld [vmem:[#allocation192_spill] sm:$0xff]  ;;  %4569 = vst.msk [vmem:[%s11076_s4 + $0x410] sm:$0xff] %vm4438_vm2, %v9759_v1  ;;  %4439 = vst.msk [vmem:[%s11076_s4] sm:$0xff] %vm4438_vm2, %v9763_v52 }
 0x50f   :  { %5056 = vmatprep.mubr.msk.bf16.mxu0 %vm274_vm1, %v2912_v47  ;;  %v2579_v26 = vadd.f32 %v9329_v23, %v2316_v25  ;;  %v2834_v21 = vmax.f32 %v2578_v48, 0.0  ;;  %v2054_v35 = vmul.f32 %v8840_v16, %v11662_v55  ;;  %v2055_v58 = vmul.f32 %v8840_v16, %v11663_v63  ;;  %v9780_v43 = vpop.f32.mrb[3].mxu0  ;;  %v9782_v56 = vpop.f32.mrb[3].mxu1  ;;  %v11672_v63 = vld [vmem:[#allocation86_spill] sm:$0xff]  ;;  %4567 = vst.msk [vmem:[%s11076_s4 + $0x400] sm:$0xff] %vm4438_vm2, %v9765_v14  ;;  %v11676_v14 = vld [vmem:[#allocation88_spill] sm:$0xff] }
 0x510   :  { %5184 = vmatprep.mubr.msk.bf16.mxu1 %vm274_vm1, %v2976_v6  ;;  %v2913_v2 = vpack.c.bf16 %v2707_v30, %v2706_v7  ;;  %v2190_v46 = vmul.f32 %v9322_v11, %v1927_v19  ;;  %v2452_v45 = vadd.f32 %v9329_v23, %v2189_v60  ;;  %v1928_v33 = vmul.f32 %v8840_v16, %v11664_v31  ;;  %v11670_v6 = vld [vmem:[#allocation191_spill] sm:$0xff] }
 0x511   :  { %v2835_v9 = vmax.f32 %v2579_v26, 0.0  ;;  %v2317_v38 = vmul.f32 %v9322_v11, %v2054_v35  ;;  %v2318_v40 = vmul.f32 %v9322_v11, %v2055_v58  ;;  %v1929_v34 = vmul.f32 %v8840_v16, %v11665_v57  ;;  %4442 = vst.msk [vmem:[%s11076_s4 + $0x18] sm:$0xff] %vm4438_vm2, %v9770_v32  ;;  %4570 = vst.msk [vmem:[%s11076_s4 + $0x418] sm:$0xff] %vm4438_vm2, %v9772_v29  ;;  %v11677_v29 = vld [vmem:[#allocation89_spill] sm:$0xff] }
 0x512   :  { %5057 = vmatmul.mubr.msk.bf16.gmra.mrb[96].mxu0 %vm274_vm1, %v2913_v2  ;;  %v2453_v54 = vadd.f32 %v9329_v23, %v2190_v46  ;;  %v2708_v24 = vmax.f32 %v2452_v45, 0.0  ;;  %v2191_v28 = vmul.f32 %v9322_v11, %v1928_v33  ;;  %v2056_v20 = vmul.f32 %v8840_v16, %v11666_v62  ;;  %4440 = vst.msk [vmem:[%s11076_s4 + $0x8] sm:$0xff] %vm4438_vm2, %v9780_v43 }
 0x513   :  { %v2977_v51 = vpack.c.bf16 %v2835_v9, %v2834_v21  ;;  %v2580_v5 = vadd.f32 %v9329_v23, %v2317_v38  ;;  %v2581_v41 = vadd.f32 %v9329_v23, %v2318_v40  ;;  %v2192_v61 = vmul.f32 %v9322_v11, %v1929_v34  ;;  %v9814_v11 = vld [vmem:[%s11075_s2] ss:$0 sm:$0xff]  ;;  %v11673_v9 = vld [vmem:[#allocation87_spill] sm:$0xff]  ;;  %4568 = vst.msk [vmem:[%s11076_s4 + $0x408] sm:$0xff] %vm4438_vm2, %v9782_v56 }
 0x514   :  { %v2709_v18 = vmax.f32 %v2453_v54, 0.0  ;;  %v2454_v12 = vadd.f32 %v9329_v23, %v2191_v28  ;;  %v2057_v37 = vmul.f32 %v8840_v16, %v11667_v13  ;;  %v2319_v44 = vmul.f32 %v9807_v15, %v2056_v20 }
 0x515   :  { %5185 = vmatmul.mubr.msk.bf16.gmra.mrb[96].mxu1 %vm274_vm1, %v2977_v51  ;;  %v2836_v8 = vmax.f32 %v2580_v5, 0.0  ;;  %v2837_v3 = vmax.f32 %v2581_v41, 0.0  ;;  %v2455_v23 = vadd.f32 %v9814_v11, %v2192_v61  ;;  %v1930_v17 = vmul.f32 %v8840_v16, %v11668_v42 }
 0x516   :  { %v2914_v50 = vpack.c.bf16 %v2709_v18, %v2708_v24  ;;  %v2710_v22 = vmax.f32 %v2454_v12, 0.0  ;;  %v2320_v10 = vmul.f32 %v9807_v15, %v2057_v37  ;;  %v2582_v27 = vadd.f32 %v9814_v11, %v2319_v44  ;;  %v4966_v4 = vpop.f32.mrb[4].mxu0  ;;  %v11674_v24 = vld [vmem:[#allocation193_spill] sm:$0xff]  ;;  %v11675_v12 = vld [vmem:[#allocation194_spill] sm:$0xff] }
 0x517   :  { %v2978_v53 = vpack.c.bf16 %v2837_v3, %v2836_v8  ;;  %v2711_v49 = vmax.f32 %v2455_v23, 0.0  ;;  %v1931_v36 = vmul.f32 %v8840_v16, %v11669_v59  ;;  %v2193_v47 = vmul.f32 %v9807_v15, %v1930_v17  ;;  %v3431_v7 = vpop.f32.mrb[5].mxu0  ;;  %4445 = vst.msk [vmem:[%s11076_s4 + $0x30] sm:$0xff] %vm4438_vm2, %v4966_v4 }
 0x518   :  { %5060 = vmatprep.mubr.msk.bf16.mxu0 %vm274_vm1, %v2914_v50  ;;  %v2583_v25 = vadd.f32 %v9814_v11, %v2320_v10  ;;  %v2838_v48 = vmax.f32 %v2582_v27, 0.0  ;;  %v2058_v30 = vmul.f32 %v8840_v16, %v11670_v6  ;;  %v2059_v19 = vmul.f32 %v8840_v16, %v11671_v0  ;;  %v5094_v60 = vpop.f32.mrb[4].mxu1  ;;  %v4967_v26 = vpop.f32.mrb[6].mxu0  ;;  %4443 = vst.msk [vmem:[%s11076_s4 + $0x20] sm:$0xff] %vm4438_vm2, %v3431_v7  ;;  %v11678_v27 = vld [vmem:[#allocation195_spill] sm:$0xff] }
 0x519   :  { %5188 = vmatprep.mubr.msk.bf16.mxu1 %vm274_vm1, %v2978_v53  ;;  %v2915_v21 = vpack.c.bf16 %v2711_v49, %v2710_v22  ;;  %v2194_v55 = vmul.f32 %v9807_v15, %v1931_v36  ;;  %v2456_v35 = vadd.f32 %v9814_v11, %v2193_v47  ;;  %v1932_v58 = vmul.f32 %v8840_v16, %v11672_v63  ;;  %v3943_v2 = vpop.f32.mrb[5].mxu1  ;;  %v3434_v46 = vpop.f32.mrb[7].mxu0  ;;  %v11679_v53 = vld [vmem:[#allocation196_spill] sm:$0xff] }
 0x51a   :  { %v2839_v45 = vmax.f32 %v2583_v25, 0.0  ;;  %v2321_v31 = vmul.f32 %v9807_v15, %v2058_v30  ;;  %v2322_v33 = vmul.f32 %v9807_v15, %v2059_v19  ;;  %v1933_v38 = vmul.f32 %v8840_v16, %v11673_v9  ;;  %v5095_v40 = vpop.f32.mrb[6].mxu1  ;;  %4573 = vst.msk [vmem:[%s11076_s4 + $0x430] sm:$0xff] %vm4438_vm2, %v5094_v60  ;;  %4571 = vst.msk [vmem:[%s11076_s4 + $0x420] sm:$0xff] %vm4438_vm2, %v3943_v2  ;;  %v11680_v25 = vld [vmem:[#allocation90_spill] sm:$0xff]  ;;  %v11682_v2 = vld [vmem:[#allocation197_spill] sm:$0xff] }
 0x51b   :  { %5061 = vmatmul.mubr.msk.bf16.gmra.mrb[100].mxu0 %vm274_vm1, %v2915_v21  ;;  %v2457_v57 = vadd.f32 %v9814_v11, %v2194_v55  ;;  %v2712_v34 = vmax.f32 %v2456_v35, 0.0  ;;  %v2195_v54 = vmul.f32 %v9807_v15, %v1932_v58  ;;  %v2060_v28 = vmul.f32 %v8840_v16, %v11674_v24  ;;  %v3946_v62 = vpop.f32.mrb[7].mxu1  ;;  %4446 = vst.msk [vmem:[%s11076_s4 + $0x38] sm:$0xff] %vm4438_vm2, %v4967_v26  ;;  %v11681_v26 = vld [vmem:[#allocation91_spill] sm:$0xff]  ;;  %v11683_v24 = vld [vmem:[#allocation198_spill] sm:$0xff] }
 0x51c   :  { %v2979_v20 = vpack.c.bf16 %v2839_v45, %v2838_v48  ;;  %v2584_v51 = vadd.f32 %v9814_v11, %v2321_v31  ;;  %v2585_v5 = vadd.f32 %v9814_v11, %v2322_v33  ;;  %v2196_v41 = vmul.f32 %v9807_v15, %v1933_v38  ;;  %4574 = vst.msk [vmem:[%s11076_s4 + $0x438] sm:$0xff] %vm4438_vm2, %v5095_v40 }
 0x51d   :  { %v2713_v61 = vmax.f32 %v2457_v57, 0.0  ;;  %v2458_v18 = vadd.f32 %v9814_v11, %v2195_v54  ;;  %v2061_v13 = vmul.f32 %v8840_v16, %v11675_v12  ;;  %v2323_v37 = vmul.f32 %v9807_v15, %v2060_v28  ;;  %4444 = vst.msk [vmem:[%s11076_s4 + $0x28] sm:$0xff] %vm4438_vm2, %v3434_v46  ;;  %4572 = vst.msk [vmem:[%s11076_s4 + $0x428] sm:$0xff] %vm4438_vm2, %v3946_v62  ;;  %v11684_v12 = vld [vmem:[#allocation92_spill] sm:$0xff] }
 0x51e   :  { %5189 = vmatmul.mubr.msk.bf16.gmra.mrb[100].mxu1 %vm274_vm1, %v2979_v20  ;;  %v2840_v44 = vmax.f32 %v2584_v51, 0.0  ;;  %v2841_v8 = vmax.f32 %v2585_v5, 0.0  ;;  %v2459_v3 = vadd.f32 %v9814_v11, %v2196_v41  ;;  %v1934_v32 = vmul.f32 %v8840_v16, %v11676_v14  ;;  %v11687_v14 = vld [vmem:[#allocation200_spill] sm:$0xff] }
 0x51f   :  { %v2916_v23 = vpack.c.bf16 %v2713_v61, %v2712_v34  ;;  %v2714_v42 = vmax.f32 %v2458_v18, 0.0  ;;  %v2324_v17 = vmul.f32 %v9807_v15, %v2061_v13  ;;  %v2586_v50 = vadd.f32 %v9814_v11, %v2323_v37  ;;  %v4970_v39 = vpop.f32.mrb[8].mxu0 }
 0x520   :  { %v2980_v1 = vpack.c.bf16 %v2841_v8, %v2840_v44  ;;  %v2715_v52 = vmax.f32 %v2459_v3, 0.0  ;;  %v1935_v43 = vmul.f32 %v8840_v16, %v11677_v29  ;;  %4449 = vst.msk [vmem:[%s11076_s4 + $0x50] sm:$0xff] %vm4438_vm2, %v4970_v39  ;;  %v3447_v56 = vpop.f32.mrb[9].mxu0  ;;  %v2062_v4 = vmul.f32 %v8840_v16, %v11678_v27 }
 0x521   :  { %5064 = vmatprep.mubr.msk.bf16.mxu0 %vm274_vm1, %v2916_v23  ;;  %v2587_v22 = vadd.f32 %v9814_v11, %v2324_v17  ;;  %v2842_v10 = vmax.f32 %v2586_v50, 0.0  ;;  %v2063_v49 = vmul.f32 %v8840_v16, %v11679_v53  ;;  %4447 = vst.msk [vmem:[%s11076_s4 + $0x40] sm:$0xff] %vm4438_vm2, %v3447_v56  ;;  %v4971_v59 = vpop.f32.mrb[10].mxu0  ;;  %v2197_v47 = vmul.f32 %v9807_v15, %v1934_v32  ;;  %v11685_v23 = vld [vmem:[#allocation93_spill] sm:$0xff] }
 0x522   :  { %5192 = vmatprep.mubr.msk.bf16.mxu1 %vm274_vm1, %v2980_v1  ;;  %v2917_v36 = vpack.c.bf16 %v2715_v52, %v2714_v42  ;;  %v2198_v7 = vmul.f32 %v9807_v15, %v1935_v43  ;;  %v1936_v48 = vmul.f32 %v8840_v16, %v11680_v25  ;;  %v5098_v6 = vpop.f32.mrb[8].mxu1  ;;  %4450 = vst.msk [vmem:[%s11076_s4 + $0x58] sm:$0xff] %vm4438_vm2, %v4971_v59  ;;  %v3450_v30 = vpop.f32.mrb[11].mxu0  ;;  %v11686_v1 = vld [vmem:[#allocation199_spill] sm:$0xff] }
 0x523   :  { %v2843_v0 = vmax.f32 %v2587_v22, 0.0  ;;  %v2325_v19 = vmul.f32 %v9807_v15, %v2062_v4  ;;  %v2326_v60 = vmul.f32 %v9807_v15, %v2063_v49  ;;  %v1937_v21 = vmul.f32 %v8840_v16, %v11681_v26  ;;  %4577 = vst.msk [vmem:[%s11076_s4 + $0x450] sm:$0xff] %vm4438_vm2, %v5098_v6  ;;  %v3959_v55 = vpop.f32.mrb[9].mxu1  ;;  %4448 = vst.msk [vmem:[%s11076_s4 + $0x48] sm:$0xff] %vm4438_vm2, %v3450_v30 }
 0x524   :  { %5065 = vmatmul.mubr.msk.bf16.gmra.mrb[104].mxu0 %vm274_vm1, %v2917_v36  ;;  %v2460_v35 = vadd.f32 %v9814_v11, %v2197_v47  ;;  %v2461_v63 = vadd.f32 %v9814_v11, %v2198_v7  ;;  %v2199_v58 = vmul.f32 %v9807_v15, %v1936_v48  ;;  %v2064_v46 = vmul.f32 %v8840_v16, %v11682_v2  ;;  %v5099_v45 = vpop.f32.mrb[10].mxu1  ;;  %v11689_v48 = vld [vmem:[#allocation95_spill] sm:$0xff] }
 0x525   :  { %4575 = vst.msk [vmem:[%s11076_s4 + $0x440] sm:$0xff] %vm4438_vm2, %v3959_v55  ;;  %v2981_v31 = vpack.c.bf16 %v2843_v0, %v2842_v10  ;;  %v2588_v33 = vadd.f32 %v9814_v11, %v2325_v19  ;;  %v2589_v9 = vadd.f32 %v9814_v11, %v2326_v60  ;;  %v2200_v38 = vmul.f32 %v9807_v15, %v1937_v21  ;;  %v3962_v40 = vpop.f32.mrb[11].mxu1  ;;  %v11688_v10 = vld [vmem:[#allocation94_spill] sm:$0xff]  ;;  %v11690_v0 = vld [vmem:[#allocation201_spill] sm:$0xff] }
 0x526   :  { %4578 = vst.msk [vmem:[%s11076_s4 + $0x458] sm:$0xff] %vm4438_vm2, %v5099_v45  ;;  %v2716_v57 = vmax.f32 %v2460_v35, 0.0  ;;  %v2717_v34 = vmax.f32 %v2461_v63, 0.0  ;;  %v2462_v54 = vadd.f32 %v9814_v11, %v2199_v58  ;;  %v2065_v28 = vmul.f32 %v8840_v16, %v11683_v24  ;;  %4576 = vst.msk [vmem:[%s11076_s4 + $0x448] sm:$0xff] %vm4438_vm2, %v3962_v40  ;;  %v11691_v45 = vld [vmem:[#allocation202_spill] sm:$0xff]  ;;  %v11692_v40 = vld [vmem:[#allocation96_spill] sm:$0xff] }
 0x527   :  { %5193 = vmatmul.mubr.msk.bf16.gmra.mrb[104].mxu1 %vm274_vm1, %v2981_v31  ;;  %v2844_v62 = vmax.f32 %v2588_v33, 0.0  ;;  %v2845_v20 = vmax.f32 %v2589_v9, 0.0  ;;  %v2463_v51 = vadd.f32 %v9814_v11, %v2200_v38  ;;  %v2327_v5 = vmul.f32 %v9807_v15, %v2064_v46 }
 0x528   :  { %v2918_v41 = vpack.c.bf16 %v2717_v34, %v2716_v57  ;;  %v2718_v61 = vmax.f32 %v2462_v54, 0.0  ;;  %v2328_v18 = vmul.f32 %v9807_v15, %v2065_v28  ;;  %v1938_v13 = vmul.f32 %v8840_v16, %v11684_v12  ;;  %v4974_v37 = vpop.f32.mrb[12].mxu0 }
 0x529   :  { %v2982_v44 = vpack.c.bf16 %v2845_v20, %v2844_v62  ;;  %v2719_v8 = vmax.f32 %v2463_v51, 0.0  ;;  %v2590_v3 = vadd.f32 %v9814_v11, %v2327_v5  ;;  %v1939_v42 = vmul.f32 %v8840_v16, %v11685_v23  ;;  %4453 = vst.msk [vmem:[%s11076_s4 + $0x70] sm:$0xff] %vm4438_vm2, %v4974_v37  ;;  %v3463_v17 = vpop.f32.mrb[13].mxu0  ;;  %v11693_v5 = vld [vmem:[#allocation97_spill] sm:$0xff]  ;;  %v11694_v37 = vld [vmem:[#allocation203_spill] sm:$0xff] }
 0x52a   :  { %5068 = vmatprep.mubr.msk.bf16.mxu0 %vm274_vm1, %v2918_v41  ;;  %v2591_v50 = vadd.f32 %v9814_v11, %v2328_v18  ;;  %v2201_v39 = vmul.f32 %v9807_v15, %v1938_v13  ;;  %v2066_v52 = vmul.f32 %v8840_v16, %v11686_v1  ;;  %v2067_v32 = vmul.f32 %v8840_v16, %v11687_v14  ;;  %v4975_v29 = vpop.f32.mrb[14].mxu0 }
 0x52b   :  { %4451 = vst.msk [vmem:[%s11076_s4 + $0x60] sm:$0xff] %vm4438_vm2, %v3463_v17  ;;  %5196 = vmatprep.mubr.msk.bf16.mxu1 %vm274_vm1, %v2982_v44  ;;  %v2919_v43 = vpack.c.bf16 %v2719_v8, %v2718_v61  ;;  %v2846_v56 = vmax.f32 %v2590_v3, 0.0  ;;  %v2202_v22 = vmul.f32 %v9807_v15, %v1939_v42  ;;  %v1940_v27 = vmul.f32 %v8840_v16, %v11688_v10  ;;  %v5102_v4 = vpop.f32.mrb[12].mxu1  ;;  %v3466_v53 = vpop.f32.mrb[15].mxu0  ;;  %v11695_v8 = vld [vmem:[#allocation204_spill] sm:$0xff] }
 0x52c   :  { %4454 = vst.msk [vmem:[%s11076_s4 + $0x78] sm:$0xff] %vm4438_vm2, %v4975_v29  ;;  %v2847_v49 = vmax.f32 %v2591_v50, 0.0  ;;  %v2464_v59 = vadd.f32 %v9814_v11, %v2201_v39  ;;  %v2329_v36 = vmul.f32 %v9807_v15, %v2066_v52  ;;  %v2330_v47 = vmul.f32 %v9807_v15, %v2067_v32  ;;  %4581 = vst.msk [vmem:[%s11076_s4 + $0x470] sm:$0xff] %vm4438_vm2, %v5102_v4  ;;  %v3975_v7 = vpop.f32.mrb[13].mxu1  ;;  %v11696_v39 = vld [vmem:[#allocation98_spill] sm:$0xff]  ;;  %v11697_v4 = vld [vmem:[#allocation99_spill] sm:$0xff] }
 0x52d   :  { %4452 = vst.msk [vmem:[%s11076_s4 + $0x68] sm:$0xff] %vm4438_vm2, %v3466_v53  ;;  %5069 = vmatmul.mubr.msk.bf16.gmra.mrb[108].mxu0 %vm274_vm1, %v2919_v43  ;;  %v2465_v25 = vadd.f32 %v9814_v11, %v2202_v22  ;;  %v1941_v6 = vmul.f32 %v8840_v16, %v11689_v48  ;;  %v2203_v30 = vmul.f32 %v9807_v15, %v1940_v27  ;;  %4579 = vst.msk [vmem:[%s11076_s4 + $0x460] sm:$0xff] %vm4438_vm2, %v3975_v7  ;;  %v5103_v60 = vpop.f32.mrb[14].mxu1 }
 0x52e   :  { %v2068_v19 = vmul.f32 %v8840_v16, %v11690_v0  ;;  %v2983_v26 = vpack.c.bf16 %v2847_v49, %v2846_v56  ;;  %v2720_v21 = vmax.f32 %v2464_v59, 0.0  ;;  %v2592_v55 = vadd.f32 %v9814_v11, %v2329_v36  ;;  %4582 = vst.msk [vmem:[%s11076_s4 + $0x478] sm:$0xff] %vm4438_vm2, %v5103_v60  ;;  %v3978_v63 = vpop.f32.mrb[15].mxu1  ;;  %v11699_v60 = vld [vmem:[#allocation206_spill] sm:$0xff] }
 0x52f   :  { %v2593_v35 = vadd.f32 %v9814_v11, %v2330_v47  ;;  %v2721_v58 = vmax.f32 %v2465_v25, 0.0  ;;  %v2204_v2 = vmul.f32 %v9807_v15, %v1941_v6  ;;  %v2466_v46 = vadd.f32 %v9814_v11, %v2203_v30  ;;  %4580 = vst.msk [vmem:[%s11076_s4 + $0x468] sm:$0xff] %vm4438_vm2, %v3978_v63  ;;  %v11698_v25 = vld [vmem:[#allocation205_spill] sm:$0xff]  ;;  %v11700_v63 = vld [vmem:[#allocation100_spill] sm:$0xff] }
 0x530   :  { %v2069_v31 = vmul.f32 %v8840_v16, %v11691_v45  ;;  %5197 = vmatmul.mubr.msk.bf16.gmra.mrb[108].mxu1 %vm274_vm1, %v2983_v26  ;;  %v2848_v33 = vmax.f32 %v2592_v55, 0.0  ;;  %v2331_v38 = vmul.f32 %v9807_v15, %v2068_v19  ;;  %v1942_v57 = vmul.f32 %v8840_v16, %v11692_v40  ;;  %v11701_v40 = vld [vmem:[#allocation101_spill] sm:$0xff] }
 0x531   :  { %v2849_v9 = vmax.f32 %v2593_v35, 0.0  ;;  %v2920_v34 = vpack.c.bf16 %v2721_v58, %v2720_v21  ;;  %v2467_v54 = vadd.f32 %v9814_v11, %v2204_v2  ;;  %v2722_v24 = vmax.f32 %v2466_v46, 0.0  ;;  %v4978_v62 = vpop.f32.mrb[16].mxu0 }
 0x532   :  { %v2332_v28 = vmul.f32 %v9807_v15, %v2069_v31  ;;  %v2594_v51 = vadd.f32 %v9814_v11, %v2331_v38  ;;  %v1943_v41 = vmul.f32 %v8840_v16, %v11693_v5  ;;  %v2205_v61 = vmul.f32 %v9807_v15, %v1942_v57  ;;  %4457 = vst.msk [vmem:[%s11076_s4 + $0x90] sm:$0xff] %vm4438_vm2, %v4978_v62  ;;  %v3479_v18 = vpop.f32.mrb[17].mxu0  ;;  %v11702_v62 = vld [vmem:[#allocation207_spill] sm:$0xff] }
 0x533   :  { %v2984_v20 = vpack.c.bf16 %v2849_v9, %v2848_v33  ;;  %5072 = vmatprep.mubr.msk.bf16.mxu0 %vm274_vm1, %v2920_v34  ;;  %v2723_v12 = vmax.f32 %v2467_v54, 0.0  ;;  %v2070_v44 = vmul.f32 %v8840_v16, %v11694_v37  ;;  %v2071_v3 = vmul.f32 %v8840_v16, %v11695_v8  ;;  %4455 = vst.msk [vmem:[%s11076_s4 + $0x80] sm:$0xff] %vm4438_vm2, %v3479_v18  ;;  %v4979_v23 = vpop.f32.mrb[18].mxu0 }
 0x534   :  { %v2595_v13 = vadd.f32 %v9814_v11, %v2332_v28  ;;  %v2850_v42 = vmax.f32 %v2594_v51, 0.0  ;;  %v2206_v17 = vmul.f32 %v9807_v15, %v1943_v41  ;;  %v2468_v50 = vadd.f32 %v9814_v11, %v2205_v61  ;;  %v5106_v52 = vpop.f32.mrb[16].mxu1  ;;  %4458 = vst.msk [vmem:[%s11076_s4 + $0x98] sm:$0xff] %vm4438_vm2, %v4979_v23  ;;  %v3482_v14 = vpop.f32.mrb[19].mxu0  ;;  %v11703_v51 = vld [vmem:[#allocation208_spill] sm:$0xff] }
 0x535   :  { %5200 = vmatprep.mubr.msk.bf16.mxu1 %vm274_vm1, %v2984_v20  ;;  %v1944_v1 = vmul.f32 %v8840_v16, %v11696_v39  ;;  %v2921_v32 = vpack.c.bf16 %v2723_v12, %v2722_v24  ;;  %v2333_v43 = vmul.f32 %v9807_v15, %v2070_v44  ;;  %v2334_v56 = vmul.f32 %v9807_v15, %v2071_v3  ;;  %v3991_v22 = vpop.f32.mrb[17].mxu1 }
 0x536   :  { %v2851_v29 = vmax.f32 %v2595_v13, 0.0  ;;  %4585 = vst.msk [vmem:[%s11076_s4 + $0x490] sm:$0xff] %vm4438_vm2, %v5106_v52  ;;  %4456 = vst.msk [vmem:[%s11076_s4 + $0x88] sm:$0xff] %vm4438_vm2, %v3482_v14  ;;  %v2469_v10 = vadd.f32 %v9814_v11, %v2206_v17  ;;  %v2724_v27 = vmax.f32 %v2468_v50, 0.0  ;;  %v1945_v53 = vmul.f32 %v8840_v16, %v11697_v4  ;;  %v5107_v59 = vpop.f32.mrb[18].mxu1  ;;  %v11704_v13 = vld [vmem:[#allocation102_spill] sm:$0xff] }
 0x537   :  { %v2207_v49 = vmul.f32 %v9807_v15, %v1944_v1  ;;  %4583 = vst.msk [vmem:[%s11076_s4 + $0x480] sm:$0xff] %vm4438_vm2, %v3991_v22  ;;  %5073 = vmatmul.mubr.msk.bf16.gmra.mrb[112].mxu0 %vm274_vm1, %v2921_v32  ;;  %v2596_v47 = vadd.f32 %v9814_v11, %v2333_v43  ;;  %v2597_v7 = vadd.f32 %v9814_v11, %v2334_v56  ;;  %4586 = vst.msk [vmem:[%s11076_s4 + $0x498] sm:$0xff] %vm4438_vm2, %v5107_v59  ;;  %v3994_v6 = vpop.f32.mrb[19].mxu1  ;;  %v11705_v52 = vld [vmem:[#allocation103_spill] sm:$0xff] }
 0x538   :  { %v2985_v36 = vpack.c.bf16 %v2851_v29, %v2850_v42  ;;  %v2072_v48 = vmul.f32 %v8840_v16, %v11698_v25  ;;  %v2725_v30 = vmax.f32 %v2469_v10, 0.0  ;;  %v2208_v0 = vmul.f32 %v9807_v15, %v1945_v53  ;;  %4584 = vst.msk [vmem:[%s11076_s4 + $0x488] sm:$0xff] %vm4438_vm2, %v3994_v6  ;;  %v11706_v10 = vld [vmem:[#allocation209_spill] sm:$0xff]  ;;  %v11708_v6 = vld [vmem:[#allocation104_spill] sm:$0xff] }
 0x539   :  { %v2470_v19 = vadd.f32 %v9814_v11, %v2207_v49  ;;  %v2073_v26 = vmul.f32 %v8840_v16, %v11699_v60  ;;  %v2852_v21 = vmax.f32 %v2596_v47, 0.0  ;;  %v2853_v55 = vmax.f32 %v2597_v7, 0.0 }
 0x53a   :  { %5201 = vmatmul.mubr.msk.bf16.gmra.mrb[112].mxu1 %vm274_vm1, %v2985_v36  ;;  %v2335_v35 = vmul.f32 %v9807_v15, %v2072_v48  ;;  %v1946_v58 = vmul.f32 %v8840_v16, %v11700_v63  ;;  %v2922_v2 = vpack.c.bf16 %v2725_v30, %v2724_v27  ;;  %v2471_v46 = vadd.f32 %v9814_v11, %v2208_v0  ;;  %v4982_v33 = vpop.f32.mrb[20].mxu0  ;;  %v11707_v36 = vld [vmem:[#allocation210_spill] sm:$0xff]  ;;  %v11709_v63 = vld [vmem:[#allocation105_spill] sm:$0xff] }
 0x53b   :  { %v2726_v45 = vmax.f32 %v2470_v19, 0.0  ;;  %v2336_v31 = vmul.f32 %v9807_v15, %v2073_v26  ;;  %v2986_v9 = vpack.c.bf16 %v2853_v55, %v2852_v21  ;;  %v1947_v57 = vmul.f32 %v8840_v16, %v11701_v40  ;;  %4461 = vst.msk [vmem:[%s11076_s4 + $0xb0] sm:$0xff] %vm4438_vm2, %v4982_v33  ;;  %v3495_v54 = vpop.f32.mrb[21].mxu0  ;;  %v11710_v33 = vld [vmem:[#allocation211_spill] sm:$0xff] }
 0x53c   :  { %v2598_v38 = vadd.f32 %v9814_v11, %v2335_v35  ;;  %v2209_v34 = vmul.f32 %v9807_v15, %v1946_v58  ;;  %5076 = vmatprep.mubr.msk.bf16.mxu0 %vm274_vm1, %v2922_v2  ;;  %v2727_v24 = vmax.f32 %v2471_v46, 0.0  ;;  %v2074_v20 = vmul.f32 %v8840_v16, %v11702_v62  ;;  %4459 = vst.msk [vmem:[%s11076_s4 + $0xa0] sm:$0xff] %vm4438_vm2, %v3495_v54  ;;  %v4983_v41 = vpop.f32.mrb[22].mxu0 }
 0x53d   :  { %v2599_v28 = vadd.f32 %v9814_v11, %v2336_v31  ;;  %v2075_v5 = vmul.f32 %v8840_v16, %v11703_v51  ;;  %5204 = vmatprep.mubr.msk.bf16.mxu1 %vm274_vm1, %v2986_v9  ;;  %v2210_v18 = vmul.f32 %v9807_v15, %v1947_v57  ;;  %v1948_v37 = vmul.f32 %v8840_v16, %v11704_v13  ;;  %v5110_v44 = vpop.f32.mrb[20].mxu1  ;;  %v3498_v8 = vpop.f32.mrb[23].mxu0 }
 0x53e   :  { %v2854_v61 = vmax.f32 %v2598_v38, 0.0  ;;  %v2472_v12 = vadd.f32 %v9814_v11, %v2209_v34  ;;  %4462 = vst.msk [vmem:[%s11076_s4 + $0xb8] sm:$0xff] %vm4438_vm2, %v4983_v41  ;;  %v2923_v3 = vpack.c.bf16 %v2727_v24, %v2726_v45  ;;  %v2337_v42 = vmul.f32 %v9807_v15, %v2074_v20  ;;  %4589 = vst.msk [vmem:[%s11076_s4 + $0x4b0] sm:$0xff] %vm4438_vm2, %v5110_v44  ;;  %v4007_v50 = vpop.f32.mrb[21].mxu1  ;;  %v11711_v38 = vld [vmem:[#allocation212_spill] sm:$0xff]  ;;  %v11713_v44 = vld [vmem:[#allocation107_spill] sm:$0xff] }
 0x53f   :  { %v2855_v23 = vmax.f32 %v2599_v28, 0.0  ;;  %v2338_v17 = vmul.f32 %v9807_v15, %v2075_v5  ;;  %4460 = vst.msk [vmem:[%s11076_s4 + $0xa8] sm:$0xff] %vm4438_vm2, %v3498_v8  ;;  %v2473_v39 = vadd.f32 %v9814_v11, %v2210_v18  ;;  %v1949_v14 = vmul.f32 %v8840_v16, %v11705_v52  ;;  %4587 = vst.msk [vmem:[%s11076_s4 + $0x4a0] sm:$0xff] %vm4438_vm2, %v4007_v50  ;;  %v5111_v29 = vpop.f32.mrb[22].mxu1  ;;  %v11712_v28 = vld [vmem:[#allocation106_spill] sm:$0xff] }
 0x540   :  { %v2728_v1 = vmax.f32 %v2472_v12, 0.0  ;;  %v2211_v32 = vmul.f32 %v9807_v15, %v1948_v37  ;;  %5077 = vmatmul.mubr.msk.bf16.gmra.mrb[116].mxu0 %vm274_vm1, %v2923_v3  ;;  %v2600_v56 = vadd.f32 %v9814_v11, %v2337_v42  ;;  %v2076_v27 = vmul.f32 %v8840_v16, %v11706_v10  ;;  %4590 = vst.msk [vmem:[%s11076_s4 + $0x4b8] sm:$0xff] %vm4438_vm2, %v5111_v29  ;;  %v4010_v4 = vpop.f32.mrb[23].mxu1 }
 0x541   :  { %v2987_v43 = vpack.c.bf16 %v2855_v23, %v2854_v61  ;;  %v2601_v22 = vadd.f32 %v9814_v11, %v2338_v17  ;;  %v2729_v53 = vmax.f32 %v2473_v39, 0.0  ;;  %v2212_v49 = vmul.f32 %v9807_v15, %v1949_v14  ;;  %4588 = vst.msk [vmem:[%s11076_s4 + $0x4a8] sm:$0xff] %vm4438_vm2, %v4010_v4  ;;  %v11714_v39 = vld [vmem:[#allocation213_spill] sm:$0xff] }
 0x542   :  { %v2474_v59 = vadd.f32 %v9814_v11, %v2211_v32  ;;  %v2077_v47 = vmul.f32 %v8840_v16, %v11707_v36  ;;  %v2856_v7 = vmax.f32 %v2600_v56, 0.0  ;;  %v2339_v48 = vmul.f32 %v9807_v15, %v2076_v27 }
 0x543   :  { %5205 = vmatmul.mubr.msk.bf16.gmra.mrb[116].mxu1 %vm274_vm1, %v2987_v43  ;;  %v2857_v25 = vmax.f32 %v2601_v22, 0.0  ;;  %v1950_v30 = vmul.f32 %v8840_v16, %v11708_v6  ;;  %v2924_v0 = vpack.c.bf16 %v2729_v53, %v2728_v1  ;;  %v2475_v19 = vadd.f32 %v9814_v11, %v2212_v49  ;;  %v4986_v21 = vpop.f32.mrb[24].mxu0  ;;  %v11715_v43 = vld [vmem:[#allocation214_spill] sm:$0xff] }
 0x544   :  { %v2730_v60 = vmax.f32 %v2474_v59, 0.0  ;;  %v2340_v26 = vmul.f32 %v9807_v15, %v2077_v47  ;;  %v2602_v35 = vadd.f32 %v9814_v11, %v2339_v48  ;;  %v1951_v58 = vmul.f32 %v8840_v16, %v11709_v63  ;;  %4465 = vst.msk [vmem:[%s11076_s4 + $0xd0] sm:$0xff] %vm4438_vm2, %v4986_v21  ;;  %v3511_v46 = vpop.f32.mrb[25].mxu0 }
 0x545   :  { %v2988_v55 = vpack.c.bf16 %v2857_v25, %v2856_v7  ;;  %v2213_v2 = vmul.f32 %v9807_v15, %v1950_v30  ;;  %5080 = vmatprep.mubr.msk.bf16.mxu0 %vm274_vm1, %v2924_v0  ;;  %v2731_v45 = vmax.f32 %v2475_v19, 0.0  ;;  %v2078_v9 = vmul.f32 %v8840_v16, %v11710_v33  ;;  %4463 = vst.msk [vmem:[%s11076_s4 + $0xc0] sm:$0xff] %vm4438_vm2, %v3511_v46  ;;  %v4987_v57 = vpop.f32.mrb[26].mxu0 }
 0x546   :  { %v2603_v31 = vadd.f32 %v9814_v11, %v2340_v26  ;;  %v2079_v40 = vmul.f32 %v8840_v16, %v11711_v38  ;;  %v2858_v34 = vmax.f32 %v2602_v35, 0.0  ;;  %v2214_v54 = vmul.f32 %v9807_v15, %v1951_v58  ;;  %v5114_v20 = vpop.f32.mrb[24].mxu1  ;;  %4466 = vst.msk [vmem:[%s11076_s4 + $0xd8] sm:$0xff] %vm4438_vm2, %v4987_v57  ;;  %v3514_v51 = vpop.f32.mrb[27].mxu0 }
 0x547   :  { %5208 = vmatprep.mubr.msk.bf16.mxu1 %vm274_vm1, %v2988_v55  ;;  %v2476_v24 = vadd.f32 %v9814_v11, %v2213_v2  ;;  %v1952_v62 = vmul.f32 %v8840_v16, %v11712_v28  ;;  %v2925_v5 = vpack.c.bf16 %v2731_v45, %v2730_v60  ;;  %v2341_v61 = vmul.f32 %v9807_v15, %v2078_v9  ;;  %v4023_v12 = vpop.f32.mrb[25].mxu1 }
 0x548   :  { %v2859_v41 = vmax.f32 %v2603_v31, 0.0  ;;  %v2342_v18 = vmul.f32 %v9807_v15, %v2079_v40  ;;  %4593 = vst.msk [vmem:[%s11076_s4 + $0x4d0] sm:$0xff] %vm4438_vm2, %v5114_v20  ;;  %4464 = vst.msk [vmem:[%s11076_s4 + $0xc8] sm:$0xff] %vm4438_vm2, %v3514_v51  ;;  %v2477_v13 = vadd.f32 %v9814_v11, %v2214_v54  ;;  %v1953_v8 = vmul.f32 %v8840_v16, %v11713_v44  ;;  %v5115_v23 = vpop.f32.mrb[26].mxu1 }
 0x549   :  { %v2732_v37 = vmax.f32 %v2476_v24, 0.0  ;;  %v2215_v3 = vmul.f32 %v9807_v15, %v1952_v62  ;;  %4591 = vst.msk [vmem:[%s11076_s4 + $0x4c0] sm:$0xff] %vm4438_vm2, %v4023_v12  ;;  %5081 = vmatmul.mubr.msk.bf16.gmra.mrb[120].mxu0 %vm274_vm1, %v2925_v5  ;;  %v2604_v17 = vadd.f32 %v9814_v11, %v2341_v61  ;;  %v2080_v1 = vmul.f32 %v8840_v16, %v11714_v39  ;;  %v4026_v52 = vpop.f32.mrb[27].mxu1 }
 0x54a   :  { %v2989_v42 = vpack.c.bf16 %v2859_v41, %v2858_v34  ;;  %v2605_v50 = vadd.f32 %v9814_v11, %v2342_v18  ;;  %4594 = vst.msk [vmem:[%s11076_s4 + $0x4d8] sm:$0xff] %vm4438_vm2, %v5115_v23  ;;  %v2733_v14 = vmax.f32 %v2477_v13, 0.0  ;;  %v2216_v32 = vmul.f32 %v9807_v15, %v1953_v8  ;;  %4592 = vst.msk [vmem:[%s11076_s4 + $0x4c8] sm:$0xff] %vm4438_vm2, %v4026_v52 }
 0x54b   :  { %v2478_v29 = vadd.f32 %v9814_v11, %v2215_v3  ;;  %v2081_v56 = vmul.f32 %v8840_v16, %v11715_v43  ;;  %v2860_v22 = vmax.f32 %v2604_v17, 0.0  ;;  %v2343_v27 = vmul.f32 %v9807_v15, %v2080_v1 }
 0x54c   :  { %5209 = vmatmul.mubr.msk.bf16.gmra.mrb[120].mxu1 %vm274_vm1, %v2989_v42  ;;  %v2861_v10 = vmax.f32 %v2605_v50, 0.0  ;;  %v2926_v4 = vpack.c.bf16 %v2733_v14, %v2732_v37  ;;  %v2479_v53 = vadd.f32 %v9814_v11, %v2216_v32  ;;  %v4990_v36 = vpop.f32.mrb[28].mxu0 }
 0x54d   :  { %v2734_v49 = vmax.f32 %v2478_v29, 0.0  ;;  %v2344_v59 = vmul.f32 %v9807_v15, %v2081_v56  ;;  %v2606_v16 = vadd.f32 %v9814_v11, %v2343_v27  ;;  %4469 = vst.msk [vmem:[%s11076_s4 + $0xf0] sm:$0xff] %vm4438_vm2, %v4990_v36  ;;  %v3527_v7 = vpop.f32.mrb[29].mxu0 }
 0x54e   :  { %v2990_v47 = vpack.c.bf16 %v2861_v10, %v2860_v22  ;;  %5084 = vmatprep.mubr.msk.bf16.mxu0 %vm274_vm1, %v2926_v4  ;;  %v2735_v25 = vmax.f32 %v2479_v53, 0.0  ;;  %4467 = vst.msk [vmem:[%s11076_s4 + $0xe0] sm:$0xff] %vm4438_vm2, %v3527_v7  ;;  %v4991_v15 = vpop.f32.mrb[30].mxu0 }
 0x54f   :  { %v2607_v48 = vadd.f32 %v9814_v11, %v2344_v59  ;;  %v2862_v6 = vmax.f32 %v2606_v16, 0.0  ;;  %v5118_v30 = vpop.f32.mrb[28].mxu1  ;;  %4470 = vst.msk [vmem:[%s11076_s4 + $0xf8] sm:$0xff] %vm4438_vm2, %v4991_v15  ;;  %v3530_v0 = vpop.f32.mrb[31].mxu0 }
 0x550   :  { %5212 = vmatprep.mubr.msk.bf16.mxu1 %vm274_vm1, %v2990_v47  ;;  %v2927_v19 = vpack.c.bf16 %v2735_v25, %v2734_v49  ;;  %4597 = vst.msk [vmem:[%s11076_s4 + $0x4f0] sm:$0xff] %vm4438_vm2, %v5118_v30  ;;  %v4039_v11 = vpop.f32.mrb[29].mxu1  ;;  %4468 = vst.msk [vmem:[%s11076_s4 + $0xe8] sm:$0xff] %vm4438_vm2, %v3530_v0 }
 0x551   :  { %v2863_v60 = vmax.f32 %v2607_v48, 0.0  ;;  %4595 = vst.msk [vmem:[%s11076_s4 + $0x4e0] sm:$0xff] %vm4438_vm2, %v4039_v11  ;;  %v5119_v26 = vpop.f32.mrb[30].mxu1 }
 0x552   :  { %5085 = vmatmul.mubr.msk.bf16.gmra.mrb[124].mxu0 %vm274_vm1, %v2927_v19  ;;  %4598 = vst.msk [vmem:[%s11076_s4 + $0x4f8] sm:$0xff] %vm4438_vm2, %v5119_v26  ;;  %v4042_v55 = vpop.f32.mrb[31].mxu1 }
 0x553   :  { %v2991_v21 = vpack.c.bf16 %v2863_v60, %v2862_v6  ;;  %4596 = vst.msk [vmem:[%s11076_s4 + $0x4e8] sm:$0xff] %vm4438_vm2, %v4042_v55 }
 0x555   :  { %5213 = vmatmul.mubr.msk.bf16.gmra.mrb[124].mxu1 %vm274_vm1, %v2991_v21  ;;  %v4994_v35 = vpop.f32.mrb[32].mxu0 }
 0x556   :  { %4473 = vst.msk [vmem:[%s11076_s4 + $0x110] sm:$0xff] %vm4438_vm2, %v4994_v35  ;;  %v3543_v63 = vpop.f32.mrb[33].mxu0 }
 0x557   :  { %4471 = vst.msk [vmem:[%s11076_s4 + $0x100] sm:$0xff] %vm4438_vm2, %v3543_v63  ;;  %v4995_v58 = vpop.f32.mrb[34].mxu0 }
 0x558   :  { %v5122_v2 = vpop.f32.mrb[32].mxu1  ;;  %4474 = vst.msk [vmem:[%s11076_s4 + $0x118] sm:$0xff] %vm4438_vm2, %v4995_v58  ;;  %v3546_v46 = vpop.f32.mrb[35].mxu0 }
 0x559   :  { %4601 = vst.msk [vmem:[%s11076_s4 + $0x510] sm:$0xff] %vm4438_vm2, %v5122_v2  ;;  %v4055_v45 = vpop.f32.mrb[33].mxu1  ;;  %4472 = vst.msk [vmem:[%s11076_s4 + $0x108] sm:$0xff] %vm4438_vm2, %v3546_v46 }
 0x55a   :  { %4599 = vst.msk [vmem:[%s11076_s4 + $0x500] sm:$0xff] %vm4438_vm2, %v4055_v45  ;;  %v5123_v31 = vpop.f32.mrb[34].mxu1 }
 0x55b   :  { %4602 = vst.msk [vmem:[%s11076_s4 + $0x518] sm:$0xff] %vm4438_vm2, %v5123_v31  ;;  %v4058_v33 = vpop.f32.mrb[35].mxu1 }
 0x55c   :  { %4600 = vst.msk [vmem:[%s11076_s4 + $0x508] sm:$0xff] %vm4438_vm2, %v4058_v33 }
 0x55e   :  { %v4998_v9 = vpop.f32.mrb[36].mxu0 }
 0x55f   :  { %4477 = vst.msk [vmem:[%s11076_s4 + $0x130] sm:$0xff] %vm4438_vm2, %v4998_v9  ;;  %v3559_v38 = vpop.f32.mrb[37].mxu0 }
 0x560   :  { %4475 = vst.msk [vmem:[%s11076_s4 + $0x120] sm:$0xff] %vm4438_vm2, %v3559_v38  ;;  %v4999_v40 = vpop.f32.mrb[38].mxu0 }
 0x561   :  { %v5126_v57 = vpop.f32.mrb[36].mxu1  ;;  %4478 = vst.msk [vmem:[%s11076_s4 + $0x138] sm:$0xff] %vm4438_vm2, %v4999_v40  ;;  %v3562_v34 = vpop.f32.mrb[39].mxu0 }
 0x562   :  { %4605 = vst.msk [vmem:[%s11076_s4 + $0x530] sm:$0xff] %vm4438_vm2, %v5126_v57  ;;  %v4071_v54 = vpop.f32.mrb[37].mxu1  ;;  %4476 = vst.msk [vmem:[%s11076_s4 + $0x128] sm:$0xff] %vm4438_vm2, %v3562_v34 }
 0x563   :  { %4603 = vst.msk [vmem:[%s11076_s4 + $0x520] sm:$0xff] %vm4438_vm2, %v4071_v54  ;;  %v5127_v24 = vpop.f32.mrb[38].mxu1 }
 0x564   :  { %4606 = vst.msk [vmem:[%s11076_s4 + $0x538] sm:$0xff] %vm4438_vm2, %v5127_v24  ;;  %v4074_v28 = vpop.f32.mrb[39].mxu1 }
 0x565   :  { %4604 = vst.msk [vmem:[%s11076_s4 + $0x528] sm:$0xff] %vm4438_vm2, %v4074_v28 }
 0x567   :  { %v5002_v62 = vpop.f32.mrb[40].mxu0 }
 0x568   :  { %4481 = vst.msk [vmem:[%s11076_s4 + $0x150] sm:$0xff] %vm4438_vm2, %v5002_v62  ;;  %v3575_v20 = vpop.f32.mrb[41].mxu0 }
 0x569   :  { %4479 = vst.msk [vmem:[%s11076_s4 + $0x140] sm:$0xff] %vm4438_vm2, %v3575_v20  ;;  %v5003_v51 = vpop.f32.mrb[42].mxu0 }
 0x56a   :  { %v5130_v5 = vpop.f32.mrb[40].mxu1  ;;  %4482 = vst.msk [vmem:[%s11076_s4 + $0x158] sm:$0xff] %vm4438_vm2, %v5003_v51  ;;  %v3578_v41 = vpop.f32.mrb[43].mxu0 }
 0x56b   :  { %4609 = vst.msk [vmem:[%s11076_s4 + $0x550] sm:$0xff] %vm4438_vm2, %v5130_v5  ;;  %v4087_v61 = vpop.f32.mrb[41].mxu1  ;;  %4480 = vst.msk [vmem:[%s11076_s4 + $0x148] sm:$0xff] %vm4438_vm2, %v3578_v41 }
 0x56c   :  { %4607 = vst.msk [vmem:[%s11076_s4 + $0x540] sm:$0xff] %vm4438_vm2, %v4087_v61  ;;  %v5131_v18 = vpop.f32.mrb[42].mxu1 }
 0x56d   :  { %4610 = vst.msk [vmem:[%s11076_s4 + $0x558] sm:$0xff] %vm4438_vm2, %v5131_v18  ;;  %v4090_v12 = vpop.f32.mrb[43].mxu1 }
 0x56e   :  { %4608 = vst.msk [vmem:[%s11076_s4 + $0x548] sm:$0xff] %vm4438_vm2, %v4090_v12 }
 0x570   :  { %v5006_v13 = vpop.f32.mrb[44].mxu0 }
 0x571   :  { %4485 = vst.msk [vmem:[%s11076_s4 + $0x170] sm:$0xff] %vm4438_vm2, %v5006_v13  ;;  %v3591_v37 = vpop.f32.mrb[45].mxu0 }
 0x572   :  { %4483 = vst.msk [vmem:[%s11076_s4 + $0x160] sm:$0xff] %vm4438_vm2, %v3591_v37  ;;  %v5007_v44 = vpop.f32.mrb[46].mxu0 }
 0x573   :  { %v5134_v8 = vpop.f32.mrb[44].mxu1  ;;  %4486 = vst.msk [vmem:[%s11076_s4 + $0x178] sm:$0xff] %vm4438_vm2, %v5007_v44  ;;  %v3594_v3 = vpop.f32.mrb[47].mxu0 }
 0x574   :  { %4613 = vst.msk [vmem:[%s11076_s4 + $0x570] sm:$0xff] %vm4438_vm2, %v5134_v8  ;;  %v4103_v23 = vpop.f32.mrb[45].mxu1  ;;  %4484 = vst.msk [vmem:[%s11076_s4 + $0x168] sm:$0xff] %vm4438_vm2, %v3594_v3 }
 0x575   :  { %4611 = vst.msk [vmem:[%s11076_s4 + $0x560] sm:$0xff] %vm4438_vm2, %v4103_v23  ;;  %v5135_v42 = vpop.f32.mrb[46].mxu1 }
 0x576   :  { %4614 = vst.msk [vmem:[%s11076_s4 + $0x578] sm:$0xff] %vm4438_vm2, %v5135_v42  ;;  %v4106_v17 = vpop.f32.mrb[47].mxu1 }
 0x577   :  { %4612 = vst.msk [vmem:[%s11076_s4 + $0x568] sm:$0xff] %vm4438_vm2, %v4106_v17 }
 0x579   :  { %v5010_v50 = vpop.f32.mrb[48].mxu0 }
 0x57a   :  { %4489 = vst.msk [vmem:[%s11076_s4 + $0x190] sm:$0xff] %vm4438_vm2, %v5010_v50  ;;  %v3607_v39 = vpop.f32.mrb[49].mxu0 }
 0x57b   :  { %4487 = vst.msk [vmem:[%s11076_s4 + $0x180] sm:$0xff] %vm4438_vm2, %v3607_v39  ;;  %v5011_v1 = vpop.f32.mrb[50].mxu0 }
 0x57c   :  { %v5138_v52 = vpop.f32.mrb[48].mxu1  ;;  %4490 = vst.msk [vmem:[%s11076_s4 + $0x198] sm:$0xff] %vm4438_vm2, %v5011_v1  ;;  %v3610_v14 = vpop.f32.mrb[51].mxu0 }
 0x57d   :  { %4617 = vst.msk [vmem:[%s11076_s4 + $0x590] sm:$0xff] %vm4438_vm2, %v5138_v52  ;;  %v4119_v32 = vpop.f32.mrb[49].mxu1  ;;  %4488 = vst.msk [vmem:[%s11076_s4 + $0x188] sm:$0xff] %vm4438_vm2, %v3610_v14 }
 0x57e   :  { %4615 = vst.msk [vmem:[%s11076_s4 + $0x580] sm:$0xff] %vm4438_vm2, %v4119_v32  ;;  %v5139_v29 = vpop.f32.mrb[50].mxu1 }
 0x57f   :  { %4618 = vst.msk [vmem:[%s11076_s4 + $0x598] sm:$0xff] %vm4438_vm2, %v5139_v29  ;;  %v4122_v43 = vpop.f32.mrb[51].mxu1 }
 0x580   :  { %4616 = vst.msk [vmem:[%s11076_s4 + $0x588] sm:$0xff] %vm4438_vm2, %v4122_v43 }
 0x582   :  { %v5014_v56 = vpop.f32.mrb[52].mxu0 }
 0x583   :  { %4493 = vst.msk [vmem:[%s11076_s4 + $0x1b0] sm:$0xff] %vm4438_vm2, %v5014_v56  ;;  %v3623_v22 = vpop.f32.mrb[53].mxu0 }
 0x584   :  { %4491 = vst.msk [vmem:[%s11076_s4 + $0x1a0] sm:$0xff] %vm4438_vm2, %v3623_v22  ;;  %v5015_v10 = vpop.f32.mrb[54].mxu0 }
 0x585   :  { %v5142_v27 = vpop.f32.mrb[52].mxu1  ;;  %4494 = vst.msk [vmem:[%s11076_s4 + $0x1b8] sm:$0xff] %vm4438_vm2, %v5015_v10  ;;  %v3626_v4 = vpop.f32.mrb[55].mxu0 }
 0x586   :  { %4621 = vst.msk [vmem:[%s11076_s4 + $0x5b0] sm:$0xff] %vm4438_vm2, %v5142_v27  ;;  %v4135_v53 = vpop.f32.mrb[53].mxu1  ;;  %4492 = vst.msk [vmem:[%s11076_s4 + $0x1a8] sm:$0xff] %vm4438_vm2, %v3626_v4 }
 0x587   :  { %4619 = vst.msk [vmem:[%s11076_s4 + $0x5a0] sm:$0xff] %vm4438_vm2, %v4135_v53  ;;  %v5143_v49 = vpop.f32.mrb[54].mxu1 }
 0x588   :  { %4622 = vst.msk [vmem:[%s11076_s4 + $0x5b8] sm:$0xff] %vm4438_vm2, %v5143_v49  ;;  %v4138_v59 = vpop.f32.mrb[55].mxu1 }
 0x589   :  { %4620 = vst.msk [vmem:[%s11076_s4 + $0x5a8] sm:$0xff] %vm4438_vm2, %v4138_v59 }
 0x58b   :  { %v5018_v36 = vpop.f32.mrb[56].mxu0 }
 0x58c   :  { %4497 = vst.msk [vmem:[%s11076_s4 + $0x1d0] sm:$0xff] %vm4438_vm2, %v5018_v36  ;;  %v3639_v47 = vpop.f32.mrb[57].mxu0 }
 0x58d   :  { %4495 = vst.msk [vmem:[%s11076_s4 + $0x1c0] sm:$0xff] %vm4438_vm2, %v3639_v47  ;;  %v5019_v16 = vpop.f32.mrb[58].mxu0 }
 0x58e   :  { %v5146_v7 = vpop.f32.mrb[56].mxu1  ;;  %4498 = vst.msk [vmem:[%s11076_s4 + $0x1d8] sm:$0xff] %vm4438_vm2, %v5019_v16  ;;  %v3642_v25 = vpop.f32.mrb[59].mxu0 }
 0x58f   :  { %4625 = vst.msk [vmem:[%s11076_s4 + $0x5d0] sm:$0xff] %vm4438_vm2, %v5146_v7  ;;  %v4151_v48 = vpop.f32.mrb[57].mxu1  ;;  %4496 = vst.msk [vmem:[%s11076_s4 + $0x1c8] sm:$0xff] %vm4438_vm2, %v3642_v25 }
 0x590   :  { %4623 = vst.msk [vmem:[%s11076_s4 + $0x5c0] sm:$0xff] %vm4438_vm2, %v4151_v48  ;;  %v5147_v15 = vpop.f32.mrb[58].mxu1 }
 0x591   :  { %4626 = vst.msk [vmem:[%s11076_s4 + $0x5d8] sm:$0xff] %vm4438_vm2, %v5147_v15  ;;  %v4154_v6 = vpop.f32.mrb[59].mxu1 }
 0x592   :  { %4624 = vst.msk [vmem:[%s11076_s4 + $0x5c8] sm:$0xff] %vm4438_vm2, %v4154_v6 }
 0x594   :  { %v5022_v30 = vpop.f32.mrb[60].mxu0 }
 0x595   :  { %4501 = vst.msk [vmem:[%s11076_s4 + $0x1f0] sm:$0xff] %vm4438_vm2, %v5022_v30  ;;  %v3655_v0 = vpop.f32.mrb[61].mxu0 }
 0x596   :  { %4499 = vst.msk [vmem:[%s11076_s4 + $0x1e0] sm:$0xff] %vm4438_vm2, %v3655_v0  ;;  %v5023_v19 = vpop.f32.mrb[62].mxu0 }
 0x597   :  { %v5150_v60 = vpop.f32.mrb[60].mxu1  ;;  %4502 = vst.msk [vmem:[%s11076_s4 + $0x1f8] sm:$0xff] %vm4438_vm2, %v5023_v19  ;;  %v3658_v11 = vpop.f32.mrb[63].mxu0 }
 0x598   :  { %4629 = vst.msk [vmem:[%s11076_s4 + $0x5f0] sm:$0xff] %vm4438_vm2, %v5150_v60  ;;  %v4167_v26 = vpop.f32.mrb[61].mxu1  ;;  %4500 = vst.msk [vmem:[%s11076_s4 + $0x1e8] sm:$0xff] %vm4438_vm2, %v3658_v11 }
 0x599   :  { %4627 = vst.msk [vmem:[%s11076_s4 + $0x5e0] sm:$0xff] %vm4438_vm2, %v4167_v26  ;;  %v5151_v21 = vpop.f32.mrb[62].mxu1 }
 0x59a   :  { %4630 = vst.msk [vmem:[%s11076_s4 + $0x5f8] sm:$0xff] %vm4438_vm2, %v5151_v21  ;;  %v4170_v55 = vpop.f32.mrb[63].mxu1 }
 0x59b   :  { %4628 = vst.msk [vmem:[%s11076_s4 + $0x5e8] sm:$0xff] %vm4438_vm2, %v4170_v55 }
 0x59d   :  { %v5026_v35 = vpop.f32.mrb[64].mxu0 }
 0x59e   :  { %4505 = vst.msk [vmem:[%s11076_s4 + $0x210] sm:$0xff] %vm4438_vm2, %v5026_v35  ;;  %v3671_v63 = vpop.f32.mrb[65].mxu0 }
 0x59f   :  { %4503 = vst.msk [vmem:[%s11076_s4 + $0x200] sm:$0xff] %vm4438_vm2, %v3671_v63  ;;  %v5027_v58 = vpop.f32.mrb[66].mxu0 }
 0x5a0   :  { %v5154_v2 = vpop.f32.mrb[64].mxu1  ;;  %4506 = vst.msk [vmem:[%s11076_s4 + $0x218] sm:$0xff] %vm4438_vm2, %v5027_v58  ;;  %v3674_v46 = vpop.f32.mrb[67].mxu0 }
 0x5a1   :  { %4633 = vst.msk [vmem:[%s11076_s4 + $0x610] sm:$0xff] %vm4438_vm2, %v5154_v2  ;;  %v4183_v45 = vpop.f32.mrb[65].mxu1  ;;  %4504 = vst.msk [vmem:[%s11076_s4 + $0x208] sm:$0xff] %vm4438_vm2, %v3674_v46 }
 0x5a2   :  { %4631 = vst.msk [vmem:[%s11076_s4 + $0x600] sm:$0xff] %vm4438_vm2, %v4183_v45  ;;  %v5155_v31 = vpop.f32.mrb[66].mxu1 }
 0x5a3   :  { %4634 = vst.msk [vmem:[%s11076_s4 + $0x618] sm:$0xff] %vm4438_vm2, %v5155_v31  ;;  %v4186_v33 = vpop.f32.mrb[67].mxu1 }
 0x5a4   :  { %4632 = vst.msk [vmem:[%s11076_s4 + $0x608] sm:$0xff] %vm4438_vm2, %v4186_v33 }
 0x5a6   :  { %v5030_v9 = vpop.f32.mrb[68].mxu0 }
 0x5a7   :  { %4509 = vst.msk [vmem:[%s11076_s4 + $0x230] sm:$0xff] %vm4438_vm2, %v5030_v9  ;;  %v3687_v38 = vpop.f32.mrb[69].mxu0 }
 0x5a8   :  { %4507 = vst.msk [vmem:[%s11076_s4 + $0x220] sm:$0xff] %vm4438_vm2, %v3687_v38  ;;  %v5031_v40 = vpop.f32.mrb[70].mxu0 }
 0x5a9   :  { %v5158_v57 = vpop.f32.mrb[68].mxu1  ;;  %4510 = vst.msk [vmem:[%s11076_s4 + $0x238] sm:$0xff] %vm4438_vm2, %v5031_v40  ;;  %v3690_v34 = vpop.f32.mrb[71].mxu0 }
 0x5aa   :  { %4637 = vst.msk [vmem:[%s11076_s4 + $0x630] sm:$0xff] %vm4438_vm2, %v5158_v57  ;;  %v4199_v54 = vpop.f32.mrb[69].mxu1  ;;  %4508 = vst.msk [vmem:[%s11076_s4 + $0x228] sm:$0xff] %vm4438_vm2, %v3690_v34 }
 0x5ab   :  { %4635 = vst.msk [vmem:[%s11076_s4 + $0x620] sm:$0xff] %vm4438_vm2, %v4199_v54  ;;  %v5159_v24 = vpop.f32.mrb[70].mxu1 }
 0x5ac   :  { %4638 = vst.msk [vmem:[%s11076_s4 + $0x638] sm:$0xff] %vm4438_vm2, %v5159_v24  ;;  %v4202_v28 = vpop.f32.mrb[71].mxu1 }
 0x5ad   :  { %4636 = vst.msk [vmem:[%s11076_s4 + $0x628] sm:$0xff] %vm4438_vm2, %v4202_v28 }
 0x5af   :  { %v5034_v62 = vpop.f32.mrb[72].mxu0 }
 0x5b0   :  { %4513 = vst.msk [vmem:[%s11076_s4 + $0x250] sm:$0xff] %vm4438_vm2, %v5034_v62  ;;  %v3703_v20 = vpop.f32.mrb[73].mxu0 }
 0x5b1   :  { %4511 = vst.msk [vmem:[%s11076_s4 + $0x240] sm:$0xff] %vm4438_vm2, %v3703_v20  ;;  %v5035_v51 = vpop.f32.mrb[74].mxu0 }
 0x5b2   :  { %v5162_v5 = vpop.f32.mrb[72].mxu1  ;;  %4514 = vst.msk [vmem:[%s11076_s4 + $0x258] sm:$0xff] %vm4438_vm2, %v5035_v51  ;;  %v3706_v41 = vpop.f32.mrb[75].mxu0 }
 0x5b3   :  { %4641 = vst.msk [vmem:[%s11076_s4 + $0x650] sm:$0xff] %vm4438_vm2, %v5162_v5  ;;  %v4215_v61 = vpop.f32.mrb[73].mxu1  ;;  %4512 = vst.msk [vmem:[%s11076_s4 + $0x248] sm:$0xff] %vm4438_vm2, %v3706_v41 }
 0x5b4   :  { %4639 = vst.msk [vmem:[%s11076_s4 + $0x640] sm:$0xff] %vm4438_vm2, %v4215_v61  ;;  %v5163_v18 = vpop.f32.mrb[74].mxu1 }
 0x5b5   :  { %4642 = vst.msk [vmem:[%s11076_s4 + $0x658] sm:$0xff] %vm4438_vm2, %v5163_v18  ;;  %v4218_v12 = vpop.f32.mrb[75].mxu1 }
 0x5b6   :  { %4640 = vst.msk [vmem:[%s11076_s4 + $0x648] sm:$0xff] %vm4438_vm2, %v4218_v12 }
 0x5b8   :  { %v5038_v13 = vpop.f32.mrb[76].mxu0 }
 0x5b9   :  { %4517 = vst.msk [vmem:[%s11076_s4 + $0x270] sm:$0xff] %vm4438_vm2, %v5038_v13  ;;  %v3719_v37 = vpop.f32.mrb[77].mxu0 }
 0x5ba   :  { %4515 = vst.msk [vmem:[%s11076_s4 + $0x260] sm:$0xff] %vm4438_vm2, %v3719_v37  ;;  %v5039_v44 = vpop.f32.mrb[78].mxu0 }
 0x5bb   :  { %v5166_v8 = vpop.f32.mrb[76].mxu1  ;;  %4518 = vst.msk [vmem:[%s11076_s4 + $0x278] sm:$0xff] %vm4438_vm2, %v5039_v44  ;;  %v3722_v3 = vpop.f32.mrb[79].mxu0 }
 0x5bc   :  { %4645 = vst.msk [vmem:[%s11076_s4 + $0x670] sm:$0xff] %vm4438_vm2, %v5166_v8  ;;  %v4231_v23 = vpop.f32.mrb[77].mxu1  ;;  %4516 = vst.msk [vmem:[%s11076_s4 + $0x268] sm:$0xff] %vm4438_vm2, %v3722_v3 }
 0x5bd   :  { %4643 = vst.msk [vmem:[%s11076_s4 + $0x660] sm:$0xff] %vm4438_vm2, %v4231_v23  ;;  %v5167_v42 = vpop.f32.mrb[78].mxu1 }
 0x5be   :  { %4646 = vst.msk [vmem:[%s11076_s4 + $0x678] sm:$0xff] %vm4438_vm2, %v5167_v42  ;;  %v4234_v17 = vpop.f32.mrb[79].mxu1 }
 0x5bf   :  { %4644 = vst.msk [vmem:[%s11076_s4 + $0x668] sm:$0xff] %vm4438_vm2, %v4234_v17 }
 0x5c1   :  { %v5042_v50 = vpop.f32.mrb[80].mxu0 }
 0x5c2   :  { %4521 = vst.msk [vmem:[%s11076_s4 + $0x290] sm:$0xff] %vm4438_vm2, %v5042_v50  ;;  %v3735_v39 = vpop.f32.mrb[81].mxu0 }
 0x5c3   :  { %4519 = vst.msk [vmem:[%s11076_s4 + $0x280] sm:$0xff] %vm4438_vm2, %v3735_v39  ;;  %v5043_v1 = vpop.f32.mrb[82].mxu0 }
 0x5c4   :  { %v5170_v52 = vpop.f32.mrb[80].mxu1  ;;  %4522 = vst.msk [vmem:[%s11076_s4 + $0x298] sm:$0xff] %vm4438_vm2, %v5043_v1  ;;  %v3738_v14 = vpop.f32.mrb[83].mxu0 }
 0x5c5   :  { %4649 = vst.msk [vmem:[%s11076_s4 + $0x690] sm:$0xff] %vm4438_vm2, %v5170_v52  ;;  %v4247_v32 = vpop.f32.mrb[81].mxu1  ;;  %4520 = vst.msk [vmem:[%s11076_s4 + $0x288] sm:$0xff] %vm4438_vm2, %v3738_v14 }
 0x5c6   :  { %4647 = vst.msk [vmem:[%s11076_s4 + $0x680] sm:$0xff] %vm4438_vm2, %v4247_v32  ;;  %v5171_v29 = vpop.f32.mrb[82].mxu1 }
 0x5c7   :  { %4650 = vst.msk [vmem:[%s11076_s4 + $0x698] sm:$0xff] %vm4438_vm2, %v5171_v29  ;;  %v4250_v43 = vpop.f32.mrb[83].mxu1 }
 0x5c8   :  { %4648 = vst.msk [vmem:[%s11076_s4 + $0x688] sm:$0xff] %vm4438_vm2, %v4250_v43 }
 0x5ca   :  { %v5046_v56 = vpop.f32.mrb[84].mxu0 }
 0x5cb   :  { %4525 = vst.msk [vmem:[%s11076_s4 + $0x2b0] sm:$0xff] %vm4438_vm2, %v5046_v56  ;;  %v3751_v22 = vpop.f32.mrb[85].mxu0 }
 0x5cc   :  { %4523 = vst.msk [vmem:[%s11076_s4 + $0x2a0] sm:$0xff] %vm4438_vm2, %v3751_v22  ;;  %v5047_v10 = vpop.f32.mrb[86].mxu0 }
 0x5cd   :  { %v5174_v27 = vpop.f32.mrb[84].mxu1  ;;  %4526 = vst.msk [vmem:[%s11076_s4 + $0x2b8] sm:$0xff] %vm4438_vm2, %v5047_v10  ;;  %v3754_v4 = vpop.f32.mrb[87].mxu0 }
 0x5ce   :  { %4653 = vst.msk [vmem:[%s11076_s4 + $0x6b0] sm:$0xff] %vm4438_vm2, %v5174_v27  ;;  %v4263_v53 = vpop.f32.mrb[85].mxu1  ;;  %4524 = vst.msk [vmem:[%s11076_s4 + $0x2a8] sm:$0xff] %vm4438_vm2, %v3754_v4 }
 0x5cf   :  { %4651 = vst.msk [vmem:[%s11076_s4 + $0x6a0] sm:$0xff] %vm4438_vm2, %v4263_v53  ;;  %v5175_v49 = vpop.f32.mrb[86].mxu1 }
 0x5d0   :  { %4654 = vst.msk [vmem:[%s11076_s4 + $0x6b8] sm:$0xff] %vm4438_vm2, %v5175_v49  ;;  %v4266_v59 = vpop.f32.mrb[87].mxu1 }
 0x5d1   :  { %4652 = vst.msk [vmem:[%s11076_s4 + $0x6a8] sm:$0xff] %vm4438_vm2, %v4266_v59 }
 0x5d3   :  { %v5050_v36 = vpop.f32.mrb[88].mxu0 }
 0x5d4   :  { %4529 = vst.msk [vmem:[%s11076_s4 + $0x2d0] sm:$0xff] %vm4438_vm2, %v5050_v36  ;;  %v3767_v47 = vpop.f32.mrb[89].mxu0 }
 0x5d5   :  { %4527 = vst.msk [vmem:[%s11076_s4 + $0x2c0] sm:$0xff] %vm4438_vm2, %v3767_v47  ;;  %v5051_v16 = vpop.f32.mrb[90].mxu0 }
 0x5d6   :  { %v5178_v7 = vpop.f32.mrb[88].mxu1  ;;  %4530 = vst.msk [vmem:[%s11076_s4 + $0x2d8] sm:$0xff] %vm4438_vm2, %v5051_v16  ;;  %v3770_v25 = vpop.f32.mrb[91].mxu0 }
 0x5d7   :  { %4657 = vst.msk [vmem:[%s11076_s4 + $0x6d0] sm:$0xff] %vm4438_vm2, %v5178_v7  ;;  %v4279_v48 = vpop.f32.mrb[89].mxu1  ;;  %4528 = vst.msk [vmem:[%s11076_s4 + $0x2c8] sm:$0xff] %vm4438_vm2, %v3770_v25 }
 0x5d8   :  { %4655 = vst.msk [vmem:[%s11076_s4 + $0x6c0] sm:$0xff] %vm4438_vm2, %v4279_v48  ;;  %v5179_v15 = vpop.f32.mrb[90].mxu1 }
 0x5d9   :  { %4658 = vst.msk [vmem:[%s11076_s4 + $0x6d8] sm:$0xff] %vm4438_vm2, %v5179_v15  ;;  %v4282_v6 = vpop.f32.mrb[91].mxu1 }
 0x5da   :  { %4656 = vst.msk [vmem:[%s11076_s4 + $0x6c8] sm:$0xff] %vm4438_vm2, %v4282_v6 }
 0x5dc   :  { %v5054_v30 = vpop.f32.mrb[92].mxu0 }
 0x5dd   :  { %4533 = vst.msk [vmem:[%s11076_s4 + $0x2f0] sm:$0xff] %vm4438_vm2, %v5054_v30  ;;  %v3783_v0 = vpop.f32.mrb[93].mxu0 }
 0x5de   :  { %4531 = vst.msk [vmem:[%s11076_s4 + $0x2e0] sm:$0xff] %vm4438_vm2, %v3783_v0  ;;  %v5055_v19 = vpop.f32.mrb[94].mxu0 }
 0x5df   :  { %v5182_v60 = vpop.f32.mrb[92].mxu1  ;;  %4534 = vst.msk [vmem:[%s11076_s4 + $0x2f8] sm:$0xff] %vm4438_vm2, %v5055_v19  ;;  %v3786_v11 = vpop.f32.mrb[95].mxu0 }
 0x5e0   :  { %4661 = vst.msk [vmem:[%s11076_s4 + $0x6f0] sm:$0xff] %vm4438_vm2, %v5182_v60  ;;  %v4295_v26 = vpop.f32.mrb[93].mxu1  ;;  %4532 = vst.msk [vmem:[%s11076_s4 + $0x2e8] sm:$0xff] %vm4438_vm2, %v3786_v11 }
 0x5e1   :  { %4659 = vst.msk [vmem:[%s11076_s4 + $0x6e0] sm:$0xff] %vm4438_vm2, %v4295_v26  ;;  %v5183_v21 = vpop.f32.mrb[94].mxu1 }
 0x5e2   :  { %4662 = vst.msk [vmem:[%s11076_s4 + $0x6f8] sm:$0xff] %vm4438_vm2, %v5183_v21  ;;  %v4298_v55 = vpop.f32.mrb[95].mxu1 }
 0x5e3   :  { %4660 = vst.msk [vmem:[%s11076_s4 + $0x6e8] sm:$0xff] %vm4438_vm2, %v4298_v55 }
 0x5e5   :  { %v5058_v35 = vpop.f32.mrb[96].mxu0 }
 0x5e6   :  { %4537 = vst.msk [vmem:[%s11076_s4 + $0x310] sm:$0xff] %vm4438_vm2, %v5058_v35  ;;  %v3799_v63 = vpop.f32.mrb[97].mxu0 }
 0x5e7   :  { %4535 = vst.msk [vmem:[%s11076_s4 + $0x300] sm:$0xff] %vm4438_vm2, %v3799_v63  ;;  %v5059_v58 = vpop.f32.mrb[98].mxu0 }
 0x5e8   :  { %v5186_v2 = vpop.f32.mrb[96].mxu1  ;;  %4538 = vst.msk [vmem:[%s11076_s4 + $0x318] sm:$0xff] %vm4438_vm2, %v5059_v58  ;;  %v3802_v46 = vpop.f32.mrb[99].mxu0 }
 0x5e9   :  { %4665 = vst.msk [vmem:[%s11076_s4 + $0x710] sm:$0xff] %vm4438_vm2, %v5186_v2  ;;  %v4311_v45 = vpop.f32.mrb[97].mxu1  ;;  %4536 = vst.msk [vmem:[%s11076_s4 + $0x308] sm:$0xff] %vm4438_vm2, %v3802_v46 }
 0x5ea   :  { %4663 = vst.msk [vmem:[%s11076_s4 + $0x700] sm:$0xff] %vm4438_vm2, %v4311_v45  ;;  %v5187_v31 = vpop.f32.mrb[98].mxu1 }
 0x5eb   :  { %4666 = vst.msk [vmem:[%s11076_s4 + $0x718] sm:$0xff] %vm4438_vm2, %v5187_v31  ;;  %v4314_v33 = vpop.f32.mrb[99].mxu1 }
 0x5ec   :  { %4664 = vst.msk [vmem:[%s11076_s4 + $0x708] sm:$0xff] %vm4438_vm2, %v4314_v33 }
 0x5ee   :  { %v5062_v9 = vpop.f32.mrb[100].mxu0 }
 0x5ef   :  { %4541 = vst.msk [vmem:[%s11076_s4 + $0x330] sm:$0xff] %vm4438_vm2, %v5062_v9  ;;  %v3815_v38 = vpop.f32.mrb[101].mxu0 }
 0x5f0   :  { %4539 = vst.msk [vmem:[%s11076_s4 + $0x320] sm:$0xff] %vm4438_vm2, %v3815_v38  ;;  %v5063_v40 = vpop.f32.mrb[102].mxu0 }
 0x5f1   :  { %v5190_v57 = vpop.f32.mrb[100].mxu1  ;;  %4542 = vst.msk [vmem:[%s11076_s4 + $0x338] sm:$0xff] %vm4438_vm2, %v5063_v40  ;;  %v3818_v34 = vpop.f32.mrb[103].mxu0 }
 0x5f2   :  { %4669 = vst.msk [vmem:[%s11076_s4 + $0x730] sm:$0xff] %vm4438_vm2, %v5190_v57  ;;  %v4327_v54 = vpop.f32.mrb[101].mxu1  ;;  %4540 = vst.msk [vmem:[%s11076_s4 + $0x328] sm:$0xff] %vm4438_vm2, %v3818_v34 }
 0x5f3   :  { %4667 = vst.msk [vmem:[%s11076_s4 + $0x720] sm:$0xff] %vm4438_vm2, %v4327_v54  ;;  %v5191_v24 = vpop.f32.mrb[102].mxu1 }
 0x5f4   :  { %4670 = vst.msk [vmem:[%s11076_s4 + $0x738] sm:$0xff] %vm4438_vm2, %v5191_v24  ;;  %v4330_v28 = vpop.f32.mrb[103].mxu1 }
 0x5f5   :  { %4668 = vst.msk [vmem:[%s11076_s4 + $0x728] sm:$0xff] %vm4438_vm2, %v4330_v28 }
 0x5f7   :  { %v5066_v62 = vpop.f32.mrb[104].mxu0 }
 0x5f8   :  { %4545 = vst.msk [vmem:[%s11076_s4 + $0x350] sm:$0xff] %vm4438_vm2, %v5066_v62  ;;  %v3831_v20 = vpop.f32.mrb[105].mxu0 }
 0x5f9   :  { %4543 = vst.msk [vmem:[%s11076_s4 + $0x340] sm:$0xff] %vm4438_vm2, %v3831_v20  ;;  %v5067_v51 = vpop.f32.mrb[106].mxu0 }
 0x5fa   :  { %v5194_v5 = vpop.f32.mrb[104].mxu1  ;;  %4546 = vst.msk [vmem:[%s11076_s4 + $0x358] sm:$0xff] %vm4438_vm2, %v5067_v51  ;;  %v3834_v41 = vpop.f32.mrb[107].mxu0 }
 0x5fb   :  { %4673 = vst.msk [vmem:[%s11076_s4 + $0x750] sm:$0xff] %vm4438_vm2, %v5194_v5  ;;  %v4343_v61 = vpop.f32.mrb[105].mxu1  ;;  %4544 = vst.msk [vmem:[%s11076_s4 + $0x348] sm:$0xff] %vm4438_vm2, %v3834_v41 }
 0x5fc   :  { %4671 = vst.msk [vmem:[%s11076_s4 + $0x740] sm:$0xff] %vm4438_vm2, %v4343_v61  ;;  %v5195_v18 = vpop.f32.mrb[106].mxu1 }
 0x5fd   :  { %4674 = vst.msk [vmem:[%s11076_s4 + $0x758] sm:$0xff] %vm4438_vm2, %v5195_v18  ;;  %v4346_v12 = vpop.f32.mrb[107].mxu1 }
 0x5fe   :  { %4672 = vst.msk [vmem:[%s11076_s4 + $0x748] sm:$0xff] %vm4438_vm2, %v4346_v12 }
 0x600   :  { %v5070_v13 = vpop.f32.mrb[108].mxu0 }
 0x601   :  { %4549 = vst.msk [vmem:[%s11076_s4 + $0x370] sm:$0xff] %vm4438_vm2, %v5070_v13  ;;  %v3847_v37 = vpop.f32.mrb[109].mxu0 }
 0x602   :  { %4547 = vst.msk [vmem:[%s11076_s4 + $0x360] sm:$0xff] %vm4438_vm2, %v3847_v37  ;;  %v5071_v44 = vpop.f32.mrb[110].mxu0 }
 0x603   :  { %v5198_v8 = vpop.f32.mrb[108].mxu1  ;;  %4550 = vst.msk [vmem:[%s11076_s4 + $0x378] sm:$0xff] %vm4438_vm2, %v5071_v44  ;;  %v3850_v3 = vpop.f32.mrb[111].mxu0 }
 0x604   :  { %4677 = vst.msk [vmem:[%s11076_s4 + $0x770] sm:$0xff] %vm4438_vm2, %v5198_v8  ;;  %v4359_v23 = vpop.f32.mrb[109].mxu1  ;;  %4548 = vst.msk [vmem:[%s11076_s4 + $0x368] sm:$0xff] %vm4438_vm2, %v3850_v3 }
 0x605   :  { %4675 = vst.msk [vmem:[%s11076_s4 + $0x760] sm:$0xff] %vm4438_vm2, %v4359_v23  ;;  %v5199_v42 = vpop.f32.mrb[110].mxu1 }
 0x606   :  { %4678 = vst.msk [vmem:[%s11076_s4 + $0x778] sm:$0xff] %vm4438_vm2, %v5199_v42  ;;  %v4362_v17 = vpop.f32.mrb[111].mxu1 }
 0x607   :  { %4676 = vst.msk [vmem:[%s11076_s4 + $0x768] sm:$0xff] %vm4438_vm2, %v4362_v17 }
 0x60a   :  { %v5074_v50 = vpop.f32.mrb[112].mxu0 }
 0x60b   :  { %4553 = vst.msk [vmem:[%s11076_s4 + $0x390] sm:$0xff] %vm4438_vm2, %v5074_v50  ;;  %v3863_v39 = vpop.f32.mrb[113].mxu0 }
 0x60c   :  { %4551 = vst.msk [vmem:[%s11076_s4 + $0x380] sm:$0xff] %vm4438_vm2, %v3863_v39  ;;  %v5075_v52 = vpop.f32.mrb[114].mxu0 }
 0x60d   :  { %v5202_v1 = vpop.f32.mrb[112].mxu1  ;;  %4554 = vst.msk [vmem:[%s11076_s4 + $0x398] sm:$0xff] %vm4438_vm2, %v5075_v52  ;;  %v3866_v32 = vpop.f32.mrb[115].mxu0 }
 0x60e   :  { %4681 = vst.msk [vmem:[%s11076_s4 + $0x790] sm:$0xff] %vm4438_vm2, %v5202_v1  ;;  %v4375_v14 = vpop.f32.mrb[113].mxu1  ;;  %4552 = vst.msk [vmem:[%s11076_s4 + $0x388] sm:$0xff] %vm4438_vm2, %v3866_v32 }
 0x60f   :  { %4679 = vst.msk [vmem:[%s11076_s4 + $0x780] sm:$0xff] %vm4438_vm2, %v4375_v14  ;;  %v5203_v29 = vpop.f32.mrb[114].mxu1 }
 0x610   :  { %4682 = vst.msk [vmem:[%s11076_s4 + $0x798] sm:$0xff] %vm4438_vm2, %v5203_v29  ;;  %v4378_v43 = vpop.f32.mrb[115].mxu1 }
 0x611   :  { %4680 = vst.msk [vmem:[%s11076_s4 + $0x788] sm:$0xff] %vm4438_vm2, %v4378_v43 }
 0x613   :  { %v5078_v56 = vpop.f32.mrb[116].mxu0 }
 0x614   :  { %4557 = vst.msk [vmem:[%s11076_s4 + $0x3b0] sm:$0xff] %vm4438_vm2, %v5078_v56  ;;  %v3879_v22 = vpop.f32.mrb[117].mxu0 }
 0x615   :  { %4555 = vst.msk [vmem:[%s11076_s4 + $0x3a0] sm:$0xff] %vm4438_vm2, %v3879_v22  ;;  %v5079_v27 = vpop.f32.mrb[118].mxu0 }
 0x616   :  { %v5206_v10 = vpop.f32.mrb[116].mxu1  ;;  %4558 = vst.msk [vmem:[%s11076_s4 + $0x3b8] sm:$0xff] %vm4438_vm2, %v5079_v27  ;;  %v3882_v53 = vpop.f32.mrb[119].mxu0 }
 0x617   :  { %4685 = vst.msk [vmem:[%s11076_s4 + $0x7b0] sm:$0xff] %vm4438_vm2, %v5206_v10  ;;  %v4391_v4 = vpop.f32.mrb[117].mxu1  ;;  %4556 = vst.msk [vmem:[%s11076_s4 + $0x3a8] sm:$0xff] %vm4438_vm2, %v3882_v53 }
 0x618   :  { %4683 = vst.msk [vmem:[%s11076_s4 + $0x7a0] sm:$0xff] %vm4438_vm2, %v4391_v4  ;;  %v5207_v49 = vpop.f32.mrb[118].mxu1 }
 0x619   :  { %4686 = vst.msk [vmem:[%s11076_s4 + $0x7b8] sm:$0xff] %vm4438_vm2, %v5207_v49  ;;  %v4394_v59 = vpop.f32.mrb[119].mxu1 }
 0x61a   :  { %4684 = vst.msk [vmem:[%s11076_s4 + $0x7a8] sm:$0xff] %vm4438_vm2, %v4394_v59 }
 0x61c   :  { %v5082_v36 = vpop.f32.mrb[120].mxu0 }
 0x61d   :  { %4561 = vst.msk [vmem:[%s11076_s4 + $0x3d0] sm:$0xff] %vm4438_vm2, %v5082_v36  ;;  %v3895_v47 = vpop.f32.mrb[121].mxu0 }
 0x61e   :  { %4559 = vst.msk [vmem:[%s11076_s4 + $0x3c0] sm:$0xff] %vm4438_vm2, %v3895_v47  ;;  %v5083_v7 = vpop.f32.mrb[122].mxu0 }
 0x61f   :  { %v5210_v16 = vpop.f32.mrb[120].mxu1  ;;  %4562 = vst.msk [vmem:[%s11076_s4 + $0x3d8] sm:$0xff] %vm4438_vm2, %v5083_v7  ;;  %v3898_v48 = vpop.f32.mrb[123].mxu0 }
 0x620   :  { %4689 = vst.msk [vmem:[%s11076_s4 + $0x7d0] sm:$0xff] %vm4438_vm2, %v5210_v16  ;;  %v4407_v25 = vpop.f32.mrb[121].mxu1  ;;  %4560 = vst.msk [vmem:[%s11076_s4 + $0x3c8] sm:$0xff] %vm4438_vm2, %v3898_v48 }
 0x621   :  { %4687 = vst.msk [vmem:[%s11076_s4 + $0x7c0] sm:$0xff] %vm4438_vm2, %v4407_v25  ;;  %v5211_v15 = vpop.f32.mrb[122].mxu1 }
 0x622   :  { %4690 = vst.msk [vmem:[%s11076_s4 + $0x7d8] sm:$0xff] %vm4438_vm2, %v5211_v15  ;;  %v4410_v6 = vpop.f32.mrb[123].mxu1 }
 0x623   :  { %4688 = vst.msk [vmem:[%s11076_s4 + $0x7c8] sm:$0xff] %vm4438_vm2, %v4410_v6 }
 0x625   :  { %v5086_v30 = vpop.f32.mrb[124].mxu0 }
 0x626   :  { %4565 = vst.msk [vmem:[%s11076_s4 + $0x3f0] sm:$0xff] %vm4438_vm2, %v5086_v30  ;;  %v3911_v0 = vpop.f32.mrb[125].mxu0 }
 0x627   :  { %4563 = vst.msk [vmem:[%s11076_s4 + $0x3e0] sm:$0xff] %vm4438_vm2, %v3911_v0  ;;  %v5087_v60 = vpop.f32.mrb[126].mxu0 }
 0x628   :  { %v5214_v19 = vpop.f32.mrb[124].mxu1  ;;  %4566 = vst.msk [vmem:[%s11076_s4 + $0x3f8] sm:$0xff] %vm4438_vm2, %v5087_v60  ;;  %v3914_v26 = vpop.f32.mrb[127].mxu0 }
 0x629   :  { %4693 = vst.msk [vmem:[%s11076_s4 + $0x7f0] sm:$0xff] %vm4438_vm2, %v5214_v19  ;;  %v4423_v11 = vpop.f32.mrb[125].mxu1  ;;  %4564 = vst.msk [vmem:[%s11076_s4 + $0x3e8] sm:$0xff] %vm4438_vm2, %v3914_v26 }
 0x62a   :  { %4691 = vst.msk [vmem:[%s11076_s4 + $0x7e0] sm:$0xff] %vm4438_vm2, %v4423_v11  ;;  %v5215_v21 = vpop.f32.mrb[126].mxu1 }
 0x62b   :  { %4694 = vst.msk [vmem:[%s11076_s4 + $0x7f8] sm:$0xff] %vm4438_vm2, %v5215_v21  ;;  %v4426_v55 = vpop.f32.mrb[127].mxu1 }
 0x62c   :  { %4692 = vst.msk [vmem:[%s11076_s4 + $0x7e8] sm:$0xff] %vm4438_vm2, %v4426_v55 }

// kernel: generator_forward.11
= control target key start
LH: loop header
LB: loop body
LE: loop exit
PB: predicated region body
PF: predicated region fallthrough
CT: control target
= control target key end

     0   :  { %s110_s0 = inlined_call_operand.vmem [shape: f32[64,128], index: 0, kind: input, shape index: {}]   ;;  %s111_s1 = inlined_call_operand.vmem [shape: f32[64,128], index: 1, kind: output, shape index: {}]  }
   0x1   :  { %v8_v0 = vld [vmem:[%s110_s0] sm:$0xff]  ;;  %v9_v1 = vld [vmem:[%s110_s0 + $0x8] sm:$0xff]  ;;  %v10_v2 = vld [vmem:[%s110_s0 + $0x10] sm:$0xff] }
   0x2   :  { %36 = vtanh.f32 %v8_v0  ;;  %v11_v3 = vld [vmem:[%s110_s0 + $0x18] sm:$0xff]  ;;  %v12_v4 = vld [vmem:[%s110_s0 + $0x20] sm:$0xff]  ;;  %v13_v5 = vld [vmem:[%s110_s0 + $0x28] sm:$0xff] }
   0x3   :  { %38 = vtanh.f32 %v9_v1  ;;  %v14_v6 = vld [vmem:[%s110_s0 + $0x30] sm:$0xff]  ;;  %v15_v7 = vld [vmem:[%s110_s0 + $0x38] sm:$0xff] }
   0x4   :  { %40 = vtanh.f32 %v10_v2 }
   0x5   :  { %42 = vtanh.f32 %v11_v3 }
   0x6   :  { %44 = vtanh.f32 %v12_v4 }
   0x7   :  { %46 = vtanh.f32 %v13_v5 }
   0x8   :  { %48 = vtanh.f32 %v14_v6 }
   0x9   :  { %50 = vtanh.f32 %v15_v7 }
   0xc   :  { %v37_v8 = vpop.eup %36 }
   0xd   :  { %v39_v9 = vpop.eup %38  ;;  %24 = vst [vmem:[%s111_s1] sm:$0xff] %v37_v8 }
   0xe   :  { %v41_v10 = vpop.eup %40  ;;  %25 = vst [vmem:[%s111_s1 + $0x8] sm:$0xff] %v39_v9 }
   0xf   :  { %v43_v11 = vpop.eup %42  ;;  %26 = vst [vmem:[%s111_s1 + $0x10] sm:$0xff] %v41_v10 }
  0x10   :  { %v45_v12 = vpop.eup %44  ;;  %27 = vst [vmem:[%s111_s1 + $0x18] sm:$0xff] %v43_v11 }
  0x11   :  { %v47_v13 = vpop.eup %46  ;;  %28 = vst [vmem:[%s111_s1 + $0x20] sm:$0xff] %v45_v12 }
  0x12   :  { %v49_v14 = vpop.eup %48  ;;  %29 = vst [vmem:[%s111_s1 + $0x28] sm:$0xff] %v47_v13 }
  0x13   :  { %v51_v15 = vpop.eup %50  ;;  %30 = vst [vmem:[%s111_s1 + $0x30] sm:$0xff] %v49_v14 }
  0x14   :  { %31 = vst [vmem:[%s111_s1 + $0x38] sm:$0xff] %v51_v15 }

</bundles_post_ra>
